<compile_context>
chip_gen: v7x
topology: tpu7x:2x2x1
jax: 0.10.0
libtpu: 0.0.40
codegen_flags: <defaults>
</compile_context>

<pallas_src>
import jax
import jax.numpy as jnp
import numpy as np
from jax.experimental import pallas as pl
from jax.experimental.pallas import tpu as pltpu


def _block_fused_kernel(x_ref, w1_ref, t1_ref, w2_ref, t2_ref, out_ref,
                        xpad_ref, midpad_ref, acc1_ref, acc2_ref):
    # x_ref:    (1, H, W, Cin)    full input image (resident across row-tile axis)
    # w1_ref:   (9, Cin, Cmid)    conv1 taps (scale pre-folded into weights)
    # t1_ref:   (1, Cmid)         conv1 per-channel shift (bias [+ folded eval BN])
    # w2_ref:   (9, Cmid, Cout)   conv2 taps
    # t2_ref:   (1, Cout)
    # out_ref:  (1, th, W, Cout)  output row tile
    # scratch:  xpad   (th+4, W+2, Cin)   zero-haloed input rows for this tile
    #           midpad (th+2, W+2, Cmid)  zero-haloed mid activation (stays in VMEM)
    #           acc1   ((th+2)*W, Cmid)   f32 accumulator, conv1
    #           acc2   (th*W,     Cout)   f32 accumulator, conv2
    th = out_ref.shape[1]
    W = out_ref.shape[2]
    cin = x_ref.shape[-1]
    cmid = w1_ref.shape[-1]
    cout = out_ref.shape[-1]
    cdt = xpad_ref.dtype
    r = pl.program_id(1)
    n_row = pl.num_programs(1)
    row0 = r * th                       # first output row of this tile

    # ---- build (th+4, W+2, Cin) zero-haloed input tile in VMEM ---------------
    # Only the 1-pixel border is zeroed; the interior is always overwritten.
    xpad_ref[:, 0:1, :] = jnp.zeros((th + 4, 1, cin), cdt)
    xpad_ref[:, W + 1:W + 2, :] = jnp.zeros((th + 4, 1, cin), cdt)
    # rows local 2..th+1  <->  input rows row0..row0+th-1 (always in bounds)
    xpad_ref[2:th + 2, 1:W + 1, :] = x_ref[0, pl.ds(row0, th), :, :].astype(cdt)

    @pl.when(r > 0)                      # top halo: input rows row0-2, row0-1
    def _():
        xpad_ref[0:2, 1:W + 1, :] = x_ref[0, pl.ds(row0 - 2, 2), :, :].astype(cdt)

    @pl.when(r == 0)
    def _():
        xpad_ref[0:2, :, :] = jnp.zeros((2, W + 2, cin), cdt)

    @pl.when(r < n_row - 1)              # bottom halo: input rows row0+th, row0+th+1
    def _():
        xpad_ref[th + 2:th + 4, 1:W + 1, :] = (
            x_ref[0, pl.ds(row0 + th, 2), :, :].astype(cdt))

    @pl.when(r == n_row - 1)
    def _():
        xpad_ref[th + 2:th + 4, :, :] = jnp.zeros((2, W + 2, cin), cdt)

    # ---- conv1: 9 shifted-window MXU matmuls accumulated in f32 (no im2col) --
    # mid rows j = 0..th+1 (global r*th-1+j) -> M = (th+2)*W
    for dy in range(3):
        for dx in range(3):
            contrib = jnp.dot(
                xpad_ref[dy:dy + th + 2, dx:dx + W, :].reshape((th + 2) * W, cin),
                w1_ref[dy * 3 + dx],
                preferred_element_type=jnp.float32)
            if dy == 0 and dx == 0:
                acc1_ref[...] = contrib
            else:
                acc1_ref[...] += contrib
    y1 = jnp.maximum(acc1_ref[...] + t1_ref[...], 0.0)      # shift + ReLU (f32)

    # ---- mid activation never touches HBM: zero-haloed VMEM tile -------------
    midpad_ref[:, 0:1, :] = jnp.zeros((th + 2, 1, cmid), cdt)
    midpad_ref[:, W + 1:W + 2, :] = jnp.zeros((th + 2, 1, cmid), cdt)
    midpad_ref[:, 1:W + 1, :] = y1.reshape(th + 2, W, cmid).astype(cdt)

    @pl.when(r == 0)                     # conv2 SAME-padding rows at image edges
    def _():
        midpad_ref[0:1, :, :] = jnp.zeros((1, W + 2, cmid), cdt)

    @pl.when(r == n_row - 1)
    def _():
        midpad_ref[th + 1:th + 2, :, :] = jnp.zeros((1, W + 2, cmid), cdt)

    # ---- conv2: 9 shifted-window MXU matmuls, M = th*W -----------------------
    for dy in range(3):
        for dx in range(3):
            contrib = jnp.dot(
                midpad_ref[dy:dy + th, dx:dx + W, :].reshape(th * W, cmid),
                w2_ref[dy * 3 + dx],
                preferred_element_type=jnp.float32)
            if dy == 0 and dx == 0:
                acc2_ref[...] = contrib
            else:
                acc2_ref[...] += contrib
    y2 = jnp.maximum(acc2_ref[...] + t2_ref[...], 0.0)
    out_ref[...] = y2.reshape(1, th, W, cout).astype(out_ref.dtype)


# --------------------------------- wrapper -----------------------------------

def _choose_row_tile(H, W, target_m=2048):
    """Largest divisor of H (>=2 when tiling) with th*W <= target_m matmul rows."""
    divisors = [d for d in range(1, H + 1) if H % d == 0]
    cand = [d for d in divisors if d >= 2] or [H]
    fits = [d for d in cand if d * W <= target_m]
    return max(fits) if fits else min(cand)


def _vmem_tile_bytes(shape, dtype):
    """VMEM footprint after (sublane, 128-lane) padding of the trailing two dims."""
    itemsize = np.dtype(dtype).itemsize
    sublane = {4: 8, 2: 16, 1: 32}.get(itemsize, 8)
    shape = tuple(shape)
    if len(shape) < 2:
        shape = (1,) * (2 - len(shape)) + shape
    lead = int(np.prod(shape[:-2])) if len(shape) > 2 else 1
    rows = -(-shape[-2] // sublane) * sublane
    lanes = -(-shape[-1] // 128) * 128
    return lead * rows * lanes * itemsize


def _fold_affine(bias, bn, use_bn, eps=1e-5):
    """Per-output-channel (scale, shift), each shaped (1, C), f32."""
    if use_bn:
        # TODO(synk): training-mode BatchNorm (batch statistics) not implemented;
        # BN is folded in eval mode (running stats), matching BatchNorm2d.eval().
        s = bn["gamma"] / jnp.sqrt(bn["var"] + eps)
        scale = s
        shift = (bias - bn["mean"]) * s + bn["beta"]
    else:
        scale, shift = jnp.ones_like(bias), bias
    return scale[None, :].astype(jnp.float32), shift[None, :].astype(jnp.float32)


def _oihw_to_taps(w_oihw):
    # (Cout, Cin, 3, 3) -> (3, 3, Cin, Cout) -> (9, Cin, Cout); tap t = 3*dy + dx.
    cout, cin = w_oihw.shape[0], w_oihw.shape[1]
    return jnp.transpose(w_oihw, (2, 3, 1, 0)).reshape(9, cin, cout)


def block_apply_nhwc(x_nhwc, params, *, batch_norm=False, row_tile=None,
                     compute_dtype=jnp.float32):
    """Fused Block forward on NHWC input: conv-[BN]-ReLU-conv-[BN]-ReLU."""
    B, H, W, Cin = x_nhwc.shape
    th = _choose_row_tile(H, W) if row_tile is None else int(row_tile)
    if H % th != 0:
        raise ValueError(f"H={H} must be divisible by row_tile={th}")
    n_row = H // th
    if n_row > 1 and th < 2:
        raise ValueError("row_tile must be >= 2 when the image is row-tiled")

    # Fold conv bias (+ eval-mode BN) into per-channel scale/shift, then fold
    # the scale into the weights (conv is linear) -> kernel epilogue = shift+ReLU.
    s1, t1 = _fold_affine(params["b1"], params.get("bn1"), batch_norm)
    s2, t2 = _fold_affine(params["b2"], params.get("bn2"), batch_norm)
    w1 = (_oihw_to_taps(params["w1"]) * s1[0][None, None, :]).astype(compute_dtype)
    w2 = (_oihw_to_taps(params["w2"]) * s2[0][None, None, :]).astype(compute_dtype)
    Cmid, Cout = w1.shape[-1], w2.shape[-1]

    # VMEM budget (padded to hardware tiles); pipeline operands double-buffered.
    need = (
        2 * _vmem_tile_bytes((1, H, W, Cin), compute_dtype)
        + 2 * _vmem_tile_bytes((1, th, W, Cout), x_nhwc.dtype)
        + 2 * (_vmem_tile_bytes((9, Cin, Cmid), compute_dtype)
               + _vmem_tile_bytes((9, Cmid, Cout), compute_dtype))
        + 2 * (_vmem_tile_bytes((1, Cmid), jnp.float32)
               + _vmem_tile_bytes((1, Cout), jnp.float32))
        + _vmem_tile_bytes((th + 4, W + 2, Cin), compute_dtype)
        + _vmem_tile_bytes((th + 2, W + 2, Cmid), compute_dtype)
        + _vmem_tile_bytes(((th + 2) * W, Cmid), jnp.float32)
        + _vmem_tile_bytes((th * W, Cout), jnp.float32))
    # generous margin; floor at the old scoped default, cap below v7x's 64 MiB.
    vmem_limit = int(min(max(2 * need, 32 << 20), 56 << 20))

    return pl.pallas_call(
        _block_fused_kernel,
        out_shape=jax.ShapeDtypeStruct((B, H, W, Cout), x_nhwc.dtype),
        grid_spec=pltpu.PrefetchScalarGridSpec(
            num_scalar_prefetch=0,
            grid=(B, n_row),
            in_specs=[
                # full image per batch element, resident across the row-tile axis
                pl.BlockSpec((1, H, W, Cin), lambda b, r: (b, 0, 0, 0)),
                pl.BlockSpec((9, Cin, Cmid), lambda b, r: (0, 0, 0)),
                pl.BlockSpec((1, Cmid), lambda b, r: (0, 0)),
                pl.BlockSpec((9, Cmid, Cout), lambda b, r: (0, 0, 0)),
                pl.BlockSpec((1, Cout), lambda b, r: (0, 0)),
            ],
            out_specs=pl.BlockSpec((1, th, W, Cout), lambda b, r: (b, r, 0, 0)),
            scratch_shapes=[
                pltpu.VMEM((th + 4, W + 2, Cin), compute_dtype),
                pltpu.VMEM((th + 2, W + 2, Cmid), compute_dtype),
                pltpu.VMEM(((th + 2) * W, Cmid), jnp.float32),
                pltpu.VMEM((th * W, Cout), jnp.float32),
            ]),
        compiler_params=pltpu.CompilerParams(
            dimension_semantics=("parallel", "parallel"),
            vmem_limit_bytes=vmem_limit),
    )(x_nhwc.astype(compute_dtype), w1, t1, w2, t2)


def block_forward(x_nchw, params, *, batch_norm=False, row_tile=None,
                  compute_dtype=jnp.float32):
    """PyTorch-interface Block.forward (NCHW in/out).

    In a full UNet keep activations NHWC and call block_apply_nhwc directly;
    these transposes exist only to match the NCHW spec at the boundary.
    """
    x = jnp.transpose(x_nchw, (0, 2, 3, 1))  # NCHW -> NHWC
    y = block_apply_nhwc(x, params, batch_norm=batch_norm, row_tile=row_tile,
                         compute_dtype=compute_dtype)
    return jnp.transpose(y, (0, 3, 1, 2))    # NHWC -> NCHW


# ----------------------------- parameter helpers -----------------------------

def init_block_params(key, in_channels, mid_channel, out_channels):
    """Deterministic init; same shapes as torch.nn.Conv2d (OIHW) + bias + BN."""
    keys = jax.random.split(key, 12)

    def conv_init(kw, kb, cout, cin):
        fan_in = cin * 9
        bound = 1.0 / np.sqrt(fan_in)
        w = jax.random.uniform(kw, (cout, cin, 3, 3), jnp.float32, -bound, bound)
        b = jax.random.uniform(kb, (cout,), jnp.float32, -bound, bound)
        return w, b

    def bn_init(kg, kb, km, kv, c):
        return dict(
            gamma=jax.random.uniform(kg, (c,), jnp.float32, 0.5, 1.5),
            beta=jax.random.uniform(kb, (c,), jnp.float32, -0.5, 0.5),
            mean=jax.random.uniform(km, (c,), jnp.float32, -0.5, 0.5),
            var=jax.random.uniform(kv, (c,), jnp.float32, 0.5, 1.5))

    w1, b1 = conv_init(keys[0], keys[1], mid_channel, in_channels)
    w2, b2 = conv_init(keys[2], keys[3], out_channels, mid_channel)
    bn1 = bn_init(keys[4], keys[5], keys[6], keys[7], mid_channel)
    bn2 = bn_init(keys[8], keys[9], keys[10], keys[11], out_channels)
    return dict(w1=w1, b1=b1, w2=w2, b2=b2, bn1=bn1, bn2=bn2)


# ----------------------------- reference (plain JAX) --------------------------

def block_forward_ref(x_nchw, params, batch_norm=False, eps=1e-5):
    dn = ("NCHW", "OIHW", "NCHW")

    def bn_eval(y, bn):
        s = (bn["gamma"] / jnp.sqrt(bn["var"] + eps))[None, :, None, None]
        return (y - bn["mean"][None, :, None, None]) * s + bn["beta"][None, :, None, None]

    y = jax.lax.conv_general_dilated(x_nchw, params["w1"], (1, 1), "SAME",
                                     dimension_numbers=dn)
    y = y + params["b1"][None, :, None, None]
    if batch_norm:
        y = bn_eval(y, params["bn1"])
    y = jnp.maximum(y, 0.0)
    y = jax.lax.conv_general_dilated(y, params["w2"], (1, 1), "SAME",
                                     dimension_numbers=dn)
    y = y + params["b2"][None, :, None, None]
    if batch_norm:
        y = bn_eval(y, params["bn2"])
    return jnp.maximum(y, 0.0)


if __name__ == "__main__":
    key = jax.random.PRNGKey(0)
    kx, kp = jax.random.split(key)

    B, Cin, Cmid, Cout, H, W = 2, 4, 8, 4, 16, 16
    x = jax.random.normal(kx, (B, Cin, H, W), jnp.float32)  # NCHW like PyTorch
    params = init_block_params(kp, Cin, Cmid, Cout)

    ref = jax.block_until_ready(block_forward_ref(x, params, batch_norm=False))
    ref_bn = jax.block_until_ready(block_forward_ref(x, params, batch_norm=True))

    # 1) no-BN path, default (single) row tile
    out = jax.block_until_ready(block_forward(x, params, batch_norm=False))
    np.testing.assert_allclose(np.asarray(out), np.asarray(ref), atol=1e-4, rtol=1e-4)

    # 2) eval-mode BatchNorm folded into weights + shift
    out_bn = jax.block_until_ready(block_forward(x, params, batch_norm=True))
    np.testing.assert_allclose(np.asarray(out_bn), np.asarray(ref_bn), atol=1e-4, rtol=1e-4)

    # 3) explicit row tiling (2 row tiles; 1-row mid halo recomputed at the seam)
    out_rt = jax.block_until_ready(block_forward(x, params, batch_norm=False, row_tile=8))
    np.testing.assert_allclose(np.asarray(out_rt), np.asarray(ref), atol=1e-4, rtol=1e-4)

    # 4) bf16 data movement / MXU feed (v6e/v7x path); accumulation stays f32
    out_bf16 = jax.block_until_ready(
        block_forward(x, params, batch_norm=True, row_tile=8,
                      compute_dtype=jnp.bfloat16))
    np.testing.assert_allclose(np.asarray(out_bf16), np.asarray(ref_bn),
                               atol=1e-1, rtol=5e-2)

    print("KERNEL_OK")
</pallas_src>

<mosaic_0001>
module attributes {stable_mosaic.version = 11 : i64} {
  func.func @_block_fused_kernel(%arg0: i32, %arg1: i32, %arg2: memref<1x16x16x4xf32, #tpu.memory_space<vmem>>, %arg3: memref<9x4x8xf32, #tpu.memory_space<vmem>>, %arg4: memref<1x8xf32, #tpu.memory_space<vmem>>, %arg5: memref<9x8x4xf32, #tpu.memory_space<vmem>>, %arg6: memref<1x4xf32, #tpu.memory_space<vmem>>, %arg7: memref<1x16x16x4xf32, #tpu.memory_space<vmem>>, %arg8: memref<20x18x4xf32, #tpu.memory_space<vmem>>, %arg9: memref<18x18x8xf32, #tpu.memory_space<vmem>>, %arg10: memref<288x8xf32, #tpu.memory_space<vmem>>, %arg11: memref<256x4xf32, #tpu.memory_space<vmem>>) attributes {dimension_semantics = [#tpu.dimension_semantics<parallel>, #tpu.dimension_semantics<parallel>], iteration_bounds = array<i64: 2, 1>, scalar_prefetch = 0 : i64, scratch_operands = 4 : i64, tpu.core_type = #tpu.core_type<tc>, window_params = [{transform_indices = @transform_0, window_bounds = array<i64: 1, 16, 16, 4>}, {pipeline_mode = #tpu.pipeline_mode<synchronous>, transform_indices = @transform_1, window_bounds = array<i64: 9, 4, 8>}, {pipeline_mode = #tpu.pipeline_mode<synchronous>, transform_indices = @transform_2, window_bounds = array<i64: 1, 8>}, {pipeline_mode = #tpu.pipeline_mode<synchronous>, transform_indices = @transform_3, window_bounds = array<i64: 9, 8, 4>}, {pipeline_mode = #tpu.pipeline_mode<synchronous>, transform_indices = @transform_4, window_bounds = array<i64: 1, 4>}, {transform_indices = @transform_5, window_bounds = array<i64: 1, 16, 16, 4>}]} {
    %c16_i32 = arith.constant 16 : i32
    %0 = arith.muli %arg1, %c16_i32 : i32
    %cst = arith.constant 0.000000e+00 : f32
    %1 = vector.broadcast %cst : f32 to vector<20x1x4xf32>
    %c0 = arith.constant 0 : index
    %c0_0 = arith.constant 0 : index
    %c0_1 = arith.constant 0 : index
    %2 = vector.load %arg8[%c0, %c0_0, %c0_1] : memref<20x18x4xf32, #tpu.memory_space<vmem>>, vector<20x1x4xf32>
    tpu.vector_store %arg8[%c0, %c0_0, %c0_1], %1 {strides = array<i32>} : memref<20x18x4xf32, #tpu.memory_space<vmem>>, vector<20x1x4xf32>,
    %cst_2 = arith.constant 0.000000e+00 : f32
    %3 = vector.broadcast %cst_2 : f32 to vector<20x1x4xf32>
    %c0_3 = arith.constant 0 : index
    %c17 = arith.constant 17 : index
    %c0_4 = arith.constant 0 : index
    %4 = vector.load %arg8[%c0_3, %c17, %c0_4] : memref<20x18x4xf32, #tpu.memory_space<vmem>>, vector<20x1x4xf32>
    tpu.vector_store %arg8[%c0_3, %c17, %c0_4], %3 {strides = array<i32>} : memref<20x18x4xf32, #tpu.memory_space<vmem>>, vector<20x1x4xf32>,
    %c0_5 = arith.constant 0 : index
    %5 = arith.index_cast %0 : i32 to index
    %c0_6 = arith.constant 0 : index
    %c0_7 = arith.constant 0 : index
    %6 = vector.load %arg2[%c0_5, %5, %c0_6, %c0_7] : memref<1x16x16x4xf32, #tpu.memory_space<vmem>>, vector<1x16x16x4xf32>
    %7 = vector.shape_cast %6 : vector<1x16x16x4xf32> to vector<16x16x4xf32>
    %c2 = arith.constant 2 : index
    %c1 = arith.constant 1 : index
    %c0_8 = arith.constant 0 : index
    %8 = vector.load %arg8[%c2, %c1, %c0_8] : memref<20x18x4xf32, #tpu.memory_space<vmem>>, vector<16x16x4xf32>
    tpu.vector_store %arg8[%c2, %c1, %c0_8], %7 {strides = array<i32>} : memref<20x18x4xf32, #tpu.memory_space<vmem>>, vector<16x16x4xf32>,
    %c0_i32 = arith.constant 0 : i32
    %9 = arith.cmpi sgt, %arg1, %c0_i32 : i32
    %10 = arith.extui %9 : i1 to i32
    %c0_i32_9 = arith.constant 0 : i32
    %11 = arith.cmpi ne, %10, %c0_i32_9 : i32
    scf.if %11 {
      %c2_i32 = arith.constant 2 : i32
      %187 = arith.subi %0, %c2_i32 : i32
      %c0_233 = arith.constant 0 : index
      %188 = arith.index_cast %187 : i32 to index
      %c0_234 = arith.constant 0 : index
      %c0_235 = arith.constant 0 : index
      %189 = vector.load %arg2[%c0_233, %188, %c0_234, %c0_235] : memref<1x16x16x4xf32, #tpu.memory_space<vmem>>, vector<1x2x16x4xf32>
      %190 = vector.shape_cast %189 : vector<1x2x16x4xf32> to vector<2x16x4xf32>
      %c0_236 = arith.constant 0 : index
      %c1_237 = arith.constant 1 : index
      %c0_238 = arith.constant 0 : index
      %191 = vector.load %arg8[%c0_236, %c1_237, %c0_238] : memref<20x18x4xf32, #tpu.memory_space<vmem>>, vector<2x16x4xf32>
      tpu.vector_store %arg8[%c0_236, %c1_237, %c0_238], %190 {strides = array<i32>} : memref<20x18x4xf32, #tpu.memory_space<vmem>>, vector<2x16x4xf32>,
    } else {
    }
    %c0_i32_10 = arith.constant 0 : i32
    %12 = arith.cmpi eq, %arg1, %c0_i32_10 : i32
    %13 = arith.extui %12 : i1 to i32
    %c0_i32_11 = arith.constant 0 : i32
    %14 = arith.cmpi ne, %13, %c0_i32_11 : i32
    scf.if %14 {
      %cst_233 = arith.constant 0.000000e+00 : f32
      %187 = vector.broadcast %cst_233 : f32 to vector<2x18x4xf32>
      %c0_234 = arith.constant 0 : index
      %c0_235 = arith.constant 0 : index
      %c0_236 = arith.constant 0 : index
      %188 = vector.load %arg8[%c0_234, %c0_235, %c0_236] : memref<20x18x4xf32, #tpu.memory_space<vmem>>, vector<2x18x4xf32>
      tpu.vector_store %arg8[%c0_234, %c0_235, %c0_236], %187 {strides = array<i32>} : memref<20x18x4xf32, #tpu.memory_space<vmem>>, vector<2x18x4xf32>,
    } else {
    }
    %c0_i32_12 = arith.constant 0 : i32
    %15 = arith.cmpi slt, %arg1, %c0_i32_12 : i32
    %16 = arith.extui %15 : i1 to i32
    %c0_i32_13 = arith.constant 0 : i32
    %17 = arith.cmpi ne, %16, %c0_i32_13 : i32
    scf.if %17 {
      %c16_i32_233 = arith.constant 16 : i32
      %187 = arith.addi %0, %c16_i32_233 : i32
      %c0_234 = arith.constant 0 : index
      %188 = arith.index_cast %187 : i32 to index
      %c0_235 = arith.constant 0 : index
      %c0_236 = arith.constant 0 : index
      %189 = vector.load %arg2[%c0_234, %188, %c0_235, %c0_236] : memref<1x16x16x4xf32, #tpu.memory_space<vmem>>, vector<1x2x16x4xf32>
      %190 = vector.shape_cast %189 : vector<1x2x16x4xf32> to vector<2x16x4xf32>
      %c18 = arith.constant 18 : index
      %c1_237 = arith.constant 1 : index
      %c0_238 = arith.constant 0 : index
      %191 = vector.load %arg8[%c18, %c1_237, %c0_238] : memref<20x18x4xf32, #tpu.memory_space<vmem>>, vector<2x16x4xf32>
      tpu.vector_store %arg8[%c18, %c1_237, %c0_238], %190 {strides = array<i32>} : memref<20x18x4xf32, #tpu.memory_space<vmem>>, vector<2x16x4xf32>,
    } else {
    }
    %c0_i32_14 = arith.constant 0 : i32
    %18 = arith.cmpi eq, %arg1, %c0_i32_14 : i32
    %19 = arith.extui %18 : i1 to i32
    %c0_i32_15 = arith.constant 0 : i32
    %20 = arith.cmpi ne, %19, %c0_i32_15 : i32
    scf.if %20 {
      %cst_233 = arith.constant 0.000000e+00 : f32
      %187 = vector.broadcast %cst_233 : f32 to vector<2x18x4xf32>
      %c18 = arith.constant 18 : index
      %c0_234 = arith.constant 0 : index
      %c0_235 = arith.constant 0 : index
      %188 = vector.load %arg8[%c18, %c0_234, %c0_235] : memref<20x18x4xf32, #tpu.memory_space<vmem>>, vector<2x18x4xf32>
      tpu.vector_store %arg8[%c18, %c0_234, %c0_235], %187 {strides = array<i32>} : memref<20x18x4xf32, #tpu.memory_space<vmem>>, vector<2x18x4xf32>,
    } else {
    }
    %c0_16 = arith.constant 0 : index
    %c0_17 = arith.constant 0 : index
    %c0_18 = arith.constant 0 : index
    %21 = vector.load %arg8[%c0_16, %c0_17, %c0_18] : memref<20x18x4xf32, #tpu.memory_space<vmem>>, vector<18x16x4xf32>
    %22 = vector.shape_cast %21 : vector<18x16x4xf32> to vector<288x4xf32>
    %c0_19 = arith.constant 0 : index
    %c0_20 = arith.constant 0 : index
    %c0_21 = arith.constant 0 : index
    %23 = vector.load %arg3[%c0_19, %c0_20, %c0_21] : memref<9x4x8xf32, #tpu.memory_space<vmem>>, vector<1x4x8xf32>
    %24 = vector.shape_cast %23 : vector<1x4x8xf32> to vector<4x8xf32>
    %cst_22 = arith.constant dense<0.000000e+00> : vector<288x8xf32>
    %25 = tpu.matmul %22, %24, %cst_22 {dimension_numbers = #tpu.dot_dimension_numbers<[1], [0], [0], [1], [0, 0, 1, 1], [], []>} : vector<288x4xf32>, vector<4x8xf32>, vector<288x8xf32> -> vector<288x8xf32>
    %c0_23 = arith.constant 0 : index
    %c0_24 = arith.constant 0 : index
    %26 = vector.load %arg10[%c0_23, %c0_24] : memref<288x8xf32, #tpu.memory_space<vmem>>, vector<288x8xf32>
    tpu.vector_store %arg10[%c0_23, %c0_24], %25 {strides = array<i32>} : memref<288x8xf32, #tpu.memory_space<vmem>>, vector<288x8xf32>,
    %c0_25 = arith.constant 0 : index
    %c1_26 = arith.constant 1 : index
    %c0_27 = arith.constant 0 : index
    %27 = vector.load %arg8[%c0_25, %c1_26, %c0_27] : memref<20x18x4xf32, #tpu.memory_space<vmem>>, vector<18x16x4xf32>
    %28 = vector.shape_cast %27 : vector<18x16x4xf32> to vector<288x4xf32>
    %c1_28 = arith.constant 1 : index
    %c0_29 = arith.constant 0 : index
    %c0_30 = arith.constant 0 : index
    %29 = vector.load %arg3[%c1_28, %c0_29, %c0_30] : memref<9x4x8xf32, #tpu.memory_space<vmem>>, vector<1x4x8xf32>
    %30 = vector.shape_cast %29 : vector<1x4x8xf32> to vector<4x8xf32>
    %cst_31 = arith.constant dense<0.000000e+00> : vector<288x8xf32>
    %31 = tpu.matmul %28, %30, %cst_31 {dimension_numbers = #tpu.dot_dimension_numbers<[1], [0], [0], [1], [0, 0, 1, 1], [], []>} : vector<288x4xf32>, vector<4x8xf32>, vector<288x8xf32> -> vector<288x8xf32>
    %c0_32 = arith.constant 0 : index
    %c0_33 = arith.constant 0 : index
    %32 = vector.load %arg10[%c0_32, %c0_33] : memref<288x8xf32, #tpu.memory_space<vmem>>, vector<288x8xf32>
    %33 = arith.addf %32, %31 : vector<288x8xf32>
    %c0_34 = arith.constant 0 : index
    %c0_35 = arith.constant 0 : index
    %34 = vector.load %arg10[%c0_34, %c0_35] : memref<288x8xf32, #tpu.memory_space<vmem>>, vector<288x8xf32>
    tpu.vector_store %arg10[%c0_34, %c0_35], %33 {strides = array<i32>} : memref<288x8xf32, #tpu.memory_space<vmem>>, vector<288x8xf32>,
    %c0_36 = arith.constant 0 : index
    %c2_37 = arith.constant 2 : index
    %c0_38 = arith.constant 0 : index
    %35 = vector.load %arg8[%c0_36, %c2_37, %c0_38] : memref<20x18x4xf32, #tpu.memory_space<vmem>>, vector<18x16x4xf32>
    %36 = vector.shape_cast %35 : vector<18x16x4xf32> to vector<288x4xf32>
    %c2_39 = arith.constant 2 : index
    %c0_40 = arith.constant 0 : index
    %c0_41 = arith.constant 0 : index
    %37 = vector.load %arg3[%c2_39, %c0_40, %c0_41] : memref<9x4x8xf32, #tpu.memory_space<vmem>>, vector<1x4x8xf32>
    %38 = vector.shape_cast %37 : vector<1x4x8xf32> to vector<4x8xf32>
    %cst_42 = arith.constant dense<0.000000e+00> : vector<288x8xf32>
    %39 = tpu.matmul %36, %38, %cst_42 {dimension_numbers = #tpu.dot_dimension_numbers<[1], [0], [0], [1], [0, 0, 1, 1], [], []>} : vector<288x4xf32>, vector<4x8xf32>, vector<288x8xf32> -> vector<288x8xf32>
    %c0_43 = arith.constant 0 : index
    %c0_44 = arith.constant 0 : index
    %40 = vector.load %arg10[%c0_43, %c0_44] : memref<288x8xf32, #tpu.memory_space<vmem>>, vector<288x8xf32>
    %41 = arith.addf %40, %39 : vector<288x8xf32>
    %c0_45 = arith.constant 0 : index
    %c0_46 = arith.constant 0 : index
    %42 = vector.load %arg10[%c0_45, %c0_46] : memref<288x8xf32, #tpu.memory_space<vmem>>, vector<288x8xf32>
    tpu.vector_store %arg10[%c0_45, %c0_46], %41 {strides = array<i32>} : memref<288x8xf32, #tpu.memory_space<vmem>>, vector<288x8xf32>,
    %c1_47 = arith.constant 1 : index
    %c0_48 = arith.constant 0 : index
    %c0_49 = arith.constant 0 : index
    %43 = vector.load %arg8[%c1_47, %c0_48, %c0_49] : memref<20x18x4xf32, #tpu.memory_space<vmem>>, vector<18x16x4xf32>
    %44 = vector.shape_cast %43 : vector<18x16x4xf32> to vector<288x4xf32>
    %c3 = arith.constant 3 : index
    %c0_50 = arith.constant 0 : index
    %c0_51 = arith.constant 0 : index
    %45 = vector.load %arg3[%c3, %c0_50, %c0_51] : memref<9x4x8xf32, #tpu.memory_space<vmem>>, vector<1x4x8xf32>
    %46 = vector.shape_cast %45 : vector<1x4x8xf32> to vector<4x8xf32>
    %cst_52 = arith.constant dense<0.000000e+00> : vector<288x8xf32>
    %47 = tpu.matmul %44, %46, %cst_52 {dimension_numbers = #tpu.dot_dimension_numbers<[1], [0], [0], [1], [0, 0, 1, 1], [], []>} : vector<288x4xf32>, vector<4x8xf32>, vector<288x8xf32> -> vector<288x8xf32>
    %c0_53 = arith.constant 0 : index
    %c0_54 = arith.constant 0 : index
    %48 = vector.load %arg10[%c0_53, %c0_54] : memref<288x8xf32, #tpu.memory_space<vmem>>, vector<288x8xf32>
    %49 = arith.addf %48, %47 : vector<288x8xf32>
    %c0_55 = arith.constant 0 : index
    %c0_56 = arith.constant 0 : index
    %50 = vector.load %arg10[%c0_55, %c0_56] : memref<288x8xf32, #tpu.memory_space<vmem>>, vector<288x8xf32>
    tpu.vector_store %arg10[%c0_55, %c0_56], %49 {strides = array<i32>} : memref<288x8xf32, #tpu.memory_space<vmem>>, vector<288x8xf32>,
    %c1_57 = arith.constant 1 : index
    %c1_58 = arith.constant 1 : index
    %c0_59 = arith.constant 0 : index
    %51 = vector.load %arg8[%c1_57, %c1_58, %c0_59] : memref<20x18x4xf32, #tpu.memory_space<vmem>>, vector<18x16x4xf32>
    %52 = vector.shape_cast %51 : vector<18x16x4xf32> to vector<288x4xf32>
    %c4 = arith.constant 4 : index
    %c0_60 = arith.constant 0 : index
    %c0_61 = arith.constant 0 : index
    %53 = vector.load %arg3[%c4, %c0_60, %c0_61] : memref<9x4x8xf32, #tpu.memory_space<vmem>>, vector<1x4x8xf32>
    %54 = vector.shape_cast %53 : vector<1x4x8xf32> to vector<4x8xf32>
    %cst_62 = arith.constant dense<0.000000e+00> : vector<288x8xf32>
    %55 = tpu.matmul %52, %54, %cst_62 {dimension_numbers = #tpu.dot_dimension_numbers<[1], [0], [0], [1], [0, 0, 1, 1], [], []>} : vector<288x4xf32>, vector<4x8xf32>, vector<288x8xf32> -> vector<288x8xf32>
    %c0_63 = arith.constant 0 : index
    %c0_64 = arith.constant 0 : index
    %56 = vector.load %arg10[%c0_63, %c0_64] : memref<288x8xf32, #tpu.memory_space<vmem>>, vector<288x8xf32>
    %57 = arith.addf %56, %55 : vector<288x8xf32>
    %c0_65 = arith.constant 0 : index
    %c0_66 = arith.constant 0 : index
    %58 = vector.load %arg10[%c0_65, %c0_66] : memref<288x8xf32, #tpu.memory_space<vmem>>, vector<288x8xf32>
    tpu.vector_store %arg10[%c0_65, %c0_66], %57 {strides = array<i32>} : memref<288x8xf32, #tpu.memory_space<vmem>>, vector<288x8xf32>,
    %c1_67 = arith.constant 1 : index
    %c2_68 = arith.constant 2 : index
    %c0_69 = arith.constant 0 : index
    %59 = vector.load %arg8[%c1_67, %c2_68, %c0_69] : memref<20x18x4xf32, #tpu.memory_space<vmem>>, vector<18x16x4xf32>
    %60 = vector.shape_cast %59 : vector<18x16x4xf32> to vector<288x4xf32>
    %c5 = arith.constant 5 : index
    %c0_70 = arith.constant 0 : index
    %c0_71 = arith.constant 0 : index
    %61 = vector.load %arg3[%c5, %c0_70, %c0_71] : memref<9x4x8xf32, #tpu.memory_space<vmem>>, vector<1x4x8xf32>
    %62 = vector.shape_cast %61 : vector<1x4x8xf32> to vector<4x8xf32>
    %cst_72 = arith.constant dense<0.000000e+00> : vector<288x8xf32>
    %63 = tpu.matmul %60, %62, %cst_72 {dimension_numbers = #tpu.dot_dimension_numbers<[1], [0], [0], [1], [0, 0, 1, 1], [], []>} : vector<288x4xf32>, vector<4x8xf32>, vector<288x8xf32> -> vector<288x8xf32>
    %c0_73 = arith.constant 0 : index
    %c0_74 = arith.constant 0 : index
    %64 = vector.load %arg10[%c0_73, %c0_74] : memref<288x8xf32, #tpu.memory_space<vmem>>, vector<288x8xf32>
    %65 = arith.addf %64, %63 : vector<288x8xf32>
    %c0_75 = arith.constant 0 : index
    %c0_76 = arith.constant 0 : index
    %66 = vector.load %arg10[%c0_75, %c0_76] : memref<288x8xf32, #tpu.memory_space<vmem>>, vector<288x8xf32>
    tpu.vector_store %arg10[%c0_75, %c0_76], %65 {strides = array<i32>} : memref<288x8xf32, #tpu.memory_space<vmem>>, vector<288x8xf32>,
    %c2_77 = arith.constant 2 : index
    %c0_78 = arith.constant 0 : index
    %c0_79 = arith.constant 0 : index
    %67 = vector.load %arg8[%c2_77, %c0_78, %c0_79] : memref<20x18x4xf32, #tpu.memory_space<vmem>>, vector<18x16x4xf32>
    %68 = vector.shape_cast %67 : vector<18x16x4xf32> to vector<288x4xf32>
    %c6 = arith.constant 6 : index
    %c0_80 = arith.constant 0 : index
    %c0_81 = arith.constant 0 : index
    %69 = vector.load %arg3[%c6, %c0_80, %c0_81] : memref<9x4x8xf32, #tpu.memory_space<vmem>>, vector<1x4x8xf32>
    %70 = vector.shape_cast %69 : vector<1x4x8xf32> to vector<4x8xf32>
    %cst_82 = arith.constant dense<0.000000e+00> : vector<288x8xf32>
    %71 = tpu.matmul %68, %70, %cst_82 {dimension_numbers = #tpu.dot_dimension_numbers<[1], [0], [0], [1], [0, 0, 1, 1], [], []>} : vector<288x4xf32>, vector<4x8xf32>, vector<288x8xf32> -> vector<288x8xf32>
    %c0_83 = arith.constant 0 : index
    %c0_84 = arith.constant 0 : index
    %72 = vector.load %arg10[%c0_83, %c0_84] : memref<288x8xf32, #tpu.memory_space<vmem>>, vector<288x8xf32>
    %73 = arith.addf %72, %71 : vector<288x8xf32>
    %c0_85 = arith.constant 0 : index
    %c0_86 = arith.constant 0 : index
    %74 = vector.load %arg10[%c0_85, %c0_86] : memref<288x8xf32, #tpu.memory_space<vmem>>, vector<288x8xf32>
    tpu.vector_store %arg10[%c0_85, %c0_86], %73 {strides = array<i32>} : memref<288x8xf32, #tpu.memory_space<vmem>>, vector<288x8xf32>,
    %c2_87 = arith.constant 2 : index
    %c1_88 = arith.constant 1 : index
    %c0_89 = arith.constant 0 : index
    %75 = vector.load %arg8[%c2_87, %c1_88, %c0_89] : memref<20x18x4xf32, #tpu.memory_space<vmem>>, vector<18x16x4xf32>
    %76 = vector.shape_cast %75 : vector<18x16x4xf32> to vector<288x4xf32>
    %c7 = arith.constant 7 : index
    %c0_90 = arith.constant 0 : index
    %c0_91 = arith.constant 0 : index
    %77 = vector.load %arg3[%c7, %c0_90, %c0_91] : memref<9x4x8xf32, #tpu.memory_space<vmem>>, vector<1x4x8xf32>
    %78 = vector.shape_cast %77 : vector<1x4x8xf32> to vector<4x8xf32>
    %cst_92 = arith.constant dense<0.000000e+00> : vector<288x8xf32>
    %79 = tpu.matmul %76, %78, %cst_92 {dimension_numbers = #tpu.dot_dimension_numbers<[1], [0], [0], [1], [0, 0, 1, 1], [], []>} : vector<288x4xf32>, vector<4x8xf32>, vector<288x8xf32> -> vector<288x8xf32>
    %c0_93 = arith.constant 0 : index
    %c0_94 = arith.constant 0 : index
    %80 = vector.load %arg10[%c0_93, %c0_94] : memref<288x8xf32, #tpu.memory_space<vmem>>, vector<288x8xf32>
    %81 = arith.addf %80, %79 : vector<288x8xf32>
    %c0_95 = arith.constant 0 : index
    %c0_96 = arith.constant 0 : index
    %82 = vector.load %arg10[%c0_95, %c0_96] : memref<288x8xf32, #tpu.memory_space<vmem>>, vector<288x8xf32>
    tpu.vector_store %arg10[%c0_95, %c0_96], %81 {strides = array<i32>} : memref<288x8xf32, #tpu.memory_space<vmem>>, vector<288x8xf32>,
    %c2_97 = arith.constant 2 : index
    %c2_98 = arith.constant 2 : index
    %c0_99 = arith.constant 0 : index
    %83 = vector.load %arg8[%c2_97, %c2_98, %c0_99] : memref<20x18x4xf32, #tpu.memory_space<vmem>>, vector<18x16x4xf32>
    %84 = vector.shape_cast %83 : vector<18x16x4xf32> to vector<288x4xf32>
    %c8 = arith.constant 8 : index
    %c0_100 = arith.constant 0 : index
    %c0_101 = arith.constant 0 : index
    %85 = vector.load %arg3[%c8, %c0_100, %c0_101] : memref<9x4x8xf32, #tpu.memory_space<vmem>>, vector<1x4x8xf32>
    %86 = vector.shape_cast %85 : vector<1x4x8xf32> to vector<4x8xf32>
    %cst_102 = arith.constant dense<0.000000e+00> : vector<288x8xf32>
    %87 = tpu.matmul %84, %86, %cst_102 {dimension_numbers = #tpu.dot_dimension_numbers<[1], [0], [0], [1], [0, 0, 1, 1], [], []>} : vector<288x4xf32>, vector<4x8xf32>, vector<288x8xf32> -> vector<288x8xf32>
    %c0_103 = arith.constant 0 : index
    %c0_104 = arith.constant 0 : index
    %88 = vector.load %arg10[%c0_103, %c0_104] : memref<288x8xf32, #tpu.memory_space<vmem>>, vector<288x8xf32>
    %89 = arith.addf %88, %87 : vector<288x8xf32>
    %c0_105 = arith.constant 0 : index
    %c0_106 = arith.constant 0 : index
    %90 = vector.load %arg10[%c0_105, %c0_106] : memref<288x8xf32, #tpu.memory_space<vmem>>, vector<288x8xf32>
    tpu.vector_store %arg10[%c0_105, %c0_106], %89 {strides = array<i32>} : memref<288x8xf32, #tpu.memory_space<vmem>>, vector<288x8xf32>,
    %c0_107 = arith.constant 0 : index
    %c0_108 = arith.constant 0 : index
    %91 = vector.load %arg10[%c0_107, %c0_108] : memref<288x8xf32, #tpu.memory_space<vmem>>, vector<288x8xf32>
    %c0_109 = arith.constant 0 : index
    %c0_110 = arith.constant 0 : index
    %92 = vector.load %arg4[%c0_109, %c0_110] : memref<1x8xf32, #tpu.memory_space<vmem>>, vector<1x8xf32>
    %93 = vector.broadcast %92 : vector<1x8xf32> to vector<288x8xf32>
    %94 = arith.addf %91, %93 : vector<288x8xf32>
    %cst_111 = arith.constant 0.000000e+00 : f32
    %95 = vector.broadcast %cst_111 : f32 to vector<288x8xf32>
    %96 = arith.maximumf %94, %95 : vector<288x8xf32>
    %cst_112 = arith.constant 0.000000e+00 : f32
    %97 = vector.broadcast %cst_112 : f32 to vector<18x1x8xf32>
    %c0_113 = arith.constant 0 : index
    %c0_114 = arith.constant 0 : index
    %c0_115 = arith.constant 0 : index
    %98 = vector.load %arg9[%c0_113, %c0_114, %c0_115] : memref<18x18x8xf32, #tpu.memory_space<vmem>>, vector<18x1x8xf32>
    tpu.vector_store %arg9[%c0_113, %c0_114, %c0_115], %97 {strides = array<i32>} : memref<18x18x8xf32, #tpu.memory_space<vmem>>, vector<18x1x8xf32>,
    %cst_116 = arith.constant 0.000000e+00 : f32
    %99 = vector.broadcast %cst_116 : f32 to vector<18x1x8xf32>
    %c0_117 = arith.constant 0 : index
    %c17_118 = arith.constant 17 : index
    %c0_119 = arith.constant 0 : index
    %100 = vector.load %arg9[%c0_117, %c17_118, %c0_119] : memref<18x18x8xf32, #tpu.memory_space<vmem>>, vector<18x1x8xf32>
    tpu.vector_store %arg9[%c0_117, %c17_118, %c0_119], %99 {strides = array<i32>} : memref<18x18x8xf32, #tpu.memory_space<vmem>>, vector<18x1x8xf32>,
    %101 = vector.shape_cast %96 : vector<288x8xf32> to vector<18x16x8xf32>
    %c0_120 = arith.constant 0 : index
    %c1_121 = arith.constant 1 : index
    %c0_122 = arith.constant 0 : index
    %102 = vector.load %arg9[%c0_120, %c1_121, %c0_122] : memref<18x18x8xf32, #tpu.memory_space<vmem>>, vector<18x16x8xf32>
    tpu.vector_store %arg9[%c0_120, %c1_121, %c0_122], %101 {strides = array<i32>} : memref<18x18x8xf32, #tpu.memory_space<vmem>>, vector<18x16x8xf32>,
    %c0_i32_123 = arith.constant 0 : i32
    %103 = arith.cmpi eq, %arg1, %c0_i32_123 : i32
    %104 = arith.extui %103 : i1 to i32
    %c0_i32_124 = arith.constant 0 : i32
    %105 = arith.cmpi ne, %104, %c0_i32_124 : i32
    scf.if %105 {
      %cst_233 = arith.constant 0.000000e+00 : f32
      %187 = vector.broadcast %cst_233 : f32 to vector<1x18x8xf32>
      %c0_234 = arith.constant 0 : index
      %c0_235 = arith.constant 0 : index
      %c0_236 = arith.constant 0 : index
      %188 = vector.load %arg9[%c0_234, %c0_235, %c0_236] : memref<18x18x8xf32, #tpu.memory_space<vmem>>, vector<1x18x8xf32>
      tpu.vector_store %arg9[%c0_234, %c0_235, %c0_236], %187 {strides = array<i32>} : memref<18x18x8xf32, #tpu.memory_space<vmem>>, vector<1x18x8xf32>,
    } else {
    }
    %c0_i32_125 = arith.constant 0 : i32
    %106 = arith.cmpi eq, %arg1, %c0_i32_125 : i32
    %107 = arith.extui %106 : i1 to i32
    %c0_i32_126 = arith.constant 0 : i32
    %108 = arith.cmpi ne, %107, %c0_i32_126 : i32
    scf.if %108 {
      %cst_233 = arith.constant 0.000000e+00 : f32
      %187 = vector.broadcast %cst_233 : f32 to vector<1x18x8xf32>
      %c17_234 = arith.constant 17 : index
      %c0_235 = arith.constant 0 : index
      %c0_236 = arith.constant 0 : index
      %188 = vector.load %arg9[%c17_234, %c0_235, %c0_236] : memref<18x18x8xf32, #tpu.memory_space<vmem>>, vector<1x18x8xf32>
      tpu.vector_store %arg9[%c17_234, %c0_235, %c0_236], %187 {strides = array<i32>} : memref<18x18x8xf32, #tpu.memory_space<vmem>>, vector<1x18x8xf32>,
    } else {
    }
    %c0_127 = arith.constant 0 : index
    %c0_128 = arith.constant 0 : index
    %c0_129 = arith.constant 0 : index
    %109 = vector.load %arg9[%c0_127, %c0_128, %c0_129] : memref<18x18x8xf32, #tpu.memory_space<vmem>>, vector<16x16x8xf32>
    %110 = vector.shape_cast %109 : vector<16x16x8xf32> to vector<256x8xf32>
    %c0_130 = arith.constant 0 : index
    %c0_131 = arith.constant 0 : index
    %c0_132 = arith.constant 0 : index
    %111 = vector.load %arg5[%c0_130, %c0_131, %c0_132] : memref<9x8x4xf32, #tpu.memory_space<vmem>>, vector<1x8x4xf32>
    %112 = vector.shape_cast %111 : vector<1x8x4xf32> to vector<8x4xf32>
    %cst_133 = arith.constant dense<0.000000e+00> : vector<256x4xf32>
    %113 = tpu.matmul %110, %112, %cst_133 {dimension_numbers = #tpu.dot_dimension_numbers<[1], [0], [0], [1], [0, 0, 1, 1], [], []>} : vector<256x8xf32>, vector<8x4xf32>, vector<256x4xf32> -> vector<256x4xf32>
    %c0_134 = arith.constant 0 : index
    %c0_135 = arith.constant 0 : index
    %114 = vector.load %arg11[%c0_134, %c0_135] : memref<256x4xf32, #tpu.memory_space<vmem>>, vector<256x4xf32>
    tpu.vector_store %arg11[%c0_134, %c0_135], %113 {strides = array<i32>} : memref<256x4xf32, #tpu.memory_space<vmem>>, vector<256x4xf32>,
    %c0_136 = arith.constant 0 : index
    %c1_137 = arith.constant 1 : index
    %c0_138 = arith.constant 0 : index
    %115 = vector.load %arg9[%c0_136, %c1_137, %c0_138] : memref<18x18x8xf32, #tpu.memory_space<vmem>>, vector<16x16x8xf32>
    %116 = vector.shape_cast %115 : vector<16x16x8xf32> to vector<256x8xf32>
    %c1_139 = arith.constant 1 : index
    %c0_140 = arith.constant 0 : index
    %c0_141 = arith.constant 0 : index
    %117 = vector.load %arg5[%c1_139, %c0_140, %c0_141] : memref<9x8x4xf32, #tpu.memory_space<vmem>>, vector<1x8x4xf32>
    %118 = vector.shape_cast %117 : vector<1x8x4xf32> to vector<8x4xf32>
    %cst_142 = arith.constant dense<0.000000e+00> : vector<256x4xf32>
    %119 = tpu.matmul %116, %118, %cst_142 {dimension_numbers = #tpu.dot_dimension_numbers<[1], [0], [0], [1], [0, 0, 1, 1], [], []>} : vector<256x8xf32>, vector<8x4xf32>, vector<256x4xf32> -> vector<256x4xf32>
    %c0_143 = arith.constant 0 : index
    %c0_144 = arith.constant 0 : index
    %120 = vector.load %arg11[%c0_143, %c0_144] : memref<256x4xf32, #tpu.memory_space<vmem>>, vector<256x4xf32>
    %121 = arith.addf %120, %119 : vector<256x4xf32>
    %c0_145 = arith.constant 0 : index
    %c0_146 = arith.constant 0 : index
    %122 = vector.load %arg11[%c0_145, %c0_146] : memref<256x4xf32, #tpu.memory_space<vmem>>, vector<256x4xf32>
    tpu.vector_store %arg11[%c0_145, %c0_146], %121 {strides = array<i32>} : memref<256x4xf32, #tpu.memory_space<vmem>>, vector<256x4xf32>,
    %c0_147 = arith.constant 0 : index
    %c2_148 = arith.constant 2 : index
    %c0_149 = arith.constant 0 : index
    %123 = vector.load %arg9[%c0_147, %c2_148, %c0_149] : memref<18x18x8xf32, #tpu.memory_space<vmem>>, vector<16x16x8xf32>
    %124 = vector.shape_cast %123 : vector<16x16x8xf32> to vector<256x8xf32>
    %c2_150 = arith.constant 2 : index
    %c0_151 = arith.constant 0 : index
    %c0_152 = arith.constant 0 : index
    %125 = vector.load %arg5[%c2_150, %c0_151, %c0_152] : memref<9x8x4xf32, #tpu.memory_space<vmem>>, vector<1x8x4xf32>
    %126 = vector.shape_cast %125 : vector<1x8x4xf32> to vector<8x4xf32>
    %cst_153 = arith.constant dense<0.000000e+00> : vector<256x4xf32>
    %127 = tpu.matmul %124, %126, %cst_153 {dimension_numbers = #tpu.dot_dimension_numbers<[1], [0], [0], [1], [0, 0, 1, 1], [], []>} : vector<256x8xf32>, vector<8x4xf32>, vector<256x4xf32> -> vector<256x4xf32>
    %c0_154 = arith.constant 0 : index
    %c0_155 = arith.constant 0 : index
    %128 = vector.load %arg11[%c0_154, %c0_155] : memref<256x4xf32, #tpu.memory_space<vmem>>, vector<256x4xf32>
    %129 = arith.addf %128, %127 : vector<256x4xf32>
    %c0_156 = arith.constant 0 : index
    %c0_157 = arith.constant 0 : index
    %130 = vector.load %arg11[%c0_156, %c0_157] : memref<256x4xf32, #tpu.memory_space<vmem>>, vector<256x4xf32>
    tpu.vector_store %arg11[%c0_156, %c0_157], %129 {strides = array<i32>} : memref<256x4xf32, #tpu.memory_space<vmem>>, vector<256x4xf32>,
    %c1_158 = arith.constant 1 : index
    %c0_159 = arith.constant 0 : index
    %c0_160 = arith.constant 0 : index
    %131 = vector.load %arg9[%c1_158, %c0_159, %c0_160] : memref<18x18x8xf32, #tpu.memory_space<vmem>>, vector<16x16x8xf32>
    %132 = vector.shape_cast %131 : vector<16x16x8xf32> to vector<256x8xf32>
    %c3_161 = arith.constant 3 : index
    %c0_162 = arith.constant 0 : index
    %c0_163 = arith.constant 0 : index
    %133 = vector.load %arg5[%c3_161, %c0_162, %c0_163] : memref<9x8x4xf32, #tpu.memory_space<vmem>>, vector<1x8x4xf32>
    %134 = vector.shape_cast %133 : vector<1x8x4xf32> to vector<8x4xf32>
    %cst_164 = arith.constant dense<0.000000e+00> : vector<256x4xf32>
    %135 = tpu.matmul %132, %134, %cst_164 {dimension_numbers = #tpu.dot_dimension_numbers<[1], [0], [0], [1], [0, 0, 1, 1], [], []>} : vector<256x8xf32>, vector<8x4xf32>, vector<256x4xf32> -> vector<256x4xf32>
    %c0_165 = arith.constant 0 : index
    %c0_166 = arith.constant 0 : index
    %136 = vector.load %arg11[%c0_165, %c0_166] : memref<256x4xf32, #tpu.memory_space<vmem>>, vector<256x4xf32>
    %137 = arith.addf %136, %135 : vector<256x4xf32>
    %c0_167 = arith.constant 0 : index
    %c0_168 = arith.constant 0 : index
    %138 = vector.load %arg11[%c0_167, %c0_168] : memref<256x4xf32, #tpu.memory_space<vmem>>, vector<256x4xf32>
    tpu.vector_store %arg11[%c0_167, %c0_168], %137 {strides = array<i32>} : memref<256x4xf32, #tpu.memory_space<vmem>>, vector<256x4xf32>,
    %c1_169 = arith.constant 1 : index
    %c1_170 = arith.constant 1 : index
    %c0_171 = arith.constant 0 : index
    %139 = vector.load %arg9[%c1_169, %c1_170, %c0_171] : memref<18x18x8xf32, #tpu.memory_space<vmem>>, vector<16x16x8xf32>
    %140 = vector.shape_cast %139 : vector<16x16x8xf32> to vector<256x8xf32>
    %c4_172 = arith.constant 4 : index
    %c0_173 = arith.constant 0 : index
    %c0_174 = arith.constant 0 : index
    %141 = vector.load %arg5[%c4_172, %c0_173, %c0_174] : memref<9x8x4xf32, #tpu.memory_space<vmem>>, vector<1x8x4xf32>
    %142 = vector.shape_cast %141 : vector<1x8x4xf32> to vector<8x4xf32>
    %cst_175 = arith.constant dense<0.000000e+00> : vector<256x4xf32>
    %143 = tpu.matmul %140, %142, %cst_175 {dimension_numbers = #tpu.dot_dimension_numbers<[1], [0], [0], [1], [0, 0, 1, 1], [], []>} : vector<256x8xf32>, vector<8x4xf32>, vector<256x4xf32> -> vector<256x4xf32>
    %c0_176 = arith.constant 0 : index
    %c0_177 = arith.constant 0 : index
    %144 = vector.load %arg11[%c0_176, %c0_177] : memref<256x4xf32, #tpu.memory_space<vmem>>, vector<256x4xf32>
    %145 = arith.addf %144, %143 : vector<256x4xf32>
    %c0_178 = arith.constant 0 : index
    %c0_179 = arith.constant 0 : index
    %146 = vector.load %arg11[%c0_178, %c0_179] : memref<256x4xf32, #tpu.memory_space<vmem>>, vector<256x4xf32>
    tpu.vector_store %arg11[%c0_178, %c0_179], %145 {strides = array<i32>} : memref<256x4xf32, #tpu.memory_space<vmem>>, vector<256x4xf32>,
    %c1_180 = arith.constant 1 : index
    %c2_181 = arith.constant 2 : index
    %c0_182 = arith.constant 0 : index
    %147 = vector.load %arg9[%c1_180, %c2_181, %c0_182] : memref<18x18x8xf32, #tpu.memory_space<vmem>>, vector<16x16x8xf32>
    %148 = vector.shape_cast %147 : vector<16x16x8xf32> to vector<256x8xf32>
    %c5_183 = arith.constant 5 : index
    %c0_184 = arith.constant 0 : index
    %c0_185 = arith.constant 0 : index
    %149 = vector.load %arg5[%c5_183, %c0_184, %c0_185] : memref<9x8x4xf32, #tpu.memory_space<vmem>>, vector<1x8x4xf32>
    %150 = vector.shape_cast %149 : vector<1x8x4xf32> to vector<8x4xf32>
    %cst_186 = arith.constant dense<0.000000e+00> : vector<256x4xf32>
    %151 = tpu.matmul %148, %150, %cst_186 {dimension_numbers = #tpu.dot_dimension_numbers<[1], [0], [0], [1], [0, 0, 1, 1], [], []>} : vector<256x8xf32>, vector<8x4xf32>, vector<256x4xf32> -> vector<256x4xf32>
    %c0_187 = arith.constant 0 : index
    %c0_188 = arith.constant 0 : index
    %152 = vector.load %arg11[%c0_187, %c0_188] : memref<256x4xf32, #tpu.memory_space<vmem>>, vector<256x4xf32>
    %153 = arith.addf %152, %151 : vector<256x4xf32>
    %c0_189 = arith.constant 0 : index
    %c0_190 = arith.constant 0 : index
    %154 = vector.load %arg11[%c0_189, %c0_190] : memref<256x4xf32, #tpu.memory_space<vmem>>, vector<256x4xf32>
    tpu.vector_store %arg11[%c0_189, %c0_190], %153 {strides = array<i32>} : memref<256x4xf32, #tpu.memory_space<vmem>>, vector<256x4xf32>,
    %c2_191 = arith.constant 2 : index
    %c0_192 = arith.constant 0 : index
    %c0_193 = arith.constant 0 : index
    %155 = vector.load %arg9[%c2_191, %c0_192, %c0_193] : memref<18x18x8xf32, #tpu.memory_space<vmem>>, vector<16x16x8xf32>
    %156 = vector.shape_cast %155 : vector<16x16x8xf32> to vector<256x8xf32>
    %c6_194 = arith.constant 6 : index
    %c0_195 = arith.constant 0 : index
    %c0_196 = arith.constant 0 : index
    %157 = vector.load %arg5[%c6_194, %c0_195, %c0_196] : memref<9x8x4xf32, #tpu.memory_space<vmem>>, vector<1x8x4xf32>
    %158 = vector.shape_cast %157 : vector<1x8x4xf32> to vector<8x4xf32>
    %cst_197 = arith.constant dense<0.000000e+00> : vector<256x4xf32>
    %159 = tpu.matmul %156, %158, %cst_197 {dimension_numbers = #tpu.dot_dimension_numbers<[1], [0], [0], [1], [0, 0, 1, 1], [], []>} : vector<256x8xf32>, vector<8x4xf32>, vector<256x4xf32> -> vector<256x4xf32>
    %c0_198 = arith.constant 0 : index
    %c0_199 = arith.constant 0 : index
    %160 = vector.load %arg11[%c0_198, %c0_199] : memref<256x4xf32, #tpu.memory_space<vmem>>, vector<256x4xf32>
    %161 = arith.addf %160, %159 : vector<256x4xf32>
    %c0_200 = arith.constant 0 : index
    %c0_201 = arith.constant 0 : index
    %162 = vector.load %arg11[%c0_200, %c0_201] : memref<256x4xf32, #tpu.memory_space<vmem>>, vector<256x4xf32>
    tpu.vector_store %arg11[%c0_200, %c0_201], %161 {strides = array<i32>} : memref<256x4xf32, #tpu.memory_space<vmem>>, vector<256x4xf32>,
    %c2_202 = arith.constant 2 : index
    %c1_203 = arith.constant 1 : index
    %c0_204 = arith.constant 0 : index
    %163 = vector.load %arg9[%c2_202, %c1_203, %c0_204] : memref<18x18x8xf32, #tpu.memory_space<vmem>>, vector<16x16x8xf32>
    %164 = vector.shape_cast %163 : vector<16x16x8xf32> to vector<256x8xf32>
    %c7_205 = arith.constant 7 : index
    %c0_206 = arith.constant 0 : index
    %c0_207 = arith.constant 0 : index
    %165 = vector.load %arg5[%c7_205, %c0_206, %c0_207] : memref<9x8x4xf32, #tpu.memory_space<vmem>>, vector<1x8x4xf32>
    %166 = vector.shape_cast %165 : vector<1x8x4xf32> to vector<8x4xf32>
    %cst_208 = arith.constant dense<0.000000e+00> : vector<256x4xf32>
    %167 = tpu.matmul %164, %166, %cst_208 {dimension_numbers = #tpu.dot_dimension_numbers<[1], [0], [0], [1], [0, 0, 1, 1], [], []>} : vector<256x8xf32>, vector<8x4xf32>, vector<256x4xf32> -> vector<256x4xf32>
    %c0_209 = arith.constant 0 : index
    %c0_210 = arith.constant 0 : index
    %168 = vector.load %arg11[%c0_209, %c0_210] : memref<256x4xf32, #tpu.memory_space<vmem>>, vector<256x4xf32>
    %169 = arith.addf %168, %167 : vector<256x4xf32>
    %c0_211 = arith.constant 0 : index
    %c0_212 = arith.constant 0 : index
    %170 = vector.load %arg11[%c0_211, %c0_212] : memref<256x4xf32, #tpu.memory_space<vmem>>, vector<256x4xf32>
    tpu.vector_store %arg11[%c0_211, %c0_212], %169 {strides = array<i32>} : memref<256x4xf32, #tpu.memory_space<vmem>>, vector<256x4xf32>,
    %c2_213 = arith.constant 2 : index
    %c2_214 = arith.constant 2 : index
    %c0_215 = arith.constant 0 : index
    %171 = vector.load %arg9[%c2_213, %c2_214, %c0_215] : memref<18x18x8xf32, #tpu.memory_space<vmem>>, vector<16x16x8xf32>
    %172 = vector.shape_cast %171 : vector<16x16x8xf32> to vector<256x8xf32>
    %c8_216 = arith.constant 8 : index
    %c0_217 = arith.constant 0 : index
    %c0_218 = arith.constant 0 : index
    %173 = vector.load %arg5[%c8_216, %c0_217, %c0_218] : memref<9x8x4xf32, #tpu.memory_space<vmem>>, vector<1x8x4xf32>
    %174 = vector.shape_cast %173 : vector<1x8x4xf32> to vector<8x4xf32>
    %cst_219 = arith.constant dense<0.000000e+00> : vector<256x4xf32>
    %175 = tpu.matmul %172, %174, %cst_219 {dimension_numbers = #tpu.dot_dimension_numbers<[1], [0], [0], [1], [0, 0, 1, 1], [], []>} : vector<256x8xf32>, vector<8x4xf32>, vector<256x4xf32> -> vector<256x4xf32>
    %c0_220 = arith.constant 0 : index
    %c0_221 = arith.constant 0 : index
    %176 = vector.load %arg11[%c0_220, %c0_221] : memref<256x4xf32, #tpu.memory_space<vmem>>, vector<256x4xf32>
    %177 = arith.addf %176, %175 : vector<256x4xf32>
    %c0_222 = arith.constant 0 : index
    %c0_223 = arith.constant 0 : index
    %178 = vector.load %arg11[%c0_222, %c0_223] : memref<256x4xf32, #tpu.memory_space<vmem>>, vector<256x4xf32>
    tpu.vector_store %arg11[%c0_222, %c0_223], %177 {strides = array<i32>} : memref<256x4xf32, #tpu.memory_space<vmem>>, vector<256x4xf32>,
    %c0_224 = arith.constant 0 : index
    %c0_225 = arith.constant 0 : index
    %179 = vector.load %arg11[%c0_224, %c0_225] : memref<256x4xf32, #tpu.memory_space<vmem>>, vector<256x4xf32>
    %c0_226 = arith.constant 0 : index
    %c0_227 = arith.constant 0 : index
    %180 = vector.load %arg6[%c0_226, %c0_227] : memref<1x4xf32, #tpu.memory_space<vmem>>, vector<1x4xf32>
    %181 = vector.broadcast %180 : vector<1x4xf32> to vector<256x4xf32>
    %182 = arith.addf %179, %181 : vector<256x4xf32>
    %cst_228 = arith.constant 0.000000e+00 : f32
    %183 = vector.broadcast %cst_228 : f32 to vector<256x4xf32>
    %184 = arith.maximumf %182, %183 : vector<256x4xf32>
    %185 = vector.shape_cast %184 : vector<256x4xf32> to vector<1x16x16x4xf32>
    %c0_229 = arith.constant 0 : index
    %c0_230 = arith.constant 0 : index
    %c0_231 = arith.constant 0 : index
    %c0_232 = arith.constant 0 : index
    %186 = vector.load %arg7[%c0_229, %c0_230, %c0_231, %c0_232] : memref<1x16x16x4xf32, #tpu.memory_space<vmem>>, vector<1x16x16x4xf32>
    tpu.vector_store %arg7[%c0_229, %c0_230, %c0_231, %c0_232], %185 {strides = array<i32>} : memref<1x16x16x4xf32, #tpu.memory_space<vmem>>, vector<1x16x16x4xf32>,
    return
  }
  func.func @transform_0(%arg0: i32, %arg1: i32) -> (i32, i32, i32, i32) {
    %c0_i32 = arith.constant 0 : i32
    %c0_i32_0 = arith.constant 0 : i32
    %c0_i32_1 = arith.constant 0 : i32
    %c0_i32_2 = arith.constant 0 : i32
    return %arg0, %c0_i32, %c0_i32_0, %c0_i32_1 : i32, i32, i32, i32
  }
  func.func @transform_1(%arg0: i32, %arg1: i32) -> (i32, i32, i32) {
    %c0_i32 = arith.constant 0 : i32
    %c0_i32_0 = arith.constant 0 : i32
    %c0_i32_1 = arith.constant 0 : i32
    %c0_i32_2 = arith.constant 0 : i32
    return %c0_i32, %c0_i32_0, %c0_i32_1 : i32, i32, i32
  }
  func.func @transform_2(%arg0: i32, %arg1: i32) -> (i32, i32) {
    %c0_i32 = arith.constant 0 : i32
    %c0_i32_0 = arith.constant 0 : i32
    %c0_i32_1 = arith.constant 0 : i32
    return %c0_i32, %c0_i32_0 : i32, i32
  }
  func.func @transform_3(%arg0: i32, %arg1: i32) -> (i32, i32, i32) {
    %c0_i32 = arith.constant 0 : i32
    %c0_i32_0 = arith.constant 0 : i32
    %c0_i32_1 = arith.constant 0 : i32
    %c0_i32_2 = arith.constant 0 : i32
    return %c0_i32, %c0_i32_0, %c0_i32_1 : i32, i32, i32
  }
  func.func @transform_4(%arg0: i32, %arg1: i32) -> (i32, i32) {
    %c0_i32 = arith.constant 0 : i32
    %c0_i32_0 = arith.constant 0 : i32
    %c0_i32_1 = arith.constant 0 : i32
    return %c0_i32, %c0_i32_0 : i32, i32
  }
  func.func @transform_5(%arg0: i32, %arg1: i32) -> (i32, i32, i32, i32) {
    %c0_i32 = arith.constant 0 : i32
    %c0_i32_0 = arith.constant 0 : i32
    %c0_i32_1 = arith.constant 0 : i32
    return %arg0, %arg1, %c0_i32, %c0_i32_0 : i32, i32, i32, i32
  }
}

</mosaic_0001>

<bundles_post_ra>
// kernel: tpu_custom_call.1
= control target key start
LH: loop header
LB: loop body
LE: loop exit
PB: predicated region body
PF: predicated region fallthrough
CT: control target
= control target key end

     0   :  { %s11612_s18 = smov 0   ;;  %s11614_s19 = smov 0   ;;  %s14632_s0 = inlined_call_operand.vmem [shape: f32[2,16,16,4], index: 0, kind: input, shape index: {}]   ;;  %s14633_s1 = inlined_call_operand.vmem [shape: f32[9,4,8], index: 1, kind: input, shape index: {}]   ;;  %s14634_s2 = inlined_call_operand.vmem [shape: f32[1,8], index: 2, kind: input, shape index: {}]   ;;  %s14635_s3 = inlined_call_operand.vmem [shape: f32[9,8,4], index: 3, kind: input, shape index: {}]   ;;  %s14636_s4 = inlined_call_operand.vmem [shape: f32[1,4], index: 4, kind: input, shape index: {}]   ;;  %s14637_s5 = inlined_call_operand.vmem [shape: f32[2,16,16,4], index: 5, kind: output, shape index: {}]  }
   0x1   :  { %s11616_s20 = smov 0  }
   0x2 LB: > { %s27_s21 = sadd.s32 1, %s11575_s19  ;;  %p9290_p0 = scmp.ge.s32.totalorder %s11579_s20, 1  ;;  %s11579_s20 = sphi %s11616_s20, %s15_s20   ;;  %s11575_s19 = sphi %s11614_s19, %s14774_s19   ;;  %s11571_s18 = sphi %s11612_s18, %s14773_s18  }
   0x3   : > { %p29_p1 = scmp.ge.s32.totalorder %s27_s21, 2  ;;  %p201_p2 = scmp.lt.s32.totalorder %s11579_s20, 3 }
   0x5   : > { %s14776_s21 = smov (%p29_p1, %s27_s21), 0  ;;  %p202_p3 = pnand %p9290_p0, %p201_p2 }
   0x7   : > { %205 = sbr.rel (%p202_p3) target bundleno = 1122 (0x462), region = 40 }
   0xe   : > { %v449_v0 = vld [vmem:[%s14633_s1] sm:$0xf]  ;;  %vm558_vm0 = vcmask 1043456   ;;  %vm251_vm1 = vcmask 24576   ;;  %vm327_vm2 = vcmask 31744   ;;  %v14638_v1 = vmov 0.0  }
   0xf   : > { %10576 = vmatprep.subr.msk.mxu0 %vm558_vm0, %v449_v0  ;;  %252 = vst.msk [vmem:[#allocation2] sm:$0x1] %vm251_vm1, %v14638_v1  ;;  %253 = vst.msk [vmem:[#allocation2 + $0x18] sm:$0x1] %vm251_vm1, %v14638_v1  ;;  %v9378_v2 = vld [vmem:[%s14633_s1 + $0x8] sm:$0xf]  ;;  %11530 = vmatprep.subr.msk.mxu1 %vm558_vm0, %v449_v0 }
  0x10   : > { %254 = vst.msk [vmem:[#allocation2 + $0x30] sm:$0x1] %vm251_vm1, %v14638_v1  ;;  %255 = vst.msk [vmem:[#allocation2 + $0x48] sm:$0x1] %vm251_vm1, %v14638_v1  ;;  %p234_p4 = scmp.lt.s32.totalorder %s11571_s18, 1  ;;  %vm381_vm3 = vcmask 25600   ;;  %10577 = vmatpush3.msk.msra.mxu0 %vm558_vm0, %v449_v0  ;;  %11531 = vmatpush3.msk.msra.mxu1 %vm558_vm0, %v449_v0 }
  0x11   : > { %256 = vst.msk [vmem:[#allocation2 + $0x60] sm:$0x1] %vm251_vm1, %v14638_v1  ;;  %257 = vst.msk [vmem:[#allocation2 + $0x78] sm:$0x1] %vm251_vm1, %v14638_v1  ;;  %v11732_v3 = vld [vmem:[%s14633_s1 + $0x4] sm:$0xf]  ;;  %10688 = vmatprep.subr.msk.mxu0 %vm558_vm0, %v9378_v2 }
  0x12   : > { %258 = vst.msk [vmem:[#allocation2 + $0x90] sm:$0x1] %vm251_vm1, %v14638_v1  ;;  %259 = vst.msk [vmem:[#allocation2 + $0xa8] sm:$0x1] %vm251_vm1, %v14638_v1  ;;  %s14778_s18 = smov (!%p234_p4, %s11571_s18), 1  ;;  %10632 = vmatprep.subr.msk.mxu1 %vm558_vm0, %v11732_v3  ;;  %vm807_vm4 = vcmask 64512  }
  0x13   : > { %260 = vst.msk [vmem:[#allocation2 + $0xc0] sm:$0x1] %vm251_vm1, %v14638_v1  ;;  %261 = vst.msk [vmem:[#allocation2 + $0xd8] sm:$0x1] %vm251_vm1, %v14638_v1  ;;  %s9944_s28 = sshll.u32 %s14778_s18, 8  ;;  %vm4976_vm5 = vcmask 57344  }
  0x14   : > { %262 = vst.msk [vmem:[#allocation2 + $0xf0] sm:$0x1] %vm251_vm1, %v14638_v1  ;;  %263 = vst.msk [vmem:[#allocation2 + $0x108] sm:$0x1] %vm251_vm1, %v14638_v1  ;;  %s11762_s6 = scalar_lea.vmem %s14632_s0, %s9944_s28  ;;  %v11780_v13 = vld [vmem:[%s14633_s1 + $0x10] sm:$0xf]  ;;  %s14451_s27 = scalar_lea.vmem %s14637_s5, %s9944_s28 }
  0x15   : > { %264 = vst.msk [vmem:[#allocation2 + $0x120] sm:$0x1] %vm251_vm1, %v14638_v1  ;;  %265 = vst.msk [vmem:[#allocation2 + $0x138] sm:$0x1] %vm251_vm1, %v14638_v1  ;;  %v324_v4 = vld [vmem:[%s11762_s6 + $0xf0] sm:$0xff]  ;;  %v325_v5 = vld [vmem:[%s11762_s6 + $0xf8] sm:$0xff] }
  0x16   : > { %266 = vst.msk [vmem:[#allocation2 + $0x150] sm:$0x1] %vm251_vm1, %v14638_v1  ;;  %267 = vst.msk [vmem:[#allocation2 + $0x168] sm:$0x1] %vm251_vm1, %v14638_v1  ;;  %v294_v6 = vld [vmem:[%s11762_s6] sm:$0xff]  ;;  %v295_v8 = vld [vmem:[%s11762_s6 + $0x8] sm:$0xff] }
  0x17   : > { %268 = vst.msk [vmem:[#allocation2 + $0x180] sm:$0x1] %vm251_vm1, %v14638_v1  ;;  %269 = vst.msk [vmem:[#allocation2 + $0x198] sm:$0x1] %vm251_vm1, %v14638_v1  ;;  %v296_v11 = vld [vmem:[%s11762_s6 + $0x10] sm:$0xff]  ;;  %v297_v12 = vld [vmem:[%s11762_s6 + $0x18] sm:$0xff] }
  0x18   : > { %270 = vst.msk [vmem:[#allocation2 + $0x1b0] sm:$0x1] %vm251_vm1, %v14638_v1  ;;  %271 = vst.msk [vmem:[#allocation2 + $0x1c8] sm:$0x1] %vm251_vm1, %v14638_v1  ;;  %v298_v15 = vld [vmem:[%s11762_s6 + $0x20] sm:$0xff]  ;;  %v299_v16 = vld [vmem:[%s11762_s6 + $0x28] sm:$0xff] }
  0x19   : > { %272 = vst.msk [vmem:[#allocation2 + $0x11] sm:$0x1] %vm251_vm1, %v14638_v1  ;;  %273 = vst.msk [vmem:[#allocation2 + $0x29] sm:$0x1] %vm251_vm1, %v14638_v1  ;;  %v300_v17 = vld [vmem:[%s11762_s6 + $0x30] sm:$0xff]  ;;  %v301_v18 = vld [vmem:[%s11762_s6 + $0x38] sm:$0xff] }
  0x1a   : > { %274 = vst.msk [vmem:[#allocation2 + $0x41] sm:$0x1] %vm251_vm1, %v14638_v1  ;;  %275 = vst.msk [vmem:[#allocation2 + $0x59] sm:$0x1] %vm251_vm1, %v14638_v1  ;;  %v302_v20 = vld [vmem:[%s11762_s6 + $0x40] sm:$0xff]  ;;  %v303_v21 = vld [vmem:[%s11762_s6 + $0x48] sm:$0xff] }
  0x1b   : > { %276 = vst.msk [vmem:[#allocation2 + $0x71] sm:$0x1] %vm251_vm1, %v14638_v1  ;;  %277 = vst.msk [vmem:[#allocation2 + $0x89] sm:$0x1] %vm251_vm1, %v14638_v1  ;;  %v304_v22 = vld [vmem:[%s11762_s6 + $0x50] sm:$0xff]  ;;  %v305_v23 = vld [vmem:[%s11762_s6 + $0x58] sm:$0xff] }
  0x1c   : > { %278 = vst.msk [vmem:[#allocation2 + $0xa1] sm:$0x1] %vm251_vm1, %v14638_v1  ;;  %279 = vst.msk [vmem:[#allocation2 + $0xb9] sm:$0x1] %vm251_vm1, %v14638_v1  ;;  %v306_v24 = vld [vmem:[%s11762_s6 + $0x60] sm:$0xff]  ;;  %v307_v25 = vld [vmem:[%s11762_s6 + $0x68] sm:$0xff] }
  0x1d   : > { %280 = vst.msk [vmem:[#allocation2 + $0xd1] sm:$0x1] %vm251_vm1, %v14638_v1  ;;  %281 = vst.msk [vmem:[#allocation2 + $0xe9] sm:$0x1] %vm251_vm1, %v14638_v1  ;;  %v9416_v30 = vld [vmem:[%s14633_s1 + $0xc] sm:$0xf] }
  0x1e   : > { %282 = vst.msk [vmem:[#allocation2 + $0x101] sm:$0x1] %vm251_vm1, %v14638_v1  ;;  %283 = vst.msk [vmem:[#allocation2 + $0x119] sm:$0x1] %vm251_vm1, %v14638_v1  ;;  %v308_v31 = vld [vmem:[%s11762_s6 + $0x70] sm:$0xff]  ;;  %v309_v32 = vld [vmem:[%s11762_s6 + $0x78] sm:$0xff] }
  0x1f   : > { %284 = vst.msk [vmem:[#allocation2 + $0x131] sm:$0x1] %vm251_vm1, %v14638_v1  ;;  %285 = vst.msk [vmem:[#allocation2 + $0x149] sm:$0x1] %vm251_vm1, %v14638_v1  ;;  %v310_v33 = vld [vmem:[%s11762_s6 + $0x80] sm:$0xff]  ;;  %v311_v44 = vld [vmem:[%s11762_s6 + $0x88] sm:$0xff] }
  0x20   : > { %286 = vst.msk [vmem:[#allocation2 + $0x161] sm:$0x1] %vm251_vm1, %v14638_v1  ;;  %287 = vst.msk [vmem:[#allocation2 + $0x179] sm:$0x1] %vm251_vm1, %v14638_v1  ;;  %v312_v46 = vld [vmem:[%s11762_s6 + $0x90] sm:$0xff]  ;;  %v313_v47 = vld [vmem:[%s11762_s6 + $0x98] sm:$0xff] }
  0x21   : > { %288 = vst.msk [vmem:[#allocation2 + $0x191] sm:$0x1] %vm251_vm1, %v14638_v1  ;;  %289 = vst.msk [vmem:[#allocation2 + $0x1a9] sm:$0x1] %vm251_vm1, %v14638_v1  ;;  %v314_v50 = vld [vmem:[%s11762_s6 + $0xa0] sm:$0xff]  ;;  %v315_v53 = vld [vmem:[%s11762_s6 + $0xa8] sm:$0xff] }
  0x22   : > { %290 = vst.msk [vmem:[#allocation2 + $0x1c1] sm:$0x1] %vm251_vm1, %v14638_v1  ;;  %291 = vst.msk [vmem:[#allocation2 + $0x1d9] sm:$0x1] %vm251_vm1, %v14638_v1  ;;  %v316_v54 = vld [vmem:[%s11762_s6 + $0xb0] sm:$0xff]  ;;  %v317_v55 = vld [vmem:[%s11762_s6 + $0xb8] sm:$0xff] }
  0x23   : > { %380 = vst.msk [vmem:[#allocation2 + $0x8] sm:$0xff] %vm327_vm2, %v14638_v1  ;;  %384 = vst.msk [vmem:[#allocation2 + $0x20] sm:$0xff] %vm327_vm2, %v14638_v1  ;;  %v318_v56 = vld [vmem:[%s11762_s6 + $0xc0] sm:$0xff]  ;;  %v319_v57 = vld [vmem:[%s11762_s6 + $0xc8] sm:$0xff]  ;;  %vm5054_vm6 = vcmask 58368  }
  0x24   : > { %407 = vst.msk [vmem:[#allocation2 + $0x1b8] sm:$0xff] %vm327_vm2, %v14638_v1  ;;  %411 = vst.msk [vmem:[#allocation2 + $0x1d0] sm:$0xff] %vm327_vm2, %v14638_v1  ;;  %v320_v58 = vld [vmem:[%s11762_s6 + $0xd0] sm:$0xff]  ;;  %v321_v59 = vld [vmem:[%s11762_s6 + $0xd8] sm:$0xff] }
  0x25   : > { %379 = vst.msk [vmem:[#allocation2] sm:$0xff] %vm327_vm2, %v14638_v1  ;;  %383 = vst.msk [vmem:[#allocation2 + $0x18] sm:$0xff] %vm327_vm2, %v14638_v1  ;;  %v322_v60 = vld [vmem:[%s11762_s6 + $0xe0] sm:$0xff]  ;;  %v323_v62 = vld [vmem:[%s11762_s6 + $0xe8] sm:$0xff] }
  0x26   : > { %406 = vst.msk [vmem:[#allocation2 + $0x1b0] sm:$0xff] %vm327_vm2, %v14638_v1  ;;  %410 = vst.msk [vmem:[#allocation2 + $0x1c8] sm:$0xff] %vm327_vm2, %v14638_v1 }
  0x27   : > { %382 = vst.msk [vmem:[#allocation2 + $0x10] sm:$0x3] %vm381_vm3, %v14638_v1  ;;  %385 = vst.msk [vmem:[#allocation2 + $0x28] sm:$0x3] %vm381_vm3, %v14638_v1 }
  0x28   : > { %409 = vst.msk [vmem:[#allocation2 + $0x1c0] sm:$0x3] %vm381_vm3, %v14638_v1  ;;  %412 = vst.msk [vmem:[#allocation2 + $0x1d8] sm:$0x3] %vm381_vm3, %v14638_v1 }
  0x29   : > { %358 = vst.msk [vmem:[#allocation2 + $0x199] sm:$0xff] %vm327_vm2, %v324_v4  ;;  %359 = vst.msk [vmem:[#allocation2 + $0x1a1] sm:$0xff] %vm327_vm2, %v325_v5 }
  0x2a   : > { %v414_v7 = vld [vmem:[#allocation2 + $0x8] sm:$0xff]  ;;  %328 = vst.msk [vmem:[#allocation2 + $0x31] sm:$0xff] %vm327_vm2, %v294_v6  ;;  %329 = vst.msk [vmem:[#allocation2 + $0x39] sm:$0xff] %vm327_vm2, %v295_v8  ;;  %v11783_v14 = vld [vmem:[#allocation2 + $0x20] sm:$0xff] }
  0x2b   : > { %330 = vst.msk [vmem:[#allocation2 + $0x49] sm:$0xff] %vm327_vm2, %v296_v11  ;;  %331 = vst.msk [vmem:[#allocation2 + $0x51] sm:$0xff] %vm327_vm2, %v297_v12 }
  0x2c   : > { %v413_v9 = vld [vmem:[#allocation2] sm:$0xff]  ;;  %v11771_v10 = vld [vmem:[#allocation2 + $0x18] sm:$0xff]  ;;  %332 = vst.msk [vmem:[#allocation2 + $0x61] sm:$0xff] %vm327_vm2, %v298_v15  ;;  %333 = vst.msk [vmem:[#allocation2 + $0x69] sm:$0xff] %vm327_vm2, %v299_v16 }
  0x2d   : > { %10578 = vmatprep.mubr.msk.f32.mxu0 %vm327_vm2, %v413_v9  ;;  %v844_v19 = vld [vmem:[#allocation2 + $0x1] sm:$0xff]  ;;  %334 = vst.msk [vmem:[#allocation2 + $0x79] sm:$0xff] %vm327_vm2, %v300_v17  ;;  %335 = vst.msk [vmem:[#allocation2 + $0x81] sm:$0xff] %vm327_vm2, %v301_v18  ;;  %v11844_v36 = vld [vmem:[#allocation2 + $0x19] sm:$0xff] }
  0x2e   : > { %10579 = vmatmul.mubr.msk.f32.vlgmr.msra.gmra.mrb[0].mxu0 %vm327_vm2, %v414_v7  ;;  %336 = vst.msk [vmem:[#allocation2 + $0x91] sm:$0xff] %vm327_vm2, %v302_v20  ;;  %337 = vst.msk [vmem:[#allocation2 + $0x99] sm:$0xff] %vm327_vm2, %v303_v21  ;;  %v845_v34 = vld [vmem:[#allocation2 + $0x9] sm:$0xff]  ;;  %v11856_v39 = vld [vmem:[#allocation2 + $0x21] sm:$0xff] }
  0x2f   : > { %10689 = vmatpush3.msk.msra.mxu0 %vm558_vm0, %v9378_v2  ;;  %10581 = vmatprep.mubr.msk.f32.mxu0 %vm327_vm2, %v11771_v10  ;;  %338 = vst.msk [vmem:[#allocation2 + $0xa9] sm:$0xff] %vm327_vm2, %v304_v22  ;;  %339 = vst.msk [vmem:[#allocation2 + $0xb1] sm:$0xff] %vm327_vm2, %v305_v23  ;;  %v12008_v23 = vld [vmem:[%s14633_s1 + $0x14] sm:$0xf]  ;;  %v1346_v1 = vld [vmem:[#allocation2 + $0x2] sm:$0xff] }
  0x30   : > { %10800 = vmatprep.subr.msk.mxu0 %vm558_vm0, %v11780_v13  ;;  %v11811_v26 = vld [vmem:[#allocation2 + $0x198] sm:$0xff]  ;;  %v11813_v27 = vld [vmem:[#allocation2 + $0x1a0] sm:$0xff]  ;;  %340 = vst.msk [vmem:[#allocation2 + $0xc1] sm:$0xff] %vm327_vm2, %v306_v24  ;;  %341 = vst.msk [vmem:[#allocation2 + $0xc9] sm:$0xff] %vm327_vm2, %v307_v25 }
  0x31   : > { %v11815_v28 = vld [vmem:[#allocation2 + $0x30] sm:$0xff]  ;;  %10629 = vmatprep.mubr.msk.f32.mxu1 %vm327_vm2, %v11811_v26  ;;  %v11824_v29 = vld [vmem:[#allocation2 + $0x38] sm:$0xff]  ;;  %342 = vst.msk [vmem:[#allocation2 + $0xd9] sm:$0xff] %vm327_vm2, %v308_v31  ;;  %343 = vst.msk [vmem:[#allocation2 + $0xe1] sm:$0xff] %vm327_vm2, %v309_v32 }
  0x32   : > { %10582 = vmatmul.mubr.msk.f32.gmra.mrb[2].mxu0 %vm327_vm2, %v11783_v14  ;;  %14684 = vst [vmem:[#allocation6_spill] sm:$0xff] %v11815_v28  ;;  %14685 = vst [vmem:[#allocation7_spill] sm:$0xff] %v11824_v29  ;;  %10630 = vmatmul.mubr.msk.f32.vlgmr.msra.gmra.mrb[0].mxu1 %vm327_vm2, %v11813_v27  ;;  %v11837_v35 = vld [vmem:[#allocation2 + $0x48] sm:$0xff]  ;;  %v11849_v37 = vld [vmem:[#allocation2 + $0x50] sm:$0xff] }
  0x33   : > { %10584 = vmatprep.mubr.msk.f32.mxu0 %vm327_vm2, %v11815_v28  ;;  %10633 = vmatpush3.msk.msra.mxu1 %vm558_vm0, %v11732_v3  ;;  %14686 = vst [vmem:[#allocation8_spill] sm:$0xff] %v11837_v35  ;;  %344 = vst.msk [vmem:[#allocation2 + $0xf1] sm:$0xff] %vm327_vm2, %v310_v33  ;;  %v11852_v38 = vld [vmem:[#allocation2 + $0x60] sm:$0xff]  ;;  %v11861_v40 = vld [vmem:[#allocation2 + $0x31] sm:$0xff] }
  0x34   : > { %10634 = vmatprep.mubr.msk.f32.mxu1 %vm327_vm2, %v844_v19  ;;  %10744 = vmatprep.subr.msk.mxu1 %vm558_vm0, %v9416_v30  ;;  %14687 = vst [vmem:[#allocation9_spill] sm:$0xff] %v11849_v37  ;;  %14688 = vst [vmem:[#allocation10_spill] sm:$0xff] %v11852_v38  ;;  %v11865_v41 = vld [vmem:[#allocation2 + $0x68] sm:$0xff]  ;;  %v11869_v42 = vld [vmem:[#allocation2 + $0x78] sm:$0xff] }
  0x35   : > { %14689 = vst [vmem:[#allocation11_spill] sm:$0xff] %v11865_v41  ;;  %14690 = vst [vmem:[#allocation12_spill] sm:$0xff] %v11869_v42  ;;  %v11873_v43 = vld [vmem:[#allocation2 + $0x39] sm:$0xff]  ;;  %v11878_v45 = vld [vmem:[#allocation2 + $0x49] sm:$0xff] }
  0x36   : > { %10585 = vmatmul.mubr.msk.f32.gmra.mrb[4].mxu0 %vm327_vm2, %v11824_v29  ;;  %10635 = vmatmul.mubr.msk.f32.vlgmr.msra.gmra.mrb[2].mxu1 %vm327_vm2, %v845_v34  ;;  %345 = vst.msk [vmem:[#allocation2 + $0xf9] sm:$0xff] %vm327_vm2, %v311_v44  ;;  %v11885_v48 = vld [vmem:[#allocation2 + $0x80] sm:$0xff]  ;;  %v11887_v49 = vld [vmem:[#allocation2 + $0x51] sm:$0xff]  ;;  %346 = vst.msk [vmem:[#allocation2 + $0x109] sm:$0xff] %vm327_vm2, %v312_v46 }
  0x37   : > { %10587 = vmatprep.mubr.msk.f32.mxu0 %vm327_vm2, %v11837_v35  ;;  %10637 = vmatprep.mubr.msk.f32.mxu1 %vm327_vm2, %v11844_v36  ;;  %14691 = vst [vmem:[#allocation13_spill] sm:$0xff] %v11885_v48  ;;  %347 = vst.msk [vmem:[#allocation2 + $0x111] sm:$0xff] %vm327_vm2, %v313_v47  ;;  %v11894_v51 = vld [vmem:[#allocation2 + $0x90] sm:$0xff]  ;;  %v11896_v52 = vld [vmem:[#allocation2 + $0x61] sm:$0xff] }
  0x38   : > { %10745 = vmatpush3.msk.msra.mxu1 %vm558_vm0, %v9416_v30  ;;  %14692 = vst [vmem:[#allocation14_spill] sm:$0xff] %v11894_v51  ;;  %348 = vst.msk [vmem:[#allocation2 + $0x121] sm:$0xff] %vm327_vm2, %v314_v50  ;;  %v11918_v61 = vld [vmem:[#allocation2 + $0x98] sm:$0xff]  ;;  %v11926_v63 = vld [vmem:[#allocation2 + $0xa8] sm:$0xff] }
  0x39   : > { %349 = vst.msk [vmem:[#allocation2 + $0x129] sm:$0xff] %vm327_vm2, %v315_v53  ;;  %350 = vst.msk [vmem:[#allocation2 + $0x139] sm:$0xff] %vm327_vm2, %v316_v54  ;;  %v11931_v0 = vld [vmem:[#allocation2 + $0x69] sm:$0xff]  ;;  %v11935_v2 = vld [vmem:[#allocation2 + $0x79] sm:$0xff]  ;;  %10856 = vmatprep.subr.msk.mxu1 %vm558_vm0, %v12008_v23 }
  0x3a   : > { %10588 = vmatmul.mubr.msk.f32.gmra.mrb[6].mxu0 %vm327_vm2, %v11849_v37  ;;  %10638 = vmatmul.mubr.msk.f32.gmra.mrb[4].mxu1 %vm327_vm2, %v11856_v39  ;;  %351 = vst.msk [vmem:[#allocation2 + $0x141] sm:$0xff] %vm327_vm2, %v317_v55  ;;  %352 = vst.msk [vmem:[#allocation2 + $0x151] sm:$0xff] %vm327_vm2, %v318_v56  ;;  %v11939_v3 = vld [vmem:[#allocation2 + $0xb0] sm:$0xff]  ;;  %v11943_v4 = vld [vmem:[#allocation2 + $0xc0] sm:$0xff] }
  0x3b   : > { %10590 = vmatprep.mubr.msk.f32.mxu0 %vm327_vm2, %v11852_v38  ;;  %10640 = vmatprep.mubr.msk.f32.mxu1 %vm327_vm2, %v11861_v40  ;;  %353 = vst.msk [vmem:[#allocation2 + $0x159] sm:$0xff] %vm327_vm2, %v319_v57  ;;  %14693 = vst [vmem:[#allocation15_spill] sm:$0xff] %v11918_v61  ;;  %v11947_v5 = vld [vmem:[#allocation2 + $0x81] sm:$0xff]  ;;  %v11951_v6 = vld [vmem:[#allocation2 + $0x91] sm:$0xff] }
  0x3c   : > { %354 = vst.msk [vmem:[#allocation2 + $0x169] sm:$0xff] %vm327_vm2, %v320_v58  ;;  %355 = vst.msk [vmem:[#allocation2 + $0x171] sm:$0xff] %vm327_vm2, %v321_v59  ;;  %v11955_v7 = vld [vmem:[#allocation2 + $0xc8] sm:$0xff]  ;;  %v11959_v8 = vld [vmem:[#allocation2 + $0xd8] sm:$0xff] }
  0x3d   : > { %356 = vst.msk [vmem:[#allocation2 + $0x181] sm:$0xff] %vm327_vm2, %v322_v60  ;;  %357 = vst.msk [vmem:[#allocation2 + $0x189] sm:$0xff] %vm327_vm2, %v323_v62  ;;  %v11963_v9 = vld [vmem:[#allocation2 + $0x99] sm:$0xff]  ;;  %v11967_v11 = vld [vmem:[#allocation2 + $0xa9] sm:$0xff] }
  0x3e   : > { %10591 = vmatmul.mubr.msk.f32.gmra.mrb[8].mxu0 %vm327_vm2, %v11865_v41  ;;  %10641 = vmatmul.mubr.msk.f32.gmra.mrb[6].mxu1 %vm327_vm2, %v11873_v43  ;;  %v11971_v12 = vld [vmem:[#allocation2 + $0xe0] sm:$0xff]  ;;  %v11975_v15 = vld [vmem:[#allocation2 + $0xf0] sm:$0xff]  ;;  %v11987_v18 = vld [vmem:[#allocation2 + $0xf8] sm:$0xff] }
  0x3f   : > { %10593 = vmatprep.mubr.msk.f32.mxu0 %vm327_vm2, %v11869_v42  ;;  %10643 = vmatprep.mubr.msk.f32.mxu1 %vm327_vm2, %v11878_v45  ;;  %v11979_v16 = vld [vmem:[#allocation2 + $0xb1] sm:$0xff]  ;;  %v11983_v17 = vld [vmem:[#allocation2 + $0xc1] sm:$0xff]  ;;  %v11995_v20 = vld [vmem:[#allocation2 + $0xc9] sm:$0xff] }
  0x40   : > { %v11991_v19 = vld [vmem:[#allocation2 + $0x108] sm:$0xff]  ;;  %v11999_v21 = vld [vmem:[#allocation2 + $0xd9] sm:$0xff]  ;;  %v12003_v22 = vld [vmem:[#allocation2 + $0x110] sm:$0xff] }
  0x41   : > { %v12012_v24 = vld [vmem:[#allocation2 + $0x120] sm:$0xff]  ;;  %v12022_v30 = vld [vmem:[#allocation2 + $0xf1] sm:$0xff]  ;;  %v12026_v31 = vld [vmem:[#allocation2 + $0x128] sm:$0xff] }
  0x42   : > { %10594 = vmatmul.mubr.msk.f32.gmra.mrb[10].mxu0 %vm327_vm2, %v11885_v48  ;;  %10644 = vmatmul.mubr.msk.f32.gmra.mrb[8].mxu1 %vm327_vm2, %v11887_v49  ;;  %v12018_v25 = vld [vmem:[#allocation2 + $0xe1] sm:$0xff]  ;;  %14694 = vst [vmem:[#allocation16_spill] sm:$0xff] %v12022_v30  ;;  %v12030_v32 = vld [vmem:[#allocation2 + $0x138] sm:$0xff]  ;;  %v12038_v34 = vld [vmem:[#allocation2 + $0x109] sm:$0xff] }
  0x43   : > { %10596 = vmatprep.mubr.msk.f32.mxu0 %vm327_vm2, %v11894_v51  ;;  %10646 = vmatprep.mubr.msk.f32.mxu1 %vm327_vm2, %v11896_v52  ;;  %v12034_v33 = vld [vmem:[#allocation2 + $0xf9] sm:$0xff]  ;;  %14696 = vst [vmem:[#allocation18_spill] sm:$0xff] %v12038_v34  ;;  %v12046_v46 = vld [vmem:[#allocation2 + $0x150] sm:$0xff]  ;;  %v12054_v50 = vld [vmem:[#allocation2 + $0x121] sm:$0xff] }
  0x44   : > { %14695 = vst [vmem:[#allocation17_spill] sm:$0xff] %v12034_v33  ;;  %v12042_v44 = vld [vmem:[#allocation2 + $0x140] sm:$0xff]  ;;  %v12050_v47 = vld [vmem:[#allocation2 + $0x111] sm:$0xff]  ;;  %14698 = vst [vmem:[#allocation20_spill] sm:$0xff] %v12054_v50 }
  0x45   : > { %14697 = vst [vmem:[#allocation19_spill] sm:$0xff] %v12050_v47  ;;  %v12058_v53 = vld [vmem:[#allocation2 + $0x158] sm:$0xff]  ;;  %v12062_v54 = vld [vmem:[#allocation2 + $0x168] sm:$0xff]  ;;  %v12074_v57 = vld [vmem:[#allocation2 + $0x170] sm:$0xff] }
  0x46   : > { %10597 = vmatmul.mubr.msk.f32.gmra.mrb[12].mxu0 %vm327_vm2, %v11918_v61  ;;  %10647 = vmatmul.mubr.msk.f32.gmra.mrb[10].mxu1 %vm327_vm2, %v11931_v0  ;;  %v12066_v55 = vld [vmem:[#allocation2 + $0x129] sm:$0xff]  ;;  %v12070_v56 = vld [vmem:[#allocation2 + $0x139] sm:$0xff]  ;;  %v12082_v59 = vld [vmem:[#allocation2 + $0x141] sm:$0xff] }
  0x47   : > { %10599 = vmatprep.mubr.msk.f32.mxu0 %vm327_vm2, %v11926_v63  ;;  %10649 = vmatprep.mubr.msk.f32.mxu1 %vm327_vm2, %v11935_v2  ;;  %14699 = vst [vmem:[#allocation21_spill] sm:$0xff] %v12066_v55  ;;  %14700 = vst [vmem:[#allocation22_spill] sm:$0xff] %v12070_v56  ;;  %v12078_v58 = vld [vmem:[#allocation2 + $0x180] sm:$0xff]  ;;  %v12086_v60 = vld [vmem:[#allocation2 + $0x151] sm:$0xff] }
  0x48   : > { %14701 = vst [vmem:[#allocation23_spill] sm:$0xff] %v12082_v59  ;;  %14702 = vst [vmem:[#allocation24_spill] sm:$0xff] %v12086_v60  ;;  %v12090_v62 = vld [vmem:[#allocation2 + $0x188] sm:$0xff] }
  0x4a   : > { %10600 = vmatmul.mubr.msk.f32.gmra.mrb[14].mxu0 %vm327_vm2, %v11939_v3  ;;  %10650 = vmatmul.mubr.msk.f32.gmra.mrb[12].mxu1 %vm327_vm2, %v11947_v5 }
  0x4b   : > { %10602 = vmatprep.mubr.msk.f32.mxu0 %vm327_vm2, %v11943_v4  ;;  %10652 = vmatprep.mubr.msk.f32.mxu1 %vm327_vm2, %v11951_v6 }
  0x4e   : > { %10603 = vmatmul.mubr.msk.f32.gmra.mrb[16].mxu0 %vm327_vm2, %v11955_v7  ;;  %10653 = vmatmul.mubr.msk.f32.gmra.mrb[14].mxu1 %vm327_vm2, %v11963_v9 }
  0x4f   : > { %10605 = vmatprep.mubr.msk.f32.mxu0 %vm327_vm2, %v11959_v8  ;;  %10655 = vmatprep.mubr.msk.f32.mxu1 %vm327_vm2, %v11967_v11 }
  0x52   : > { %10606 = vmatmul.mubr.msk.f32.gmra.mrb[18].mxu0 %vm327_vm2, %v11971_v12  ;;  %10656 = vmatmul.mubr.msk.f32.gmra.mrb[16].mxu1 %vm327_vm2, %v11979_v16 }
  0x53   : > { %10608 = vmatprep.mubr.msk.f32.mxu0 %vm327_vm2, %v11975_v15  ;;  %10658 = vmatprep.mubr.msk.f32.mxu1 %vm327_vm2, %v11983_v17 }
  0x56   : > { %10609 = vmatmul.mubr.msk.f32.gmra.mrb[20].mxu0 %vm327_vm2, %v11987_v18  ;;  %10659 = vmatmul.mubr.msk.f32.gmra.mrb[18].mxu1 %vm327_vm2, %v11995_v20 }
  0x57   : > { %10611 = vmatprep.mubr.msk.f32.mxu0 %vm327_vm2, %v11991_v19  ;;  %10661 = vmatprep.mubr.msk.f32.mxu1 %vm327_vm2, %v11999_v21 }
  0x5a   : > { %10612 = vmatmul.mubr.msk.f32.gmra.mrb[22].mxu0 %vm327_vm2, %v12003_v22  ;;  %10662 = vmatmul.mubr.msk.f32.gmra.mrb[20].mxu1 %vm327_vm2, %v12018_v25 }
  0x5b   : > { %10614 = vmatprep.mubr.msk.f32.mxu0 %vm327_vm2, %v12012_v24  ;;  %10664 = vmatprep.mubr.msk.f32.mxu1 %vm327_vm2, %v12022_v30  ;;  %v12159_v30 = vld [vmem:[#allocation2 + $0x62] sm:$0xff] }
  0x5e   : > { %10615 = vmatmul.mubr.msk.f32.gmra.mrb[24].mxu0 %vm327_vm2, %v12026_v31  ;;  %10665 = vmatmul.mubr.msk.f32.gmra.mrb[22].mxu1 %vm327_vm2, %v12034_v33  ;;  %v12155_v33 = vld [vmem:[#allocation2 + $0x52] sm:$0xff] }
  0x5f   : > { %10617 = vmatprep.mubr.msk.f32.mxu0 %vm327_vm2, %v12030_v32  ;;  %10667 = vmatprep.mubr.msk.f32.mxu1 %vm327_vm2, %v12038_v34  ;;  %v12117_v34 = vld [vmem:[#allocation2 + $0x181] sm:$0xff] }
  0x60   : > { %14706 = vst [vmem:[#allocation28_spill] sm:$0xff] %v12117_v34 }
  0x62   : > { %10618 = vmatmul.mubr.msk.f32.gmra.mrb[26].mxu0 %vm327_vm2, %v12042_v44  ;;  %10668 = vmatmul.mubr.msk.f32.gmra.mrb[24].mxu1 %vm327_vm2, %v12050_v47  ;;  %v12105_v47 = vld [vmem:[#allocation2 + $0x1a] sm:$0xff] }
  0x63   : > { %10620 = vmatprep.mubr.msk.f32.mxu0 %vm327_vm2, %v12046_v46  ;;  %10670 = vmatprep.mubr.msk.f32.mxu1 %vm327_vm2, %v12054_v50  ;;  %v1347_v50 = vld [vmem:[#allocation2 + $0xa] sm:$0xff] }
  0x66   : > { %10621 = vmatmul.mubr.msk.f32.gmra.mrb[28].mxu0 %vm327_vm2, %v12058_v53  ;;  %10671 = vmatmul.mubr.msk.f32.gmra.mrb[26].mxu1 %vm327_vm2, %v12066_v55  ;;  %v12100_v55 = vld [vmem:[#allocation2 + $0x169] sm:$0xff] }
  0x67   : > { %10623 = vmatprep.mubr.msk.f32.mxu0 %vm327_vm2, %v12062_v54  ;;  %10673 = vmatprep.mubr.msk.f32.mxu1 %vm327_vm2, %v12070_v56  ;;  %v12096_v56 = vld [vmem:[#allocation2 + $0x159] sm:$0xff]  ;;  %14704 = vst [vmem:[#allocation26_spill] sm:$0xff] %v12100_v55 }
  0x68   : > { %14703 = vst [vmem:[#allocation25_spill] sm:$0xff] %v12096_v56 }
  0x6a   : > { %10624 = vmatmul.mubr.msk.f32.gmra.mrb[30].mxu0 %vm327_vm2, %v12074_v57  ;;  %10674 = vmatmul.mubr.msk.f32.gmra.mrb[28].mxu1 %vm327_vm2, %v12082_v59  ;;  %v12109_v59 = vld [vmem:[#allocation2 + $0x171] sm:$0xff] }
  0x6b   : > { %10626 = vmatprep.mubr.msk.f32.mxu0 %vm327_vm2, %v12078_v58  ;;  %10676 = vmatprep.mubr.msk.f32.mxu1 %vm327_vm2, %v12086_v60  ;;  %14705 = vst [vmem:[#allocation27_spill] sm:$0xff] %v12109_v59  ;;  %v12114_v60 = vld [vmem:[%s14633_s1 + $0x18] sm:$0xf] }
  0x6e   : > { %10627 = vmatmul.mubr.msk.f32.gmra.mrb[32].mxu0 %vm327_vm2, %v12090_v62  ;;  %10677 = vmatmul.mubr.msk.f32.gmra.mrb[30].mxu1 %vm327_vm2, %v12096_v56  ;;  %v12141_v56 = vld [vmem:[#allocation2 + $0x3a] sm:$0xff] }
  0x6f   : > { %10690 = vmatprep.mubr.msk.f32.mxu0 %vm327_vm2, %v1346_v1  ;;  %10679 = vmatprep.mubr.msk.f32.mxu1 %vm327_vm2, %v12100_v55  ;;  %v12123_v1 = vld [vmem:[#allocation2 + $0x22] sm:$0xff]  ;;  %v12127_v55 = vld [vmem:[#allocation2 + $0x32] sm:$0xff] }
  0x72   : > { %10691 = vmatmul.mubr.msk.f32.vlgmr.msra.gmra.mrb[34].mxu0 %vm327_vm2, %v1347_v50  ;;  %10680 = vmatmul.mubr.msk.f32.gmra.mrb[32].mxu1 %vm327_vm2, %v12109_v59  ;;  %v12133_v50 = vld [vmem:[#allocation2 + $0x189] sm:$0xff] }
  0x73   : > { %10801 = vmatpush3.msk.msra.mxu0 %vm558_vm0, %v11780_v13  ;;  %10693 = vmatprep.mubr.msk.f32.mxu0 %vm327_vm2, %v12105_v47  ;;  %14707 = vst [vmem:[#allocation29_spill] sm:$0xff] %v12133_v50  ;;  %v12137_v13 = vld [vmem:[#allocation2 + $0x199] sm:$0xff]  ;;  %v12145_v59 = vld [vmem:[#allocation2 + $0x4a] sm:$0xff] }
  0x74   : > { %10912 = vmatprep.subr.msk.mxu0 %vm558_vm0, %v12114_v60  ;;  %10682 = vmatprep.mubr.msk.f32.mxu1 %vm327_vm2, %v12117_v34  ;;  %14708 = vst [vmem:[#allocation30_spill] sm:$0xff] %v12137_v13  ;;  %v12149_v34 = vld [vmem:[#allocation2 + $0x1a1] sm:$0xff] }
  0x75   : > { %14709 = vst [vmem:[#allocation31_spill] sm:$0xff] %v12149_v34 }
  0x76   : > { %10694 = vmatmul.mubr.msk.f32.gmra.mrb[36].mxu0 %vm327_vm2, %v12123_v1  ;;  %10683 = vmatmul.mubr.msk.f32.gmra.mrb[34].mxu1 %vm327_vm2, %v12133_v50  ;;  %v12172_v50 = vld [vmem:[%s14633_s1 + $0x1c] sm:$0xf] }
  0x77   : > { %10696 = vmatprep.mubr.msk.f32.mxu0 %vm327_vm2, %v12127_v55  ;;  %10685 = vmatprep.mubr.msk.f32.mxu1 %vm327_vm2, %v12137_v13  ;;  %v12167_v13 = vld [vmem:[#allocation2 + $0x6a] sm:$0xff] }
  0x7a   : > { %10697 = vmatmul.mubr.msk.f32.gmra.mrb[38].mxu0 %vm327_vm2, %v12141_v56  ;;  %10686 = vmatmul.mubr.msk.f32.gmra.mrb[36].mxu1 %vm327_vm2, %v12149_v34  ;;  %v12176_v34 = vld [vmem:[#allocation2 + $0x7a] sm:$0xff] }
  0x7b   : > { %10699 = vmatprep.mubr.msk.f32.mxu0 %vm327_vm2, %v12145_v59  ;;  %10746 = vmatprep.mubr.msk.f32.mxu1 %vm327_vm2, %v11771_v10  ;;  %v12188_v10 = vld [vmem:[#allocation2 + $0x82] sm:$0xff] }
  0x7e   : > { %10700 = vmatmul.mubr.msk.f32.gmra.mrb[40].mxu0 %vm327_vm2, %v12155_v33  ;;  %10747 = vmatmul.mubr.msk.f32.vlgmr.msra.gmra.mrb[38].mxu1 %vm327_vm2, %v11783_v14  ;;  %v12192_v14 = vld [vmem:[#allocation2 + $0x92] sm:$0xff] }
  0x7f   : > { %10702 = vmatprep.mubr.msk.f32.mxu0 %vm327_vm2, %v12159_v30  ;;  %10749 = vmatprep.mubr.msk.f32.mxu1 %vm327_vm2, %v11815_v28  ;;  %v12204_v28 = vld [vmem:[#allocation2 + $0xaa] sm:$0xff] }
  0x80   : > { %10857 = vmatpush3.msk.msra.mxu1 %vm558_vm0, %v12008_v23  ;;  %v12200_v23 = vld [vmem:[#allocation2 + $0x9a] sm:$0xff] }
  0x81   : > { %10968 = vmatprep.subr.msk.mxu1 %vm558_vm0, %v12172_v50 }
  0x82   : > { %10703 = vmatmul.mubr.msk.f32.gmra.mrb[42].mxu0 %vm327_vm2, %v12167_v13  ;;  %10750 = vmatmul.mubr.msk.f32.gmra.mrb[40].mxu1 %vm327_vm2, %v11824_v29  ;;  %v12216_v29 = vld [vmem:[#allocation2 + $0xc2] sm:$0xff] }
  0x83   : > { %10705 = vmatprep.mubr.msk.f32.mxu0 %vm327_vm2, %v12176_v34  ;;  %10752 = vmatprep.mubr.msk.f32.mxu1 %vm327_vm2, %v11837_v35  ;;  %v12212_v35 = vld [vmem:[#allocation2 + $0xb2] sm:$0xff] }
  0x86   : > { %10706 = vmatmul.mubr.msk.f32.gmra.mrb[44].mxu0 %vm327_vm2, %v12188_v10  ;;  %10753 = vmatmul.mubr.msk.f32.gmra.mrb[42].mxu1 %vm327_vm2, %v11849_v37  ;;  %v12228_v37 = vld [vmem:[#allocation2 + $0xda] sm:$0xff] }
  0x87   : > { %10708 = vmatprep.mubr.msk.f32.mxu0 %vm327_vm2, %v12192_v14  ;;  %10755 = vmatprep.mubr.msk.f32.mxu1 %vm327_vm2, %v11852_v38  ;;  %v12224_v38 = vld [vmem:[#allocation2 + $0xca] sm:$0xff] }
  0x8a   : > { %10709 = vmatmul.mubr.msk.f32.gmra.mrb[46].mxu0 %vm327_vm2, %v12200_v23  ;;  %10756 = vmatmul.mubr.msk.f32.gmra.mrb[44].mxu1 %vm327_vm2, %v11865_v41  ;;  %v12240_v41 = vld [vmem:[#allocation2 + $0xf2] sm:$0xff] }
  0x8b   : > { %10711 = vmatprep.mubr.msk.f32.mxu0 %vm327_vm2, %v12204_v28  ;;  %10758 = vmatprep.mubr.msk.f32.mxu1 %vm327_vm2, %v11869_v42  ;;  %v12236_v42 = vld [vmem:[#allocation2 + $0xe2] sm:$0xff] }
  0x8e   : > { %10712 = vmatmul.mubr.msk.f32.gmra.mrb[48].mxu0 %vm327_vm2, %v12212_v35  ;;  %10759 = vmatmul.mubr.msk.f32.gmra.mrb[46].mxu1 %vm327_vm2, %v11885_v48  ;;  %v12252_v48 = vld [vmem:[#allocation2 + $0x10a] sm:$0xff] }
  0x8f   : > { %10714 = vmatprep.mubr.msk.f32.mxu0 %vm327_vm2, %v12216_v29  ;;  %10761 = vmatprep.mubr.msk.f32.mxu1 %vm327_vm2, %v11894_v51  ;;  %v12248_v51 = vld [vmem:[#allocation2 + $0xfa] sm:$0xff] }
  0x92   : > { %10715 = vmatmul.mubr.msk.f32.gmra.mrb[50].mxu0 %vm327_vm2, %v12224_v38  ;;  %10762 = vmatmul.mubr.msk.f32.gmra.mrb[48].mxu1 %vm327_vm2, %v11918_v61  ;;  %v12264_v61 = vld [vmem:[#allocation2 + $0x122] sm:$0xff] }
  0x93   : > { %10717 = vmatprep.mubr.msk.f32.mxu0 %vm327_vm2, %v12228_v37  ;;  %10764 = vmatprep.mubr.msk.f32.mxu1 %vm327_vm2, %v11926_v63  ;;  %v12260_v63 = vld [vmem:[#allocation2 + $0x112] sm:$0xff] }
  0x96   : > { %10718 = vmatmul.mubr.msk.f32.gmra.mrb[52].mxu0 %vm327_vm2, %v12236_v42  ;;  %10765 = vmatmul.mubr.msk.f32.gmra.mrb[50].mxu1 %vm327_vm2, %v11939_v3  ;;  %v12272_v3 = vld [vmem:[#allocation2 + $0x12a] sm:$0xff] }
  0x97   : > { %10720 = vmatprep.mubr.msk.f32.mxu0 %vm327_vm2, %v12240_v41  ;;  %10767 = vmatprep.mubr.msk.f32.mxu1 %vm327_vm2, %v11943_v4  ;;  %v12276_v4 = vld [vmem:[#allocation2 + $0x13a] sm:$0xff] }
  0x9a   : > { %10721 = vmatmul.mubr.msk.f32.gmra.mrb[54].mxu0 %vm327_vm2, %v12248_v51  ;;  %10768 = vmatmul.mubr.msk.f32.gmra.mrb[52].mxu1 %vm327_vm2, %v11955_v7  ;;  %v12284_v7 = vld [vmem:[#allocation2 + $0x142] sm:$0xff] }
  0x9b   : > { %10723 = vmatprep.mubr.msk.f32.mxu0 %vm327_vm2, %v12252_v48  ;;  %10770 = vmatprep.mubr.msk.f32.mxu1 %vm327_vm2, %v11959_v8  ;;  %v12288_v8 = vld [vmem:[#allocation2 + $0x152] sm:$0xff] }
  0x9e   : > { %10724 = vmatmul.mubr.msk.f32.gmra.mrb[56].mxu0 %vm327_vm2, %v12260_v63  ;;  %10771 = vmatmul.mubr.msk.f32.gmra.mrb[54].mxu1 %vm327_vm2, %v11971_v12  ;;  %v12296_v12 = vld [vmem:[#allocation2 + $0x15a] sm:$0xff] }
  0x9f   : > { %10726 = vmatprep.mubr.msk.f32.mxu0 %vm327_vm2, %v12264_v61  ;;  %10773 = vmatprep.mubr.msk.f32.mxu1 %vm327_vm2, %v11975_v15  ;;  %v12300_v15 = vld [vmem:[#allocation2 + $0x16a] sm:$0xff] }
  0xa2   : > { %10727 = vmatmul.mubr.msk.f32.gmra.mrb[58].mxu0 %vm327_vm2, %v12272_v3  ;;  %10774 = vmatmul.mubr.msk.f32.gmra.mrb[56].mxu1 %vm327_vm2, %v11987_v18  ;;  %v12308_v18 = vld [vmem:[#allocation2 + $0x172] sm:$0xff] }
  0xa3   : > { %10729 = vmatprep.mubr.msk.f32.mxu0 %vm327_vm2, %v12276_v4  ;;  %10776 = vmatprep.mubr.msk.f32.mxu1 %vm327_vm2, %v11991_v19  ;;  %v12312_v19 = vld [vmem:[#allocation2 + $0x182] sm:$0xff] }
  0xa6   : > { %10730 = vmatmul.mubr.msk.f32.gmra.mrb[60].mxu0 %vm327_vm2, %v12284_v7  ;;  %10777 = vmatmul.mubr.msk.f32.gmra.mrb[58].mxu1 %vm327_vm2, %v12003_v22  ;;  %v12320_v22 = vld [vmem:[#allocation2 + $0x18a] sm:$0xff] }
  0xa7   : > { %10732 = vmatprep.mubr.msk.f32.mxu0 %vm327_vm2, %v12288_v8  ;;  %10779 = vmatprep.mubr.msk.f32.mxu1 %vm327_vm2, %v12012_v24  ;;  %v12324_v24 = vld [vmem:[#allocation2 + $0x19a] sm:$0xff] }
  0xaa   : > { %10733 = vmatmul.mubr.msk.f32.gmra.mrb[62].mxu0 %vm327_vm2, %v12296_v12  ;;  %10780 = vmatmul.mubr.msk.f32.gmra.mrb[60].mxu1 %vm327_vm2, %v12026_v31  ;;  %v12332_v31 = vld [vmem:[#allocation2 + $0x1a2] sm:$0xff] }
  0xab   : > { %10735 = vmatprep.mubr.msk.f32.mxu0 %vm327_vm2, %v12300_v15  ;;  %10782 = vmatprep.mubr.msk.f32.mxu1 %vm327_vm2, %v12030_v32  ;;  %v12349_v32 = vld [vmem:[%s14633_s1 + $0x20] sm:$0xf] }
  0xae   : > { %10736 = vmatmul.mubr.msk.f32.gmra.mrb[64].mxu0 %vm327_vm2, %v12308_v18  ;;  %10783 = vmatmul.mubr.msk.f32.gmra.mrb[62].mxu1 %vm327_vm2, %v12042_v44 }
  0xaf   : > { %10738 = vmatprep.mubr.msk.f32.mxu0 %vm327_vm2, %v12312_v19  ;;  %10785 = vmatprep.mubr.msk.f32.mxu1 %vm327_vm2, %v12046_v46  ;;  %v2888_v46 = vld [vmem:[#allocation2 + $0x1ba] sm:$0xff] }
  0xb2   : > { %10739 = vmatmul.mubr.msk.f32.gmra.mrb[66].mxu0 %vm327_vm2, %v12320_v22  ;;  %10786 = vmatmul.mubr.msk.f32.gmra.mrb[64].mxu1 %vm327_vm2, %v12058_v53  ;;  %v14731_v53 = vld [vmem:[#allocation11_spill] sm:$0xff] }
  0xb3   : > { %10741 = vmatprep.mubr.msk.f32.mxu0 %vm327_vm2, %v12324_v24  ;;  %10788 = vmatprep.mubr.msk.f32.mxu1 %vm327_vm2, %v12062_v54 }
  0xb6   : > { %10742 = vmatmul.mubr.msk.f32.gmra.mrb[68].mxu0 %vm327_vm2, %v12332_v31  ;;  %10789 = vmatmul.mubr.msk.f32.gmra.mrb[66].mxu1 %vm327_vm2, %v12074_v57  ;;  %v14732_v57 = vld [vmem:[#allocation12_spill] sm:$0xff] }
  0xb7   : > { %10802 = vmatprep.mubr.msk.f32.mxu0 %vm327_vm2, %v11844_v36  ;;  %10791 = vmatprep.mubr.msk.f32.mxu1 %vm327_vm2, %v12078_v58  ;;  %v12365_v36 = vld [vmem:[#allocation2 + $0x1b0] sm:$0xff] }
  0xba   : > { %10803 = vmatmul.mubr.msk.f32.vlgmr.msra.gmra.mrb[70].mxu0 %vm327_vm2, %v11856_v39  ;;  %10792 = vmatmul.mubr.msk.f32.gmra.mrb[68].mxu1 %vm327_vm2, %v12090_v62  ;;  %v12373_v39 = vld [vmem:[#allocation2 + $0x1b8] sm:$0xff] }
  0xbb   : > { %10913 = vmatpush3.msk.msra.mxu0 %vm558_vm0, %v12114_v60  ;;  %10805 = vmatprep.mubr.msk.f32.mxu0 %vm327_vm2, %v11861_v40  ;;  %v14712_v40 = vld [vmem:[#allocation18_spill] sm:$0xff] }
  0xbc   : > { %11024 = vmatprep.subr.msk.mxu0 %vm558_vm0, %v12349_v32  ;;  %10794 = vmatprep.mubr.msk.f32.mxu1 %vm327_vm2, %v11811_v26  ;;  %v14710_v26 = vld [vmem:[#allocation16_spill] sm:$0xff] }
  0xbe   : > { %10806 = vmatmul.mubr.msk.f32.gmra.mrb[72].mxu0 %vm327_vm2, %v11873_v43  ;;  %10795 = vmatmul.mubr.msk.f32.gmra.mrb[70].mxu1 %vm327_vm2, %v11813_v27  ;;  %v14711_v27 = vld [vmem:[#allocation17_spill] sm:$0xff]  ;;  %v14713_v43 = vld [vmem:[#allocation19_spill] sm:$0xff] }
  0xbf   : > { %10808 = vmatprep.mubr.msk.f32.mxu0 %vm327_vm2, %v11878_v45  ;;  %10797 = vmatprep.mubr.msk.f32.mxu1 %vm327_vm2, %v12365_v36  ;;  %v14714_v45 = vld [vmem:[#allocation20_spill] sm:$0xff] }
  0xc2   : > { %10809 = vmatmul.mubr.msk.f32.gmra.mrb[74].mxu0 %vm327_vm2, %v11887_v49  ;;  %10798 = vmatmul.mubr.msk.f32.gmra.mrb[72].mxu1 %vm327_vm2, %v12373_v39  ;;  %v14716_v49 = vld [vmem:[#allocation22_spill] sm:$0xff] }
  0xc3   : > { %10811 = vmatprep.mubr.msk.f32.mxu0 %vm327_vm2, %v11896_v52  ;;  %10858 = vmatprep.mubr.msk.f32.mxu1 %vm327_vm2, %v12105_v47  ;;  %v12487_v52 = vld [vmem:[#allocation2 + $0x1b1] sm:$0xff] }
  0xc6   : > { %10812 = vmatmul.mubr.msk.f32.gmra.mrb[76].mxu0 %vm327_vm2, %v11931_v0  ;;  %10859 = vmatmul.mubr.msk.f32.vlgmr.msra.gmra.mrb[74].mxu1 %vm327_vm2, %v12123_v1  ;;  %v12495_v0 = vld [vmem:[#allocation2 + $0x1b9] sm:$0xff] }
  0xc7   : > { %10814 = vmatprep.mubr.msk.f32.mxu0 %vm327_vm2, %v11935_v2  ;;  %10861 = vmatprep.mubr.msk.f32.mxu1 %vm327_vm2, %v12127_v55  ;;  %v14726_v2 = vld [vmem:[#allocation6_spill] sm:$0xff] }
  0xc8   : > { %10969 = vmatpush3.msk.msra.mxu1 %vm558_vm0, %v12172_v50  ;;  %v3857_v55 = vld [vmem:[#allocation2 + $0x31] sm:$0xff]  ;;  %v3858_v50 = vld [vmem:[#allocation2 + $0x39] sm:$0xff] }
  0xca   : > { %10815 = vmatmul.mubr.msk.f32.gmra.mrb[78].mxu0 %vm327_vm2, %v11947_v5  ;;  %10862 = vmatmul.mubr.msk.f32.gmra.mrb[76].mxu1 %vm327_vm2, %v12141_v56 }
  0xcb   : > { %10817 = vmatprep.mubr.msk.f32.mxu0 %vm327_vm2, %v11951_v6  ;;  %10864 = vmatprep.mubr.msk.f32.mxu1 %vm327_vm2, %v12145_v59 }
  0xce   : > { %10818 = vmatmul.mubr.msk.f32.gmra.mrb[80].mxu0 %vm327_vm2, %v11963_v9  ;;  %10865 = vmatmul.mubr.msk.f32.gmra.mrb[78].mxu1 %vm327_vm2, %v12155_v33  ;;  %v14727_v9 = vld [vmem:[#allocation7_spill] sm:$0xff] }
  0xcf   : > { %10820 = vmatprep.mubr.msk.f32.mxu0 %vm327_vm2, %v11967_v11  ;;  %10867 = vmatprep.mubr.msk.f32.mxu1 %vm327_vm2, %v12159_v30  ;;  %v14728_v11 = vld [vmem:[#allocation8_spill] sm:$0xff]  ;;  %v14730_v30 = vld [vmem:[#allocation10_spill] sm:$0xff] }
  0xd2   : > { %10821 = vmatmul.mubr.msk.f32.gmra.mrb[82].mxu0 %vm327_vm2, %v11979_v16  ;;  %10868 = vmatmul.mubr.msk.f32.gmra.mrb[80].mxu1 %vm327_vm2, %v12167_v13 }
  0xd3   : > { %10823 = vmatprep.mubr.msk.f32.mxu0 %vm327_vm2, %v11983_v17  ;;  %10870 = vmatprep.mubr.msk.f32.mxu1 %vm327_vm2, %v12176_v34 }
  0xd6   : > { %10824 = vmatmul.mubr.msk.f32.gmra.mrb[84].mxu0 %vm327_vm2, %v11995_v20  ;;  %10871 = vmatmul.mubr.msk.f32.gmra.mrb[82].mxu1 %vm327_vm2, %v12188_v10  ;;  %v14729_v20 = vld [vmem:[#allocation9_spill] sm:$0xff] }
  0xd7   : > { %10826 = vmatprep.mubr.msk.f32.mxu0 %vm327_vm2, %v11999_v21  ;;  %10873 = vmatprep.mubr.msk.f32.mxu1 %vm327_vm2, %v12192_v14  ;;  %v2887_v21 = vld [vmem:[#allocation2 + $0x1b2] sm:$0xff]  ;;  %v14733_v10 = vld [vmem:[#allocation13_spill] sm:$0xff] }
  0xda   : > { %10827 = vmatmul.mubr.msk.f32.gmra.mrb[86].mxu0 %vm327_vm2, %v12018_v25  ;;  %10874 = vmatmul.mubr.msk.f32.gmra.mrb[84].mxu1 %vm327_vm2, %v12200_v23  ;;  %v3859_v23 = vld [vmem:[#allocation2 + $0x49] sm:$0xff] }
  0xdb   : > { %10829 = vmatprep.mubr.msk.f32.mxu0 %vm327_vm2, %v14710_v26  ;;  %10876 = vmatprep.mubr.msk.f32.mxu1 %vm327_vm2, %v12204_v28  ;;  %v14715_v28 = vld [vmem:[#allocation21_spill] sm:$0xff] }
  0xde   : > { %10830 = vmatmul.mubr.msk.f32.gmra.mrb[88].mxu0 %vm327_vm2, %v14711_v27  ;;  %10877 = vmatmul.mubr.msk.f32.gmra.mrb[86].mxu1 %vm327_vm2, %v12212_v35  ;;  %v14718_v35 = vld [vmem:[#allocation24_spill] sm:$0xff]  ;;  %v3366_v27 = vld [vmem:[#allocation2 + $0xb0] sm:$0xff] }
  0xdf   : > { %10832 = vmatprep.mubr.msk.f32.mxu0 %vm327_vm2, %v14712_v40  ;;  %10879 = vmatprep.mubr.msk.f32.mxu1 %vm327_vm2, %v12216_v29  ;;  %v14717_v29 = vld [vmem:[#allocation23_spill] sm:$0xff] }
  0xe2   : > { %10833 = vmatmul.mubr.msk.f32.gmra.mrb[90].mxu0 %vm327_vm2, %v14713_v43  ;;  %10880 = vmatmul.mubr.msk.f32.gmra.mrb[88].mxu1 %vm327_vm2, %v12224_v38  ;;  %v14720_v38 = vld [vmem:[#allocation26_spill] sm:$0xff] }
  0xe3   : > { %10835 = vmatprep.mubr.msk.f32.mxu0 %vm327_vm2, %v14714_v45  ;;  %10882 = vmatprep.mubr.msk.f32.mxu1 %vm327_vm2, %v12228_v37  ;;  %v14719_v37 = vld [vmem:[#allocation25_spill] sm:$0xff]  ;;  %v3367_v45 = vld [vmem:[#allocation2 + $0xc0] sm:$0xff] }
  0xe6   : > { %10836 = vmatmul.mubr.msk.f32.gmra.mrb[92].mxu0 %vm327_vm2, %v14715_v28  ;;  %10883 = vmatmul.mubr.msk.f32.gmra.mrb[90].mxu1 %vm327_vm2, %v12236_v42  ;;  %v14722_v42 = vld [vmem:[#allocation28_spill] sm:$0xff] }
  0xe7   : > { %10838 = vmatprep.mubr.msk.f32.mxu0 %vm327_vm2, %v14716_v49  ;;  %10885 = vmatprep.mubr.msk.f32.mxu1 %vm327_vm2, %v12240_v41  ;;  %v14721_v41 = vld [vmem:[#allocation27_spill] sm:$0xff] }
  0xea   : > { %10839 = vmatmul.mubr.msk.f32.gmra.mrb[94].mxu0 %vm327_vm2, %v14717_v29  ;;  %10886 = vmatmul.mubr.msk.f32.gmra.mrb[92].mxu1 %vm327_vm2, %v12248_v51  ;;  %v14724_v51 = vld [vmem:[#allocation30_spill] sm:$0xff] }
  0xeb   : > { %10841 = vmatprep.mubr.msk.f32.mxu0 %vm327_vm2, %v14718_v35  ;;  %10888 = vmatprep.mubr.msk.f32.mxu1 %vm327_vm2, %v12252_v48  ;;  %v14723_v48 = vld [vmem:[#allocation29_spill] sm:$0xff] }
  0xec   : > { %v3862_v35 = vld [vmem:[#allocation2 + $0x69] sm:$0xff] }
  0xee   : > { %10842 = vmatmul.mubr.msk.f32.gmra.mrb[96].mxu0 %vm327_vm2, %v14719_v37  ;;  %10889 = vmatmul.mubr.msk.f32.gmra.mrb[94].mxu1 %vm327_vm2, %v12260_v63 }
  0xef   : > { %10844 = vmatprep.mubr.msk.f32.mxu0 %vm327_vm2, %v14720_v38  ;;  %10891 = vmatprep.mubr.msk.f32.mxu1 %vm327_vm2, %v12264_v61  ;;  %v14725_v61 = vld [vmem:[#allocation31_spill] sm:$0xff] }
  0xf2   : > { %10845 = vmatmul.mubr.msk.f32.gmra.mrb[98].mxu0 %vm327_vm2, %v14721_v41  ;;  %10892 = vmatmul.mubr.msk.f32.gmra.mrb[96].mxu1 %vm327_vm2, %v12272_v3  ;;  %v14734_v3 = vld [vmem:[#allocation14_spill] sm:$0xff]  ;;  %v3863_v41 = vld [vmem:[#allocation2 + $0x79] sm:$0xff] }
  0xf3   : > { %10847 = vmatprep.mubr.msk.f32.mxu0 %vm327_vm2, %v14722_v42  ;;  %10894 = vmatprep.mubr.msk.f32.mxu1 %vm327_vm2, %v12276_v4 }
  0xf6   : > { %10848 = vmatmul.mubr.msk.f32.gmra.mrb[100].mxu0 %vm327_vm2, %v14723_v48  ;;  %10895 = vmatmul.mubr.msk.f32.gmra.mrb[98].mxu1 %vm327_vm2, %v12284_v7  ;;  %v3368_v48 = vld [vmem:[#allocation2 + $0xc8] sm:$0xff] }
  0xf7   : > { %10850 = vmatprep.mubr.msk.f32.mxu0 %vm327_vm2, %v14724_v51  ;;  %10897 = vmatprep.mubr.msk.f32.mxu1 %vm327_vm2, %v12288_v8  ;;  %v3365_v8 = vld [vmem:[#allocation2 + $0xa8] sm:$0xff] }
  0xfa   : > { %10851 = vmatmul.mubr.msk.f32.gmra.mrb[102].mxu0 %vm327_vm2, %v14725_v61  ;;  %10898 = vmatmul.mubr.msk.f32.gmra.mrb[100].mxu1 %vm327_vm2, %v12296_v12 }
  0xfb   : > { %10853 = vmatprep.mubr.msk.f32.mxu0 %vm327_vm2, %v12487_v52  ;;  %10900 = vmatprep.mubr.msk.f32.mxu1 %vm327_vm2, %v12300_v15 }
  0xfe   : > { %10854 = vmatmul.mubr.msk.f32.gmra.mrb[104].mxu0 %vm327_vm2, %v12495_v0  ;;  %10901 = vmatmul.mubr.msk.f32.gmra.mrb[102].mxu1 %vm327_vm2, %v12308_v18 }
  0xff   : > { %10914 = vmatprep.mubr.msk.f32.mxu0 %vm327_vm2, %v14726_v2  ;;  %10903 = vmatprep.mubr.msk.f32.mxu1 %vm327_vm2, %v12312_v19  ;;  %v3860_v19 = vld [vmem:[#allocation2 + $0x51] sm:$0xff] }
 0x100   : > { %v3369_v2 = vld [vmem:[#allocation2 + $0xd8] sm:$0xff] }
 0x101   : > { %v10580_v5 = vpop.f32.mrb[0].mxu0 }
 0x102   : > { %809 = vst.msk [vmem:[#allocation4 + $0x8] sm:$0xff] %vm807_vm4, %v10580_v5  ;;  %v628_v6 = vpop.f32.mrb[1].mxu0  ;;  %10915 = vmatmul.mubr.msk.f32.vlgmr.msra.gmra.mrb[106].mxu0 %vm327_vm2, %v14727_v9  ;;  %10904 = vmatmul.mubr.msk.f32.gmra.mrb[104].mxu1 %vm327_vm2, %v12320_v22 }
 0x103   : > { %808 = vst.msk [vmem:[#allocation4] sm:$0xff] %vm807_vm4, %v628_v6  ;;  %11025 = vmatpush3.msk.msra.mxu0 %vm558_vm0, %v12349_v32  ;;  %10917 = vmatprep.mubr.msk.f32.mxu0 %vm327_vm2, %v14728_v11  ;;  %v3861_v32 = vld [vmem:[#allocation2 + $0x61] sm:$0xff] }
 0x104   : > { %10906 = vmatprep.mubr.msk.f32.mxu1 %vm327_vm2, %v12324_v24  ;;  %v14735_v24 = vld [vmem:[#allocation15_spill] sm:$0xff]  ;;  %v3864_v11 = vld [vmem:[#allocation2 + $0x81] sm:$0xff] }
 0x105   : > { %v10583_v16 = vpop.f32.mrb[2].mxu0  ;;  %v10631_v25 = vpop.f32.mrb[0].mxu1 }
 0x106   : > { %811 = vst.msk [vmem:[#allocation4 + $0x18] sm:$0xff] %vm807_vm4, %v10583_v16  ;;  %v638_v17 = vpop.f32.mrb[3].mxu0  ;;  %10918 = vmatmul.mubr.msk.f32.gmra.mrb[108].mxu0 %vm327_vm2, %v14729_v20  ;;  %10907 = vmatmul.mubr.msk.f32.gmra.mrb[106].mxu1 %vm327_vm2, %v12332_v31  ;;  %843 = vst.msk [vmem:[#allocation4 + $0x118] sm:$0xff] %vm807_vm4, %v10631_v25  ;;  %v798_v33 = vpop.f32.mrb[1].mxu1  ;;  %v3865_v20 = vld [vmem:[#allocation2 + $0x91] sm:$0xff]  ;;  %v3370_v25 = vld [vmem:[#allocation2 + $0xe0] sm:$0xff] }
 0x107   : > { %810 = vst.msk [vmem:[#allocation4 + $0x10] sm:$0xff] %vm807_vm4, %v638_v17  ;;  %10920 = vmatprep.mubr.msk.f32.mxu0 %vm327_vm2, %v14730_v30  ;;  %842 = vst.msk [vmem:[#allocation4 + $0x110] sm:$0xff] %vm807_vm4, %v798_v33  ;;  %10909 = vmatprep.mubr.msk.f32.mxu1 %vm327_vm2, %v2887_v21 }
 0x109   : > { %v10586_v34 = vpop.f32.mrb[4].mxu0  ;;  %v1239_v44 = vld [vmem:[#allocation4 + $0x8] sm:$0xff]  ;;  %v10636_v56 = vpop.f32.mrb[2].mxu1 }
 0x10a   : > { %813 = vst.msk [vmem:[#allocation4 + $0x28] sm:$0xff] %vm807_vm4, %v10586_v34  ;;  %v648_v47 = vpop.f32.mrb[5].mxu0  ;;  %10921 = vmatmul.mubr.msk.f32.gmra.mrb[110].mxu0 %vm327_vm2, %v14731_v53  ;;  %v1238_v54 = vld [vmem:[#allocation4] sm:$0xff]  ;;  %v1275_v58 = vadd.f32 %v10636_v56, %v1239_v44  ;;  %v1059_v59 = vpop.f32.mrb[3].mxu1  ;;  %10910 = vmatmul.mubr.msk.f32.gmra.mrb[108].mxu1 %vm327_vm2, %v2888_v46  ;;  %v3866_v53 = vld [vmem:[#allocation2 + $0x99] sm:$0xff] }
 0x10b   : > { %812 = vst.msk [vmem:[#allocation4 + $0x20] sm:$0xff] %vm807_vm4, %v648_v47  ;;  %10923 = vmatprep.mubr.msk.f32.mxu0 %vm327_vm2, %v14732_v57  ;;  %v1274_v60 = vadd.f32 %v1238_v54, %v1059_v59  ;;  %10970 = vmatprep.mubr.msk.f32.mxu1 %vm327_vm2, %v3857_v55  ;;  %v3371_v34 = vld [vmem:[#allocation2 + $0xf0] sm:$0xff] }
 0x10c   : > { %1311 = vst.msk [vmem:[#allocation4 + $0x8] sm:$0xff] %vm807_vm4, %v1275_v58  ;;  %v3867_v56 = vld [vmem:[#allocation2 + $0xa9] sm:$0xff]  ;;  %v3372_v58 = vld [vmem:[#allocation2 + $0xf8] sm:$0xff] }
 0x10d   : > { %v10589_v62 = vpop.f32.mrb[6].mxu0  ;;  %v1241_v1 = vld [vmem:[#allocation4 + $0x18] sm:$0xff]  ;;  %1310 = vst.msk [vmem:[#allocation4] sm:$0xff] %vm807_vm4, %v1274_v60  ;;  %v10639_v63 = vpop.f32.mrb[4].mxu1 }
 0x10e   : > { %815 = vst.msk [vmem:[#allocation4 + $0x38] sm:$0xff] %vm807_vm4, %v10589_v62  ;;  %v658_v13 = vpop.f32.mrb[7].mxu0  ;;  %10924 = vmatmul.mubr.msk.f32.gmra.mrb[112].mxu0 %vm327_vm2, %v14733_v10  ;;  %v1240_v14 = vld [vmem:[#allocation4 + $0x10] sm:$0xff]  ;;  %v1277_v4 = vadd.f32 %v10639_v63, %v1241_v1  ;;  %v1069_v7 = vpop.f32.mrb[5].mxu1  ;;  %10971 = vmatmul.mubr.msk.f32.vlgmr.msra.gmra.mrb[110].mxu1 %vm327_vm2, %v3858_v50  ;;  %v3373_v62 = vld [vmem:[#allocation2 + $0x108] sm:$0xff]  ;;  %v3868_v10 = vld [vmem:[#allocation2 + $0xb1] sm:$0xff] }
 0x10f   : > { %814 = vst.msk [vmem:[#allocation4 + $0x30] sm:$0xff] %vm807_vm4, %v658_v13  ;;  %10926 = vmatprep.mubr.msk.f32.mxu0 %vm327_vm2, %v14734_v3  ;;  %v1276_v12 = vadd.f32 %v1240_v14, %v1069_v7  ;;  %10973 = vmatprep.mubr.msk.f32.mxu1 %vm327_vm2, %v3859_v23  ;;  %v3869_v63 = vld [vmem:[#allocation2 + $0xc1] sm:$0xff] }
 0x110   : > { %1313 = vst.msk [vmem:[#allocation4 + $0x18] sm:$0xff] %vm807_vm4, %v1277_v4  ;;  %v3374_v4 = vld [vmem:[#allocation2 + $0x110] sm:$0xff] }
 0x111   : > { %v10592_v15 = vpop.f32.mrb[8].mxu0  ;;  %v1243_v18 = vld [vmem:[#allocation4 + $0x28] sm:$0xff]  ;;  %1312 = vst.msk [vmem:[#allocation4 + $0x10] sm:$0xff] %vm807_vm4, %v1276_v12  ;;  %v10642_v26 = vpop.f32.mrb[6].mxu1  ;;  %v3375_v12 = vld [vmem:[#allocation2 + $0x120] sm:$0xff] }
 0x112   : > { %817 = vst.msk [vmem:[#allocation4 + $0x48] sm:$0xff] %vm807_vm4, %v10592_v15  ;;  %v668_v22 = vpop.f32.mrb[9].mxu0  ;;  %10927 = vmatmul.mubr.msk.f32.gmra.mrb[114].mxu0 %vm327_vm2, %v14735_v24  ;;  %v1242_v31 = vld [vmem:[#allocation4 + $0x20] sm:$0xff]  ;;  %v1279_v40 = vadd.f32 %v10642_v26, %v1243_v18  ;;  %v1079_v43 = vpop.f32.mrb[7].mxu1  ;;  %10974 = vmatmul.mubr.msk.f32.gmra.mrb[112].mxu1 %vm327_vm2, %v3860_v19 }
 0x113   : > { %816 = vst.msk [vmem:[#allocation4 + $0x40] sm:$0xff] %vm807_vm4, %v668_v22  ;;  %10929 = vmatprep.mubr.msk.f32.mxu0 %vm327_vm2, %v3365_v8  ;;  %v1278_v28 = vadd.f32 %v1242_v31, %v1079_v43  ;;  %10976 = vmatprep.mubr.msk.f32.mxu1 %vm327_vm2, %v3861_v32  ;;  %v3870_v22 = vld [vmem:[#allocation2 + $0xc9] sm:$0xff]  ;;  %v3871_v32 = vld [vmem:[#allocation2 + $0xd9] sm:$0xff] }
 0x114   : > { %1315 = vst.msk [vmem:[#allocation4 + $0x28] sm:$0xff] %vm807_vm4, %v1279_v40 }
 0x115   : > { %v10595_v49 = vpop.f32.mrb[10].mxu0  ;;  %v1245_v29 = vld [vmem:[#allocation4 + $0x38] sm:$0xff]  ;;  %1314 = vst.msk [vmem:[#allocation4 + $0x20] sm:$0xff] %vm807_vm4, %v1278_v28  ;;  %v10645_v42 = vpop.f32.mrb[8].mxu1 }
 0x116   : > { %819 = vst.msk [vmem:[#allocation4 + $0x58] sm:$0xff] %vm807_vm4, %v10595_v49  ;;  %v678_v37 = vpop.f32.mrb[11].mxu0  ;;  %10930 = vmatmul.mubr.msk.f32.gmra.mrb[116].mxu0 %vm327_vm2, %v3366_v27  ;;  %v1244_v38 = vld [vmem:[#allocation4 + $0x30] sm:$0xff]  ;;  %v1281_v51 = vadd.f32 %v10645_v42, %v1245_v29  ;;  %v1089_v61 = vpop.f32.mrb[9].mxu1  ;;  %10977 = vmatmul.mubr.msk.f32.gmra.mrb[114].mxu1 %vm327_vm2, %v3862_v35  ;;  %v3376_v27 = vld [vmem:[#allocation2 + $0x128] sm:$0xff] }
 0x117   : > { %818 = vst.msk [vmem:[#allocation4 + $0x50] sm:$0xff] %vm807_vm4, %v678_v37  ;;  %10932 = vmatprep.mubr.msk.f32.mxu0 %vm327_vm2, %v3367_v45  ;;  %v1280_v5 = vadd.f32 %v1244_v38, %v1089_v61  ;;  %10979 = vmatprep.mubr.msk.f32.mxu1 %vm327_vm2, %v3863_v41  ;;  %v3377_v45 = vld [vmem:[#allocation2 + $0x138] sm:$0xff]  ;;  %v3872_v35 = vld [vmem:[#allocation2 + $0xe1] sm:$0xff] }
 0x118   : > { %1317 = vst.msk [vmem:[#allocation4 + $0x38] sm:$0xff] %vm807_vm4, %v1281_v51  ;;  %v3873_v41 = vld [vmem:[#allocation2 + $0xf1] sm:$0xff] }
 0x119   : > { %v10598_v6 = vpop.f32.mrb[12].mxu0  ;;  %v1247_v9 = vld [vmem:[#allocation4 + $0x48] sm:$0xff]  ;;  %1316 = vst.msk [vmem:[#allocation4 + $0x30] sm:$0xff] %vm807_vm4, %v1280_v5  ;;  %v10648_v21 = vpop.f32.mrb[10].mxu1 }
 0x11a   : > { %821 = vst.msk [vmem:[#allocation4 + $0x68] sm:$0xff] %vm807_vm4, %v10598_v6  ;;  %v688_v16 = vpop.f32.mrb[13].mxu0  ;;  %10933 = vmatmul.mubr.msk.f32.gmra.mrb[118].mxu0 %vm327_vm2, %v3368_v48  ;;  %v1246_v17 = vld [vmem:[#allocation4 + $0x40] sm:$0xff]  ;;  %v1283_v30 = vadd.f32 %v10648_v21, %v1247_v9  ;;  %v1099_v33 = vpop.f32.mrb[11].mxu1  ;;  %10980 = vmatmul.mubr.msk.f32.gmra.mrb[116].mxu1 %vm327_vm2, %v3864_v11  ;;  %v3378_v48 = vld [vmem:[#allocation2 + $0x140] sm:$0xff] }
 0x11b   : > { %820 = vst.msk [vmem:[#allocation4 + $0x60] sm:$0xff] %vm807_vm4, %v688_v16  ;;  %10935 = vmatprep.mubr.msk.f32.mxu0 %vm327_vm2, %v3369_v2  ;;  %v1282_v44 = vadd.f32 %v1246_v17, %v1099_v33  ;;  %10982 = vmatprep.mubr.msk.f32.mxu1 %vm327_vm2, %v3865_v20  ;;  %v3379_v2 = vld [vmem:[#allocation2 + $0x150] sm:$0xff]  ;;  %v3874_v11 = vld [vmem:[#allocation2 + $0xf9] sm:$0xff] }
 0x11c   : > { %1319 = vst.msk [vmem:[#allocation4 + $0x48] sm:$0xff] %vm807_vm4, %v1283_v30  ;;  %v3875_v20 = vld [vmem:[#allocation2 + $0x109] sm:$0xff] }
 0x11d   : > { %v10601_v46 = vpop.f32.mrb[14].mxu0  ;;  %v1249_v47 = vld [vmem:[#allocation4 + $0x58] sm:$0xff]  ;;  %1318 = vst.msk [vmem:[#allocation4 + $0x40] sm:$0xff] %vm807_vm4, %v1282_v44  ;;  %v10651_v57 = vpop.f32.mrb[12].mxu1 }
 0x11e   : > { %823 = vst.msk [vmem:[#allocation4 + $0x78] sm:$0xff] %vm807_vm4, %v10601_v46  ;;  %v698_v54 = vpop.f32.mrb[15].mxu0  ;;  %10936 = vmatmul.mubr.msk.f32.gmra.mrb[120].mxu0 %vm327_vm2, %v3370_v25  ;;  %v1248_v55 = vld [vmem:[#allocation4 + $0x50] sm:$0xff]  ;;  %v1285_v59 = vadd.f32 %v10651_v57, %v1249_v47  ;;  %v1109_v60 = vpop.f32.mrb[13].mxu1  ;;  %10983 = vmatmul.mubr.msk.f32.gmra.mrb[118].mxu1 %vm327_vm2, %v3866_v53  ;;  %v3380_v25 = vld [vmem:[#allocation2 + $0x158] sm:$0xff] }
 0x11f   : > { %822 = vst.msk [vmem:[#allocation4 + $0x70] sm:$0xff] %vm807_vm4, %v698_v54  ;;  %10938 = vmatprep.mubr.msk.f32.mxu0 %vm327_vm2, %v3371_v34  ;;  %v1284_v1 = vadd.f32 %v1248_v55, %v1109_v60  ;;  %10985 = vmatprep.mubr.msk.f32.mxu1 %vm327_vm2, %v3867_v56  ;;  %v3381_v34 = vld [vmem:[#allocation2 + $0x168] sm:$0xff]  ;;  %v3876_v53 = vld [vmem:[#allocation2 + $0x111] sm:$0xff] }
 0x120   : > { %1321 = vst.msk [vmem:[#allocation4 + $0x58] sm:$0xff] %vm807_vm4, %v1285_v59  ;;  %v3877_v56 = vld [vmem:[#allocation2 + $0x121] sm:$0xff] }
 0x121   : > { %v10604_v50 = vpop.f32.mrb[16].mxu0  ;;  %v1251_v13 = vld [vmem:[#allocation4 + $0x68] sm:$0xff]  ;;  %1320 = vst.msk [vmem:[#allocation4 + $0x50] sm:$0xff] %vm807_vm4, %v1284_v1  ;;  %v10654_v3 = vpop.f32.mrb[14].mxu1 }
 0x122   : > { %825 = vst.msk [vmem:[#allocation4 + $0x88] sm:$0xff] %vm807_vm4, %v10604_v50  ;;  %v708_v14 = vpop.f32.mrb[17].mxu0  ;;  %10939 = vmatmul.mubr.msk.f32.gmra.mrb[122].mxu0 %vm327_vm2, %v3372_v58  ;;  %v1250_v23 = vld [vmem:[#allocation4 + $0x60] sm:$0xff]  ;;  %v1287_v7 = vadd.f32 %v10654_v3, %v1251_v13  ;;  %v1119_v8 = vpop.f32.mrb[15].mxu1  ;;  %10986 = vmatmul.mubr.msk.f32.gmra.mrb[120].mxu1 %vm327_vm2, %v3868_v10 }
 0x123   : > { %824 = vst.msk [vmem:[#allocation4 + $0x80] sm:$0xff] %vm807_vm4, %v708_v14  ;;  %10941 = vmatprep.mubr.msk.f32.mxu0 %vm327_vm2, %v3373_v62  ;;  %v1286_v15 = vadd.f32 %v1250_v23, %v1119_v8  ;;  %10988 = vmatprep.mubr.msk.f32.mxu1 %vm327_vm2, %v3869_v63  ;;  %v3382_v58 = vld [vmem:[#allocation2 + $0x170] sm:$0xff]  ;;  %v3383_v62 = vld [vmem:[#allocation2 + $0x180] sm:$0xff] }
 0x124   : > { %1323 = vst.msk [vmem:[#allocation4 + $0x68] sm:$0xff] %vm807_vm4, %v1287_v7  ;;  %v3878_v10 = vld [vmem:[#allocation2 + $0x129] sm:$0xff]  ;;  %v3879_v63 = vld [vmem:[#allocation2 + $0x139] sm:$0xff] }
 0x125   : > { %v10607_v18 = vpop.f32.mrb[18].mxu0  ;;  %v1253_v19 = vld [vmem:[#allocation4 + $0x78] sm:$0xff]  ;;  %1322 = vst.msk [vmem:[#allocation4 + $0x60] sm:$0xff] %vm807_vm4, %v1286_v15  ;;  %v10657_v26 = vpop.f32.mrb[16].mxu1 }
 0x126   : > { %827 = vst.msk [vmem:[#allocation4 + $0x98] sm:$0xff] %vm807_vm4, %v10607_v18  ;;  %v718_v24 = vpop.f32.mrb[19].mxu0  ;;  %10942 = vmatmul.mubr.msk.f32.gmra.mrb[124].mxu0 %vm327_vm2, %v3374_v4  ;;  %v1252_v31 = vld [vmem:[#allocation4 + $0x70] sm:$0xff]  ;;  %v1289_v40 = vadd.f32 %v10657_v26, %v1253_v19  ;;  %v1129_v43 = vpop.f32.mrb[17].mxu1  ;;  %10989 = vmatmul.mubr.msk.f32.gmra.mrb[122].mxu1 %vm327_vm2, %v3870_v22  ;;  %v3384_v4 = vld [vmem:[#allocation2 + $0x188] sm:$0xff] }
 0x127   : > { %826 = vst.msk [vmem:[#allocation4 + $0x90] sm:$0xff] %vm807_vm4, %v718_v24  ;;  %10944 = vmatprep.mubr.msk.f32.mxu0 %vm327_vm2, %v3375_v12  ;;  %v1288_v28 = vadd.f32 %v1252_v31, %v1129_v43  ;;  %10991 = vmatprep.mubr.msk.f32.mxu1 %vm327_vm2, %v3871_v32  ;;  %v3385_v12 = vld [vmem:[#allocation2 + $0x198] sm:$0xff]  ;;  %v3880_v22 = vld [vmem:[#allocation2 + $0x141] sm:$0xff] }
 0x128   : > { %1325 = vst.msk [vmem:[#allocation4 + $0x78] sm:$0xff] %vm807_vm4, %v1289_v40  ;;  %v3881_v32 = vld [vmem:[#allocation2 + $0x151] sm:$0xff] }
 0x129   : > { %v10610_v49 = vpop.f32.mrb[20].mxu0  ;;  %v1255_v29 = vld [vmem:[#allocation4 + $0x88] sm:$0xff]  ;;  %1324 = vst.msk [vmem:[#allocation4 + $0x70] sm:$0xff] %vm807_vm4, %v1288_v28  ;;  %v10660_v42 = vpop.f32.mrb[18].mxu1 }
 0x12a   : > { %829 = vst.msk [vmem:[#allocation4 + $0xa8] sm:$0xff] %vm807_vm4, %v10610_v49  ;;  %v728_v37 = vpop.f32.mrb[21].mxu0  ;;  %10945 = vmatmul.mubr.msk.f32.gmra.mrb[126].mxu0 %vm327_vm2, %v3376_v27  ;;  %v1254_v38 = vld [vmem:[#allocation4 + $0x80] sm:$0xff]  ;;  %v1291_v51 = vadd.f32 %v10660_v42, %v1255_v29  ;;  %v1139_v61 = vpop.f32.mrb[19].mxu1  ;;  %10992 = vmatmul.mubr.msk.f32.gmra.mrb[124].mxu1 %vm327_vm2, %v3872_v35  ;;  %v3386_v27 = vld [vmem:[#allocation2 + $0x1a0] sm:$0xff] }
 0x12b   : > { %828 = vst.msk [vmem:[#allocation4 + $0xa0] sm:$0xff] %vm807_vm4, %v728_v37  ;;  %10947 = vmatprep.mubr.msk.f32.mxu0 %vm327_vm2, %v3377_v45  ;;  %v1290_v5 = vadd.f32 %v1254_v38, %v1139_v61  ;;  %10994 = vmatprep.mubr.msk.f32.mxu1 %vm327_vm2, %v3873_v41  ;;  %v3882_v29 = vld [vmem:[#allocation2 + $0x159] sm:$0xff]  ;;  %v3883_v38 = vld [vmem:[#allocation2 + $0x169] sm:$0xff] }
 0x12c   : > { %1327 = vst.msk [vmem:[#allocation4 + $0x88] sm:$0xff] %vm807_vm4, %v1291_v51  ;;  %v3389_v51 = vld [vmem:[#allocation2 + $0x1c8] sm:$0xff] }
 0x12d   : > { %v10613_v6 = vpop.f32.mrb[22].mxu0  ;;  %v1257_v9 = vld [vmem:[#allocation4 + $0x98] sm:$0xff]  ;;  %1326 = vst.msk [vmem:[#allocation4 + $0x80] sm:$0xff] %vm807_vm4, %v1290_v5  ;;  %v10663_v21 = vpop.f32.mrb[20].mxu1 }
 0x12e   : > { %831 = vst.msk [vmem:[#allocation4 + $0xb8] sm:$0xff] %vm807_vm4, %v10613_v6  ;;  %v738_v16 = vpop.f32.mrb[23].mxu0  ;;  %10948 = vmatmul.mubr.msk.f32.gmra.mrb[128].mxu0 %vm327_vm2, %v3378_v48  ;;  %v1256_v17 = vld [vmem:[#allocation4 + $0x90] sm:$0xff]  ;;  %v1293_v30 = vadd.f32 %v10663_v21, %v1257_v9  ;;  %v1149_v33 = vpop.f32.mrb[21].mxu1  ;;  %10995 = vmatmul.mubr.msk.f32.gmra.mrb[126].mxu1 %vm327_vm2, %v3874_v11  ;;  %v3884_v6 = vld [vmem:[#allocation2 + $0x171] sm:$0xff] }
 0x12f   : > { %830 = vst.msk [vmem:[#allocation4 + $0xb0] sm:$0xff] %vm807_vm4, %v738_v16  ;;  %10950 = vmatprep.mubr.msk.f32.mxu0 %vm327_vm2, %v3379_v2  ;;  %v1292_v44 = vadd.f32 %v1256_v17, %v1149_v33  ;;  %10997 = vmatprep.mubr.msk.f32.mxu1 %vm327_vm2, %v3875_v20  ;;  %v3885_v11 = vld [vmem:[#allocation2 + $0x181] sm:$0xff]  ;;  %v3390_v17 = vld [vmem:[#allocation2 + $0x1d0] sm:$0xff] }
 0x130   : > { %1329 = vst.msk [vmem:[#allocation4 + $0x98] sm:$0xff] %vm807_vm4, %v1293_v30 }
 0x131   : > { %v10616_v46 = vpop.f32.mrb[24].mxu0  ;;  %v1259_v47 = vld [vmem:[#allocation4 + $0xa8] sm:$0xff]  ;;  %1328 = vst.msk [vmem:[#allocation4 + $0x90] sm:$0xff] %vm807_vm4, %v1292_v44  ;;  %v10666_v57 = vpop.f32.mrb[22].mxu1 }
 0x132   : > { %833 = vst.msk [vmem:[#allocation4 + $0xc8] sm:$0xff] %vm807_vm4, %v10616_v46  ;;  %v748_v54 = vpop.f32.mrb[25].mxu0  ;;  %10951 = vmatmul.mubr.msk.f32.gmra.mrb[130].mxu0 %vm327_vm2, %v3380_v25  ;;  %v1258_v55 = vld [vmem:[#allocation4 + $0xa0] sm:$0xff]  ;;  %v1295_v59 = vadd.f32 %v10666_v57, %v1259_v47  ;;  %v1159_v60 = vpop.f32.mrb[23].mxu1  ;;  %10998 = vmatmul.mubr.msk.f32.gmra.mrb[128].mxu1 %vm327_vm2, %v3876_v53 }
 0x133   : > { %832 = vst.msk [vmem:[#allocation4 + $0xc0] sm:$0xff] %vm807_vm4, %v748_v54  ;;  %10953 = vmatprep.mubr.msk.f32.mxu0 %vm327_vm2, %v3381_v34  ;;  %v1294_v1 = vadd.f32 %v1258_v55, %v1159_v60  ;;  %11000 = vmatprep.mubr.msk.f32.mxu1 %vm327_vm2, %v3877_v56  ;;  %v4359_v25 = vld [vmem:[#allocation2 + $0x32] sm:$0xff] }
 0x134   : > { %1331 = vst.msk [vmem:[#allocation4 + $0xa8] sm:$0xff] %vm807_vm4, %v1295_v59  ;;  %v1741_v34 = vld [vmem:[#allocation4 + $0x8] sm:$0xff]  ;;  %v1740_v53 = vld [vmem:[#allocation4] sm:$0xff] }
 0x135   : > { %v10619_v50 = vpop.f32.mrb[26].mxu0  ;;  %v1261_v13 = vld [vmem:[#allocation4 + $0xb8] sm:$0xff]  ;;  %1330 = vst.msk [vmem:[#allocation4 + $0xa0] sm:$0xff] %vm807_vm4, %v1294_v1  ;;  %v10669_v3 = vpop.f32.mrb[24].mxu1  ;;  %v3887_v55 = vld [vmem:[#allocation2 + $0x199] sm:$0xff] }
 0x136   : > { %835 = vst.msk [vmem:[#allocation4 + $0xd8] sm:$0xff] %vm807_vm4, %v10619_v50  ;;  %v758_v14 = vpop.f32.mrb[27].mxu0  ;;  %10954 = vmatmul.mubr.msk.f32.gmra.mrb[132].mxu0 %vm327_vm2, %v3382_v58  ;;  %v1260_v23 = vld [vmem:[#allocation4 + $0xb0] sm:$0xff]  ;;  %v1297_v7 = vadd.f32 %v10669_v3, %v1261_v13  ;;  %v1169_v8 = vpop.f32.mrb[25].mxu1  ;;  %11001 = vmatmul.mubr.msk.f32.gmra.mrb[130].mxu1 %vm327_vm2, %v3878_v10  ;;  %v1743_v13 = vld [vmem:[#allocation4 + $0x18] sm:$0xff] }
 0x137   : > { %834 = vst.msk [vmem:[#allocation4 + $0xd0] sm:$0xff] %vm807_vm4, %v758_v14  ;;  %10956 = vmatprep.mubr.msk.f32.mxu0 %vm327_vm2, %v3383_v62  ;;  %v1296_v15 = vadd.f32 %v1260_v23, %v1169_v8  ;;  %11003 = vmatprep.mubr.msk.f32.mxu1 %vm327_vm2, %v3879_v63  ;;  %v4360_v58 = vld [vmem:[#allocation2 + $0x3a] sm:$0xff]  ;;  %v4361_v62 = vld [vmem:[#allocation2 + $0x4a] sm:$0xff] }
 0x138   : > { %1333 = vst.msk [vmem:[#allocation4 + $0xb8] sm:$0xff] %vm807_vm4, %v1297_v7  ;;  %v3888_v14 = vld [vmem:[#allocation2 + $0x1a1] sm:$0xff] }
 0x139   : > { %v10622_v18 = vpop.f32.mrb[28].mxu0  ;;  %v1263_v19 = vld [vmem:[#allocation4 + $0xc8] sm:$0xff]  ;;  %1332 = vst.msk [vmem:[#allocation4 + $0xb0] sm:$0xff] %vm807_vm4, %v1296_v15  ;;  %v10672_v26 = vpop.f32.mrb[26].mxu1  ;;  %v1742_v3 = vld [vmem:[#allocation4 + $0x10] sm:$0xff] }
 0x13a   : > { %837 = vst.msk [vmem:[#allocation4 + $0xe8] sm:$0xff] %vm807_vm4, %v10622_v18  ;;  %v768_v24 = vpop.f32.mrb[29].mxu0  ;;  %10957 = vmatmul.mubr.msk.f32.gmra.mrb[134].mxu0 %vm327_vm2, %v3384_v4  ;;  %v1262_v31 = vld [vmem:[#allocation4 + $0xc0] sm:$0xff]  ;;  %v1299_v40 = vadd.f32 %v10672_v26, %v1263_v19  ;;  %v1179_v43 = vpop.f32.mrb[27].mxu1  ;;  %11004 = vmatmul.mubr.msk.f32.gmra.mrb[132].mxu1 %vm327_vm2, %v3880_v22  ;;  %v4363_v19 = vld [vmem:[#allocation2 + $0x62] sm:$0xff] }
 0x13b   : > { %836 = vst.msk [vmem:[#allocation4 + $0xe0] sm:$0xff] %vm807_vm4, %v768_v24  ;;  %10959 = vmatprep.mubr.msk.f32.mxu0 %vm327_vm2, %v3385_v12  ;;  %v1298_v45 = vadd.f32 %v1262_v31, %v1179_v43  ;;  %11006 = vmatprep.mubr.msk.f32.mxu1 %vm327_vm2, %v3881_v32  ;;  %v4362_v12 = vld [vmem:[#allocation2 + $0x52] sm:$0xff] }
 0x13c   : > { %1335 = vst.msk [vmem:[#allocation4 + $0xc8] sm:$0xff] %vm807_vm4, %v1299_v40  ;;  %v1745_v31 = vld [vmem:[#allocation4 + $0x28] sm:$0xff]  ;;  %v3891_v40 = vld [vmem:[#allocation2 + $0x1c9] sm:$0xff] }
 0x13d   : > { %v10625_v28 = vpop.f32.mrb[30].mxu0  ;;  %v1265_v49 = vld [vmem:[#allocation4 + $0xd8] sm:$0xff]  ;;  %1334 = vst.msk [vmem:[#allocation4 + $0xc0] sm:$0xff] %vm807_vm4, %v1298_v45  ;;  %v10675_v41 = vpop.f32.mrb[28].mxu1 }
 0x13e   : > { %839 = vst.msk [vmem:[#allocation4 + $0xf8] sm:$0xff] %vm807_vm4, %v10625_v28  ;;  %v778_v35 = vpop.f32.mrb[31].mxu0  ;;  %10960 = vmatmul.mubr.msk.f32.gmra.mrb[136].mxu0 %vm327_vm2, %v3386_v27  ;;  %v1264_v37 = vld [vmem:[#allocation4 + $0xd0] sm:$0xff]  ;;  %v1301_v42 = vadd.f32 %v10675_v41, %v1265_v49  ;;  %v1189_v48 = vpop.f32.mrb[29].mxu1  ;;  %11007 = vmatmul.mubr.msk.f32.gmra.mrb[134].mxu1 %vm327_vm2, %v3882_v29  ;;  %v1744_v27 = vld [vmem:[#allocation4 + $0x20] sm:$0xff]  ;;  %v1273_v45 = vld [vmem:[#allocation4 + $0x118] sm:$0xff] }
 0x13f   : > { %838 = vst.msk [vmem:[#allocation4 + $0xf0] sm:$0xff] %vm807_vm4, %v778_v35  ;;  %10962 = vmatprep.mubr.msk.f32.mxu0 %vm327_vm2, %v12365_v36  ;;  %v1300_v61 = vadd.f32 %v1264_v37, %v1189_v48  ;;  %11009 = vmatprep.mubr.msk.f32.mxu1 %vm327_vm2, %v3883_v38  ;;  %v4364_v49 = vld [vmem:[#allocation2 + $0x6a] sm:$0xff]  ;;  %v1272_v35 = vld [vmem:[#allocation4 + $0x110] sm:$0xff] }
 0x140   : > { %1337 = vst.msk [vmem:[#allocation4 + $0xd8] sm:$0xff] %vm807_vm4, %v1301_v42  ;;  %v4365_v37 = vld [vmem:[#allocation2 + $0x7a] sm:$0xff]  ;;  %v1747_v42 = vld [vmem:[#allocation4 + $0x38] sm:$0xff]  ;;  %v3892_v48 = vld [vmem:[#allocation2 + $0x1d1] sm:$0xff] }
 0x141   : > { %v10628_v2 = vpop.f32.mrb[32].mxu0  ;;  %v1267_v5 = vld [vmem:[#allocation4 + $0xe8] sm:$0xff]  ;;  %1336 = vst.msk [vmem:[#allocation4 + $0xd0] sm:$0xff] %vm807_vm4, %v1300_v61  ;;  %v10678_v16 = vpop.f32.mrb[30].mxu1 }
 0x142   : > { %841 = vst.msk [vmem:[#allocation4 + $0x108] sm:$0xff] %vm807_vm4, %v10628_v2  ;;  %v788_v9 = vpop.f32.mrb[33].mxu0  ;;  %10963 = vmatmul.mubr.msk.f32.gmra.mrb[138].mxu0 %vm327_vm2, %v12373_v39  ;;  %v1266_v36 = vld [vmem:[#allocation4 + $0xe0] sm:$0xff]  ;;  %v1303_v20 = vadd.f32 %v10678_v16, %v1267_v5  ;;  %v1199_v21 = vpop.f32.mrb[31].mxu1  ;;  %11010 = vmatmul.mubr.msk.f32.gmra.mrb[136].mxu1 %vm327_vm2, %v3884_v6  ;;  %v1746_v2 = vld [vmem:[#allocation4 + $0x30] sm:$0xff] }
 0x143   : > { %840 = vst.msk [vmem:[#allocation4 + $0x100] sm:$0xff] %vm807_vm4, %v788_v9  ;;  %10965 = vmatprep.mubr.msk.f32.mxu0 %vm327_vm2, %v3389_v51  ;;  %v1302_v30 = vadd.f32 %v1266_v36, %v1199_v21  ;;  %11012 = vmatprep.mubr.msk.f32.mxu1 %vm327_vm2, %v3885_v11  ;;  %v3886_v39 = vld [vmem:[#allocation2 + $0x189] sm:$0xff] }
 0x144   : > { %1339 = vst.msk [vmem:[#allocation4 + $0xe8] sm:$0xff] %vm807_vm4, %v1303_v20  ;;  %v4366_v9 = vld [vmem:[#allocation2 + $0x82] sm:$0xff] }
 0x145   : > { %v10692_v33 = vpop.f32.mrb[34].mxu0  ;;  %v1269_v44 = vld [vmem:[#allocation4 + $0xf8] sm:$0xff]  ;;  %1338 = vst.msk [vmem:[#allocation4 + $0xe0] sm:$0xff] %vm807_vm4, %v1302_v30  ;;  %v10681_v56 = vpop.f32.mrb[32].mxu1 }
 0x146   : > { %v1777_v46 = vadd.f32 %v10692_v33, %v1741_v34  ;;  %v1561_v47 = vpop.f32.mrb[35].mxu0  ;;  %10966 = vmatmul.mubr.msk.f32.gmra.mrb[140].mxu0 %vm327_vm2, %v3390_v17  ;;  %v1268_v54 = vld [vmem:[#allocation4 + $0xf0] sm:$0xff]  ;;  %v1305_v59 = vadd.f32 %v10681_v56, %v1269_v44  ;;  %v1209_v60 = vpop.f32.mrb[33].mxu1  ;;  %11013 = vmatmul.mubr.msk.f32.gmra.mrb[138].mxu1 %vm327_vm2, %v3886_v39  ;;  %v4367_v17 = vld [vmem:[#allocation2 + $0x92] sm:$0xff]  ;;  %v4369_v56 = vld [vmem:[#allocation2 + $0xaa] sm:$0xff] }
 0x147   : > { %v1776_v57 = vadd.f32 %v1740_v53, %v1561_v47  ;;  %11026 = vmatprep.mubr.msk.f32.mxu0 %vm327_vm2, %v4359_v25  ;;  %v1304_v1 = vadd.f32 %v1268_v54, %v1209_v60  ;;  %11015 = vmatprep.mubr.msk.f32.mxu1 %vm327_vm2, %v3887_v55  ;;  %v1749_v25 = vld [vmem:[#allocation4 + $0x48] sm:$0xff]  ;;  %v1748_v34 = vld [vmem:[#allocation4 + $0x40] sm:$0xff] }
 0x148   : > { %1813 = vst.msk [vmem:[#allocation4 + $0x8] sm:$0xff] %vm807_vm4, %v1777_v46  ;;  %1341 = vst.msk [vmem:[#allocation4 + $0xf8] sm:$0xff] %vm807_vm4, %v1305_v59  ;;  %v4368_v47 = vld [vmem:[#allocation2 + $0x9a] sm:$0xff]  ;;  %v1751_v59 = vld [vmem:[#allocation4 + $0x58] sm:$0xff] }
 0x149   : > { %1812 = vst.msk [vmem:[#allocation4] sm:$0xff] %vm807_vm4, %v1776_v57  ;;  %v10695_v50 = vpop.f32.mrb[36].mxu0  ;;  %v1271_v10 = vld [vmem:[#allocation4 + $0x108] sm:$0xff]  ;;  %1340 = vst.msk [vmem:[#allocation4 + $0xf0] sm:$0xff] %vm807_vm4, %v1304_v1  ;;  %v10684_v7 = vpop.f32.mrb[34].mxu1  ;;  %v1750_v1 = vld [vmem:[#allocation4 + $0x50] sm:$0xff] }
 0x14a   : > { %v1779_v23 = vadd.f32 %v10695_v50, %v1743_v13  ;;  %v1571_v63 = vpop.f32.mrb[37].mxu0  ;;  %11027 = vmatmul.mubr.msk.f32.vlgmr.msra.gmra.mrb[142].mxu0 %vm327_vm2, %v4360_v58  ;;  %v1270_v4 = vld [vmem:[#allocation4 + $0x100] sm:$0xff]  ;;  %v1307_v15 = vadd.f32 %v10684_v7, %v1271_v10  ;;  %v1219_v18 = vpop.f32.mrb[35].mxu1  ;;  %11016 = vmatmul.mubr.msk.f32.gmra.mrb[140].mxu1 %vm327_vm2, %v3888_v14 }
 0x14b   : > { %v1778_v8 = vadd.f32 %v1742_v3, %v1571_v63  ;;  %11029 = vmatprep.mubr.msk.f32.mxu0 %vm327_vm2, %v4361_v62  ;;  %v1306_v22 = vadd.f32 %v1270_v4, %v1219_v18  ;;  %11018 = vmatprep.mubr.msk.f32.mxu1 %vm327_vm2, %v12487_v52  ;;  %v4370_v14 = vld [vmem:[#allocation2 + $0xb2] sm:$0xff]  ;;  %v4371_v4 = vld [vmem:[#allocation2 + $0xc2] sm:$0xff] }
 0x14c   : > { %1815 = vst.msk [vmem:[#allocation4 + $0x18] sm:$0xff] %vm807_vm4, %v1779_v23  ;;  %1343 = vst.msk [vmem:[#allocation4 + $0x108] sm:$0xff] %vm807_vm4, %v1307_v15 }
 0x14d   : > { %1814 = vst.msk [vmem:[#allocation4 + $0x10] sm:$0xff] %vm807_vm4, %v1778_v8  ;;  %v10698_v24 = vpop.f32.mrb[38].mxu0  ;;  %1342 = vst.msk [vmem:[#allocation4 + $0x100] sm:$0xff] %vm807_vm4, %v1306_v22  ;;  %v10687_v43 = vpop.f32.mrb[36].mxu1 }
 0x14e   : > { %v1781_v32 = vadd.f32 %v10698_v24, %v1745_v31  ;;  %v1581_v26 = vpop.f32.mrb[39].mxu0  ;;  %11030 = vmatmul.mubr.msk.f32.gmra.mrb[144].mxu0 %vm327_vm2, %v4362_v12  ;;  %v1309_v29 = vadd.f32 %v10687_v43, %v1273_v45  ;;  %v1229_v52 = vpop.f32.mrb[37].mxu1  ;;  %11019 = vmatmul.mubr.msk.f32.gmra.mrb[142].mxu1 %vm327_vm2, %v12495_v0  ;;  %v1753_v12 = vld [vmem:[#allocation4 + $0x68] sm:$0xff] }
 0x14f   : > { %v1780_v28 = vadd.f32 %v1744_v27, %v1581_v26  ;;  %11032 = vmatprep.mubr.msk.f32.mxu0 %vm327_vm2, %v4363_v19  ;;  %v1308_v38 = vadd.f32 %v1272_v35, %v1229_v52  ;;  %11021 = vmatprep.mubr.msk.f32.mxu1 %vm327_vm2, %v3891_v40  ;;  %v2244_v6 = vld [vmem:[#allocation4 + $0x8] sm:$0xff]  ;;  %v1752_v19 = vld [vmem:[#allocation4 + $0x60] sm:$0xff]  ;;  %v1754_v35 = vld [vmem:[#allocation4 + $0x70] sm:$0xff] }
 0x150   : > { %1817 = vst.msk [vmem:[#allocation4 + $0x28] sm:$0xff] %vm807_vm4, %v1781_v32  ;;  %1345 = vst.msk [vmem:[#allocation4 + $0x118] sm:$0xff] %vm807_vm4, %v1309_v29  ;;  %v2243_v16 = vld [vmem:[#allocation4] sm:$0xff]  ;;  %v4373_v43 = vld [vmem:[#allocation2 + $0xda] sm:$0xff] }
 0x151   : > { %1816 = vst.msk [vmem:[#allocation4 + $0x20] sm:$0xff] %vm807_vm4, %v1780_v28  ;;  %v10701_v41 = vpop.f32.mrb[40].mxu0  ;;  %1344 = vst.msk [vmem:[#allocation4 + $0x110] sm:$0xff] %vm807_vm4, %v1308_v38  ;;  %v10748_v0 = vpop.f32.mrb[38].mxu1  ;;  %v4372_v32 = vld [vmem:[#allocation2 + $0xca] sm:$0xff] }
 0x152   : > { %v1783_v51 = vadd.f32 %v10701_v41, %v1747_v42  ;;  %v1591_v61 = vpop.f32.mrb[41].mxu0  ;;  %11033 = vmatmul.mubr.msk.f32.gmra.mrb[146].mxu0 %vm327_vm2, %v4364_v49  ;;  %v2280_v36 = vadd.f32 %v10748_v0, %v2244_v6  ;;  %v2064_v11 = vpop.f32.mrb[39].mxu1  ;;  %11022 = vmatmul.mubr.msk.f32.gmra.mrb[144].mxu1 %vm327_vm2, %v3892_v48  ;;  %v1755_v49 = vld [vmem:[#allocation4 + $0x78] sm:$0xff]  ;;  %v1757_v6 = vld [vmem:[#allocation4 + $0x88] sm:$0xff] }
 0x153   : > { %v1782_v5 = vadd.f32 %v1746_v2, %v1591_v61  ;;  %11035 = vmatprep.mubr.msk.f32.mxu0 %vm327_vm2, %v4365_v37  ;;  %v2279_v20 = vadd.f32 %v2243_v16, %v2064_v11  ;;  %v2246_v46 = vld [vmem:[#allocation4 + $0x18] sm:$0xff]  ;;  %v4375_v2 = vld [vmem:[#allocation2 + $0xf2] sm:$0xff] }
 0x154   : > { %1819 = vst.msk [vmem:[#allocation4 + $0x38] sm:$0xff] %vm807_vm4, %v1783_v51  ;;  %2316 = vst.msk [vmem:[#allocation4 + $0x8] sm:$0xff] %vm807_vm4, %v2280_v36  ;;  %v2245_v55 = vld [vmem:[#allocation4 + $0x10] sm:$0xff]  ;;  %v1756_v11 = vld [vmem:[#allocation4 + $0x80] sm:$0xff] }
 0x155   : > { %1818 = vst.msk [vmem:[#allocation4 + $0x30] sm:$0xff] %vm807_vm4, %v1782_v5  ;;  %v10704_v21 = vpop.f32.mrb[42].mxu0  ;;  %2315 = vst.msk [vmem:[#allocation4] sm:$0xff] %vm807_vm4, %v2279_v20  ;;  %v10751_v39 = vpop.f32.mrb[40].mxu1  ;;  %v4374_v42 = vld [vmem:[#allocation2 + $0xe2] sm:$0xff] }
 0x156   : > { %v1785_v30 = vadd.f32 %v10704_v21, %v1749_v25  ;;  %v1601_v33 = vpop.f32.mrb[43].mxu0  ;;  %11036 = vmatmul.mubr.msk.f32.gmra.mrb[148].mxu0 %vm327_vm2, %v4366_v9  ;;  %v2282_v53 = vadd.f32 %v10751_v39, %v2246_v46  ;;  %v2074_v54 = vpop.f32.mrb[41].mxu1  ;;  %v4376_v21 = vld [vmem:[#allocation2 + $0xfa] sm:$0xff]  ;;  %v1759_v46 = vld [vmem:[#allocation4 + $0x98] sm:$0xff] }
 0x157   : > { %v1784_v44 = vadd.f32 %v1748_v34, %v1601_v33  ;;  %11038 = vmatprep.mubr.msk.f32.mxu0 %vm327_vm2, %v4367_v17  ;;  %v2281_v57 = vadd.f32 %v2245_v55, %v2074_v54  ;;  %v2248_v10 = vld [vmem:[#allocation4 + $0x28] sm:$0xff]  ;;  %v4377_v34 = vld [vmem:[#allocation2 + $0x10a] sm:$0xff]  ;;  %v1758_v54 = vld [vmem:[#allocation4 + $0x90] sm:$0xff] }
 0x158   : > { %1821 = vst.msk [vmem:[#allocation4 + $0x48] sm:$0xff] %vm807_vm4, %v1785_v30  ;;  %2318 = vst.msk [vmem:[#allocation4 + $0x18] sm:$0xff] %vm807_vm4, %v2282_v53  ;;  %v2247_v3 = vld [vmem:[#allocation4 + $0x20] sm:$0xff] }
 0x159   : > { %1820 = vst.msk [vmem:[#allocation4 + $0x40] sm:$0xff] %vm807_vm4, %v1784_v44  ;;  %v10707_v58 = vpop.f32.mrb[44].mxu0  ;;  %2317 = vst.msk [vmem:[#allocation4 + $0x10] sm:$0xff] %vm807_vm4, %v2281_v57  ;;  %v10754_v13 = vpop.f32.mrb[42].mxu1 }
 0x15a   : > { %v1787_v60 = vadd.f32 %v10707_v58, %v1751_v59  ;;  %v1611_v62 = vpop.f32.mrb[45].mxu0  ;;  %11039 = vmatmul.mubr.msk.f32.gmra.mrb[150].mxu0 %vm327_vm2, %v4368_v47  ;;  %v2284_v23 = vadd.f32 %v10754_v13, %v2248_v10  ;;  %v2084_v63 = vpop.f32.mrb[43].mxu1  ;;  %v4378_v58 = vld [vmem:[#allocation2 + $0x112] sm:$0xff] }
 0x15b   : > { %v1786_v50 = vadd.f32 %v1750_v1, %v1611_v62  ;;  %11041 = vmatprep.mubr.msk.f32.mxu0 %vm327_vm2, %v4369_v56  ;;  %v2283_v7 = vadd.f32 %v2247_v3, %v2084_v63  ;;  %v2250_v31 = vld [vmem:[#allocation4 + $0x38] sm:$0xff]  ;;  %v1761_v10 = vld [vmem:[#allocation4 + $0xa8] sm:$0xff]  ;;  %v1760_v63 = vld [vmem:[#allocation4 + $0xa0] sm:$0xff] }
 0x15c   : > { %1823 = vst.msk [vmem:[#allocation4 + $0x58] sm:$0xff] %vm807_vm4, %v1787_v60  ;;  %2320 = vst.msk [vmem:[#allocation4 + $0x28] sm:$0xff] %vm807_vm4, %v2284_v23  ;;  %v2249_v40 = vld [vmem:[#allocation4 + $0x30] sm:$0xff] }
 0x15d   : > { %1822 = vst.msk [vmem:[#allocation4 + $0x50] sm:$0xff] %vm807_vm4, %v1786_v50  ;;  %v10710_v8 = vpop.f32.mrb[46].mxu0  ;;  %2319 = vst.msk [vmem:[#allocation4 + $0x20] sm:$0xff] %vm807_vm4, %v2283_v7  ;;  %v10757_v24 = vpop.f32.mrb[44].mxu1  ;;  %v4379_v1 = vld [vmem:[#allocation2 + $0x122] sm:$0xff] }
 0x15e   : > { %v1789_v15 = vadd.f32 %v10710_v8, %v1753_v12  ;;  %v1621_v18 = vpop.f32.mrb[47].mxu0  ;;  %11042 = vmatmul.mubr.msk.f32.gmra.mrb[152].mxu0 %vm327_vm2, %v4370_v14  ;;  %v2286_v26 = vadd.f32 %v10757_v24, %v2250_v31  ;;  %v2094_v27 = vpop.f32.mrb[45].mxu1  ;;  %v4380_v8 = vld [vmem:[#allocation2 + $0x12a] sm:$0xff] }
 0x15f   : > { %v1788_v22 = vadd.f32 %v1752_v19, %v1621_v18  ;;  %11044 = vmatprep.mubr.msk.f32.mxu0 %vm327_vm2, %v4371_v4  ;;  %v2285_v45 = vadd.f32 %v2249_v40, %v2094_v27  ;;  %v2252_v41 = vld [vmem:[#allocation4 + $0x48] sm:$0xff]  ;;  %v1763_v31 = vld [vmem:[#allocation4 + $0xb8] sm:$0xff]  ;;  %v1762_v27 = vld [vmem:[#allocation4 + $0xb0] sm:$0xff] }
 0x160   : > { %1825 = vst.msk [vmem:[#allocation4 + $0x68] sm:$0xff] %vm807_vm4, %v1789_v15  ;;  %2322 = vst.msk [vmem:[#allocation4 + $0x38] sm:$0xff] %vm807_vm4, %v2286_v26  ;;  %v2251_v61 = vld [vmem:[#allocation4 + $0x40] sm:$0xff]  ;;  %v4381_v19 = vld [vmem:[#allocation2 + $0x13a] sm:$0xff] }
 0x161   : > { %1824 = vst.msk [vmem:[#allocation4 + $0x60] sm:$0xff] %vm807_vm4, %v1788_v22  ;;  %v10713_v28 = vpop.f32.mrb[48].mxu0  ;;  %2321 = vst.msk [vmem:[#allocation4 + $0x30] sm:$0xff] %vm807_vm4, %v2285_v45  ;;  %v10760_v38 = vpop.f32.mrb[46].mxu1  ;;  %v5092_v40 = vld [vmem:[%s14635_s3] sm:$0xff] }
 0x162   : > { %v1791_v29 = vadd.f32 %v10713_v28, %v1755_v49  ;;  %v1631_v52 = vpop.f32.mrb[49].mxu0  ;;  %11045 = vmatmul.mubr.msk.f32.gmra.mrb[154].mxu0 %vm327_vm2, %v4372_v32  ;;  %v2288_v48 = vadd.f32 %v10760_v38, %v2252_v41  ;;  %v2104_v51 = vpop.f32.mrb[47].mxu1  ;;  %v4382_v49 = vld [vmem:[#allocation2 + $0x142] sm:$0xff]  ;;  %11080 = vmatprep.subr.mxu1 %v5092_v40 }
 0x163   : > { %v1790_v37 = vadd.f32 %v1754_v35, %v1631_v52  ;;  %11047 = vmatprep.mubr.msk.f32.mxu0 %vm327_vm2, %v4373_v43  ;;  %v2287_v5 = vadd.f32 %v2251_v61, %v2104_v51  ;;  %v2254_v20 = vld [vmem:[#allocation4 + $0x58] sm:$0xff]  ;;  %11081 = vmatpush3.msra.mxu1 %v5092_v40  ;;  %v1764_v61 = vld [vmem:[#allocation4 + $0xc0] sm:$0xff] }
 0x164   : > { %1827 = vst.msk [vmem:[#allocation4 + $0x78] sm:$0xff] %vm807_vm4, %v1791_v29  ;;  %2324 = vst.msk [vmem:[#allocation4 + $0x48] sm:$0xff] %vm807_vm4, %v2288_v48  ;;  %v2253_v33 = vld [vmem:[#allocation4 + $0x50] sm:$0xff]  ;;  %v4391_v40 = vld [vmem:[#allocation2 + $0x1b2] sm:$0xff] }
 0x165   : > { %1826 = vst.msk [vmem:[#allocation4 + $0x70] sm:$0xff] %vm807_vm4, %v1790_v37  ;;  %v10716_v0 = vpop.f32.mrb[50].mxu0  ;;  %2323 = vst.msk [vmem:[#allocation4 + $0x40] sm:$0xff] %vm807_vm4, %v2287_v5  ;;  %v10763_v17 = vpop.f32.mrb[48].mxu1  ;;  %v4383_v37 = vld [vmem:[#allocation2 + $0x152] sm:$0xff] }
 0x166   : > { %v1793_v9 = vadd.f32 %v10716_v0, %v1757_v6  ;;  %v1641_v36 = vpop.f32.mrb[51].mxu0  ;;  %11048 = vmatmul.mubr.msk.f32.gmra.mrb[156].mxu0 %vm327_vm2, %v4374_v42  ;;  %v2290_v25 = vadd.f32 %v10763_v17, %v2254_v20  ;;  %v2114_v30 = vpop.f32.mrb[49].mxu1  ;;  %v1765_v42 = vld [vmem:[#allocation4 + $0xc8] sm:$0xff] }
 0x167   : > { %v1792_v16 = vadd.f32 %v1756_v11, %v1641_v36  ;;  %11050 = vmatprep.mubr.msk.f32.mxu0 %vm327_vm2, %v4375_v2  ;;  %v2289_v44 = vadd.f32 %v2253_v33, %v2114_v30  ;;  %v2256_v57 = vld [vmem:[#allocation4 + $0x68] sm:$0xff]  ;;  %v1766_v33 = vld [vmem:[#allocation4 + $0xd0] sm:$0xff] }
 0x168   : > { %1829 = vst.msk [vmem:[#allocation4 + $0x88] sm:$0xff] %vm807_vm4, %v1793_v9  ;;  %2326 = vst.msk [vmem:[#allocation4 + $0x58] sm:$0xff] %vm807_vm4, %v2290_v25  ;;  %v2255_v62 = vld [vmem:[#allocation4 + $0x60] sm:$0xff]  ;;  %v4384_v6 = vld [vmem:[#allocation2 + $0x15a] sm:$0xff] }
 0x169   : > { %1828 = vst.msk [vmem:[#allocation4 + $0x80] sm:$0xff] %vm807_vm4, %v1792_v16  ;;  %v10719_v39 = vpop.f32.mrb[52].mxu0  ;;  %2325 = vst.msk [vmem:[#allocation4 + $0x50] sm:$0xff] %vm807_vm4, %v2289_v44  ;;  %v10766_v56 = vpop.f32.mrb[50].mxu1  ;;  %v4385_v16 = vld [vmem:[#allocation2 + $0x16a] sm:$0xff] }
 0x16a   : > { %v1795_v47 = vadd.f32 %v10719_v39, %v1759_v46  ;;  %v1651_v53 = vpop.f32.mrb[53].mxu0  ;;  %11051 = vmatmul.mubr.msk.f32.gmra.mrb[158].mxu0 %vm327_vm2, %v4376_v21  ;;  %v2292_v59 = vadd.f32 %v10766_v56, %v2256_v57  ;;  %v2124_v60 = vpop.f32.mrb[51].mxu1  ;;  %v1767_v21 = vld [vmem:[#allocation4 + $0xd8] sm:$0xff]  ;;  %v4386_v46 = vld [vmem:[#allocation2 + $0x172] sm:$0xff] }
 0x16b   : > { %v1794_v55 = vadd.f32 %v1758_v54, %v1651_v53  ;;  %11053 = vmatprep.mubr.msk.f32.mxu0 %vm327_vm2, %v4377_v34  ;;  %v2291_v50 = vadd.f32 %v2255_v62, %v2124_v60  ;;  %v2258_v7 = vld [vmem:[#allocation4 + $0x78] sm:$0xff]  ;;  %v1768_v62 = vld [vmem:[#allocation4 + $0xe0] sm:$0xff] }
 0x16c   : > { %1831 = vst.msk [vmem:[#allocation4 + $0x98] sm:$0xff] %vm807_vm4, %v1795_v47  ;;  %2328 = vst.msk [vmem:[#allocation4 + $0x68] sm:$0xff] %vm807_vm4, %v2292_v59  ;;  %v2257_v18 = vld [vmem:[#allocation4 + $0x70] sm:$0xff] }
 0x16d   : > { %1830 = vst.msk [vmem:[#allocation4 + $0x90] sm:$0xff] %vm807_vm4, %v1794_v55  ;;  %v10722_v13 = vpop.f32.mrb[54].mxu0  ;;  %2327 = vst.msk [vmem:[#allocation4 + $0x60] sm:$0xff] %vm807_vm4, %v2291_v50  ;;  %v10769_v4 = vpop.f32.mrb[52].mxu1  ;;  %v4387_v55 = vld [vmem:[#allocation2 + $0x182] sm:$0xff] }
 0x16e   : > { %v1797_v14 = vadd.f32 %v10722_v13, %v1761_v10  ;;  %v1661_v23 = vpop.f32.mrb[55].mxu0  ;;  %11054 = vmatmul.mubr.msk.f32.gmra.mrb[160].mxu0 %vm327_vm2, %v4378_v58  ;;  %v2294_v12 = vadd.f32 %v10769_v4, %v2258_v7  ;;  %v2134_v15 = vpop.f32.mrb[53].mxu1  ;;  %v1769_v58 = vld [vmem:[#allocation4 + $0xe8] sm:$0xff]  ;;  %v4388_v10 = vld [vmem:[#allocation2 + $0x18a] sm:$0xff] }
 0x16f   : > { %v1796_v3 = vadd.f32 %v1760_v63, %v1661_v23  ;;  %11056 = vmatprep.mubr.msk.f32.mxu0 %vm327_vm2, %v4379_v1  ;;  %v2293_v22 = vadd.f32 %v2257_v18, %v2134_v15  ;;  %v2260_v28 = vld [vmem:[#allocation4 + $0x88] sm:$0xff]  ;;  %v1770_v18 = vld [vmem:[#allocation4 + $0xf0] sm:$0xff] }
 0x170   : > { %1833 = vst.msk [vmem:[#allocation4 + $0xa8] sm:$0xff] %vm807_vm4, %v1797_v14  ;;  %2330 = vst.msk [vmem:[#allocation4 + $0x78] sm:$0xff] %vm807_vm4, %v2294_v12  ;;  %v2259_v35 = vld [vmem:[#allocation4 + $0x80] sm:$0xff] }
 0x171   : > { %1832 = vst.msk [vmem:[#allocation4 + $0xa0] sm:$0xff] %vm807_vm4, %v1796_v3  ;;  %v10725_v24 = vpop.f32.mrb[56].mxu0  ;;  %2329 = vst.msk [vmem:[#allocation4 + $0x70] sm:$0xff] %vm807_vm4, %v2293_v22  ;;  %v10772_v45 = vpop.f32.mrb[54].mxu1  ;;  %v4389_v3 = vld [vmem:[#allocation2 + $0x19a] sm:$0xff] }
 0x172   : > { %v1799_v32 = vadd.f32 %v10725_v24, %v1763_v31  ;;  %v1671_v26 = vpop.f32.mrb[57].mxu0  ;;  %11057 = vmatmul.mubr.msk.f32.gmra.mrb[162].mxu0 %vm327_vm2, %v4380_v8  ;;  %v2296_v29 = vadd.f32 %v10772_v45, %v2260_v28  ;;  %v2144_v52 = vpop.f32.mrb[55].mxu1  ;;  %v1771_v8 = vld [vmem:[#allocation4 + $0xf8] sm:$0xff]  ;;  %v1773_v28 = vld [vmem:[#allocation4 + $0x108] sm:$0xff] }
 0x173   : > { %v1798_v43 = vadd.f32 %v1762_v27, %v1671_v26  ;;  %11059 = vmatprep.mubr.msk.f32.mxu0 %vm327_vm2, %v4381_v19  ;;  %v2295_v38 = vadd.f32 %v2259_v35, %v2144_v52  ;;  %v2262_v0 = vld [vmem:[#allocation4 + $0x98] sm:$0xff]  ;;  %v1772_v52 = vld [vmem:[#allocation4 + $0x100] sm:$0xff] }
 0x174   : > { %1835 = vst.msk [vmem:[#allocation4 + $0xb8] sm:$0xff] %vm807_vm4, %v1799_v32  ;;  %2332 = vst.msk [vmem:[#allocation4 + $0x88] sm:$0xff] %vm807_vm4, %v2296_v29  ;;  %v2261_v11 = vld [vmem:[#allocation4 + $0x90] sm:$0xff] }
 0x175   : > { %1834 = vst.msk [vmem:[#allocation4 + $0xb0] sm:$0xff] %vm807_vm4, %v1798_v43  ;;  %v10728_v41 = vpop.f32.mrb[58].mxu0  ;;  %2331 = vst.msk [vmem:[#allocation4 + $0x80] sm:$0xff] %vm807_vm4, %v2295_v38  ;;  %v10775_v5 = vpop.f32.mrb[56].mxu1  ;;  %v4390_v31 = vld [vmem:[#allocation2 + $0x1a2] sm:$0xff] }
 0x176   : > { %v1801_v48 = vadd.f32 %v10728_v41, %v1765_v42  ;;  %v1681_v51 = vpop.f32.mrb[59].mxu0  ;;  %11060 = vmatmul.mubr.msk.f32.gmra.mrb[164].mxu0 %vm327_vm2, %v4382_v49  ;;  %v2298_v9 = vadd.f32 %v10775_v5, %v2262_v0  ;;  %v2154_v36 = vpop.f32.mrb[57].mxu1  ;;  %v4392_v41 = vld [vmem:[#allocation2 + $0x1ba] sm:$0xff]  ;;  %v1775_v0 = vld [vmem:[#allocation4 + $0x118] sm:$0xff] }
 0x177   : > { %v1800_v2 = vadd.f32 %v1764_v61, %v1681_v51  ;;  %11062 = vmatprep.mubr.msk.f32.mxu0 %vm327_vm2, %v4383_v37  ;;  %v2297_v17 = vadd.f32 %v2261_v11, %v2154_v36  ;;  %v2264_v39 = vld [vmem:[#allocation4 + $0xa8] sm:$0xff]  ;;  %v4393_v61 = vld [vmem:[#allocation2 + $0x1ca] sm:$0xff]  ;;  %v1774_v36 = vld [vmem:[#allocation4 + $0x110] sm:$0xff] }
 0x178   : > { %1837 = vst.msk [vmem:[#allocation4 + $0xc8] sm:$0xff] %vm807_vm4, %v1801_v48  ;;  %2334 = vst.msk [vmem:[#allocation4 + $0x98] sm:$0xff] %vm807_vm4, %v2298_v9  ;;  %v2263_v54 = vld [vmem:[#allocation4 + $0xa0] sm:$0xff] }
 0x179   : > { %1836 = vst.msk [vmem:[#allocation4 + $0xc0] sm:$0xff] %vm807_vm4, %v1800_v2  ;;  %v10731_v20 = vpop.f32.mrb[60].mxu0  ;;  %2333 = vst.msk [vmem:[#allocation4 + $0x90] sm:$0xff] %vm807_vm4, %v2297_v17  ;;  %v10778_v44 = vpop.f32.mrb[58].mxu1 }
 0x17a   : > { %v1803_v25 = vadd.f32 %v10731_v20, %v1767_v21  ;;  %v1691_v30 = vpop.f32.mrb[61].mxu0  ;;  %11063 = vmatmul.mubr.msk.f32.gmra.mrb[166].mxu0 %vm327_vm2, %v4384_v6  ;;  %v2300_v47 = vadd.f32 %v10778_v44, %v2264_v39  ;;  %v2164_v53 = vpop.f32.mrb[59].mxu1  ;;  %v4394_v20 = vld [vmem:[#allocation2 + $0x1d2] sm:$0xff] }
 0x17b   : > { %v1802_v34 = vadd.f32 %v1766_v33, %v1691_v30  ;;  %11065 = vmatprep.mubr.msk.f32.mxu0 %vm327_vm2, %v4385_v16  ;;  %v2299_v56 = vadd.f32 %v2263_v54, %v2164_v53  ;;  %v2266_v13 = vld [vmem:[#allocation4 + $0xb8] sm:$0xff]  ;;  %v2746_v44 = vld [vmem:[#allocation4 + $0x8] sm:$0xff] }
 0x17c   : > { %1839 = vst.msk [vmem:[#allocation4 + $0xd8] sm:$0xff] %vm807_vm4, %v1803_v25  ;;  %2336 = vst.msk [vmem:[#allocation4 + $0xa8] sm:$0xff] %vm807_vm4, %v2300_v47  ;;  %v2265_v63 = vld [vmem:[#allocation4 + $0xb0] sm:$0xff]  ;;  %v2745_v47 = vld [vmem:[#allocation4] sm:$0xff] }
 0x17d   : > { %1838 = vst.msk [vmem:[#allocation4 + $0xd0] sm:$0xff] %vm807_vm4, %v1802_v34  ;;  %v10734_v57 = vpop.f32.mrb[62].mxu0  ;;  %2335 = vst.msk [vmem:[#allocation4 + $0xa0] sm:$0xff] %vm807_vm4, %v2299_v56  ;;  %v10781_v50 = vpop.f32.mrb[60].mxu1 }
 0x17e   : > { %v1805_v59 = vadd.f32 %v10734_v57, %v1769_v58  ;;  %v1701_v60 = vpop.f32.mrb[63].mxu0  ;;  %11066 = vmatmul.mubr.msk.f32.gmra.mrb[168].mxu0 %vm327_vm2, %v4386_v46  ;;  %v2302_v14 = vadd.f32 %v10781_v50, %v2266_v13  ;;  %v2174_v23 = vpop.f32.mrb[61].mxu1  ;;  %v2747_v13 = vld [vmem:[#allocation4 + $0x10] sm:$0xff] }
 0x17f   : > { %v1804_v1 = vadd.f32 %v1768_v62, %v1701_v60  ;;  %11068 = vmatprep.mubr.msk.f32.mxu0 %vm327_vm2, %v4387_v55  ;;  %v2301_v4 = vadd.f32 %v2265_v63, %v2174_v23  ;;  %v2268_v24 = vld [vmem:[#allocation4 + $0xc8] sm:$0xff]  ;;  %v2748_v62 = vld [vmem:[#allocation4 + $0x18] sm:$0xff] }
 0x180   : > { %1841 = vst.msk [vmem:[#allocation4 + $0xe8] sm:$0xff] %vm807_vm4, %v1805_v59  ;;  %2338 = vst.msk [vmem:[#allocation4 + $0xb8] sm:$0xff] %vm807_vm4, %v2302_v14  ;;  %v2267_v27 = vld [vmem:[#allocation4 + $0xc0] sm:$0xff] }
 0x181   : > { %1840 = vst.msk [vmem:[#allocation4 + $0xe0] sm:$0xff] %vm807_vm4, %v1804_v1  ;;  %v10737_v7 = vpop.f32.mrb[64].mxu0  ;;  %2337 = vst.msk [vmem:[#allocation4 + $0xb0] sm:$0xff] %vm807_vm4, %v2301_v4  ;;  %v10784_v22 = vpop.f32.mrb[62].mxu1 }
 0x182   : > { %v1807_v12 = vadd.f32 %v10737_v7, %v1771_v8  ;;  %v1711_v15 = vpop.f32.mrb[65].mxu0  ;;  %11069 = vmatmul.mubr.msk.f32.gmra.mrb[170].mxu0 %vm327_vm2, %v4388_v10  ;;  %v2304_v32 = vadd.f32 %v10784_v22, %v2268_v24  ;;  %v2184_v26 = vpop.f32.mrb[63].mxu1 }
 0x183   : > { %v1806_v19 = vadd.f32 %v1770_v18, %v1711_v15  ;;  %11071 = vmatprep.mubr.msk.f32.mxu0 %vm327_vm2, %v4389_v3  ;;  %v2303_v43 = vadd.f32 %v2267_v27, %v2184_v26  ;;  %v2270_v38 = vld [vmem:[#allocation4 + $0xd8] sm:$0xff] }
 0x184   : > { %1843 = vst.msk [vmem:[#allocation4 + $0xf8] sm:$0xff] %vm807_vm4, %v1807_v12  ;;  %2340 = vst.msk [vmem:[#allocation4 + $0xc8] sm:$0xff] %vm807_vm4, %v2304_v32  ;;  %v2269_v51 = vld [vmem:[#allocation4 + $0xd0] sm:$0xff]  ;;  %v2750_v12 = vld [vmem:[#allocation4 + $0x28] sm:$0xff] }
 0x185   : > { %1842 = vst.msk [vmem:[#allocation4 + $0xf0] sm:$0xff] %vm807_vm4, %v1806_v19  ;;  %v10740_v45 = vpop.f32.mrb[66].mxu0  ;;  %2339 = vst.msk [vmem:[#allocation4 + $0xc0] sm:$0xff] %vm807_vm4, %v2303_v43  ;;  %v10787_v37 = vpop.f32.mrb[64].mxu1  ;;  %v2749_v19 = vld [vmem:[#allocation4 + $0x20] sm:$0xff] }
 0x186   : > { %v1809_v49 = vadd.f32 %v10740_v45, %v1773_v28  ;;  %v1721_v29 = vpop.f32.mrb[67].mxu0  ;;  %11072 = vmatmul.mubr.msk.f32.gmra.mrb[172].mxu0 %vm327_vm2, %v4390_v31  ;;  %v2306_v42 = vadd.f32 %v10787_v37, %v2270_v38  ;;  %v2194_v48 = vpop.f32.mrb[65].mxu1  ;;  %v2752_v45 = vld [vmem:[#allocation4 + $0x38] sm:$0xff] }
 0x187   : > { %v1808_v35 = vadd.f32 %v1772_v52, %v1721_v29  ;;  %11074 = vmatprep.mubr.msk.f32.mxu0 %vm327_vm2, %v4391_v40  ;;  %v2305_v2 = vadd.f32 %v2269_v51, %v2194_v48  ;;  %v2272_v17 = vld [vmem:[#allocation4 + $0xe8] sm:$0xff]  ;;  %v2751_v29 = vld [vmem:[#allocation4 + $0x30] sm:$0xff] }
 0x188   : > { %1845 = vst.msk [vmem:[#allocation4 + $0x108] sm:$0xff] %vm807_vm4, %v1809_v49  ;;  %2342 = vst.msk [vmem:[#allocation4 + $0xd8] sm:$0xff] %vm807_vm4, %v2306_v42  ;;  %v2271_v30 = vld [vmem:[#allocation4 + $0xe0] sm:$0xff] }
 0x189   : > { %1844 = vst.msk [vmem:[#allocation4 + $0x100] sm:$0xff] %vm807_vm4, %v1808_v35  ;;  %v10743_v5 = vpop.f32.mrb[68].mxu0  ;;  %2341 = vst.msk [vmem:[#allocation4 + $0xd0] sm:$0xff] %vm807_vm4, %v2305_v2  ;;  %v10790_v16 = vpop.f32.mrb[66].mxu1 }
 0x18a   : > { %v1811_v6 = vadd.f32 %v10743_v5, %v1775_v0  ;;  %v1731_v9 = vpop.f32.mrb[69].mxu0  ;;  %11075 = vmatmul.mubr.msk.f32.gmra.mrb[174].mxu0 %vm327_vm2, %v4392_v41  ;;  %v2308_v21 = vadd.f32 %v10790_v16, %v2272_v17  ;;  %v2204_v25 = vpop.f32.mrb[67].mxu1  ;;  %v2753_v0 = vld [vmem:[#allocation4 + $0x40] sm:$0xff] }
 0x18b   : > { %v1810_v11 = vadd.f32 %v1774_v36, %v1731_v9  ;;  %11077 = vmatprep.mubr.msk.f32.mxu0 %vm327_vm2, %v4393_v61  ;;  %v2307_v33 = vadd.f32 %v2271_v30, %v2204_v25  ;;  %v2274_v54 = vld [vmem:[#allocation4 + $0xf8] sm:$0xff]  ;;  %v2754_v61 = vld [vmem:[#allocation4 + $0x48] sm:$0xff] }
 0x18c   : > { %1847 = vst.msk [vmem:[#allocation4 + $0x118] sm:$0xff] %vm807_vm4, %v1811_v6  ;;  %2344 = vst.msk [vmem:[#allocation4 + $0xe8] sm:$0xff] %vm807_vm4, %v2308_v21  ;;  %v2273_v58 = vld [vmem:[#allocation4 + $0xf0] sm:$0xff]  ;;  %v2756_v25 = vld [vmem:[#allocation4 + $0x58] sm:$0xff] }
 0x18d   : > { %1846 = vst.msk [vmem:[#allocation4 + $0x110] sm:$0xff] %vm807_vm4, %v1810_v11  ;;  %v10804_v34 = vpop.f32.mrb[70].mxu0  ;;  %2343 = vst.msk [vmem:[#allocation4 + $0xe0] sm:$0xff] %vm807_vm4, %v2307_v33  ;;  %v10793_v53 = vpop.f32.mrb[68].mxu1 }
 0x18e   : > { %v2782_v39 = vadd.f32 %v10804_v34, %v2746_v44  ;;  %v2566_v46 = vpop.f32.mrb[71].mxu0  ;;  %11078 = vmatmul.mubr.msk.f32.gmra.mrb[176].mxu0 %vm327_vm2, %v4394_v20  ;;  %v2310_v56 = vadd.f32 %v10793_v53, %v2274_v54  ;;  %v2214_v57 = vpop.f32.mrb[69].mxu1  ;;  %v2755_v34 = vld [vmem:[#allocation4 + $0x50] sm:$0xff] }
 0x18f   : > { %v2781_v55 = vadd.f32 %v2745_v47, %v2566_v46  ;;  %v2309_v59 = vadd.f32 %v2273_v58, %v2214_v57  ;;  %v2276_v14 = vld [vmem:[#allocation4 + $0x108] sm:$0xff] }
 0x190   : > { %2818 = vst.msk [vmem:[#allocation4 + $0x8] sm:$0xff] %vm807_vm4, %v2782_v39  ;;  %2346 = vst.msk [vmem:[#allocation4 + $0xf8] sm:$0xff] %vm807_vm4, %v2310_v56  ;;  %v2275_v4 = vld [vmem:[#allocation4 + $0x100] sm:$0xff]  ;;  %v2758_v57 = vld [vmem:[#allocation4 + $0x68] sm:$0xff] }
 0x191   : > { %2817 = vst.msk [vmem:[#allocation4] sm:$0xff] %vm807_vm4, %v2781_v55  ;;  %v10807_v60 = vpop.f32.mrb[72].mxu0  ;;  %2345 = vst.msk [vmem:[#allocation4 + $0xf0] sm:$0xff] %vm807_vm4, %v2309_v59  ;;  %v10796_v10 = vpop.f32.mrb[70].mxu1 }
 0x192   : > { %v2784_v1 = vadd.f32 %v10807_v60, %v2748_v62  ;;  %v2576_v50 = vpop.f32.mrb[73].mxu0  ;;  %v2312_v63 = vadd.f32 %v10796_v10, %v2276_v14  ;;  %v2224_v3 = vpop.f32.mrb[71].mxu1  ;;  %v2757_v60 = vld [vmem:[#allocation4 + $0x60] sm:$0xff] }
 0x193   : > { %v2783_v23 = vadd.f32 %v2747_v13, %v2576_v50  ;;  %v2311_v7 = vadd.f32 %v2275_v4, %v2224_v3  ;;  %v2278_v24 = vld [vmem:[#allocation4 + $0x118] sm:$0xff] }
 0x194   : > { %2820 = vst.msk [vmem:[#allocation4 + $0x18] sm:$0xff] %vm807_vm4, %v2784_v1  ;;  %2348 = vst.msk [vmem:[#allocation4 + $0x108] sm:$0xff] %vm807_vm4, %v2312_v63  ;;  %v2277_v27 = vld [vmem:[#allocation4 + $0x110] sm:$0xff]  ;;  %v2760_v3 = vld [vmem:[#allocation4 + $0x78] sm:$0xff] }
 0x195   : > { %2819 = vst.msk [vmem:[#allocation4 + $0x10] sm:$0xff] %vm807_vm4, %v2783_v23  ;;  %v10810_v8 = vpop.f32.mrb[74].mxu0  ;;  %2347 = vst.msk [vmem:[#allocation4 + $0x100] sm:$0xff] %vm807_vm4, %v2311_v7  ;;  %v10799_v22 = vpop.f32.mrb[72].mxu1 }
 0x196   : > { %v2786_v15 = vadd.f32 %v10810_v8, %v2750_v12  ;;  %v2586_v18 = vpop.f32.mrb[75].mxu0  ;;  %v2314_v32 = vadd.f32 %v10799_v22, %v2278_v24  ;;  %v2234_v26 = vpop.f32.mrb[73].mxu1  ;;  %v2759_v8 = vld [vmem:[#allocation4 + $0x70] sm:$0xff] }
 0x197   : > { %v2785_v31 = vadd.f32 %v2749_v19, %v2586_v18  ;;  %v2313_v40 = vadd.f32 %v2277_v27, %v2234_v26  ;;  %v3248_v37 = vld [vmem:[#allocation4 + $0x8] sm:$0xff] }
 0x198   : > { %2822 = vst.msk [vmem:[#allocation4 + $0x28] sm:$0xff] %vm807_vm4, %v2786_v15  ;;  %2350 = vst.msk [vmem:[#allocation4 + $0x118] sm:$0xff] %vm807_vm4, %v2314_v32  ;;  %v3247_v42 = vld [vmem:[#allocation4] sm:$0xff]  ;;  %v2762_v26 = vld [vmem:[#allocation4 + $0x88] sm:$0xff] }
 0x199   : > { %2821 = vst.msk [vmem:[#allocation4 + $0x20] sm:$0xff] %vm807_vm4, %v2785_v31  ;;  %v10813_v43 = vpop.f32.mrb[76].mxu0  ;;  %2349 = vst.msk [vmem:[#allocation4 + $0x110] sm:$0xff] %vm807_vm4, %v2313_v40  ;;  %v10860_v35 = vpop.f32.mrb[74].mxu1 }
 0x19a   : > { %v2788_v28 = vadd.f32 %v10813_v43, %v2752_v45  ;;  %v2596_v49 = vpop.f32.mrb[77].mxu0  ;;  %v3284_v38 = vadd.f32 %v10860_v35, %v3248_v37  ;;  %v3068_v41 = vpop.f32.mrb[75].mxu1  ;;  %v2761_v43 = vld [vmem:[#allocation4 + $0x80] sm:$0xff]  ;;  %v14736_v45 = vmov 0.0  }
 0x19b   : > { %v2787_v52 = vadd.f32 %v2751_v29, %v2596_v49  ;;  %v3283_v48 = vadd.f32 %v3247_v42, %v3068_v41  ;;  %v3250_v36 = vld [vmem:[#allocation4 + $0x18] sm:$0xff]  ;;  %4977 = vst.msk [vmem:[#allocation3] sm:$0x1] %vm4976_vm5, %v14736_v45  ;;  %4978 = vst.msk [vmem:[#allocation3 + $0x18] sm:$0x1] %vm4976_vm5, %v14736_v45 }
 0x19c   : > { %2824 = vst.msk [vmem:[#allocation4 + $0x38] sm:$0xff] %vm807_vm4, %v2788_v28  ;;  %3320 = vst.msk [vmem:[#allocation4 + $0x8] sm:$0xff] %vm807_vm4, %v3284_v38  ;;  %v3249_v17 = vld [vmem:[#allocation4 + $0x10] sm:$0xff]  ;;  %v2764_v42 = vld [vmem:[#allocation4 + $0x98] sm:$0xff] }
 0x19d   : > { %2823 = vst.msk [vmem:[#allocation4 + $0x30] sm:$0xff] %vm807_vm4, %v2787_v52  ;;  %v10816_v51 = vpop.f32.mrb[78].mxu0  ;;  %3319 = vst.msk [vmem:[#allocation4] sm:$0xff] %vm807_vm4, %v3283_v48  ;;  %v10863_v9 = vpop.f32.mrb[76].mxu1 }
 0x19e   : > { %v2790_v2 = vadd.f32 %v10816_v51, %v2754_v61  ;;  %v2606_v5 = vpop.f32.mrb[79].mxu0  ;;  %v3286_v11 = vadd.f32 %v10863_v9, %v3250_v36  ;;  %v3078_v16 = vpop.f32.mrb[77].mxu1  ;;  %4979 = vst.msk [vmem:[#allocation3 + $0x30] sm:$0x1] %vm4976_vm5, %v14736_v45  ;;  %4980 = vst.msk [vmem:[#allocation3 + $0x48] sm:$0x1] %vm4976_vm5, %v14736_v45 }
 0x19f   : > { %v2789_v6 = vadd.f32 %v2753_v0, %v2606_v5  ;;  %v3285_v20 = vadd.f32 %v3249_v17, %v3078_v16  ;;  %v3252_v46 = vld [vmem:[#allocation4 + $0x28] sm:$0xff]  ;;  %4981 = vst.msk [vmem:[#allocation3 + $0x60] sm:$0x1] %vm4976_vm5, %v14736_v45  ;;  %4982 = vst.msk [vmem:[#allocation3 + $0x78] sm:$0x1] %vm4976_vm5, %v14736_v45  ;;  %v2763_v61 = vld [vmem:[#allocation4 + $0x90] sm:$0xff] }
 0x1a0   : > { %2826 = vst.msk [vmem:[#allocation4 + $0x48] sm:$0xff] %vm807_vm4, %v2790_v2  ;;  %3322 = vst.msk [vmem:[#allocation4 + $0x18] sm:$0xff] %vm807_vm4, %v3286_v11  ;;  %v3251_v54 = vld [vmem:[#allocation4 + $0x20] sm:$0xff]  ;;  %v2766_v17 = vld [vmem:[#allocation4 + $0xa8] sm:$0xff] }
 0x1a1   : > { %2825 = vst.msk [vmem:[#allocation4 + $0x40] sm:$0xff] %vm807_vm4, %v2789_v6  ;;  %v10819_v21 = vpop.f32.mrb[80].mxu0  ;;  %3321 = vst.msk [vmem:[#allocation4 + $0x10] sm:$0xff] %vm807_vm4, %v3285_v20  ;;  %v10866_v39 = vpop.f32.mrb[78].mxu1  ;;  %v9710_v20 = vld [vmem:[%s14635_s3 + $0x10] sm:$0xff] }
 0x1a2   : > { %v2792_v30 = vadd.f32 %v10819_v21, %v2756_v25  ;;  %v2616_v33 = vpop.f32.mrb[81].mxu0  ;;  %v3288_v47 = vadd.f32 %v10866_v39, %v3252_v46  ;;  %v3088_v53 = vpop.f32.mrb[79].mxu1  ;;  %4983 = vst.msk [vmem:[#allocation3 + $0x90] sm:$0x1] %vm4976_vm5, %v14736_v45  ;;  %4984 = vst.msk [vmem:[#allocation3 + $0xa8] sm:$0x1] %vm4976_vm5, %v14736_v45  ;;  %11180 = vmatprep.subr.mxu0 %v9710_v20 }
 0x1a3   : > { %v2791_v44 = vadd.f32 %v2755_v34, %v2616_v33  ;;  %v3287_v55 = vadd.f32 %v3251_v54, %v3088_v53  ;;  %v3254_v50 = vld [vmem:[#allocation4 + $0x38] sm:$0xff]  ;;  %4985 = vst.msk [vmem:[#allocation3 + $0xc0] sm:$0x1] %vm4976_vm5, %v14736_v45  ;;  %4986 = vst.msk [vmem:[#allocation3 + $0xd8] sm:$0x1] %vm4976_vm5, %v14736_v45  ;;  %11181 = vmatpush3.msra.mxu0 %v9710_v20 }
 0x1a4   : > { %2828 = vst.msk [vmem:[#allocation4 + $0x58] sm:$0xff] %vm807_vm4, %v2792_v30  ;;  %3324 = vst.msk [vmem:[#allocation4 + $0x28] sm:$0xff] %vm807_vm4, %v3288_v47  ;;  %v3253_v14 = vld [vmem:[#allocation4 + $0x30] sm:$0xff]  ;;  %v2765_v30 = vld [vmem:[#allocation4 + $0xa0] sm:$0xff] }
 0x1a5   : > { %2827 = vst.msk [vmem:[#allocation4 + $0x50] sm:$0xff] %vm807_vm4, %v2791_v44  ;;  %v10822_v56 = vpop.f32.mrb[82].mxu0  ;;  %3323 = vst.msk [vmem:[#allocation4 + $0x20] sm:$0xff] %vm807_vm4, %v3287_v55  ;;  %v10869_v1 = vpop.f32.mrb[80].mxu1  ;;  %v2768_v55 = vld [vmem:[#allocation4 + $0xb8] sm:$0xff] }
 0x1a6   : > { %v2794_v58 = vadd.f32 %v10822_v56, %v2758_v57  ;;  %v2626_v59 = vpop.f32.mrb[83].mxu0  ;;  %v3290_v13 = vadd.f32 %v10869_v1, %v3254_v50  ;;  %v3098_v10 = vpop.f32.mrb[81].mxu1  ;;  %4987 = vst.msk [vmem:[#allocation3 + $0xf0] sm:$0x1] %vm4976_vm5, %v14736_v45  ;;  %4988 = vst.msk [vmem:[#allocation3 + $0x108] sm:$0x1] %vm4976_vm5, %v14736_v45 }
 0x1a7   : > { %v2793_v62 = vadd.f32 %v2757_v60, %v2626_v59  ;;  %v3289_v23 = vadd.f32 %v3253_v14, %v3098_v10  ;;  %v3256_v18 = vld [vmem:[#allocation4 + $0x48] sm:$0xff]  ;;  %4989 = vst.msk [vmem:[#allocation3 + $0x120] sm:$0x1] %vm4976_vm5, %v14736_v45  ;;  %4990 = vst.msk [vmem:[#allocation3 + $0x138] sm:$0x1] %vm4976_vm5, %v14736_v45 }
 0x1a8   : > { %2830 = vst.msk [vmem:[#allocation4 + $0x68] sm:$0xff] %vm807_vm4, %v2794_v58  ;;  %3326 = vst.msk [vmem:[#allocation4 + $0x38] sm:$0xff] %vm807_vm4, %v3290_v13  ;;  %v3255_v24 = vld [vmem:[#allocation4 + $0x40] sm:$0xff]  ;;  %v2767_v58 = vld [vmem:[#allocation4 + $0xb0] sm:$0xff] }
 0x1a9   : > { %2829 = vst.msk [vmem:[#allocation4 + $0x60] sm:$0xff] %vm807_vm4, %v2793_v62  ;;  %v10825_v63 = vpop.f32.mrb[84].mxu0  ;;  %3325 = vst.msk [vmem:[#allocation4 + $0x30] sm:$0xff] %vm807_vm4, %v3289_v23  ;;  %v10872_v15 = vpop.f32.mrb[82].mxu1  ;;  %v2770_v23 = vld [vmem:[#allocation4 + $0xc8] sm:$0xff] }
 0x1aa   : > { %v2796_v4 = vadd.f32 %v10825_v63, %v2760_v3  ;;  %v2636_v7 = vpop.f32.mrb[85].mxu0  ;;  %v3292_v19 = vadd.f32 %v10872_v15, %v3256_v18  ;;  %v3108_v22 = vpop.f32.mrb[83].mxu1  ;;  %4991 = vst.msk [vmem:[#allocation3 + $0x150] sm:$0x1] %vm4976_vm5, %v14736_v45  ;;  %4992 = vst.msk [vmem:[#allocation3 + $0x168] sm:$0x1] %vm4976_vm5, %v14736_v45 }
 0x1ab   : > { %v2795_v12 = vadd.f32 %v2759_v8, %v2636_v7  ;;  %v3291_v31 = vadd.f32 %v3255_v24, %v3108_v22  ;;  %4993 = vst.msk [vmem:[#allocation3 + $0x180] sm:$0x1] %vm4976_vm5, %v14736_v45  ;;  %4994 = vst.msk [vmem:[#allocation3 + $0x198] sm:$0x1] %vm4976_vm5, %v14736_v45  ;;  %v3258_v29 = vld [vmem:[#allocation4 + $0x58] sm:$0xff] }
 0x1ac   : > { %2832 = vst.msk [vmem:[#allocation4 + $0x78] sm:$0xff] %vm807_vm4, %v2796_v4  ;;  %3328 = vst.msk [vmem:[#allocation4 + $0x48] sm:$0xff] %vm807_vm4, %v3292_v19  ;;  %v3257_v37 = vld [vmem:[#allocation4 + $0x50] sm:$0xff]  ;;  %v2769_v4 = vld [vmem:[#allocation4 + $0xc0] sm:$0xff] }
 0x1ad   : > { %2831 = vst.msk [vmem:[#allocation4 + $0x70] sm:$0xff] %vm807_vm4, %v2795_v12  ;;  %v10828_v32 = vpop.f32.mrb[86].mxu0  ;;  %3327 = vst.msk [vmem:[#allocation4 + $0x40] sm:$0xff] %vm807_vm4, %v3291_v31  ;;  %v10875_v49 = vpop.f32.mrb[84].mxu1  ;;  %v12907_v22 = vld [vmem:[%s14635_s3 + $0x8] sm:$0xff] }
 0x1ae   : > { %v2798_v27 = vadd.f32 %v10828_v32, %v2762_v26  ;;  %v2646_v40 = vpop.f32.mrb[87].mxu0  ;;  %4995 = vst.msk [vmem:[#allocation3 + $0x11] sm:$0x1] %vm4976_vm5, %v14736_v45  ;;  %4996 = vst.msk [vmem:[#allocation3 + $0x29] sm:$0x1] %vm4976_vm5, %v14736_v45  ;;  %v3294_v52 = vadd.f32 %v10875_v49, %v3258_v29  ;;  %v3118_v35 = vpop.f32.mrb[85].mxu1  ;;  %11130 = vmatprep.subr.mxu1 %v12907_v22 }
 0x1af   : > { %4997 = vst.msk [vmem:[#allocation3 + $0x41] sm:$0x1] %vm4976_vm5, %v14736_v45  ;;  %4998 = vst.msk [vmem:[#allocation3 + $0x59] sm:$0x1] %vm4976_vm5, %v14736_v45  ;;  %v2797_v28 = vadd.f32 %v2761_v43, %v2646_v40  ;;  %v3293_v38 = vadd.f32 %v3257_v37, %v3118_v35  ;;  %v3260_v0 = vld [vmem:[#allocation4 + $0x68] sm:$0xff]  ;;  %v2772_v32 = vld [vmem:[#allocation4 + $0xd8] sm:$0xff] }
 0x1b0   : > { %4999 = vst.msk [vmem:[#allocation3 + $0x71] sm:$0x1] %vm4976_vm5, %v14736_v45  ;;  %5000 = vst.msk [vmem:[#allocation3 + $0x89] sm:$0x1] %vm4976_vm5, %v14736_v45  ;;  %v3259_v36 = vld [vmem:[#allocation4 + $0x60] sm:$0xff]  ;;  %v2771_v40 = vld [vmem:[#allocation4 + $0xd0] sm:$0xff] }
 0x1b1   : > { %5001 = vst.msk [vmem:[#allocation3 + $0xa1] sm:$0x1] %vm4976_vm5, %v14736_v45  ;;  %5002 = vst.msk [vmem:[#allocation3 + $0xb9] sm:$0x1] %vm4976_vm5, %v14736_v45  ;;  %v10831_v41 = vpop.f32.mrb[88].mxu0  ;;  %v10878_v5 = vpop.f32.mrb[86].mxu1 }
 0x1b2   : > { %5003 = vst.msk [vmem:[#allocation3 + $0xd1] sm:$0x1] %vm4976_vm5, %v14736_v45  ;;  %5004 = vst.msk [vmem:[#allocation3 + $0xe9] sm:$0x1] %vm4976_vm5, %v14736_v45  ;;  %v2800_v48 = vadd.f32 %v10831_v41, %v2764_v42  ;;  %v2656_v51 = vpop.f32.mrb[89].mxu0  ;;  %v3296_v6 = vadd.f32 %v10878_v5, %v3260_v0  ;;  %v3128_v9 = vpop.f32.mrb[87].mxu1 }
 0x1b3   : > { %5005 = vst.msk [vmem:[#allocation3 + $0x101] sm:$0x1] %vm4976_vm5, %v14736_v45  ;;  %5006 = vst.msk [vmem:[#allocation3 + $0x119] sm:$0x1] %vm4976_vm5, %v14736_v45  ;;  %v2799_v2 = vadd.f32 %v2763_v61, %v2656_v51  ;;  %v3295_v11 = vadd.f32 %v3259_v36, %v3128_v9  ;;  %v3262_v44 = vld [vmem:[#allocation4 + $0x78] sm:$0xff]  ;;  %v2774_v41 = vld [vmem:[#allocation4 + $0xe8] sm:$0xff] }
 0x1b4   : > { %5007 = vst.msk [vmem:[#allocation3 + $0x131] sm:$0x1] %vm4976_vm5, %v14736_v45  ;;  %5008 = vst.msk [vmem:[#allocation3 + $0x149] sm:$0x1] %vm4976_vm5, %v14736_v45  ;;  %v3261_v47 = vld [vmem:[#allocation4 + $0x70] sm:$0xff]  ;;  %v2773_v51 = vld [vmem:[#allocation4 + $0xe0] sm:$0xff] }
 0x1b5   : > { %5009 = vst.msk [vmem:[#allocation3 + $0x161] sm:$0x1] %vm4976_vm5, %v14736_v45  ;;  %5010 = vst.msk [vmem:[#allocation3 + $0x179] sm:$0x1] %vm4976_vm5, %v14736_v45  ;;  %v10834_v16 = vpop.f32.mrb[90].mxu0  ;;  %v10881_v34 = vpop.f32.mrb[88].mxu1 }
 0x1b6   : > { %5011 = vst.msk [vmem:[#allocation3 + $0x191] sm:$0x1] %vm4976_vm5, %v14736_v45  ;;  %5012 = vst.msk [vmem:[#allocation3 + $0x1a9] sm:$0x1] %vm4976_vm5, %v14736_v45  ;;  %v2802_v21 = vadd.f32 %v10834_v16, %v2766_v17  ;;  %v2666_v25 = vpop.f32.mrb[91].mxu0  ;;  %v3298_v39 = vadd.f32 %v10881_v34, %v3262_v44  ;;  %v3138_v46 = vpop.f32.mrb[89].mxu1 }
 0x1b7   : > { %2834 = vst.msk [vmem:[#allocation4 + $0x88] sm:$0xff] %vm807_vm4, %v2798_v27  ;;  %2833 = vst.msk [vmem:[#allocation4 + $0x80] sm:$0xff] %vm807_vm4, %v2797_v28  ;;  %v2801_v33 = vadd.f32 %v2765_v30, %v2666_v25  ;;  %v3297_v53 = vadd.f32 %v3261_v47, %v3138_v46  ;;  %v2776_v16 = vld [vmem:[#allocation4 + $0xf8] sm:$0xff] }
 0x1b8   : > { %3330 = vst.msk [vmem:[#allocation4 + $0x58] sm:$0xff] %vm807_vm4, %v3294_v52  ;;  %3329 = vst.msk [vmem:[#allocation4 + $0x50] sm:$0xff] %vm807_vm4, %v3293_v38 }
 0x1b9   : > { %2836 = vst.msk [vmem:[#allocation4 + $0x98] sm:$0xff] %vm807_vm4, %v2800_v48  ;;  %2835 = vst.msk [vmem:[#allocation4 + $0x90] sm:$0xff] %vm807_vm4, %v2799_v2  ;;  %v10837_v54 = vpop.f32.mrb[92].mxu0  ;;  %v10884_v60 = vpop.f32.mrb[90].mxu1 }
 0x1ba   : > { %3332 = vst.msk [vmem:[#allocation4 + $0x68] sm:$0xff] %vm807_vm4, %v3296_v6  ;;  %3331 = vst.msk [vmem:[#allocation4 + $0x60] sm:$0xff] %vm807_vm4, %v3295_v11  ;;  %v2804_v56 = vadd.f32 %v10837_v54, %v2768_v55  ;;  %v2676_v57 = vpop.f32.mrb[93].mxu0  ;;  %v3148_v50 = vpop.f32.mrb[91].mxu1 }
 0x1bb   : > { %2838 = vst.msk [vmem:[#allocation4 + $0xa8] sm:$0xff] %vm807_vm4, %v2802_v21  ;;  %2837 = vst.msk [vmem:[#allocation4 + $0xa0] sm:$0xff] %vm807_vm4, %v2801_v33  ;;  %v2803_v59 = vadd.f32 %v2767_v58, %v2676_v57  ;;  %v2775_v21 = vld [vmem:[#allocation4 + $0xf0] sm:$0xff] }
 0x1bc   : > { %3334 = vst.msk [vmem:[#allocation4 + $0x78] sm:$0xff] %vm807_vm4, %v3298_v39  ;;  %3333 = vst.msk [vmem:[#allocation4 + $0x70] sm:$0xff] %vm807_vm4, %v3297_v53  ;;  %v2778_v53 = vld [vmem:[#allocation4 + $0x108] sm:$0xff] }
 0x1bd   : > { %2840 = vst.msk [vmem:[#allocation4 + $0xb8] sm:$0xff] %vm807_vm4, %v2804_v56  ;;  %2839 = vst.msk [vmem:[#allocation4 + $0xb0] sm:$0xff] %vm807_vm4, %v2803_v59  ;;  %v10840_v14 = vpop.f32.mrb[94].mxu0  ;;  %v10887_v8 = vpop.f32.mrb[92].mxu1  ;;  %v2777_v56 = vld [vmem:[#allocation4 + $0x100] sm:$0xff] }
 0x1be   : > { %v3264_v62 = vld [vmem:[#allocation4 + $0x88] sm:$0xff]  ;;  %v3263_v13 = vld [vmem:[#allocation4 + $0x80] sm:$0xff]  ;;  %v2806_v63 = vadd.f32 %v10840_v14, %v2770_v23  ;;  %v2686_v3 = vpop.f32.mrb[95].mxu0  ;;  %v3158_v18 = vpop.f32.mrb[93].mxu1 }
 0x1bf   : > { %v3300_v1 = vadd.f32 %v10884_v60, %v3264_v62  ;;  %v3299_v10 = vadd.f32 %v3263_v13, %v3148_v50  ;;  %v2805_v7 = vadd.f32 %v2769_v4, %v2686_v3 }
 0x1c0   : > { %v3266_v12 = vld [vmem:[#allocation4 + $0x98] sm:$0xff]  ;;  %2842 = vst.msk [vmem:[#allocation4 + $0xc8] sm:$0xff] %vm807_vm4, %v2806_v63  ;;  %v3265_v19 = vld [vmem:[#allocation4 + $0x90] sm:$0xff] }
 0x1c1   : > { %3336 = vst.msk [vmem:[#allocation4 + $0x88] sm:$0xff] %vm807_vm4, %v3300_v1  ;;  %3335 = vst.msk [vmem:[#allocation4 + $0x80] sm:$0xff] %vm807_vm4, %v3299_v10  ;;  %v3302_v15 = vadd.f32 %v10887_v8, %v3266_v12  ;;  %v3301_v24 = vadd.f32 %v3265_v19, %v3158_v18  ;;  %v10843_v31 = vpop.f32.mrb[96].mxu0  ;;  %v10890_v28 = vpop.f32.mrb[94].mxu1  ;;  %v2780_v10 = vld [vmem:[#allocation4 + $0x118] sm:$0xff]  ;;  %v2779_v63 = vld [vmem:[#allocation4 + $0x110] sm:$0xff] }
 0x1c2   : > { %2841 = vst.msk [vmem:[#allocation4 + $0xc0] sm:$0xff] %vm807_vm4, %v2805_v7  ;;  %v2808_v26 = vadd.f32 %v10843_v31, %v2772_v32  ;;  %v2696_v27 = vpop.f32.mrb[97].mxu0  ;;  %v3268_v49 = vld [vmem:[#allocation4 + $0xa8] sm:$0xff]  ;;  %v3168_v52 = vpop.f32.mrb[95].mxu1  ;;  %v3267_v35 = vld [vmem:[#allocation4 + $0xa0] sm:$0xff] }
 0x1c3   : > { %3338 = vst.msk [vmem:[#allocation4 + $0x98] sm:$0xff] %vm807_vm4, %v3302_v15  ;;  %3337 = vst.msk [vmem:[#allocation4 + $0x90] sm:$0xff] %vm807_vm4, %v3301_v24  ;;  %v2807_v43 = vadd.f32 %v2771_v40, %v2696_v27  ;;  %v3304_v29 = vadd.f32 %v10890_v28, %v3268_v49  ;;  %v3303_v37 = vadd.f32 %v3267_v35, %v3168_v52  ;;  %v3750_v24 = vld [vmem:[#allocation4 + $0x8] sm:$0xff] }
 0x1c4   : > { %2844 = vst.msk [vmem:[#allocation4 + $0xd8] sm:$0xff] %vm807_vm4, %v2808_v26  ;;  %v3270_v5 = vld [vmem:[#allocation4 + $0xb8] sm:$0xff]  ;;  %v3269_v9 = vld [vmem:[#allocation4 + $0xb0] sm:$0xff]  ;;  %v3749_v26 = vld [vmem:[#allocation4] sm:$0xff] }
 0x1c5   : > { %2843 = vst.msk [vmem:[#allocation4 + $0xd0] sm:$0xff] %vm807_vm4, %v2807_v43  ;;  %v10846_v38 = vpop.f32.mrb[98].mxu0  ;;  %3340 = vst.msk [vmem:[#allocation4 + $0xa8] sm:$0xff] %vm807_vm4, %v3304_v29  ;;  %v10893_v2 = vpop.f32.mrb[96].mxu1 }
 0x1c6   : > { %v2810_v42 = vadd.f32 %v10846_v38, %v2774_v41  ;;  %v2706_v48 = vpop.f32.mrb[99].mxu0  ;;  %3339 = vst.msk [vmem:[#allocation4 + $0xa0] sm:$0xff] %vm807_vm4, %v3303_v37  ;;  %v3306_v0 = vadd.f32 %v10893_v2, %v3270_v5  ;;  %v3178_v6 = vpop.f32.mrb[97].mxu1  ;;  %v3752_v37 = vld [vmem:[#allocation4 + $0x18] sm:$0xff] }
 0x1c7   : > { %v2809_v61 = vadd.f32 %v2773_v51, %v2706_v48  ;;  %v3305_v36 = vadd.f32 %v3269_v9, %v3178_v6  ;;  %v3272_v33 = vld [vmem:[#allocation4 + $0xc8] sm:$0xff] }
 0x1c8   : > { %2846 = vst.msk [vmem:[#allocation4 + $0xe8] sm:$0xff] %vm807_vm4, %v2810_v42  ;;  %3342 = vst.msk [vmem:[#allocation4 + $0xb8] sm:$0xff] %vm807_vm4, %v3306_v0  ;;  %v3751_v42 = vld [vmem:[#allocation4 + $0x10] sm:$0xff] }
 0x1c9   : > { %2845 = vst.msk [vmem:[#allocation4 + $0xe0] sm:$0xff] %vm807_vm4, %v2809_v61  ;;  %v10849_v11 = vpop.f32.mrb[100].mxu0  ;;  %3341 = vst.msk [vmem:[#allocation4 + $0xb0] sm:$0xff] %vm807_vm4, %v3305_v36  ;;  %v10896_v30 = vpop.f32.mrb[98].mxu1  ;;  %v3271_v39 = vld [vmem:[#allocation4 + $0xc0] sm:$0xff]  ;;  %v3754_v36 = vld [vmem:[#allocation4 + $0x28] sm:$0xff] }
 0x1ca   : > { %v2812_v17 = vadd.f32 %v10849_v11, %v2776_v16  ;;  %v2716_v20 = vpop.f32.mrb[101].mxu0  ;;  %v3308_v34 = vadd.f32 %v10896_v30, %v3272_v33  ;;  %v3188_v44 = vpop.f32.mrb[99].mxu1 }
 0x1cb   : > { %v2811_v25 = vadd.f32 %v2775_v21, %v2716_v20  ;;  %v3307_v46 = vadd.f32 %v3271_v39, %v3188_v44  ;;  %v3274_v59 = vld [vmem:[#allocation4 + $0xd8] sm:$0xff] }
 0x1cc   : > { %2848 = vst.msk [vmem:[#allocation4 + $0xf8] sm:$0xff] %vm807_vm4, %v2812_v17  ;;  %3344 = vst.msk [vmem:[#allocation4 + $0xc8] sm:$0xff] %vm807_vm4, %v3308_v34  ;;  %v3273_v1 = vld [vmem:[#allocation4 + $0xd0] sm:$0xff]  ;;  %v3753_v17 = vld [vmem:[#allocation4 + $0x20] sm:$0xff] }
 0x1cd   : > { %2847 = vst.msk [vmem:[#allocation4 + $0xf0] sm:$0xff] %vm807_vm4, %v2811_v25  ;;  %v10852_v47 = vpop.f32.mrb[102].mxu0  ;;  %3343 = vst.msk [vmem:[#allocation4 + $0xc0] sm:$0xff] %vm807_vm4, %v3307_v46  ;;  %v10899_v58 = vpop.f32.mrb[100].mxu1  ;;  %v3756_v46 = vld [vmem:[#allocation4 + $0x38] sm:$0xff] }
 0x1ce   : > { %v2814_v54 = vadd.f32 %v10852_v47, %v2778_v53  ;;  %v2726_v55 = vpop.f32.mrb[103].mxu0  ;;  %v3310_v60 = vadd.f32 %v10899_v58, %v3274_v59  ;;  %v3198_v62 = vpop.f32.mrb[101].mxu1 }
 0x1cf   : > { %v2813_v57 = vadd.f32 %v2777_v56, %v2726_v55  ;;  %v3309_v50 = vadd.f32 %v3273_v1, %v3198_v62  ;;  %v3276_v7 = vld [vmem:[#allocation4 + $0xe8] sm:$0xff] }
 0x1d0   : > { %2850 = vst.msk [vmem:[#allocation4 + $0x108] sm:$0xff] %vm807_vm4, %v2814_v54  ;;  %3346 = vst.msk [vmem:[#allocation4 + $0xd8] sm:$0xff] %vm807_vm4, %v3310_v60  ;;  %v3275_v15 = vld [vmem:[#allocation4 + $0xe0] sm:$0xff]  ;;  %v3755_v54 = vld [vmem:[#allocation4 + $0x30] sm:$0xff] }
 0x1d1   : > { %2849 = vst.msk [vmem:[#allocation4 + $0x100] sm:$0xff] %vm807_vm4, %v2813_v57  ;;  %v10855_v13 = vpop.f32.mrb[104].mxu0  ;;  %3345 = vst.msk [vmem:[#allocation4 + $0xd0] sm:$0xff] %vm807_vm4, %v3309_v50  ;;  %v10902_v4 = vpop.f32.mrb[102].mxu1  ;;  %v3758_v50 = vld [vmem:[#allocation4 + $0x48] sm:$0xff] }
 0x1d2   : > { %v2816_v14 = vadd.f32 %v10855_v13, %v2780_v10  ;;  %v2736_v23 = vpop.f32.mrb[105].mxu0  ;;  %v3312_v8 = vadd.f32 %v10902_v4, %v3276_v7  ;;  %v3208_v12 = vpop.f32.mrb[103].mxu1 }
 0x1d3   : > { %v2815_v3 = vadd.f32 %v2779_v63, %v2736_v23  ;;  %v3311_v18 = vadd.f32 %v3275_v15, %v3208_v12  ;;  %v3278_v40 = vld [vmem:[#allocation4 + $0xf8] sm:$0xff] }
 0x1d4   : > { %2852 = vst.msk [vmem:[#allocation4 + $0x118] sm:$0xff] %vm807_vm4, %v2816_v14  ;;  %3348 = vst.msk [vmem:[#allocation4 + $0xe8] sm:$0xff] %vm807_vm4, %v3312_v8  ;;  %v3277_v29 = vld [vmem:[#allocation4 + $0xf0] sm:$0xff]  ;;  %v3757_v14 = vld [vmem:[#allocation4 + $0x40] sm:$0xff] }
 0x1d5   : > { %2851 = vst.msk [vmem:[#allocation4 + $0x110] sm:$0xff] %vm807_vm4, %v2815_v3  ;;  %v10916_v19 = vpop.f32.mrb[106].mxu0  ;;  %3347 = vst.msk [vmem:[#allocation4 + $0xe0] sm:$0xff] %vm807_vm4, %v3311_v18  ;;  %v10905_v27 = vpop.f32.mrb[104].mxu1  ;;  %v3760_v18 = vld [vmem:[#allocation4 + $0x58] sm:$0xff] }
 0x1d6   : > { %v3786_v31 = vadd.f32 %v10916_v19, %v3750_v24  ;;  %v3570_v32 = vpop.f32.mrb[107].mxu0  ;;  %v3314_v28 = vadd.f32 %v10905_v27, %v3278_v40  ;;  %v3218_v49 = vpop.f32.mrb[105].mxu1 }
 0x1d7   : > { %v3785_v43 = vadd.f32 %v3749_v26, %v3570_v32  ;;  %v3313_v52 = vadd.f32 %v3277_v29, %v3218_v49  ;;  %v3280_v51 = vld [vmem:[#allocation4 + $0x108] sm:$0xff] }
 0x1d8   : > { %3822 = vst.msk [vmem:[#allocation4 + $0x8] sm:$0xff] %vm807_vm4, %v3786_v31  ;;  %3350 = vst.msk [vmem:[#allocation4 + $0xf8] sm:$0xff] %vm807_vm4, %v3314_v28  ;;  %v3279_v0 = vld [vmem:[#allocation4 + $0x100] sm:$0xff]  ;;  %v3759_v31 = vld [vmem:[#allocation4 + $0x50] sm:$0xff] }
 0x1d9   : > { %3821 = vst.msk [vmem:[#allocation4] sm:$0xff] %vm807_vm4, %v3785_v43  ;;  %v10919_v35 = vpop.f32.mrb[108].mxu0  ;;  %3349 = vst.msk [vmem:[#allocation4 + $0xf0] sm:$0xff] %vm807_vm4, %v3313_v52  ;;  %v10908_v48 = vpop.f32.mrb[106].mxu1  ;;  %v3762_v52 = vld [vmem:[#allocation4 + $0x68] sm:$0xff] }
 0x1da   : > { %v3788_v38 = vadd.f32 %v10919_v35, %v3752_v37  ;;  %v3580_v41 = vpop.f32.mrb[109].mxu0  ;;  %v3316_v2 = vadd.f32 %v10908_v48, %v3280_v51  ;;  %v3228_v5 = vpop.f32.mrb[107].mxu1 }
 0x1db   : > { %v3787_v61 = vadd.f32 %v3751_v42, %v3580_v41  ;;  %v3315_v6 = vadd.f32 %v3279_v0, %v3228_v5  ;;  %v3282_v21 = vld [vmem:[#allocation4 + $0x118] sm:$0xff] }
 0x1dc   : > { %3824 = vst.msk [vmem:[#allocation4 + $0x18] sm:$0xff] %vm807_vm4, %v3788_v38  ;;  %3352 = vst.msk [vmem:[#allocation4 + $0x108] sm:$0xff] %vm807_vm4, %v3316_v2  ;;  %v3281_v34 = vld [vmem:[#allocation4 + $0x110] sm:$0xff]  ;;  %v3761_v38 = vld [vmem:[#allocation4 + $0x60] sm:$0xff] }
 0x1dd   : > { %3823 = vst.msk [vmem:[#allocation4 + $0x10] sm:$0xff] %vm807_vm4, %v3787_v61  ;;  %v10922_v9 = vpop.f32.mrb[110].mxu0  ;;  %3351 = vst.msk [vmem:[#allocation4 + $0x100] sm:$0xff] %vm807_vm4, %v3315_v6  ;;  %v10911_v20 = vpop.f32.mrb[108].mxu1  ;;  %v3764_v6 = vld [vmem:[#allocation4 + $0x78] sm:$0xff] }
 0x1de   : > { %v3790_v11 = vadd.f32 %v10922_v9, %v3754_v36  ;;  %v3590_v16 = vpop.f32.mrb[111].mxu0  ;;  %v3318_v30 = vadd.f32 %v10911_v20, %v3282_v21  ;;  %v3238_v33 = vpop.f32.mrb[109].mxu1 }
 0x1df   : > { %v3789_v25 = vadd.f32 %v3753_v17, %v3590_v16  ;;  %v3317_v44 = vadd.f32 %v3281_v34, %v3238_v33  ;;  %v4252_v57 = vld [vmem:[#allocation4 + $0x8] sm:$0xff]  ;;  %v12965_v33 = vld [vmem:[%s14635_s3 + $0x20] sm:$0xff] }
 0x1e0   : > { %3826 = vst.msk [vmem:[#allocation4 + $0x28] sm:$0xff] %vm807_vm4, %v3790_v11  ;;  %3354 = vst.msk [vmem:[#allocation4 + $0x118] sm:$0xff] %vm807_vm4, %v3318_v30  ;;  %v4251_v60 = vld [vmem:[#allocation4] sm:$0xff]  ;;  %v3763_v11 = vld [vmem:[#allocation4 + $0x70] sm:$0xff]  ;;  %11280 = vmatprep.subr.mxu0 %v12965_v33 }
 0x1e1   : > { %3825 = vst.msk [vmem:[#allocation4 + $0x20] sm:$0xff] %vm807_vm4, %v3789_v25  ;;  %v10925_v39 = vpop.f32.mrb[112].mxu0  ;;  %3353 = vst.msk [vmem:[#allocation4 + $0x110] sm:$0xff] %vm807_vm4, %v3317_v44  ;;  %v10972_v56 = vpop.f32.mrb[110].mxu1 }
 0x1e2   : > { %v3792_v47 = vadd.f32 %v10925_v39, %v3756_v46  ;;  %v3600_v53 = vpop.f32.mrb[113].mxu0  ;;  %v4288_v58 = vadd.f32 %v10972_v56, %v4252_v57  ;;  %v4072_v59 = vpop.f32.mrb[111].mxu1  ;;  %v3766_v39 = vld [vmem:[#allocation4 + $0x88] sm:$0xff] }
 0x1e3   : > { %v3791_v55 = vadd.f32 %v3755_v54, %v3600_v53  ;;  %v4287_v62 = vadd.f32 %v4251_v60, %v4072_v59  ;;  %v4254_v3 = vld [vmem:[#allocation4 + $0x18] sm:$0xff]  ;;  %v3765_v53 = vld [vmem:[#allocation4 + $0x80] sm:$0xff] }
 0x1e4   : > { %3828 = vst.msk [vmem:[#allocation4 + $0x38] sm:$0xff] %vm807_vm4, %v3792_v47  ;;  %4324 = vst.msk [vmem:[#allocation4 + $0x8] sm:$0xff] %vm807_vm4, %v4288_v58  ;;  %v4253_v8 = vld [vmem:[#allocation4 + $0x10] sm:$0xff] }
 0x1e5   : > { %3827 = vst.msk [vmem:[#allocation4 + $0x30] sm:$0xff] %vm807_vm4, %v3791_v55  ;;  %v10928_v1 = vpop.f32.mrb[114].mxu0  ;;  %4323 = vst.msk [vmem:[#allocation4] sm:$0xff] %vm807_vm4, %v4287_v62  ;;  %v10975_v63 = vpop.f32.mrb[112].mxu1 }
 0x1e6   : > { %v3794_v13 = vadd.f32 %v10928_v1, %v3758_v50  ;;  %v3610_v10 = vpop.f32.mrb[115].mxu0  ;;  %v4290_v4 = vadd.f32 %v10975_v63, %v4254_v3  ;;  %v4082_v7 = vpop.f32.mrb[113].mxu1  ;;  %v3768_v1 = vld [vmem:[#allocation4 + $0x98] sm:$0xff] }
 0x1e7   : > { %v3793_v23 = vadd.f32 %v3757_v14, %v3610_v10  ;;  %v4289_v12 = vadd.f32 %v4253_v8, %v4082_v7  ;;  %v4256_v27 = vld [vmem:[#allocation4 + $0x28] sm:$0xff]  ;;  %v3767_v10 = vld [vmem:[#allocation4 + $0x90] sm:$0xff] }
 0x1e8   : > { %3830 = vst.msk [vmem:[#allocation4 + $0x48] sm:$0xff] %vm807_vm4, %v3794_v13  ;;  %4326 = vst.msk [vmem:[#allocation4 + $0x18] sm:$0xff] %vm807_vm4, %v4290_v4  ;;  %v4255_v28 = vld [vmem:[#allocation4 + $0x20] sm:$0xff] }
 0x1e9   : > { %3829 = vst.msk [vmem:[#allocation4 + $0x40] sm:$0xff] %vm807_vm4, %v3793_v23  ;;  %v10931_v15 = vpop.f32.mrb[116].mxu0  ;;  %4325 = vst.msk [vmem:[#allocation4 + $0x10] sm:$0xff] %vm807_vm4, %v4289_v12  ;;  %v10978_v26 = vpop.f32.mrb[114].mxu1 }
 0x1ea   : > { %v3796_v19 = vadd.f32 %v10931_v15, %v3760_v18  ;;  %v3620_v24 = vpop.f32.mrb[117].mxu0  ;;  %v4292_v40 = vadd.f32 %v10978_v26, %v4256_v27  ;;  %v4092_v43 = vpop.f32.mrb[115].mxu1  ;;  %v3770_v15 = vld [vmem:[#allocation4 + $0xa8] sm:$0xff] }
 0x1eb   : > { %v3795_v32 = vadd.f32 %v3759_v31, %v3620_v24  ;;  %v4291_v49 = vadd.f32 %v4255_v28, %v4092_v43  ;;  %v4258_v48 = vld [vmem:[#allocation4 + $0x38] sm:$0xff]  ;;  %v3769_v24 = vld [vmem:[#allocation4 + $0xa0] sm:$0xff] }
 0x1ec   : > { %3832 = vst.msk [vmem:[#allocation4 + $0x58] sm:$0xff] %vm807_vm4, %v3796_v19  ;;  %4328 = vst.msk [vmem:[#allocation4 + $0x28] sm:$0xff] %vm807_vm4, %v4292_v40  ;;  %v4257_v2 = vld [vmem:[#allocation4 + $0x30] sm:$0xff] }
 0x1ed   : > { %3831 = vst.msk [vmem:[#allocation4 + $0x50] sm:$0xff] %vm807_vm4, %v3795_v32  ;;  %v10934_v29 = vpop.f32.mrb[118].mxu0  ;;  %4327 = vst.msk [vmem:[#allocation4 + $0x20] sm:$0xff] %vm807_vm4, %v4291_v49  ;;  %v10981_v42 = vpop.f32.mrb[116].mxu1 }
 0x1ee   : > { %v3798_v35 = vadd.f32 %v10934_v29, %v3762_v52  ;;  %v3630_v37 = vpop.f32.mrb[119].mxu0  ;;  %v4294_v51 = vadd.f32 %v10981_v42, %v4258_v48  ;;  %v4102_v61 = vpop.f32.mrb[117].mxu1  ;;  %v3772_v29 = vld [vmem:[#allocation4 + $0xb8] sm:$0xff] }
 0x1ef   : > { %v3797_v41 = vadd.f32 %v3761_v38, %v3630_v37  ;;  %v4293_v5 = vadd.f32 %v4257_v2, %v4102_v61  ;;  %v4260_v20 = vld [vmem:[#allocation4 + $0x48] sm:$0xff]  ;;  %v3771_v37 = vld [vmem:[#allocation4 + $0xb0] sm:$0xff] }
 0x1f0   : > { %3834 = vst.msk [vmem:[#allocation4 + $0x68] sm:$0xff] %vm807_vm4, %v3798_v35  ;;  %4330 = vst.msk [vmem:[#allocation4 + $0x38] sm:$0xff] %vm807_vm4, %v4294_v51  ;;  %v4259_v30 = vld [vmem:[#allocation4 + $0x40] sm:$0xff] }
 0x1f1   : > { %3833 = vst.msk [vmem:[#allocation4 + $0x60] sm:$0xff] %vm807_vm4, %v3797_v41  ;;  %v10937_v0 = vpop.f32.mrb[120].mxu0  ;;  %4329 = vst.msk [vmem:[#allocation4 + $0x30] sm:$0xff] %vm807_vm4, %v4293_v5  ;;  %v10984_v17 = vpop.f32.mrb[118].mxu1 }
 0x1f2   : > { %v3800_v9 = vadd.f32 %v10937_v0, %v3764_v6  ;;  %v3640_v36 = vpop.f32.mrb[121].mxu0  ;;  %v4296_v21 = vadd.f32 %v10984_v17, %v4260_v20  ;;  %v4112_v25 = vpop.f32.mrb[119].mxu1  ;;  %v3774_v0 = vld [vmem:[#allocation4 + $0xc8] sm:$0xff] }
 0x1f3   : > { %v3799_v16 = vadd.f32 %v3763_v11, %v3640_v36  ;;  %v4295_v34 = vadd.f32 %v4259_v30, %v4112_v25  ;;  %v4262_v56 = vld [vmem:[#allocation4 + $0x58] sm:$0xff]  ;;  %v3773_v36 = vld [vmem:[#allocation4 + $0xc0] sm:$0xff] }
 0x1f4   : > { %3836 = vst.msk [vmem:[#allocation4 + $0x78] sm:$0xff] %vm807_vm4, %v3800_v9  ;;  %4332 = vst.msk [vmem:[#allocation4 + $0x48] sm:$0xff] %vm807_vm4, %v4296_v21  ;;  %v4261_v59 = vld [vmem:[#allocation4 + $0x50] sm:$0xff] }
 0x1f5   : > { %3835 = vst.msk [vmem:[#allocation4 + $0x70] sm:$0xff] %vm807_vm4, %v3799_v16  ;;  %v10940_v44 = vpop.f32.mrb[122].mxu0  ;;  %4331 = vst.msk [vmem:[#allocation4 + $0x40] sm:$0xff] %vm807_vm4, %v4295_v34  ;;  %v10987_v55 = vpop.f32.mrb[120].mxu1 }
 0x1f6   : > { %v3802_v46 = vadd.f32 %v10940_v44, %v3766_v39  ;;  %v3650_v47 = vpop.f32.mrb[123].mxu0  ;;  %v4298_v57 = vadd.f32 %v10987_v55, %v4262_v56  ;;  %v4122_v58 = vpop.f32.mrb[121].mxu1  ;;  %v3776_v44 = vld [vmem:[#allocation4 + $0xd8] sm:$0xff] }
 0x1f7   : > { %v3801_v54 = vadd.f32 %v3765_v53, %v3650_v47  ;;  %v4297_v60 = vadd.f32 %v4261_v59, %v4122_v58  ;;  %v4264_v63 = vld [vmem:[#allocation4 + $0x68] sm:$0xff]  ;;  %v3775_v47 = vld [vmem:[#allocation4 + $0xd0] sm:$0xff] }
 0x1f8   : > { %3838 = vst.msk [vmem:[#allocation4 + $0x88] sm:$0xff] %vm807_vm4, %v3802_v46  ;;  %4334 = vst.msk [vmem:[#allocation4 + $0x58] sm:$0xff] %vm807_vm4, %v4298_v57  ;;  %v4263_v7 = vld [vmem:[#allocation4 + $0x60] sm:$0xff] }
 0x1f9   : > { %3837 = vst.msk [vmem:[#allocation4 + $0x80] sm:$0xff] %vm807_vm4, %v3801_v54  ;;  %v10943_v62 = vpop.f32.mrb[124].mxu0  ;;  %4333 = vst.msk [vmem:[#allocation4 + $0x50] sm:$0xff] %vm807_vm4, %v4297_v60  ;;  %v10990_v23 = vpop.f32.mrb[122].mxu1 }
 0x1fa   : > { %v3804_v50 = vadd.f32 %v10943_v62, %v3768_v1  ;;  %v3660_v13 = vpop.f32.mrb[125].mxu0  ;;  %v4300_v3 = vadd.f32 %v10990_v23, %v4264_v63  ;;  %v4132_v4 = vpop.f32.mrb[123].mxu1  ;;  %v3778_v62 = vld [vmem:[#allocation4 + $0xe8] sm:$0xff] }
 0x1fb   : > { %v3803_v14 = vadd.f32 %v3767_v10, %v3660_v13  ;;  %v4299_v8 = vadd.f32 %v4263_v7, %v4132_v4  ;;  %v4266_v26 = vld [vmem:[#allocation4 + $0x78] sm:$0xff]  ;;  %v3777_v13 = vld [vmem:[#allocation4 + $0xe0] sm:$0xff] }
 0x1fc   : > { %3840 = vst.msk [vmem:[#allocation4 + $0x98] sm:$0xff] %vm807_vm4, %v3804_v50  ;;  %4336 = vst.msk [vmem:[#allocation4 + $0x68] sm:$0xff] %vm807_vm4, %v4300_v3  ;;  %v4265_v43 = vld [vmem:[#allocation4 + $0x70] sm:$0xff] }
 0x1fd   : > { %3839 = vst.msk [vmem:[#allocation4 + $0x90] sm:$0xff] %vm807_vm4, %v3803_v14  ;;  %v10946_v12 = vpop.f32.mrb[126].mxu0  ;;  %4335 = vst.msk [vmem:[#allocation4 + $0x60] sm:$0xff] %vm807_vm4, %v4299_v8  ;;  %v10993_v32 = vpop.f32.mrb[124].mxu1 }
 0x1fe   : > { %v3806_v18 = vadd.f32 %v10946_v12, %v3770_v15  ;;  %v3670_v19 = vpop.f32.mrb[127].mxu0  ;;  %v4302_v27 = vadd.f32 %v10993_v32, %v4266_v26  ;;  %v4142_v40 = vpop.f32.mrb[125].mxu1  ;;  %v3780_v12 = vld [vmem:[#allocation4 + $0xf8] sm:$0xff] }
 0x1ff   : > { %v3805_v31 = vadd.f32 %v3769_v24, %v3670_v19  ;;  %v4301_v28 = vadd.f32 %v4265_v43, %v4142_v40  ;;  %v4268_v42 = vld [vmem:[#allocation4 + $0x88] sm:$0xff]  ;;  %v3779_v19 = vld [vmem:[#allocation4 + $0xf0] sm:$0xff] }
 0x200   : > { %3842 = vst.msk [vmem:[#allocation4 + $0xa8] sm:$0xff] %vm807_vm4, %v3806_v18  ;;  %4338 = vst.msk [vmem:[#allocation4 + $0x78] sm:$0xff] %vm807_vm4, %v4302_v27  ;;  %v4267_v61 = vld [vmem:[#allocation4 + $0x80] sm:$0xff] }
 0x201   : > { %3841 = vst.msk [vmem:[#allocation4 + $0xa0] sm:$0xff] %vm807_vm4, %v3805_v31  ;;  %v10949_v49 = vpop.f32.mrb[128].mxu0  ;;  %4337 = vst.msk [vmem:[#allocation4 + $0x70] sm:$0xff] %vm807_vm4, %v4301_v28  ;;  %v10996_v41 = vpop.f32.mrb[126].mxu1 }
 0x202   : > { %v3808_v52 = vadd.f32 %v10949_v49, %v3772_v29  ;;  %v3680_v35 = vpop.f32.mrb[129].mxu0  ;;  %v4304_v48 = vadd.f32 %v10996_v41, %v4268_v42  ;;  %v4152_v51 = vpop.f32.mrb[127].mxu1  ;;  %v3782_v49 = vld [vmem:[#allocation4 + $0x108] sm:$0xff] }
 0x203   : > { %v3807_v38 = vadd.f32 %v3771_v37, %v3680_v35  ;;  %v4303_v2 = vadd.f32 %v4267_v61, %v4152_v51  ;;  %v4270_v17 = vld [vmem:[#allocation4 + $0x98] sm:$0xff]  ;;  %v3781_v35 = vld [vmem:[#allocation4 + $0x100] sm:$0xff] }
 0x204   : > { %3844 = vst.msk [vmem:[#allocation4 + $0xb8] sm:$0xff] %vm807_vm4, %v3808_v52  ;;  %4340 = vst.msk [vmem:[#allocation4 + $0x88] sm:$0xff] %vm807_vm4, %v4304_v48  ;;  %v4269_v25 = vld [vmem:[#allocation4 + $0x90] sm:$0xff] }
 0x205   : > { %3843 = vst.msk [vmem:[#allocation4 + $0xb0] sm:$0xff] %vm807_vm4, %v3807_v38  ;;  %v10952_v5 = vpop.f32.mrb[130].mxu0  ;;  %4339 = vst.msk [vmem:[#allocation4 + $0x80] sm:$0xff] %vm807_vm4, %v4303_v2  ;;  %v10999_v16 = vpop.f32.mrb[128].mxu1 }
 0x206   : > { %v3810_v6 = vadd.f32 %v10952_v5, %v3774_v0  ;;  %v3690_v9 = vpop.f32.mrb[131].mxu0  ;;  %v4306_v20 = vadd.f32 %v10999_v16, %v4270_v17  ;;  %v4162_v21 = vpop.f32.mrb[129].mxu1  ;;  %v3784_v5 = vld [vmem:[#allocation4 + $0x118] sm:$0xff] }
 0x207   : > { %v3809_v11 = vadd.f32 %v3773_v36, %v3690_v9  ;;  %v4305_v30 = vadd.f32 %v4269_v25, %v4162_v21  ;;  %v4272_v55 = vld [vmem:[#allocation4 + $0xa8] sm:$0xff]  ;;  %v3783_v9 = vld [vmem:[#allocation4 + $0x110] sm:$0xff] }
 0x208   : > { %3846 = vst.msk [vmem:[#allocation4 + $0xc8] sm:$0xff] %vm807_vm4, %v3810_v6  ;;  %4342 = vst.msk [vmem:[#allocation4 + $0x98] sm:$0xff] %vm807_vm4, %v4306_v20  ;;  %v4271_v58 = vld [vmem:[#allocation4 + $0xa0] sm:$0xff] }
 0x209   : > { %3845 = vst.msk [vmem:[#allocation4 + $0xc0] sm:$0xff] %vm807_vm4, %v3809_v11  ;;  %v10955_v34 = vpop.f32.mrb[132].mxu0  ;;  %4341 = vst.msk [vmem:[#allocation4 + $0x90] sm:$0xff] %vm807_vm4, %v4305_v30  ;;  %v11002_v54 = vpop.f32.mrb[130].mxu1 }
 0x20a   : > { %v3812_v39 = vadd.f32 %v10955_v34, %v3776_v44  ;;  %v3700_v46 = vpop.f32.mrb[133].mxu0  ;;  %v4308_v56 = vadd.f32 %v11002_v54, %v4272_v55  ;;  %v4172_v57 = vpop.f32.mrb[131].mxu1  ;;  %v4754_v34 = vld [vmem:[#allocation4 + $0x8] sm:$0xff] }
 0x20b   : > { %v3811_v53 = vadd.f32 %v3775_v47, %v3700_v46  ;;  %v4307_v59 = vadd.f32 %v4271_v58, %v4172_v57  ;;  %v4274_v23 = vld [vmem:[#allocation4 + $0xb8] sm:$0xff]  ;;  %v4753_v46 = vld [vmem:[#allocation4] sm:$0xff] }
 0x20c   : > { %3848 = vst.msk [vmem:[#allocation4 + $0xd8] sm:$0xff] %vm807_vm4, %v3812_v39  ;;  %4344 = vst.msk [vmem:[#allocation4 + $0xa8] sm:$0xff] %vm807_vm4, %v4308_v56  ;;  %v4273_v4 = vld [vmem:[#allocation4 + $0xb0] sm:$0xff] }
 0x20d   : > { %3847 = vst.msk [vmem:[#allocation4 + $0xd0] sm:$0xff] %vm807_vm4, %v3811_v53  ;;  %v10958_v60 = vpop.f32.mrb[134].mxu0  ;;  %4343 = vst.msk [vmem:[#allocation4 + $0xa0] sm:$0xff] %vm807_vm4, %v4307_v59  ;;  %v11005_v14 = vpop.f32.mrb[132].mxu1 }
 0x20e   : > { %v3814_v1 = vadd.f32 %v10958_v60, %v3778_v62  ;;  %v3710_v50 = vpop.f32.mrb[135].mxu0  ;;  %v4310_v63 = vadd.f32 %v11005_v14, %v4274_v23  ;;  %v4182_v3 = vpop.f32.mrb[133].mxu1  ;;  %v4756_v60 = vld [vmem:[#allocation4 + $0x18] sm:$0xff] }
 0x20f   : > { %v3813_v10 = vadd.f32 %v3777_v13, %v3710_v50  ;;  %v4309_v7 = vadd.f32 %v4273_v4, %v4182_v3  ;;  %v4276_v32 = vld [vmem:[#allocation4 + $0xc8] sm:$0xff]  ;;  %v4755_v50 = vld [vmem:[#allocation4 + $0x10] sm:$0xff] }
 0x210   : > { %3850 = vst.msk [vmem:[#allocation4 + $0xe8] sm:$0xff] %vm807_vm4, %v3814_v1  ;;  %4346 = vst.msk [vmem:[#allocation4 + $0xb8] sm:$0xff] %vm807_vm4, %v4310_v63  ;;  %v4275_v40 = vld [vmem:[#allocation4 + $0xc0] sm:$0xff]  ;;  %v13019_v4 = vld [vmem:[%s14634_s2] ss:$0 sm:$0xff] }
 0x211   : > { %3849 = vst.msk [vmem:[#allocation4 + $0xe0] sm:$0xff] %vm807_vm4, %v3813_v10  ;;  %v10961_v8 = vpop.f32.mrb[136].mxu0  ;;  %4345 = vst.msk [vmem:[#allocation4 + $0xb0] sm:$0xff] %vm807_vm4, %v4309_v7  ;;  %v11008_v31 = vpop.f32.mrb[134].mxu1 }
 0x212   : > { %v3816_v15 = vadd.f32 %v10961_v8, %v3780_v12  ;;  %v3720_v18 = vpop.f32.mrb[137].mxu0  ;;  %v4312_v26 = vadd.f32 %v11008_v31, %v4276_v32  ;;  %v4192_v27 = vpop.f32.mrb[135].mxu1  ;;  %v4758_v12 = vld [vmem:[#allocation4 + $0x28] sm:$0xff] }
 0x213   : > { %v3815_v24 = vadd.f32 %v3779_v19, %v3720_v18  ;;  %v4311_v43 = vadd.f32 %v4275_v40, %v4192_v27  ;;  %v4278_v41 = vld [vmem:[#allocation4 + $0xd8] sm:$0xff]  ;;  %v4757_v19 = vld [vmem:[#allocation4 + $0x20] sm:$0xff] }
 0x214   : > { %3852 = vst.msk [vmem:[#allocation4 + $0xf8] sm:$0xff] %vm807_vm4, %v3816_v15  ;;  %4348 = vst.msk [vmem:[#allocation4 + $0xc8] sm:$0xff] %vm807_vm4, %v4312_v26  ;;  %v4277_v51 = vld [vmem:[#allocation4 + $0xd0] sm:$0xff] }
 0x215   : > { %3851 = vst.msk [vmem:[#allocation4 + $0xf0] sm:$0xff] %vm807_vm4, %v3815_v24  ;;  %v10964_v28 = vpop.f32.mrb[138].mxu0  ;;  %4347 = vst.msk [vmem:[#allocation4 + $0xc0] sm:$0xff] %vm807_vm4, %v4311_v43  ;;  %v11011_v38 = vpop.f32.mrb[136].mxu1 }
 0x216   : > { %v3818_v29 = vadd.f32 %v10964_v28, %v3782_v49  ;;  %v3730_v52 = vpop.f32.mrb[139].mxu0  ;;  %v4314_v42 = vadd.f32 %v11011_v38, %v4278_v41  ;;  %v4202_v48 = vpop.f32.mrb[137].mxu1 }
 0x217   : > { %v3817_v37 = vadd.f32 %v3781_v35, %v3730_v52  ;;  %v4313_v61 = vadd.f32 %v4277_v51, %v4202_v48  ;;  %v4280_v16 = vld [vmem:[#allocation4 + $0xe8] sm:$0xff]  ;;  %v4759_v48 = vld [vmem:[#allocation4 + $0x30] sm:$0xff] }
 0x218   : > { %3854 = vst.msk [vmem:[#allocation4 + $0x108] sm:$0xff] %vm807_vm4, %v3818_v29  ;;  %4350 = vst.msk [vmem:[#allocation4 + $0xd8] sm:$0xff] %vm807_vm4, %v4314_v42  ;;  %v4279_v21 = vld [vmem:[#allocation4 + $0xe0] sm:$0xff] }
 0x219   : > { %3853 = vst.msk [vmem:[#allocation4 + $0x100] sm:$0xff] %vm807_vm4, %v3817_v37  ;;  %v10967_v2 = vpop.f32.mrb[140].mxu0  ;;  %4349 = vst.msk [vmem:[#allocation4 + $0xd0] sm:$0xff] %vm807_vm4, %v4313_v61  ;;  %v11014_v11 = vpop.f32.mrb[138].mxu1  ;;  %v4760_v37 = vld [vmem:[#allocation4 + $0x38] sm:$0xff] }
 0x21a   : > { %v3820_v0 = vadd.f32 %v10967_v2, %v3784_v5  ;;  %v3740_v6 = vpop.f32.mrb[141].mxu0  ;;  %v4316_v17 = vadd.f32 %v11014_v11, %v4280_v16  ;;  %v4212_v20 = vpop.f32.mrb[139].mxu1 }
 0x21b   : > { %v3819_v36 = vadd.f32 %v3783_v9, %v3740_v6  ;;  %v4315_v25 = vadd.f32 %v4279_v21, %v4212_v20  ;;  %v4282_v53 = vld [vmem:[#allocation4 + $0xf8] sm:$0xff]  ;;  %v4762_v9 = vld [vmem:[#allocation4 + $0x48] sm:$0xff] }
 0x21c   : > { %3856 = vst.msk [vmem:[#allocation4 + $0x118] sm:$0xff] %vm807_vm4, %v3820_v0  ;;  %4352 = vst.msk [vmem:[#allocation4 + $0xe8] sm:$0xff] %vm807_vm4, %v4316_v17  ;;  %v4281_v57 = vld [vmem:[#allocation4 + $0xf0] sm:$0xff]  ;;  %v4761_v17 = vld [vmem:[#allocation4 + $0x40] sm:$0xff] }
 0x21d   : > { %3855 = vst.msk [vmem:[#allocation4 + $0x110] sm:$0xff] %vm807_vm4, %v3819_v36  ;;  %v11028_v30 = vpop.f32.mrb[142].mxu0  ;;  %4351 = vst.msk [vmem:[#allocation4 + $0xe0] sm:$0xff] %vm807_vm4, %v4315_v25  ;;  %v11017_v47 = vpop.f32.mrb[140].mxu1 }
 0x21e   : > { %v4790_v44 = vadd.f32 %v11028_v30, %v4754_v34  ;;  %v4574_v39 = vpop.f32.mrb[143].mxu0  ;;  %v4318_v55 = vadd.f32 %v11017_v47, %v4282_v53  ;;  %v4222_v56 = vpop.f32.mrb[141].mxu1 }
 0x21f   : > { %v4789_v54 = vadd.f32 %v4753_v46, %v4574_v39  ;;  %v4317_v58 = vadd.f32 %v4281_v57, %v4222_v56  ;;  %v4284_v10 = vld [vmem:[#allocation4 + $0x108] sm:$0xff]  ;;  %v4764_v46 = vld [vmem:[#allocation4 + $0x58] sm:$0xff] }
 0x220   : > { %4826 = vst.msk [vmem:[#allocation4 + $0x8] sm:$0xff] %vm807_vm4, %v4790_v44  ;;  %4354 = vst.msk [vmem:[#allocation4 + $0xf8] sm:$0xff] %vm807_vm4, %v4318_v55  ;;  %v4283_v3 = vld [vmem:[#allocation4 + $0x100] sm:$0xff]  ;;  %v4763_v55 = vld [vmem:[#allocation4 + $0x50] sm:$0xff] }
 0x221   : > { %4825 = vst.msk [vmem:[#allocation4] sm:$0xff] %vm807_vm4, %v4789_v54  ;;  %v11031_v59 = vpop.f32.mrb[144].mxu0  ;;  %4353 = vst.msk [vmem:[#allocation4 + $0xf0] sm:$0xff] %vm807_vm4, %v4317_v58  ;;  %v11020_v13 = vpop.f32.mrb[142].mxu1 }
 0x222   : > { %v4792_v62 = vadd.f32 %v11031_v59, %v4756_v60  ;;  %v4584_v1 = vpop.f32.mrb[145].mxu0  ;;  %v4320_v23 = vadd.f32 %v11020_v13, %v4284_v10  ;;  %v4232_v63 = vpop.f32.mrb[143].mxu1 }
 0x223   : > { %v4791_v14 = vadd.f32 %v4755_v50, %v4584_v1  ;;  %v4319_v7 = vadd.f32 %v4283_v3, %v4232_v63  ;;  %v4286_v32 = vld [vmem:[#allocation4 + $0x118] sm:$0xff] }
 0x224   : > { %4828 = vst.msk [vmem:[#allocation4 + $0x18] sm:$0xff] %vm807_vm4, %v4792_v62  ;;  %4356 = vst.msk [vmem:[#allocation4 + $0x108] sm:$0xff] %vm807_vm4, %v4320_v23  ;;  %v4285_v49 = vld [vmem:[#allocation4 + $0x110] sm:$0xff]  ;;  %v4766_v62 = vld [vmem:[#allocation4 + $0x68] sm:$0xff] }
 0x225   : > { %4827 = vst.msk [vmem:[#allocation4 + $0x10] sm:$0xff] %vm807_vm4, %v4791_v14  ;;  %v11034_v8 = vpop.f32.mrb[146].mxu0  ;;  %4355 = vst.msk [vmem:[#allocation4 + $0x100] sm:$0xff] %vm807_vm4, %v4319_v7  ;;  %v11023_v31 = vpop.f32.mrb[144].mxu1  ;;  %v4765_v7 = vld [vmem:[#allocation4 + $0x60] sm:$0xff] }
 0x226   : > { %v4794_v15 = vadd.f32 %v11034_v8, %v4758_v12  ;;  %v4594_v18 = vpop.f32.mrb[147].mxu0  ;;  %v4322_v43 = vadd.f32 %v11023_v31, %v4286_v32  ;;  %v4242_v28 = vpop.f32.mrb[145].mxu1  ;;  %v13066_v31 = vld [vmem:[%s14635_s3 + $0x30] sm:$0xff] }
 0x227   : > { %v4862_v24 = vld [vmem:[#allocation4 + $0x8] sm:$0xff]  ;;  %v4793_v26 = vadd.f32 %v4757_v19, %v4594_v18  ;;  %v4321_v52 = vadd.f32 %v4285_v49, %v4242_v28  ;;  %v4768_v28 = vld [vmem:[#allocation4 + $0x78] sm:$0xff] }
 0x228   : > { %v4905_v27 = vadd.f32 %v13019_v4, %v4862_v24  ;;  %v4861_v40 = vld [vmem:[#allocation4] sm:$0xff]  ;;  %4830 = vst.msk [vmem:[#allocation4 + $0x28] sm:$0xff] %vm807_vm4, %v4794_v15  ;;  %4358 = vst.msk [vmem:[#allocation4 + $0x118] sm:$0xff] %vm807_vm4, %v4322_v43  ;;  %v13061_v24 = vld [vmem:[%s14635_s3 + $0x18] sm:$0xff] }
 0x229   : > { %v4904_v29 = vadd.f32 %v13019_v4, %v4861_v40  ;;  %4829 = vst.msk [vmem:[#allocation4 + $0x20] sm:$0xff] %vm807_vm4, %v4793_v26  ;;  %v11037_v35 = vpop.f32.mrb[148].mxu0  ;;  %4357 = vst.msk [vmem:[#allocation4 + $0x110] sm:$0xff] %vm807_vm4, %v4321_v52  ;;  %v4767_v52 = vld [vmem:[#allocation4 + $0x70] sm:$0xff] }
 0x22a   : > { %v4941_v38 = vmax.f32 %v4905_v27, 0.0  ;;  %v4796_v41 = vadd.f32 %v11037_v35, %v4760_v37  ;;  %v4604_v42 = vpop.f32.mrb[149].mxu0 }
 0x22b   : > { %v4940_v51 = vmax.f32 %v4904_v29, 0.0  ;;  %v4864_v61 = vld [vmem:[#allocation4 + $0x18] sm:$0xff]  ;;  %v4795_v2 = vadd.f32 %v4759_v48, %v4604_v42 }
 0x22c   : > { %5014 = vst.msk [vmem:[#allocation3 + $0x9] sm:$0xff] %vm807_vm4, %v4941_v38  ;;  %v4863_v5 = vld [vmem:[#allocation4 + $0x10] sm:$0xff]  ;;  %4832 = vst.msk [vmem:[#allocation4 + $0x38] sm:$0xff] %vm807_vm4, %v4796_v41  ;;  %v4907_v0 = vadd.f32 %v13019_v4, %v4864_v61 }
 0x22d   : > { %5013 = vst.msk [vmem:[#allocation3 + $0x1] sm:$0xff] %vm807_vm4, %v4940_v51  ;;  %4831 = vst.msk [vmem:[#allocation4 + $0x30] sm:$0xff] %vm807_vm4, %v4795_v2  ;;  %v11040_v6 = vpop.f32.mrb[150].mxu0  ;;  %v4906_v36 = vadd.f32 %v13019_v4, %v4863_v5 }
 0x22e   : > { %5055 = vst.msk [vmem:[#allocation3 + $0x10] sm:$0x3] %vm5054_vm6, %v14736_v45  ;;  %v4798_v11 = vadd.f32 %v11040_v6, %v4762_v9  ;;  %v4614_v16 = vpop.f32.mrb[151].mxu0  ;;  %v4943_v20 = vmax.f32 %v4907_v0, 0.0  ;;  %v4770_v0 = vld [vmem:[#allocation4 + $0x88] sm:$0xff] }
 0x22f   : > { %5053 = vst.msk [vmem:[#allocation3 + $0x8] sm:$0xff] %vm807_vm4, %v14736_v45  ;;  %5052 = vst.msk [vmem:[#allocation3] sm:$0xff] %vm807_vm4, %v14736_v45  ;;  %v4866_v21 = vld [vmem:[#allocation4 + $0x28] sm:$0xff]  ;;  %v4797_v25 = vadd.f32 %v4761_v17, %v4614_v16  ;;  %v4942_v30 = vmax.f32 %v4906_v36, 0.0 }
 0x230   : > { %v4865_v34 = vld [vmem:[#allocation4 + $0x20] sm:$0xff]  ;;  %4834 = vst.msk [vmem:[#allocation4 + $0x48] sm:$0xff] %vm807_vm4, %v4798_v11  ;;  %5016 = vst.msk [vmem:[#allocation3 + $0x21] sm:$0xff] %vm807_vm4, %v4943_v20  ;;  %v4909_v44 = vadd.f32 %v13019_v4, %v4866_v21 }
 0x231   : > { %4833 = vst.msk [vmem:[#allocation4 + $0x40] sm:$0xff] %vm807_vm4, %v4797_v25  ;;  %v11043_v39 = vpop.f32.mrb[152].mxu0  ;;  %5015 = vst.msk [vmem:[#allocation3 + $0x19] sm:$0xff] %vm807_vm4, %v4942_v30  ;;  %v4908_v47 = vadd.f32 %v13019_v4, %v4865_v34  ;;  %v4769_v11 = vld [vmem:[#allocation4 + $0x80] sm:$0xff] }
 0x232   : > { %v4800_v53 = vadd.f32 %v11043_v39, %v4764_v46  ;;  %v4624_v54 = vpop.f32.mrb[153].mxu0  ;;  %v4945_v56 = vmax.f32 %v4909_v44, 0.0 }
 0x233   : > { %v4868_v57 = vld [vmem:[#allocation4 + $0x38] sm:$0xff]  ;;  %v4799_v58 = vadd.f32 %v4763_v55, %v4624_v54  ;;  %v4944_v59 = vmax.f32 %v4908_v47, 0.0 }
 0x234   : > { %v4867_v60 = vld [vmem:[#allocation4 + $0x30] sm:$0xff]  ;;  %4836 = vst.msk [vmem:[#allocation4 + $0x58] sm:$0xff] %vm807_vm4, %v4800_v53  ;;  %5018 = vst.msk [vmem:[#allocation3 + $0x39] sm:$0xff] %vm807_vm4, %v4945_v56  ;;  %v4911_v1 = vadd.f32 %v13019_v4, %v4868_v57  ;;  %v4772_v53 = vld [vmem:[#allocation4 + $0x98] sm:$0xff] }
 0x235   : > { %4835 = vst.msk [vmem:[#allocation4 + $0x50] sm:$0xff] %vm807_vm4, %v4799_v58  ;;  %v11046_v50 = vpop.f32.mrb[154].mxu0  ;;  %5017 = vst.msk [vmem:[#allocation3 + $0x31] sm:$0xff] %vm807_vm4, %v4944_v59  ;;  %v4910_v23 = vadd.f32 %v13019_v4, %v4867_v60  ;;  %v4771_v57 = vld [vmem:[#allocation4 + $0x90] sm:$0xff] }
 0x236   : > { %v5060_v13 = vld [vmem:[#allocation3] sm:$0xff]  ;;  %v5061_v14 = vld [vmem:[#allocation3 + $0x8] sm:$0xff]  ;;  %v4802_v63 = vadd.f32 %v11046_v50, %v4766_v62  ;;  %v4634_v3 = vpop.f32.mrb[155].mxu0  ;;  %v4947_v12 = vmax.f32 %v4911_v1, 0.0 }
 0x237   : > { %v5897_v10 = vld [vmem:[#allocation3 + $0x2] sm:$0xff]  ;;  %11082 = vmatprep.mubr.msk.f32.mxu1 %vm807_vm4, %v5060_v13  ;;  %v5898_v8 = vld [vmem:[#allocation3 + $0xa] sm:$0xff]  ;;  %v4870_v15 = vld [vmem:[#allocation4 + $0x48] sm:$0xff]  ;;  %v4801_v18 = vadd.f32 %v4765_v7, %v4634_v3  ;;  %v4946_v19 = vmax.f32 %v4910_v23, 0.0 }
 0x238   : > { %11182 = vmatprep.mubr.msk.f32.mxu0 %vm807_vm4, %v5897_v10  ;;  %11083 = vmatmul.mubr.msk.f32.vlgmr.msra.gmra.mrb[146].mxu1 %vm807_vm4, %v5061_v14  ;;  %v4869_v32 = vld [vmem:[#allocation4 + $0x40] sm:$0xff]  ;;  %4838 = vst.msk [vmem:[#allocation4 + $0x68] sm:$0xff] %vm807_vm4, %v4802_v63  ;;  %v13070_v26 = vld [vmem:[#allocation3 + $0x18] sm:$0xff]  ;;  %5020 = vst.msk [vmem:[#allocation3 + $0x51] sm:$0xff] %vm807_vm4, %v4947_v12  ;;  %v4913_v40 = vadd.f32 %v13019_v4, %v4870_v15 }
 0x239   : > { %11183 = vmatmul.mubr.msk.f32.vlgmr.msra.gmra.mrb[178].mxu0 %vm807_vm4, %v5898_v8  ;;  %11131 = vmatpush3.msra.mxu1 %v12907_v22  ;;  %v5899_v27 = vld [vmem:[#allocation3 + $0x1a] sm:$0xff]  ;;  %4837 = vst.msk [vmem:[#allocation4 + $0x60] sm:$0xff] %vm807_vm4, %v4801_v18  ;;  %v11049_v43 = vpop.f32.mrb[156].mxu0  ;;  %5019 = vst.msk [vmem:[#allocation3 + $0x49] sm:$0xff] %vm807_vm4, %v4946_v19  ;;  %v4912_v22 = vadd.f32 %v13019_v4, %v4869_v32  ;;  %v5900_v37 = vld [vmem:[#allocation3 + $0x22] sm:$0xff] }
 0x23a   : > { %11281 = vmatpush3.msra.mxu0 %v12965_v33  ;;  %11085 = vmatprep.mubr.msk.f32.mxu1 %vm807_vm4, %v13070_v26  ;;  %v4804_v49 = vadd.f32 %v11049_v43, %v4768_v28  ;;  %v4644_v29 = vpop.f32.mrb[157].mxu0  ;;  %v13081_v35 = vld [vmem:[#allocation3 + $0x20] sm:$0xff]  ;;  %v4949_v33 = vmax.f32 %v4913_v40, 0.0  ;;  %v4774_v3 = vld [vmem:[#allocation4 + $0xa8] sm:$0xff]  ;;  %v4773_v15 = vld [vmem:[#allocation4 + $0xa0] sm:$0xff] }
 0x23b   : > { %11185 = vmatprep.mubr.msk.f32.mxu0 %vm807_vm4, %v5899_v27  ;;  %11230 = vmatprep.subr.mxu1 %v13061_v24  ;;  %v4872_v38 = vld [vmem:[#allocation4 + $0x58] sm:$0xff]  ;;  %v4803_v41 = vadd.f32 %v4767_v52, %v4644_v29  ;;  %v4948_v42 = vmax.f32 %v4912_v22, 0.0  ;;  %v5902_v17 = vld [vmem:[#allocation3 + $0x3a] sm:$0xff] }
 0x23c   : > { %11380 = vmatprep.subr.mxu0 %v13066_v31  ;;  %11086 = vmatmul.mubr.msk.f32.gmra.mrb[148].mxu1 %vm807_vm4, %v13081_v35  ;;  %v4871_v48 = vld [vmem:[#allocation4 + $0x50] sm:$0xff]  ;;  %4840 = vst.msk [vmem:[#allocation4 + $0x78] sm:$0xff] %vm807_vm4, %v4804_v49  ;;  %v13089_v51 = vld [vmem:[#allocation3 + $0x30] sm:$0xff]  ;;  %5022 = vst.msk [vmem:[#allocation3 + $0x69] sm:$0xff] %vm807_vm4, %v4949_v33  ;;  %v4915_v2 = vadd.f32 %v13019_v4, %v4872_v38 }
 0x23d   : > { %11186 = vmatmul.mubr.msk.f32.gmra.mrb[180].mxu0 %vm807_vm4, %v5900_v37  ;;  %v5901_v61 = vld [vmem:[#allocation3 + $0x32] sm:$0xff]  ;;  %4839 = vst.msk [vmem:[#allocation4 + $0x70] sm:$0xff] %vm807_vm4, %v4803_v41  ;;  %v11052_v5 = vpop.f32.mrb[158].mxu0  ;;  %11088 = vmatprep.mubr.msk.f32.mxu1 %vm807_vm4, %v13089_v51  ;;  %5021 = vst.msk [vmem:[#allocation3 + $0x61] sm:$0xff] %vm807_vm4, %v4948_v42  ;;  %v4914_v6 = vadd.f32 %v13019_v4, %v4871_v48  ;;  %v4776_v37 = vld [vmem:[#allocation4 + $0xb8] sm:$0xff] }
 0x23e   : > { %11188 = vmatprep.mubr.msk.f32.mxu0 %vm807_vm4, %v5901_v61  ;;  %v4806_v9 = vadd.f32 %v11052_v5, %v4770_v0  ;;  %v4654_v36 = vpop.f32.mrb[159].mxu0  ;;  %v13099_v16 = vld [vmem:[#allocation3 + $0x38] sm:$0xff]  ;;  %v4951_v20 = vmax.f32 %v4915_v2, 0.0  ;;  %v4775_v42 = vld [vmem:[#allocation4 + $0xb0] sm:$0xff] }
 0x23f   : > { %v4874_v21 = vld [vmem:[#allocation4 + $0x68] sm:$0xff]  ;;  %v4805_v25 = vadd.f32 %v4769_v11, %v4654_v36  ;;  %v4950_v30 = vmax.f32 %v4914_v6, 0.0 }
 0x240   : > { %11089 = vmatmul.mubr.msk.f32.gmra.mrb[150].mxu1 %vm807_vm4, %v13099_v16  ;;  %v4873_v34 = vld [vmem:[#allocation4 + $0x60] sm:$0xff]  ;;  %4842 = vst.msk [vmem:[#allocation4 + $0x88] sm:$0xff] %vm807_vm4, %v4806_v9  ;;  %v13105_v44 = vld [vmem:[#allocation3 + $0x48] sm:$0xff]  ;;  %5024 = vst.msk [vmem:[#allocation3 + $0x81] sm:$0xff] %vm807_vm4, %v4951_v20  ;;  %v4917_v46 = vadd.f32 %v13019_v4, %v4874_v21 }
 0x241   : > { %11189 = vmatmul.mubr.msk.f32.gmra.mrb[182].mxu0 %vm807_vm4, %v5902_v17  ;;  %v5903_v39 = vld [vmem:[#allocation3 + $0x4a] sm:$0xff]  ;;  %4841 = vst.msk [vmem:[#allocation4 + $0x80] sm:$0xff] %vm807_vm4, %v4805_v25  ;;  %v11055_v47 = vpop.f32.mrb[160].mxu0  ;;  %11091 = vmatprep.mubr.msk.f32.mxu1 %vm807_vm4, %v13105_v44  ;;  %5023 = vst.msk [vmem:[#allocation3 + $0x79] sm:$0xff] %vm807_vm4, %v4950_v30  ;;  %v4916_v54 = vadd.f32 %v13019_v4, %v4873_v34  ;;  %v5904_v59 = vld [vmem:[#allocation3 + $0x52] sm:$0xff] }
 0x242   : > { %11191 = vmatprep.mubr.msk.f32.mxu0 %vm807_vm4, %v5903_v39  ;;  %v4808_v55 = vadd.f32 %v11055_v47, %v4772_v53  ;;  %v4664_v56 = vpop.f32.mrb[161].mxu0  ;;  %v13115_v58 = vld [vmem:[#allocation3 + $0x50] sm:$0xff]  ;;  %v4953_v60 = vmax.f32 %v4917_v46, 0.0  ;;  %v4778_v21 = vld [vmem:[#allocation4 + $0xc8] sm:$0xff] }
 0x243   : > { %v4876_v62 = vld [vmem:[#allocation4 + $0x78] sm:$0xff]  ;;  %v4807_v1 = vadd.f32 %v4771_v57, %v4664_v56  ;;  %v4952_v50 = vmax.f32 %v4916_v54, 0.0  ;;  %v4777_v39 = vld [vmem:[#allocation4 + $0xc0] sm:$0xff] }
 0x244   : > { %11092 = vmatmul.mubr.msk.f32.gmra.mrb[152].mxu1 %vm807_vm4, %v13115_v58  ;;  %v4875_v13 = vld [vmem:[#allocation4 + $0x70] sm:$0xff]  ;;  %4844 = vst.msk [vmem:[#allocation4 + $0x98] sm:$0xff] %vm807_vm4, %v4808_v55  ;;  %5026 = vst.msk [vmem:[#allocation3 + $0x99] sm:$0xff] %vm807_vm4, %v4953_v60  ;;  %v4919_v23 = vadd.f32 %v13019_v4, %v4876_v62  ;;  %v13131_v18 = vld [vmem:[#allocation3 + $0x68] sm:$0xff] }
 0x245   : > { %11192 = vmatmul.mubr.msk.f32.gmra.mrb[184].mxu0 %vm807_vm4, %v5904_v59  ;;  %v13121_v10 = vld [vmem:[#allocation3 + $0x60] sm:$0xff]  ;;  %4843 = vst.msk [vmem:[#allocation4 + $0x90] sm:$0xff] %vm807_vm4, %v4807_v1  ;;  %v11058_v63 = vpop.f32.mrb[162].mxu0  ;;  %5025 = vst.msk [vmem:[#allocation3 + $0x91] sm:$0xff] %vm807_vm4, %v4952_v50  ;;  %v4918_v7 = vadd.f32 %v13019_v4, %v4875_v13  ;;  %v5906_v19 = vld [vmem:[#allocation3 + $0x6a] sm:$0xff] }
 0x246   : > { %v5905_v14 = vld [vmem:[#allocation3 + $0x62] sm:$0xff]  ;;  %11094 = vmatprep.mubr.msk.f32.mxu1 %vm807_vm4, %v13121_v10  ;;  %v4810_v8 = vadd.f32 %v11058_v63, %v4774_v3  ;;  %v4674_v12 = vpop.f32.mrb[163].mxu0  ;;  %v4955_v32 = vmax.f32 %v4919_v23, 0.0 }
 0x247   : > { %11194 = vmatprep.mubr.msk.f32.mxu0 %vm807_vm4, %v5905_v14  ;;  %v4878_v27 = vld [vmem:[#allocation4 + $0x88] sm:$0xff]  ;;  %v4809_v40 = vadd.f32 %v4773_v15, %v4674_v12  ;;  %v4954_v43 = vmax.f32 %v4918_v7, 0.0  ;;  %v5908_v61 = vld [vmem:[#allocation3 + $0x82] sm:$0xff] }
 0x248   : > { %11095 = vmatmul.mubr.msk.f32.gmra.mrb[154].mxu1 %vm807_vm4, %v13131_v18  ;;  %v4877_v28 = vld [vmem:[#allocation4 + $0x80] sm:$0xff]  ;;  %4846 = vst.msk [vmem:[#allocation4 + $0xa8] sm:$0xff] %vm807_vm4, %v4810_v8  ;;  %v13137_v22 = vld [vmem:[#allocation3 + $0x78] sm:$0xff]  ;;  %5028 = vst.msk [vmem:[#allocation3 + $0xb1] sm:$0xff] %vm807_vm4, %v4955_v32  ;;  %v4921_v29 = vadd.f32 %v13019_v4, %v4878_v27 }
 0x249   : > { %11195 = vmatmul.mubr.msk.f32.gmra.mrb[186].mxu0 %vm807_vm4, %v5906_v19  ;;  %v5907_v49 = vld [vmem:[#allocation3 + $0x7a] sm:$0xff]  ;;  %4845 = vst.msk [vmem:[#allocation4 + $0xa0] sm:$0xff] %vm807_vm4, %v4809_v40  ;;  %v11061_v52 = vpop.f32.mrb[164].mxu0  ;;  %11097 = vmatprep.mubr.msk.f32.mxu1 %vm807_vm4, %v13137_v22  ;;  %5027 = vst.msk [vmem:[#allocation3 + $0xa9] sm:$0xff] %vm807_vm4, %v4954_v43  ;;  %v4920_v33 = vadd.f32 %v13019_v4, %v4877_v28  ;;  %v4780_v50 = vld [vmem:[#allocation4 + $0xd8] sm:$0xff] }
 0x24a   : > { %11197 = vmatprep.mubr.msk.f32.mxu0 %vm807_vm4, %v5907_v49  ;;  %v4812_v38 = vadd.f32 %v11061_v52, %v4776_v37  ;;  %v4684_v41 = vpop.f32.mrb[165].mxu0  ;;  %v13147_v48 = vld [vmem:[#allocation3 + $0x80] sm:$0xff]  ;;  %v4957_v2 = vmax.f32 %v4921_v29, 0.0  ;;  %v4782_v49 = vld [vmem:[#allocation4 + $0xe8] sm:$0xff] }
 0x24b   : > { %v4880_v5 = vld [vmem:[#allocation4 + $0x98] sm:$0xff]  ;;  %v4811_v0 = vadd.f32 %v4775_v42, %v4684_v41  ;;  %v4956_v6 = vmax.f32 %v4920_v33, 0.0  ;;  %v13168_v47 = vld [vmem:[#allocation3 + $0x9a] sm:$0xff]  ;;  %v4781_v33 = vld [vmem:[#allocation4 + $0xe0] sm:$0xff] }
 0x24c   : > { %11098 = vmatmul.mubr.msk.f32.gmra.mrb[156].mxu1 %vm807_vm4, %v13147_v48  ;;  %v4879_v9 = vld [vmem:[#allocation4 + $0x90] sm:$0xff]  ;;  %4848 = vst.msk [vmem:[#allocation4 + $0xb8] sm:$0xff] %vm807_vm4, %v4812_v38  ;;  %v13153_v36 = vld [vmem:[#allocation3 + $0x90] sm:$0xff]  ;;  %5030 = vst.msk [vmem:[#allocation3 + $0xc9] sm:$0xff] %vm807_vm4, %v4957_v2  ;;  %v4923_v17 = vadd.f32 %v13019_v4, %v4880_v5 }
 0x24d   : > { %11198 = vmatmul.mubr.msk.f32.gmra.mrb[188].mxu0 %vm807_vm4, %v5908_v61  ;;  %v13155_v11 = vld [vmem:[#allocation3 + $0x92] sm:$0xff]  ;;  %4847 = vst.msk [vmem:[#allocation4 + $0xb0] sm:$0xff] %vm807_vm4, %v4811_v0  ;;  %v11064_v20 = vpop.f32.mrb[166].mxu0  ;;  %11100 = vmatprep.mubr.msk.f32.mxu1 %vm807_vm4, %v13153_v36  ;;  %5029 = vst.msk [vmem:[#allocation3 + $0xc1] sm:$0xff] %vm807_vm4, %v4956_v6  ;;  %v4922_v25 = vadd.f32 %v13019_v4, %v4879_v9  ;;  %v4779_v63 = vld [vmem:[#allocation4 + $0xd0] sm:$0xff] }
 0x24e   : > { %11200 = vmatprep.mubr.msk.f32.mxu0 %vm807_vm4, %v13155_v11  ;;  %v4814_v30 = vadd.f32 %v11064_v20, %v4778_v21  ;;  %v4694_v34 = vpop.f32.mrb[167].mxu0  ;;  %v13166_v46 = vld [vmem:[#allocation3 + $0x98] sm:$0xff]  ;;  %v4959_v53 = vmax.f32 %v4923_v17, 0.0  ;;  %v4784_v21 = vld [vmem:[#allocation4 + $0xf8] sm:$0xff] }
 0x24f   : > { %v4882_v54 = vld [vmem:[#allocation4 + $0xa8] sm:$0xff]  ;;  %v4813_v55 = vadd.f32 %v4777_v39, %v4694_v34  ;;  %v4958_v56 = vmax.f32 %v4922_v25, 0.0  ;;  %v4783_v39 = vld [vmem:[#allocation4 + $0xf0] sm:$0xff] }
 0x250   : > { %11101 = vmatmul.mubr.msk.f32.gmra.mrb[158].mxu1 %vm807_vm4, %v13166_v46  ;;  %v4881_v57 = vld [vmem:[#allocation4 + $0xa0] sm:$0xff]  ;;  %4850 = vst.msk [vmem:[#allocation4 + $0xc8] sm:$0xff] %vm807_vm4, %v4814_v30  ;;  %v13175_v59 = vld [vmem:[#allocation3 + $0xa8] sm:$0xff]  ;;  %5032 = vst.msk [vmem:[#allocation3 + $0xe1] sm:$0xff] %vm807_vm4, %v4959_v53  ;;  %v4925_v62 = vadd.f32 %v13019_v4, %v4882_v54 }
 0x251   : > { %11201 = vmatmul.mubr.msk.f32.gmra.mrb[190].mxu0 %vm807_vm4, %v13168_v47  ;;  %v13177_v60 = vld [vmem:[#allocation3 + $0xaa] sm:$0xff]  ;;  %4849 = vst.msk [vmem:[#allocation4 + $0xc0] sm:$0xff] %vm807_vm4, %v4813_v55  ;;  %v11067_v1 = vpop.f32.mrb[168].mxu0  ;;  %11103 = vmatprep.mubr.msk.f32.mxu1 %vm807_vm4, %v13175_v59  ;;  %5031 = vst.msk [vmem:[#allocation3 + $0xd9] sm:$0xff] %vm807_vm4, %v4958_v56  ;;  %v4924_v13 = vadd.f32 %v13019_v4, %v4881_v57  ;;  %v13190_v7 = vld [vmem:[#allocation3 + $0xb2] sm:$0xff] }
 0x252   : > { %11203 = vmatprep.mubr.msk.f32.mxu0 %vm807_vm4, %v13177_v60  ;;  %v4816_v14 = vadd.f32 %v11067_v1, %v4780_v50  ;;  %v4704_v23 = vpop.f32.mrb[169].mxu0  ;;  %v13188_v3 = vld [vmem:[#allocation3 + $0xb0] sm:$0xff]  ;;  %v4961_v8 = vmax.f32 %v4925_v62, 0.0 }
 0x253   : > { %v4884_v12 = vld [vmem:[#allocation4 + $0xb8] sm:$0xff]  ;;  %v4815_v15 = vadd.f32 %v4779_v63, %v4704_v23  ;;  %v4960_v19 = vmax.f32 %v4924_v13, 0.0  ;;  %v4786_v63 = vld [vmem:[#allocation4 + $0x108] sm:$0xff] }
 0x254   : > { %11104 = vmatmul.mubr.msk.f32.gmra.mrb[160].mxu1 %vm807_vm4, %v13188_v3  ;;  %v4883_v32 = vld [vmem:[#allocation4 + $0xb0] sm:$0xff]  ;;  %4852 = vst.msk [vmem:[#allocation4 + $0xd8] sm:$0xff] %vm807_vm4, %v4816_v14  ;;  %5034 = vst.msk [vmem:[#allocation3 + $0xf9] sm:$0xff] %vm807_vm4, %v4961_v8  ;;  %v4927_v43 = vadd.f32 %v13019_v4, %v4884_v12  ;;  %v13210_v38 = vld [vmem:[#allocation3 + $0xc8] sm:$0xff] }
 0x255   : > { %11204 = vmatmul.mubr.msk.f32.gmra.mrb[192].mxu0 %vm807_vm4, %v13190_v7  ;;  %v13197_v27 = vld [vmem:[#allocation3 + $0xc0] sm:$0xff]  ;;  %4851 = vst.msk [vmem:[#allocation4 + $0xd0] sm:$0xff] %vm807_vm4, %v4815_v15  ;;  %v11070_v28 = vpop.f32.mrb[170].mxu0  ;;  %5033 = vst.msk [vmem:[#allocation3 + $0xf1] sm:$0xff] %vm807_vm4, %v4960_v19  ;;  %v4926_v29 = vadd.f32 %v13019_v4, %v4883_v32  ;;  %v13212_v41 = vld [vmem:[#allocation3 + $0xca] sm:$0xff] }
 0x256   : > { %v13199_v40 = vld [vmem:[#allocation3 + $0xc2] sm:$0xff]  ;;  %11106 = vmatprep.mubr.msk.f32.mxu1 %vm807_vm4, %v13197_v27  ;;  %v4818_v52 = vadd.f32 %v11070_v28, %v4782_v49  ;;  %v4714_v37 = vpop.f32.mrb[171].mxu0  ;;  %v4963_v42 = vmax.f32 %v4927_v43, 0.0  ;;  %v4785_v19 = vld [vmem:[#allocation4 + $0x100] sm:$0xff] }
 0x257   : > { %11206 = vmatprep.mubr.msk.f32.mxu0 %vm807_vm4, %v13199_v40  ;;  %v4886_v61 = vld [vmem:[#allocation4 + $0xc8] sm:$0xff]  ;;  %v4817_v2 = vadd.f32 %v4781_v33, %v4714_v37  ;;  %v4962_v5 = vmax.f32 %v4926_v29, 0.0  ;;  %v13234_v54 = vld [vmem:[#allocation3 + $0xe2] sm:$0xff] }
 0x258   : > { %11107 = vmatmul.mubr.msk.f32.gmra.mrb[162].mxu1 %vm807_vm4, %v13210_v38  ;;  %v4885_v0 = vld [vmem:[#allocation4 + $0xc0] sm:$0xff]  ;;  %4854 = vst.msk [vmem:[#allocation4 + $0xe8] sm:$0xff] %vm807_vm4, %v4818_v52  ;;  %v13219_v6 = vld [vmem:[#allocation3 + $0xd8] sm:$0xff]  ;;  %5036 = vst.msk [vmem:[#allocation3 + $0x111] sm:$0xff] %vm807_vm4, %v4963_v42  ;;  %v4929_v17 = vadd.f32 %v13019_v4, %v4886_v61 }
 0x259   : > { %11207 = vmatmul.mubr.msk.f32.gmra.mrb[194].mxu0 %vm807_vm4, %v13212_v41  ;;  %v13221_v9 = vld [vmem:[#allocation3 + $0xda] sm:$0xff]  ;;  %4853 = vst.msk [vmem:[#allocation4 + $0xe0] sm:$0xff] %vm807_vm4, %v4817_v2  ;;  %v11073_v20 = vpop.f32.mrb[172].mxu0  ;;  %11109 = vmatprep.mubr.msk.f32.mxu1 %vm807_vm4, %v13219_v6  ;;  %5035 = vst.msk [vmem:[#allocation3 + $0x109] sm:$0xff] %vm807_vm4, %v4962_v5  ;;  %v4928_v25 = vadd.f32 %v13019_v4, %v4885_v0  ;;  %v4788_v5 = vld [vmem:[#allocation4 + $0x118] sm:$0xff] }
 0x25a   : > { %11209 = vmatprep.mubr.msk.f32.mxu0 %vm807_vm4, %v13221_v9  ;;  %v4820_v30 = vadd.f32 %v11073_v20, %v4784_v21  ;;  %v4724_v34 = vpop.f32.mrb[173].mxu0  ;;  %v13232_v53 = vld [vmem:[#allocation3 + $0xe0] sm:$0xff]  ;;  %v4965_v55 = vmax.f32 %v4929_v17, 0.0 }
 0x25b   : > { %v4888_v56 = vld [vmem:[#allocation4 + $0xd8] sm:$0xff]  ;;  %v4819_v57 = vadd.f32 %v4783_v39, %v4724_v34  ;;  %v4964_v62 = vmax.f32 %v4928_v25, 0.0  ;;  %v13256_v43 = vld [vmem:[#allocation3 + $0xfa] sm:$0xff] }
 0x25c   : > { %11110 = vmatmul.mubr.msk.f32.gmra.mrb[164].mxu1 %vm807_vm4, %v13232_v53  ;;  %v4887_v1 = vld [vmem:[#allocation4 + $0xd0] sm:$0xff]  ;;  %4856 = vst.msk [vmem:[#allocation4 + $0xf8] sm:$0xff] %vm807_vm4, %v4820_v30  ;;  %v13241_v50 = vld [vmem:[#allocation3 + $0xf0] sm:$0xff]  ;;  %5038 = vst.msk [vmem:[#allocation3 + $0x129] sm:$0xff] %vm807_vm4, %v4965_v55  ;;  %v4931_v14 = vadd.f32 %v13019_v4, %v4888_v56 }
 0x25d   : > { %11210 = vmatmul.mubr.msk.f32.gmra.mrb[196].mxu0 %vm807_vm4, %v13234_v54  ;;  %v13243_v13 = vld [vmem:[#allocation3 + $0xf2] sm:$0xff]  ;;  %4855 = vst.msk [vmem:[#allocation4 + $0xf0] sm:$0xff] %vm807_vm4, %v4819_v57  ;;  %v11076_v23 = vpop.f32.mrb[174].mxu0  ;;  %11112 = vmatprep.mubr.msk.f32.mxu1 %vm807_vm4, %v13241_v50  ;;  %5037 = vst.msk [vmem:[#allocation3 + $0x121] sm:$0xff] %vm807_vm4, %v4964_v62  ;;  %v4930_v8 = vadd.f32 %v13019_v4, %v4887_v1  ;;  %v4787_v21 = vld [vmem:[#allocation4 + $0x110] sm:$0xff] }
 0x25e   : > { %11212 = vmatprep.mubr.msk.f32.mxu0 %vm807_vm4, %v13243_v13  ;;  %v4822_v12 = vadd.f32 %v11076_v23, %v4786_v63  ;;  %v4734_v15 = vpop.f32.mrb[175].mxu0  ;;  %v13254_v32 = vld [vmem:[#allocation3 + $0xf8] sm:$0xff]  ;;  %v4967_v28 = vmax.f32 %v4931_v14, 0.0 }
 0x25f   : > { %v4890_v49 = vld [vmem:[#allocation4 + $0xe8] sm:$0xff]  ;;  %v4821_v29 = vadd.f32 %v4785_v19, %v4734_v15  ;;  %v4966_v52 = vmax.f32 %v4930_v8, 0.0 }
 0x260   : > { %11113 = vmatmul.mubr.msk.f32.gmra.mrb[166].mxu1 %vm807_vm4, %v13254_v32  ;;  %v4889_v37 = vld [vmem:[#allocation4 + $0xe0] sm:$0xff]  ;;  %4858 = vst.msk [vmem:[#allocation4 + $0x108] sm:$0xff] %vm807_vm4, %v4822_v12  ;;  %v13263_v33 = vld [vmem:[#allocation3 + $0x108] sm:$0xff]  ;;  %5040 = vst.msk [vmem:[#allocation3 + $0x141] sm:$0xff] %vm807_vm4, %v4967_v28  ;;  %v4933_v61 = vadd.f32 %v13019_v4, %v4890_v49 }
 0x261   : > { %11213 = vmatmul.mubr.msk.f32.gmra.mrb[198].mxu0 %vm807_vm4, %v13256_v43  ;;  %v13265_v42 = vld [vmem:[#allocation3 + $0x10a] sm:$0xff]  ;;  %4857 = vst.msk [vmem:[#allocation4 + $0x100] sm:$0xff] %vm807_vm4, %v4821_v29  ;;  %v11079_v2 = vpop.f32.mrb[176].mxu0  ;;  %11115 = vmatprep.mubr.msk.f32.mxu1 %vm807_vm4, %v13263_v33  ;;  %5039 = vst.msk [vmem:[#allocation3 + $0x139] sm:$0xff] %vm807_vm4, %v4966_v52  ;;  %v4932_v0 = vadd.f32 %v13019_v4, %v4889_v37  ;;  %v13278_v30 = vld [vmem:[#allocation3 + $0x112] sm:$0xff] }
 0x262   : > { %11215 = vmatprep.mubr.msk.f32.mxu0 %vm807_vm4, %v13265_v42  ;;  %v4824_v17 = vadd.f32 %v11079_v2, %v4788_v5  ;;  %v4744_v20 = vpop.f32.mrb[177].mxu0  ;;  %v13276_v25 = vld [vmem:[#allocation3 + $0x110] sm:$0xff]  ;;  %v4969_v34 = vmax.f32 %v4933_v61, 0.0 }
 0x263   : > { %v4892_v39 = vld [vmem:[#allocation4 + $0xf8] sm:$0xff]  ;;  %v4823_v55 = vadd.f32 %v4787_v21, %v4744_v20  ;;  %v4968_v56 = vmax.f32 %v4932_v0, 0.0 }
 0x264   : > { %11116 = vmatmul.mubr.msk.f32.gmra.mrb[168].mxu1 %vm807_vm4, %v13276_v25  ;;  %v4891_v57 = vld [vmem:[#allocation4 + $0xf0] sm:$0xff]  ;;  %4860 = vst.msk [vmem:[#allocation4 + $0x118] sm:$0xff] %vm807_vm4, %v4824_v17  ;;  %5042 = vst.msk [vmem:[#allocation3 + $0x159] sm:$0xff] %vm807_vm4, %v4969_v34  ;;  %v4935_v14 = vadd.f32 %v13019_v4, %v4892_v39  ;;  %v13298_v63 = vld [vmem:[#allocation3 + $0x128] sm:$0xff] }
 0x265   : > { %11216 = vmatmul.mubr.msk.f32.gmra.mrb[200].mxu0 %vm807_vm4, %v13278_v30  ;;  %v13285_v62 = vld [vmem:[#allocation3 + $0x120] sm:$0xff]  ;;  %4859 = vst.msk [vmem:[#allocation4 + $0x110] sm:$0xff] %vm807_vm4, %v4823_v55  ;;  %5041 = vst.msk [vmem:[#allocation3 + $0x151] sm:$0xff] %vm807_vm4, %v4968_v56  ;;  %v4934_v23 = vadd.f32 %v13019_v4, %v4891_v57  ;;  %v13300_v8 = vld [vmem:[#allocation3 + $0x12a] sm:$0xff] }
 0x266   : > { %v13287_v1 = vld [vmem:[#allocation3 + $0x122] sm:$0xff]  ;;  %11118 = vmatprep.mubr.msk.f32.mxu1 %vm807_vm4, %v13285_v62  ;;  %v4971_v12 = vmax.f32 %v4935_v14, 0.0 }
 0x267   : > { %11218 = vmatprep.mubr.msk.f32.mxu0 %vm807_vm4, %v13287_v1  ;;  %v4894_v15 = vld [vmem:[#allocation4 + $0x108] sm:$0xff]  ;;  %v4970_v19 = vmax.f32 %v4934_v23, 0.0  ;;  %v13320_v2 = vld [vmem:[#allocation3 + $0x142] sm:$0xff] }
 0x268   : > { %11119 = vmatmul.mubr.msk.f32.gmra.mrb[170].mxu1 %vm807_vm4, %v13298_v63  ;;  %v4893_v28 = vld [vmem:[#allocation4 + $0x100] sm:$0xff]  ;;  %v13306_v49 = vld [vmem:[#allocation3 + $0x138] sm:$0xff]  ;;  %5044 = vst.msk [vmem:[#allocation3 + $0x171] sm:$0xff] %vm807_vm4, %v4971_v12  ;;  %v4937_v52 = vadd.f32 %v13019_v4, %v4894_v15  ;;  %v13318_v61 = vld [vmem:[#allocation3 + $0x140] sm:$0xff] }
 0x269   : > { %11219 = vmatmul.mubr.msk.f32.gmra.mrb[202].mxu0 %vm807_vm4, %v13300_v8  ;;  %v13308_v29 = vld [vmem:[#allocation3 + $0x13a] sm:$0xff]  ;;  %11121 = vmatprep.mubr.msk.f32.mxu1 %vm807_vm4, %v13306_v49  ;;  %5043 = vst.msk [vmem:[#allocation3 + $0x169] sm:$0xff] %vm807_vm4, %v4970_v19  ;;  %v4936_v37 = vadd.f32 %v13019_v4, %v4893_v28 }
 0x26a   : > { %11221 = vmatprep.mubr.msk.f32.mxu0 %vm807_vm4, %v13308_v29  ;;  %v4973_v5 = vmax.f32 %v4937_v52, 0.0  ;;  %v5446_v15 = vld [vmem:[#allocation3 + $0x1] sm:$0xff]  ;;  %v6800_v52 = vld [vmem:[#allocation3 + $0x19] sm:$0xff] }
 0x26b   : > { %v4896_v0 = vld [vmem:[#allocation4 + $0x118] sm:$0xff]  ;;  %v4972_v17 = vmax.f32 %v4936_v37, 0.0  ;;  %v13340_v14 = vld [vmem:[#allocation3 + $0x15a] sm:$0xff] }
 0x26c   : > { %11122 = vmatmul.mubr.msk.f32.gmra.mrb[172].mxu1 %vm807_vm4, %v13318_v61  ;;  %v4939_v20 = vadd.f32 %v13019_v4, %v4896_v0  ;;  %v4895_v21 = vld [vmem:[#allocation4 + $0x110] sm:$0xff]  ;;  %v13327_v34 = vld [vmem:[#allocation3 + $0x150] sm:$0xff]  ;;  %5046 = vst.msk [vmem:[#allocation3 + $0x189] sm:$0xff] %vm807_vm4, %v4973_v5  ;;  %v13338_v57 = vld [vmem:[#allocation3 + $0x158] sm:$0xff] }
 0x26d   : > { %11222 = vmatmul.mubr.msk.f32.gmra.mrb[204].mxu0 %vm807_vm4, %v13320_v2  ;;  %v13329_v39 = vld [vmem:[#allocation3 + $0x152] sm:$0xff]  ;;  %v4938_v55 = vadd.f32 %v13019_v4, %v4895_v21  ;;  %11124 = vmatprep.mubr.msk.f32.mxu1 %vm807_vm4, %v13327_v34  ;;  %5045 = vst.msk [vmem:[#allocation3 + $0x181] sm:$0xff] %vm807_vm4, %v4972_v17  ;;  %v5447_v37 = vld [vmem:[#allocation3 + $0x9] sm:$0xff]  ;;  %v6801_v5 = vld [vmem:[#allocation3 + $0x21] sm:$0xff] }
 0x26e   : > { %11224 = vmatprep.mubr.msk.f32.mxu0 %vm807_vm4, %v13329_v39  ;;  %v4975_v56 = vmax.f32 %v4939_v20, 0.0  ;;  %v13381_v0 = vld [vmem:[#allocation3 + $0x31] sm:$0xff]  ;;  %v13386_v17 = vld [vmem:[#allocation3 + $0x39] sm:$0xff]  ;;  %v13410_v21 = vld [vmem:[#allocation3 + $0x61] sm:$0xff] }
 0x26f   : > { %v4974_v23 = vmax.f32 %v4938_v55, 0.0  ;;  %v13364_v28 = vld [vmem:[#allocation3 + $0x172] sm:$0xff]  ;;  %v13392_v20 = vld [vmem:[%s14635_s3 + $0x40] sm:$0xff]  ;;  %v13416_v55 = vld [vmem:[#allocation3 + $0x69] sm:$0xff] }
 0x270   : > { %11125 = vmatmul.mubr.msk.f32.gmra.mrb[174].mxu1 %vm807_vm4, %v13338_v57  ;;  %5048 = vst.msk [vmem:[#allocation3 + $0x1a1] sm:$0xff] %vm807_vm4, %v4975_v56  ;;  %v13347_v4 = vld [vmem:[#allocation3 + $0x168] sm:$0xff]  ;;  %v13362_v19 = vld [vmem:[#allocation3 + $0x170] sm:$0xff]  ;;  %v13422_v56 = vld [vmem:[#allocation3 + $0x79] sm:$0xff] }
 0x271   : > { %11225 = vmatmul.mubr.msk.f32.gmra.mrb[206].mxu0 %vm807_vm4, %v13340_v14  ;;  %v13349_v12 = vld [vmem:[#allocation3 + $0x16a] sm:$0xff]  ;;  %5059 = vst.msk [vmem:[#allocation3 + $0x1a8] sm:$0x3] %vm5054_vm6, %v14736_v45  ;;  %11127 = vmatprep.mubr.msk.f32.mxu1 %vm807_vm4, %v13347_v4  ;;  %14737 = vst [vmem:[#allocation16_spill] sm:$0xff] %v13422_v56 }
 0x272   : > { %5047 = vst.msk [vmem:[#allocation3 + $0x199] sm:$0xff] %vm807_vm4, %v4974_v23  ;;  %11227 = vmatprep.mubr.msk.f32.mxu0 %vm807_vm4, %v13349_v12  ;;  %v13428_v23 = vld [vmem:[#allocation3 + $0x81] sm:$0xff] }
 0x273   : > { %5057 = vst.msk [vmem:[#allocation3 + $0x198] sm:$0xff] %vm807_vm4, %v14736_v45  ;;  %5058 = vst.msk [vmem:[#allocation3 + $0x1a0] sm:$0xff] %vm807_vm4, %v14736_v45  ;;  %v13375_v45 = vld [vmem:[%s14635_s3 + $0x28] sm:$0xff] }
 0x274   : > { %11128 = vmatmul.mubr.msk.f32.gmra.mrb[176].mxu1 %vm807_vm4, %v13362_v19  ;;  %14738 = vst [vmem:[#allocation17_spill] sm:$0xff] %v13428_v23 }
 0x275   : > { %11228 = vmatmul.mubr.msk.f32.gmra.mrb[208].mxu0 %vm807_vm4, %v13364_v28  ;;  %11132 = vmatprep.mubr.msk.f32.mxu1 %vm807_vm4, %v5446_v15  ;;  %v13434_v15 = vld [vmem:[#allocation3 + $0x91] sm:$0xff] }
 0x276   : > { %11282 = vmatprep.mubr.msk.f32.mxu0 %vm807_vm4, %v6800_v52  ;;  %14739 = vst [vmem:[#allocation18_spill] sm:$0xff] %v13434_v15 }
 0x278   : > { %11133 = vmatmul.mubr.msk.f32.vlgmr.msra.gmra.mrb[178].mxu1 %vm807_vm4, %v5447_v37  ;;  %v13446_v37 = vld [vmem:[#allocation3 + $0xa9] sm:$0xff] }
 0x279   : > { %11283 = vmatmul.mubr.msk.f32.vlgmr.msra.gmra.mrb[210].mxu0 %vm807_vm4, %v6801_v5  ;;  %11231 = vmatpush3.msra.mxu1 %v13061_v24  ;;  %v13397_v24 = vld [vmem:[#allocation3 + $0x49] sm:$0xff]  ;;  %14741 = vst [vmem:[#allocation20_spill] sm:$0xff] %v13446_v37 }
 0x27a   : > { %11135 = vmatprep.mubr.msk.f32.mxu1 %vm807_vm4, %v6800_v52  ;;  %11285 = vmatprep.mubr.msk.f32.mxu0 %vm807_vm4, %v13381_v0  ;;  %v13440_v52 = vld [vmem:[#allocation3 + $0x99] sm:$0xff] }
 0x27b   : > { %11330 = vmatprep.subr.mxu1 %v13375_v45  ;;  %11381 = vmatpush3.msra.mxu0 %v13066_v31  ;;  %v13404_v31 = vld [vmem:[#allocation3 + $0x51] sm:$0xff]  ;;  %14740 = vst [vmem:[#allocation19_spill] sm:$0xff] %v13440_v52 }
 0x27c   : > { %11136 = vmatmul.mubr.msk.f32.gmra.mrb[180].mxu1 %vm807_vm4, %v6801_v5  ;;  %11480 = vmatprep.subr.mxu0 %v13392_v20  ;;  %v13452_v5 = vld [vmem:[#allocation3 + $0xb1] sm:$0xff] }
 0x27d   : > { %11286 = vmatmul.mubr.msk.f32.gmra.mrb[212].mxu0 %vm807_vm4, %v13386_v17  ;;  %11138 = vmatprep.mubr.msk.f32.mxu1 %vm807_vm4, %v13381_v0  ;;  %14742 = vst [vmem:[#allocation21_spill] sm:$0xff] %v13452_v5 }
 0x27e   : > { %11288 = vmatprep.mubr.msk.f32.mxu0 %vm807_vm4, %v13397_v24 }
 0x280   : > { %11139 = vmatmul.mubr.msk.f32.gmra.mrb[182].mxu1 %vm807_vm4, %v13386_v17 }
 0x281   : > { %11289 = vmatmul.mubr.msk.f32.gmra.mrb[214].mxu0 %vm807_vm4, %v13404_v31  ;;  %11141 = vmatprep.mubr.msk.f32.mxu1 %vm807_vm4, %v13397_v24 }
 0x282   : > { %11291 = vmatprep.mubr.msk.f32.mxu0 %vm807_vm4, %v13410_v21 }
 0x284   : > { %11142 = vmatmul.mubr.msk.f32.gmra.mrb[184].mxu1 %vm807_vm4, %v13404_v31 }
 0x285   : > { %11292 = vmatmul.mubr.msk.f32.gmra.mrb[216].mxu0 %vm807_vm4, %v13416_v55  ;;  %11144 = vmatprep.mubr.msk.f32.mxu1 %vm807_vm4, %v13410_v21 }
 0x286   : > { %11294 = vmatprep.mubr.msk.f32.mxu0 %vm807_vm4, %v13422_v56 }
 0x288   : > { %11145 = vmatmul.mubr.msk.f32.gmra.mrb[186].mxu1 %vm807_vm4, %v13416_v55 }
 0x289   : > { %11295 = vmatmul.mubr.msk.f32.gmra.mrb[218].mxu0 %vm807_vm4, %v13428_v23  ;;  %11147 = vmatprep.mubr.msk.f32.mxu1 %vm807_vm4, %v13422_v56  ;;  %v13539_v56 = vld [vmem:[#allocation3 + $0x169] sm:$0xff] }
 0x28a   : > { %11297 = vmatprep.mubr.msk.f32.mxu0 %vm807_vm4, %v13434_v15 }
 0x28c   : > { %11148 = vmatmul.mubr.msk.f32.gmra.mrb[188].mxu1 %vm807_vm4, %v13428_v23  ;;  %v13458_v23 = vld [vmem:[#allocation3 + $0xc1] sm:$0xff] }
 0x28d   : > { %11298 = vmatmul.mubr.msk.f32.gmra.mrb[220].mxu0 %vm807_vm4, %v13440_v52  ;;  %11150 = vmatprep.mubr.msk.f32.mxu1 %vm807_vm4, %v13434_v15  ;;  %14743 = vst [vmem:[#allocation22_spill] sm:$0xff] %v13458_v23  ;;  %v13464_v15 = vld [vmem:[#allocation3 + $0xc9] sm:$0xff] }
 0x28e   : > { %11300 = vmatprep.mubr.msk.f32.mxu0 %vm807_vm4, %v13446_v37  ;;  %14744 = vst [vmem:[#allocation23_spill] sm:$0xff] %v13464_v15 }
 0x290   : > { %11151 = vmatmul.mubr.msk.f32.gmra.mrb[190].mxu1 %vm807_vm4, %v13440_v52  ;;  %v13470_v52 = vld [vmem:[#allocation3 + $0xd9] sm:$0xff] }
 0x291   : > { %11301 = vmatmul.mubr.msk.f32.gmra.mrb[222].mxu0 %vm807_vm4, %v13452_v5  ;;  %11153 = vmatprep.mubr.msk.f32.mxu1 %vm807_vm4, %v13446_v37  ;;  %14745 = vst [vmem:[#allocation24_spill] sm:$0xff] %v13470_v52  ;;  %v13476_v37 = vld [vmem:[#allocation3 + $0xe1] sm:$0xff] }
 0x292   : > { %11303 = vmatprep.mubr.msk.f32.mxu0 %vm807_vm4, %v13458_v23  ;;  %14746 = vst [vmem:[#allocation25_spill] sm:$0xff] %v13476_v37 }
 0x294   : > { %11154 = vmatmul.mubr.msk.f32.gmra.mrb[192].mxu1 %vm807_vm4, %v13452_v5  ;;  %v13482_v5 = vld [vmem:[#allocation3 + $0xf1] sm:$0xff] }
 0x295   : > { %11304 = vmatmul.mubr.msk.f32.gmra.mrb[224].mxu0 %vm807_vm4, %v13464_v15  ;;  %11156 = vmatprep.mubr.msk.f32.mxu1 %vm807_vm4, %v13458_v23  ;;  %14747 = vst [vmem:[#allocation26_spill] sm:$0xff] %v13482_v5  ;;  %v13488_v23 = vld [vmem:[#allocation3 + $0xf9] sm:$0xff] }
 0x296   : > { %11306 = vmatprep.mubr.msk.f32.mxu0 %vm807_vm4, %v13470_v52  ;;  %14748 = vst [vmem:[#allocation27_spill] sm:$0xff] %v13488_v23 }
 0x298   : > { %11157 = vmatmul.mubr.msk.f32.gmra.mrb[194].mxu1 %vm807_vm4, %v13464_v15  ;;  %v13494_v15 = vld [vmem:[#allocation3 + $0x109] sm:$0xff] }
 0x299   : > { %11307 = vmatmul.mubr.msk.f32.gmra.mrb[226].mxu0 %vm807_vm4, %v13476_v37  ;;  %11159 = vmatprep.mubr.msk.f32.mxu1 %vm807_vm4, %v13470_v52  ;;  %14749 = vst [vmem:[#allocation28_spill] sm:$0xff] %v13494_v15  ;;  %v13500_v52 = vld [vmem:[#allocation3 + $0x111] sm:$0xff] }
 0x29a   : > { %11309 = vmatprep.mubr.msk.f32.mxu0 %vm807_vm4, %v13482_v5  ;;  %14750 = vst [vmem:[#allocation29_spill] sm:$0xff] %v13500_v52 }
 0x29c   : > { %11160 = vmatmul.mubr.msk.f32.gmra.mrb[196].mxu1 %vm807_vm4, %v13476_v37  ;;  %v13506_v37 = vld [vmem:[#allocation3 + $0x121] sm:$0xff] }
 0x29d   : > { %11310 = vmatmul.mubr.msk.f32.gmra.mrb[228].mxu0 %vm807_vm4, %v13488_v23  ;;  %11162 = vmatprep.mubr.msk.f32.mxu1 %vm807_vm4, %v13482_v5  ;;  %14751 = vst [vmem:[#allocation30_spill] sm:$0xff] %v13506_v37  ;;  %v13512_v5 = vld [vmem:[#allocation3 + $0x129] sm:$0xff] }
 0x29e   : > { %11312 = vmatprep.mubr.msk.f32.mxu0 %vm807_vm4, %v13494_v15  ;;  %14752 = vst [vmem:[#allocation31_spill] sm:$0xff] %v13512_v5 }
 0x2a0   : > { %11163 = vmatmul.mubr.msk.f32.gmra.mrb[198].mxu1 %vm807_vm4, %v13488_v23  ;;  %v13518_v23 = vld [vmem:[#allocation3 + $0x139] sm:$0xff] }
 0x2a1   : > { %11313 = vmatmul.mubr.msk.f32.gmra.mrb[230].mxu0 %vm807_vm4, %v13500_v52  ;;  %11165 = vmatprep.mubr.msk.f32.mxu1 %vm807_vm4, %v13494_v15  ;;  %14753 = vst [vmem:[#allocation6_spill] sm:$0xff] %v13518_v23  ;;  %v13524_v15 = vld [vmem:[#allocation3 + $0x141] sm:$0xff] }
 0x2a2   : > { %11315 = vmatprep.mubr.msk.f32.mxu0 %vm807_vm4, %v13506_v37  ;;  %14754 = vst [vmem:[#allocation7_spill] sm:$0xff] %v13524_v15 }
 0x2a4   : > { %11166 = vmatmul.mubr.msk.f32.gmra.mrb[200].mxu1 %vm807_vm4, %v13500_v52  ;;  %v13530_v52 = vld [vmem:[#allocation3 + $0x151] sm:$0xff] }
 0x2a5   : > { %11316 = vmatmul.mubr.msk.f32.gmra.mrb[232].mxu0 %vm807_vm4, %v13512_v5  ;;  %11168 = vmatprep.mubr.msk.f32.mxu1 %vm807_vm4, %v13506_v37  ;;  %v6827_v37 = vld [vmem:[#allocation3 + $0x159] sm:$0xff] }
 0x2a6   : > { %11318 = vmatprep.mubr.msk.f32.mxu0 %vm807_vm4, %v13518_v23 }
 0x2a8   : > { %11169 = vmatmul.mubr.msk.f32.gmra.mrb[202].mxu1 %vm807_vm4, %v13512_v5  ;;  %v6829_v5 = vld [vmem:[#allocation3 + $0x171] sm:$0xff] }
 0x2a9   : > { %11319 = vmatmul.mubr.msk.f32.gmra.mrb[234].mxu0 %vm807_vm4, %v13524_v15  ;;  %11171 = vmatprep.mubr.msk.f32.mxu1 %vm807_vm4, %v13518_v23  ;;  %v6830_v23 = vld [vmem:[#allocation3 + $0x181] sm:$0xff] }
 0x2aa   : > { %11321 = vmatprep.mubr.msk.f32.mxu0 %vm807_vm4, %v13530_v52 }
 0x2ac   : > { %11172 = vmatmul.mubr.msk.f32.gmra.mrb[204].mxu1 %vm807_vm4, %v13524_v15  ;;  %v6831_v15 = vld [vmem:[#allocation3 + $0x189] sm:$0xff] }
 0x2ad   : > { %11322 = vmatmul.mubr.msk.f32.gmra.mrb[236].mxu0 %vm807_vm4, %v6827_v37  ;;  %11174 = vmatprep.mubr.msk.f32.mxu1 %vm807_vm4, %v13530_v52 }
 0x2ae   : > { %11324 = vmatprep.mubr.msk.f32.mxu0 %vm807_vm4, %v13539_v56 }
 0x2b0   : > { %11175 = vmatmul.mubr.msk.f32.gmra.mrb[206].mxu1 %vm807_vm4, %v6827_v37  ;;  %v13559_v37 = vld [vmem:[%s14635_s3 + $0x38] sm:$0xff] }
 0x2b1   : > { %11325 = vmatmul.mubr.msk.f32.gmra.mrb[238].mxu0 %vm807_vm4, %v6829_v5  ;;  %11177 = vmatprep.mubr.msk.f32.mxu1 %vm807_vm4, %v13539_v56 }
 0x2b2   : > { %11327 = vmatprep.mubr.msk.f32.mxu0 %vm807_vm4, %v6830_v23 }
 0x2b4   : > { %11178 = vmatmul.mubr.msk.f32.gmra.mrb[208].mxu1 %vm807_vm4, %v6829_v5 }
 0x2b5   : > { %11328 = vmatmul.mubr.msk.f32.gmra.mrb[240].mxu0 %vm807_vm4, %v6831_v15  ;;  %11232 = vmatprep.mubr.msk.f32.mxu1 %vm807_vm4, %v13070_v26  ;;  %v7731_v26 = vld [vmem:[#allocation3 + $0x180] sm:$0xff] }
 0x2b6   : > { %11382 = vmatprep.mubr.msk.f32.mxu0 %vm807_vm4, %v13089_v51 }
 0x2b8   : > { %11233 = vmatmul.mubr.msk.f32.vlgmr.msra.gmra.mrb[210].mxu1 %vm807_vm4, %v13081_v35  ;;  %v7733_v35 = vld [vmem:[#allocation3 + $0x198] sm:$0xff] }
 0x2b9   : > { %11383 = vmatmul.mubr.msk.f32.vlgmr.msra.gmra.mrb[242].mxu0 %vm807_vm4, %v13099_v16  ;;  %11331 = vmatpush3.msra.mxu1 %v13375_v45 }
 0x2ba   : > { %11235 = vmatprep.mubr.msk.f32.mxu1 %vm807_vm4, %v13089_v51  ;;  %11385 = vmatprep.mubr.msk.f32.mxu0 %vm807_vm4, %v13105_v44  ;;  %v7732_v51 = vld [vmem:[#allocation3 + $0x188] sm:$0xff] }
 0x2bb   : > { %11430 = vmatprep.subr.mxu1 %v13559_v37  ;;  %11481 = vmatpush3.msra.mxu0 %v13392_v20 }
 0x2bc   : > { %11236 = vmatmul.mubr.msk.f32.gmra.mrb[212].mxu1 %vm807_vm4, %v13099_v16  ;;  %v7734_v16 = vld [vmem:[#allocation3 + $0x1a0] sm:$0xff] }
 0x2bd   : > { %11386 = vmatmul.mubr.msk.f32.gmra.mrb[244].mxu0 %vm807_vm4, %v13115_v58  ;;  %11238 = vmatprep.mubr.msk.f32.mxu1 %vm807_vm4, %v13105_v44  ;;  %v7251_v44 = vld [vmem:[#allocation3 + $0x1a] sm:$0xff] }
 0x2be   : > { %11388 = vmatprep.mubr.msk.f32.mxu0 %vm807_vm4, %v13121_v10 }
 0x2c0   : > { %11239 = vmatmul.mubr.msk.f32.gmra.mrb[214].mxu1 %vm807_vm4, %v13115_v58  ;;  %v8605_v58 = vld [vmem:[#allocation3 + $0x32] sm:$0xff] }
 0x2c1   : > { %11389 = vmatmul.mubr.msk.f32.gmra.mrb[246].mxu0 %vm807_vm4, %v13131_v18  ;;  %11241 = vmatprep.mubr.msk.f32.mxu1 %vm807_vm4, %v13121_v10  ;;  %v7252_v10 = vld [vmem:[#allocation3 + $0x22] sm:$0xff] }
 0x2c2   : > { %11391 = vmatprep.mubr.msk.f32.mxu0 %vm807_vm4, %v13137_v22 }
 0x2c4   : > { %11242 = vmatmul.mubr.msk.f32.gmra.mrb[216].mxu1 %vm807_vm4, %v13131_v18  ;;  %v8606_v18 = vld [vmem:[#allocation3 + $0x3a] sm:$0xff] }
 0x2c5   : > { %11392 = vmatmul.mubr.msk.f32.gmra.mrb[248].mxu0 %vm807_vm4, %v13147_v48  ;;  %11244 = vmatprep.mubr.msk.f32.mxu1 %vm807_vm4, %v13137_v22  ;;  %v8607_v22 = vld [vmem:[#allocation3 + $0x4a] sm:$0xff] }
 0x2c6   : > { %11394 = vmatprep.mubr.msk.f32.mxu0 %vm807_vm4, %v13153_v36 }
 0x2c8   : > { %11245 = vmatmul.mubr.msk.f32.gmra.mrb[218].mxu1 %vm807_vm4, %v13147_v48  ;;  %v8608_v48 = vld [vmem:[#allocation3 + $0x52] sm:$0xff] }
 0x2c9   : > { %11395 = vmatmul.mubr.msk.f32.gmra.mrb[250].mxu0 %vm807_vm4, %v13166_v46  ;;  %11247 = vmatprep.mubr.msk.f32.mxu1 %vm807_vm4, %v13153_v36  ;;  %v8609_v36 = vld [vmem:[#allocation3 + $0x62] sm:$0xff] }
 0x2ca   : > { %11397 = vmatprep.mubr.msk.f32.mxu0 %vm807_vm4, %v13175_v59 }
 0x2cc   : > { %11248 = vmatmul.mubr.msk.f32.gmra.mrb[220].mxu1 %vm807_vm4, %v13166_v46  ;;  %v8610_v46 = vld [vmem:[#allocation3 + $0x6a] sm:$0xff] }
 0x2cd   : > { %11398 = vmatmul.mubr.msk.f32.gmra.mrb[252].mxu0 %vm807_vm4, %v13188_v3  ;;  %11250 = vmatprep.mubr.msk.f32.mxu1 %vm807_vm4, %v13175_v59  ;;  %v8611_v59 = vld [vmem:[#allocation3 + $0x7a] sm:$0xff] }
 0x2ce   : > { %11400 = vmatprep.mubr.msk.f32.mxu0 %vm807_vm4, %v13197_v27 }
 0x2d0   : > { %11251 = vmatmul.mubr.msk.f32.gmra.mrb[222].mxu1 %vm807_vm4, %v13188_v3  ;;  %v8612_v3 = vld [vmem:[#allocation3 + $0x82] sm:$0xff] }
 0x2d1   : > { %11401 = vmatmul.mubr.msk.f32.gmra.mrb[254].mxu0 %vm807_vm4, %v13210_v38  ;;  %11253 = vmatprep.mubr.msk.f32.mxu1 %vm807_vm4, %v13197_v27  ;;  %v7261_v27 = vld [vmem:[#allocation3 + $0x92] sm:$0xff] }
 0x2d2   : > { %11403 = vmatprep.mubr.msk.f32.mxu0 %vm807_vm4, %v13219_v6 }
 0x2d4   : > { %11254 = vmatmul.mubr.msk.f32.gmra.mrb[224].mxu1 %vm807_vm4, %v13210_v38 }
 0x2d5   : > { %11404 = vmatmul.mubr.msk.f32.gmra.mrb[0].mxu0 %vm807_vm4, %v13232_v53  ;;  %11256 = vmatprep.mubr.msk.f32.mxu1 %vm807_vm4, %v13219_v6  ;;  %v7262_v6 = vld [vmem:[#allocation3 + $0x9a] sm:$0xff] }
 0x2d6   : > { %11406 = vmatprep.mubr.msk.f32.mxu0 %vm807_vm4, %v13241_v50 }
 0x2d8   : > { %11257 = vmatmul.mubr.msk.f32.gmra.mrb[226].mxu1 %vm807_vm4, %v13232_v53 }
 0x2d9   : > { %11407 = vmatmul.mubr.msk.f32.gmra.mrb[2].mxu0 %vm807_vm4, %v13254_v32  ;;  %11259 = vmatprep.mubr.msk.f32.mxu1 %vm807_vm4, %v13241_v50 }
 0x2da   : > { %11409 = vmatprep.mubr.msk.f32.mxu0 %vm807_vm4, %v13263_v33 }
 0x2dc   : > { %11260 = vmatmul.mubr.msk.f32.gmra.mrb[228].mxu1 %vm807_vm4, %v13254_v32 }
 0x2dd   : > { %11410 = vmatmul.mubr.msk.f32.gmra.mrb[4].mxu0 %vm807_vm4, %v13276_v25  ;;  %11262 = vmatprep.mubr.msk.f32.mxu1 %vm807_vm4, %v13263_v33 }
 0x2de   : > { %11412 = vmatprep.mubr.msk.f32.mxu0 %vm807_vm4, %v13285_v62 }
 0x2e0   : > { %11263 = vmatmul.mubr.msk.f32.gmra.mrb[230].mxu1 %vm807_vm4, %v13276_v25 }
 0x2e1   : > { %11413 = vmatmul.mubr.msk.f32.gmra.mrb[6].mxu0 %vm807_vm4, %v13298_v63  ;;  %11265 = vmatprep.mubr.msk.f32.mxu1 %vm807_vm4, %v13285_v62 }
 0x2e2   : > { %11415 = vmatprep.mubr.msk.f32.mxu0 %vm807_vm4, %v13306_v49 }
 0x2e4   : > { %11266 = vmatmul.mubr.msk.f32.gmra.mrb[232].mxu1 %vm807_vm4, %v13298_v63 }
 0x2e5   : > { %11416 = vmatmul.mubr.msk.f32.gmra.mrb[8].mxu0 %vm807_vm4, %v13318_v61  ;;  %11268 = vmatprep.mubr.msk.f32.mxu1 %vm807_vm4, %v13306_v49 }
 0x2e6   : > { %11418 = vmatprep.mubr.msk.f32.mxu0 %vm807_vm4, %v13327_v34 }
 0x2e8   : > { %11269 = vmatmul.mubr.msk.f32.gmra.mrb[234].mxu1 %vm807_vm4, %v13318_v61 }
 0x2e9   : > { %11419 = vmatmul.mubr.msk.f32.gmra.mrb[10].mxu0 %vm807_vm4, %v13338_v57  ;;  %11271 = vmatprep.mubr.msk.f32.mxu1 %vm807_vm4, %v13327_v34 }
 0x2ea   : > { %11421 = vmatprep.mubr.msk.f32.mxu0 %vm807_vm4, %v13347_v4 }
 0x2ec   : > { %11272 = vmatmul.mubr.msk.f32.gmra.mrb[236].mxu1 %vm807_vm4, %v13338_v57 }
 0x2ed   : > { %11422 = vmatmul.mubr.msk.f32.gmra.mrb[12].mxu0 %vm807_vm4, %v13362_v19  ;;  %11274 = vmatprep.mubr.msk.f32.mxu1 %vm807_vm4, %v13347_v4 }
 0x2ee   : > { %11424 = vmatprep.mubr.msk.f32.mxu0 %vm807_vm4, %v7731_v26 }
 0x2f0   : > { %11275 = vmatmul.mubr.msk.f32.gmra.mrb[238].mxu1 %vm807_vm4, %v13362_v19 }
 0x2f1   : > { %11425 = vmatmul.mubr.msk.f32.gmra.mrb[14].mxu0 %vm807_vm4, %v7732_v51  ;;  %11277 = vmatprep.mubr.msk.f32.mxu1 %vm807_vm4, %v7731_v26 }
 0x2f2   : > { %11427 = vmatprep.mubr.msk.f32.mxu0 %vm807_vm4, %v7733_v35 }
 0x2f4   : > { %11278 = vmatmul.mubr.msk.f32.gmra.mrb[240].mxu1 %vm807_vm4, %v7732_v51 }
 0x2f5   : > { %11428 = vmatmul.mubr.msk.f32.gmra.mrb[16].mxu0 %vm807_vm4, %v7734_v16  ;;  %11332 = vmatprep.mubr.msk.f32.mxu1 %vm807_vm4, %v7251_v44  ;;  %v8634_v16 = vld [vmem:[#allocation3 + $0x18a] sm:$0xff] }
 0x2f6   : > { %11482 = vmatprep.mubr.msk.f32.mxu0 %vm807_vm4, %v8605_v58 }
 0x2f8   : > { %11333 = vmatmul.mubr.msk.f32.vlgmr.msra.gmra.mrb[242].mxu1 %vm807_vm4, %v7252_v10 }
 0x2f9   : > { %11483 = vmatmul.mubr.msk.f32.vlgmr.msra.gmra.mrb[18].mxu0 %vm807_vm4, %v8606_v18  ;;  %11431 = vmatpush3.msra.mxu1 %v13559_v37 }
 0x2fa   : > { %11335 = vmatprep.mubr.msk.f32.mxu1 %vm807_vm4, %v8605_v58  ;;  %11485 = vmatprep.mubr.msk.f32.mxu0 %vm807_vm4, %v8607_v22 }
 0x2fc   : > { %11336 = vmatmul.mubr.msk.f32.gmra.mrb[244].mxu1 %vm807_vm4, %v8606_v18 }
 0x2fd   : > { %11486 = vmatmul.mubr.msk.f32.gmra.mrb[20].mxu0 %vm807_vm4, %v8608_v48  ;;  %11338 = vmatprep.mubr.msk.f32.mxu1 %vm807_vm4, %v8607_v22 }
 0x2fe   : > { %11488 = vmatprep.mubr.msk.f32.mxu0 %vm807_vm4, %v8609_v36 }
 0x300   : > { %11339 = vmatmul.mubr.msk.f32.gmra.mrb[246].mxu1 %vm807_vm4, %v8608_v48 }
 0x301   : > { %11489 = vmatmul.mubr.msk.f32.gmra.mrb[22].mxu0 %vm807_vm4, %v8610_v46  ;;  %11341 = vmatprep.mubr.msk.f32.mxu1 %vm807_vm4, %v8609_v36 }
 0x302   : > { %11491 = vmatprep.mubr.msk.f32.mxu0 %vm807_vm4, %v8611_v59 }
 0x304   : > { %11342 = vmatmul.mubr.msk.f32.gmra.mrb[248].mxu1 %vm807_vm4, %v8610_v46 }
 0x305   : > { %11492 = vmatmul.mubr.msk.f32.gmra.mrb[24].mxu0 %vm807_vm4, %v8612_v3  ;;  %11344 = vmatprep.mubr.msk.f32.mxu1 %vm807_vm4, %v8611_v59 }
 0x306   : > { %11494 = vmatprep.mubr.msk.f32.mxu0 %vm807_vm4, %v13155_v11 }
 0x308   : > { %11345 = vmatmul.mubr.msk.f32.gmra.mrb[250].mxu1 %vm807_vm4, %v8612_v3 }
 0x309   : > { %11495 = vmatmul.mubr.msk.f32.gmra.mrb[26].mxu0 %vm807_vm4, %v13168_v47  ;;  %11347 = vmatprep.mubr.msk.f32.mxu1 %vm807_vm4, %v7261_v27 }
 0x30a   : > { %11497 = vmatprep.mubr.msk.f32.mxu0 %vm807_vm4, %v13177_v60 }
 0x30b   : > { %v11084_v38 = vpop.f32.mrb[146].mxu1 }
 0x30c   : > { %v13708_v53 = vpop.f32.mrb[178].mxu0  ;;  %5415 = vst.msk [vmem:[#allocation5 + $0x8] sm:$0xff] %vm327_vm2, %v11084_v38  ;;  %v5255_v50 = vpop.f32.mrb[147].mxu1  ;;  %11348 = vmatmul.mubr.msk.f32.gmra.mrb[252].mxu1 %vm807_vm4, %v7262_v6 }
 0x30d   : > { %11498 = vmatmul.mubr.msk.f32.gmra.mrb[28].mxu0 %vm807_vm4, %v13190_v7  ;;  %v13714_v11 = vpop.f32.mrb[179].mxu0  ;;  %5414 = vst.msk [vmem:[#allocation5] sm:$0xff] %vm327_vm2, %v5255_v50  ;;  %11350 = vmatprep.mubr.msk.f32.mxu1 %vm807_vm4, %v13177_v60  ;;  %v14755_v50 = vld [vmem:[#allocation16_spill] sm:$0xff] }
 0x30e   : > { %11500 = vmatprep.mubr.msk.f32.mxu0 %vm807_vm4, %v13199_v40 }
 0x30f   : > { %v11087_v47 = vpop.f32.mrb[148].mxu1 }
 0x310   : > { %v13721_v32 = vpop.f32.mrb[180].mxu0  ;;  %5417 = vst.msk [vmem:[#allocation5 + $0x18] sm:$0xff] %vm327_vm2, %v11087_v47  ;;  %v5265_v33 = vpop.f32.mrb[149].mxu1  ;;  %11351 = vmatmul.mubr.msk.f32.gmra.mrb[254].mxu1 %vm807_vm4, %v13190_v7 }
 0x311   : > { %v13724_v25 = vpop.f32.mrb[181].mxu0  ;;  %11501 = vmatmul.mubr.msk.f32.gmra.mrb[30].mxu0 %vm807_vm4, %v13212_v41  ;;  %5416 = vst.msk [vmem:[#allocation5 + $0x10] sm:$0xff] %vm327_vm2, %v5265_v33  ;;  %11353 = vmatprep.mubr.msk.f32.mxu1 %vm807_vm4, %v13199_v40 }
 0x312   : > { %11503 = vmatprep.mubr.msk.f32.mxu0 %vm807_vm4, %v13221_v9 }
 0x313   : > { %v11090_v60 = vpop.f32.mrb[150].mxu1 }
 0x314   : > { %v13735_v62 = vpop.f32.mrb[182].mxu0  ;;  %5419 = vst.msk [vmem:[#allocation5 + $0x28] sm:$0xff] %vm327_vm2, %v11090_v60  ;;  %v5275_v63 = vpop.f32.mrb[151].mxu1  ;;  %11354 = vmatmul.mubr.msk.f32.gmra.mrb[0].mxu1 %vm807_vm4, %v13212_v41  ;;  %v14756_v60 = vld [vmem:[#allocation17_spill] sm:$0xff] }
 0x315   : > { %v13738_v49 = vpop.f32.mrb[183].mxu0  ;;  %11504 = vmatmul.mubr.msk.f32.gmra.mrb[32].mxu0 %vm807_vm4, %v13234_v54  ;;  %5418 = vst.msk [vmem:[#allocation5 + $0x20] sm:$0xff] %vm327_vm2, %v5275_v63  ;;  %11356 = vmatprep.mubr.msk.f32.mxu1 %vm807_vm4, %v13221_v9  ;;  %v14757_v63 = vld [vmem:[#allocation18_spill] sm:$0xff] }
 0x316   : > { %11506 = vmatprep.mubr.msk.f32.mxu0 %vm807_vm4, %v13243_v13 }
 0x317   : > { %v11093_v7 = vpop.f32.mrb[152].mxu1 }
 0x318   : > { %v13749_v40 = vpop.f32.mrb[184].mxu0  ;;  %5421 = vst.msk [vmem:[#allocation5 + $0x38] sm:$0xff] %vm327_vm2, %v11093_v7  ;;  %v5285_v61 = vpop.f32.mrb[153].mxu1  ;;  %11357 = vmatmul.mubr.msk.f32.gmra.mrb[2].mxu1 %vm807_vm4, %v13234_v54 }
 0x319   : > { %v13752_v34 = vpop.f32.mrb[185].mxu0  ;;  %11507 = vmatmul.mubr.msk.f32.gmra.mrb[34].mxu0 %vm807_vm4, %v13256_v43  ;;  %5420 = vst.msk [vmem:[#allocation5 + $0x30] sm:$0xff] %vm327_vm2, %v5285_v61  ;;  %11359 = vmatprep.mubr.msk.f32.mxu1 %vm807_vm4, %v13243_v13 }
 0x31a   : > { %11509 = vmatprep.mubr.msk.f32.mxu0 %vm807_vm4, %v13265_v42 }
 0x31b   : > { %v11096_v41 = vpop.f32.mrb[154].mxu1 }
 0x31c   : > { %v13763_v9 = vpop.f32.mrb[186].mxu0  ;;  %5423 = vst.msk [vmem:[#allocation5 + $0x48] sm:$0xff] %vm327_vm2, %v11096_v41  ;;  %v5295_v57 = vpop.f32.mrb[155].mxu1  ;;  %11360 = vmatmul.mubr.msk.f32.gmra.mrb[4].mxu1 %vm807_vm4, %v13256_v43 }
 0x31d   : > { %v13766_v4 = vpop.f32.mrb[187].mxu0  ;;  %11510 = vmatmul.mubr.msk.f32.gmra.mrb[36].mxu0 %vm807_vm4, %v13278_v30  ;;  %5422 = vst.msk [vmem:[#allocation5 + $0x40] sm:$0xff] %vm327_vm2, %v5295_v57  ;;  %11362 = vmatprep.mubr.msk.f32.mxu1 %vm807_vm4, %v13265_v42  ;;  %v14758_v57 = vld [vmem:[#allocation19_spill] sm:$0xff] }
 0x31e   : > { %11512 = vmatprep.mubr.msk.f32.mxu0 %vm807_vm4, %v13287_v1 }
 0x31f   : > { %v11099_v54 = vpop.f32.mrb[156].mxu1 }
 0x320   : > { %v13777_v13 = vpop.f32.mrb[188].mxu0  ;;  %5425 = vst.msk [vmem:[#allocation5 + $0x58] sm:$0xff] %vm327_vm2, %v11099_v54  ;;  %v5305_v19 = vpop.f32.mrb[157].mxu1  ;;  %11363 = vmatmul.mubr.msk.f32.gmra.mrb[6].mxu1 %vm807_vm4, %v13278_v30  ;;  %v14759_v54 = vld [vmem:[#allocation20_spill] sm:$0xff] }
 0x321   : > { %v13780_v45 = vpop.f32.mrb[189].mxu0  ;;  %11513 = vmatmul.mubr.msk.f32.gmra.mrb[38].mxu0 %vm807_vm4, %v13300_v8  ;;  %5424 = vst.msk [vmem:[#allocation5 + $0x50] sm:$0xff] %vm327_vm2, %v5305_v19  ;;  %11365 = vmatprep.mubr.msk.f32.mxu1 %vm807_vm4, %v13287_v1 }
 0x322   : > { %11515 = vmatprep.mubr.msk.f32.mxu0 %vm807_vm4, %v13308_v29 }
 0x323   : > { %v11102_v43 = vpop.f32.mrb[158].mxu1 }
 0x324   : > { %v13791_v42 = vpop.f32.mrb[190].mxu0  ;;  %5427 = vst.msk [vmem:[#allocation5 + $0x68] sm:$0xff] %vm327_vm2, %v11102_v43  ;;  %v5315_v20 = vpop.f32.mrb[159].mxu1  ;;  %11366 = vmatmul.mubr.msk.f32.gmra.mrb[8].mxu1 %vm807_vm4, %v13300_v8  ;;  %v5802_v43 = vld [vmem:[#allocation5 + $0x8] sm:$0xff] }
 0x325   : > { %v13794_v23 = vpop.f32.mrb[191].mxu0  ;;  %11516 = vmatmul.mubr.msk.f32.gmra.mrb[40].mxu0 %vm807_vm4, %v13320_v2  ;;  %5426 = vst.msk [vmem:[#allocation5 + $0x60] sm:$0xff] %vm327_vm2, %v5315_v20  ;;  %11368 = vmatprep.mubr.msk.f32.mxu1 %vm807_vm4, %v13308_v29 }
 0x326   : > { %11518 = vmatprep.mubr.msk.f32.mxu0 %vm807_vm4, %v13329_v39 }
 0x327   : > { %v11105_v30 = vpop.f32.mrb[160].mxu1 }
 0x328   : > { %v13805_v1 = vpop.f32.mrb[192].mxu0  ;;  %5429 = vst.msk [vmem:[#allocation5 + $0x78] sm:$0xff] %vm327_vm2, %v11105_v30  ;;  %v5325_v15 = vpop.f32.mrb[161].mxu1  ;;  %11369 = vmatmul.mubr.msk.f32.gmra.mrb[10].mxu1 %vm807_vm4, %v13320_v2  ;;  %v8633_v2 = vld [vmem:[#allocation3 + $0x182] sm:$0xff] }
 0x329   : > { %v13808_v5 = vpop.f32.mrb[193].mxu0  ;;  %11519 = vmatmul.mubr.msk.f32.gmra.mrb[42].mxu0 %vm807_vm4, %v13340_v14  ;;  %5428 = vst.msk [vmem:[#allocation5 + $0x70] sm:$0xff] %vm327_vm2, %v5325_v15  ;;  %11371 = vmatprep.mubr.msk.f32.mxu1 %vm807_vm4, %v13329_v39  ;;  %v8635_v39 = vld [vmem:[#allocation3 + $0x19a] sm:$0xff] }
 0x32a   : > { %11521 = vmatprep.mubr.msk.f32.mxu0 %vm807_vm4, %v13349_v12 }
 0x32b   : > { %v11108_v8 = vpop.f32.mrb[162].mxu1 }
 0x32c   : > { %v13819_v29 = vpop.f32.mrb[194].mxu0  ;;  %5431 = vst.msk [vmem:[#allocation5 + $0x88] sm:$0xff] %vm327_vm2, %v11108_v8  ;;  %v5335_v37 = vpop.f32.mrb[163].mxu1  ;;  %11372 = vmatmul.mubr.msk.f32.gmra.mrb[12].mxu1 %vm807_vm4, %v13340_v14  ;;  %v5801_v8 = vld [vmem:[#allocation5] sm:$0xff] }
 0x32d   : > { %v13822_v26 = vpop.f32.mrb[195].mxu0  ;;  %11522 = vmatmul.mubr.msk.f32.gmra.mrb[44].mxu0 %vm807_vm4, %v13364_v28  ;;  %5430 = vst.msk [vmem:[#allocation5 + $0x80] sm:$0xff] %vm327_vm2, %v5335_v37  ;;  %11374 = vmatprep.mubr.msk.f32.mxu1 %vm807_vm4, %v13349_v12  ;;  %v8636_v12 = vld [vmem:[#allocation3 + $0x1a2] sm:$0xff] }
 0x32e   : > { %11524 = vmatprep.mubr.msk.f32.mxu0 %vm807_vm4, %v8633_v2 }
 0x32f   : > { %v11111_v35 = vpop.f32.mrb[164].mxu1 }
 0x330   : > { %v13832_v51 = vpop.f32.mrb[196].mxu0  ;;  %5433 = vst.msk [vmem:[#allocation5 + $0x98] sm:$0xff] %vm327_vm2, %v11111_v35  ;;  %v5345_v44 = vpop.f32.mrb[165].mxu1  ;;  %11375 = vmatmul.mubr.msk.f32.gmra.mrb[14].mxu1 %vm807_vm4, %v13364_v28  ;;  %v14761_v35 = vld [vmem:[#allocation22_spill] sm:$0xff] }
 0x331   : > { %v13835_v14 = vpop.f32.mrb[197].mxu0  ;;  %11525 = vmatmul.mubr.msk.f32.gmra.mrb[46].mxu0 %vm807_vm4, %v8634_v16  ;;  %5432 = vst.msk [vmem:[#allocation5 + $0x90] sm:$0xff] %vm327_vm2, %v5345_v44  ;;  %11377 = vmatprep.mubr.msk.f32.mxu1 %vm807_vm4, %v8633_v2  ;;  %v14760_v2 = vld [vmem:[#allocation21_spill] sm:$0xff] }
 0x332   : > { %11527 = vmatprep.mubr.msk.f32.mxu0 %vm807_vm4, %v8635_v39  ;;  %v5804_v44 = vld [vmem:[#allocation5 + $0x18] sm:$0xff] }
 0x333   : > { %v11114_v58 = vpop.f32.mrb[166].mxu1 }
 0x334   : > { %v13843_v10 = vpop.f32.mrb[198].mxu0  ;;  %5435 = vst.msk [vmem:[#allocation5 + $0xa8] sm:$0xff] %vm327_vm2, %v11114_v58  ;;  %v5355_v18 = vpop.f32.mrb[167].mxu1  ;;  %11378 = vmatmul.mubr.msk.f32.gmra.mrb[16].mxu1 %vm807_vm4, %v8634_v16 }
 0x335   : > { %v13846_v22 = vpop.f32.mrb[199].mxu0  ;;  %11528 = vmatmul.mubr.msk.f32.gmra.mrb[48].mxu0 %vm807_vm4, %v8636_v12  ;;  %5434 = vst.msk [vmem:[#allocation5 + $0xa0] sm:$0xff] %vm327_vm2, %v5355_v18  ;;  %11432 = vmatprep.mubr.msk.f32.mxu1 %vm807_vm4, %v13381_v0 }
 0x337   : > { %v11117_v28 = vpop.f32.mrb[168].mxu1 }
 0x338   : > { %v13853_v48 = vpop.f32.mrb[200].mxu0  ;;  %5437 = vst.msk [vmem:[#allocation5 + $0xb8] sm:$0xff] %vm327_vm2, %v11117_v28  ;;  %v5365_v36 = vpop.f32.mrb[169].mxu1  ;;  %11433 = vmatmul.mubr.msk.f32.vlgmr.msra.gmra.mrb[18].mxu1 %vm807_vm4, %v13386_v17  ;;  %v5803_v28 = vld [vmem:[#allocation5 + $0x10] sm:$0xff] }
 0x339   : > { %v13856_v46 = vpop.f32.mrb[201].mxu0  ;;  %5436 = vst.msk [vmem:[#allocation5 + $0xb0] sm:$0xff] %vm327_vm2, %v5365_v36  ;;  %11435 = vmatprep.mubr.msk.f32.mxu1 %vm807_vm4, %v13397_v24 }
 0x33b   : > { %v11120_v59 = vpop.f32.mrb[170].mxu1 }
 0x33c   : > { %v13863_v3 = vpop.f32.mrb[202].mxu0  ;;  %5439 = vst.msk [vmem:[#allocation5 + $0xc8] sm:$0xff] %vm327_vm2, %v11120_v59  ;;  %v5375_v0 = vpop.f32.mrb[171].mxu1  ;;  %11436 = vmatmul.mubr.msk.f32.gmra.mrb[20].mxu1 %vm807_vm4, %v13404_v31  ;;  %v14762_v59 = vld [vmem:[#allocation23_spill] sm:$0xff] }
 0x33d   : > { %v13866_v27 = vpop.f32.mrb[203].mxu0  ;;  %5438 = vst.msk [vmem:[#allocation5 + $0xc0] sm:$0xff] %vm327_vm2, %v5375_v0  ;;  %11438 = vmatprep.mubr.msk.f32.mxu1 %vm807_vm4, %v13410_v21 }
 0x33f   : > { %v11123_v17 = vpop.f32.mrb[172].mxu1 }
 0x340   : > { %v13873_v38 = vpop.f32.mrb[204].mxu0  ;;  %5441 = vst.msk [vmem:[#allocation5 + $0xd8] sm:$0xff] %vm327_vm2, %v11123_v17  ;;  %v5385_v24 = vpop.f32.mrb[173].mxu1  ;;  %11439 = vmatmul.mubr.msk.f32.gmra.mrb[22].mxu1 %vm807_vm4, %v13416_v55  ;;  %v14763_v17 = vld [vmem:[#allocation24_spill] sm:$0xff] }
 0x341   : > { %v13876_v6 = vpop.f32.mrb[205].mxu0  ;;  %5440 = vst.msk [vmem:[#allocation5 + $0xd0] sm:$0xff] %vm327_vm2, %v5385_v24  ;;  %11441 = vmatprep.mubr.msk.f32.mxu1 %vm807_vm4, %v14755_v50  ;;  %v5806_v50 = vld [vmem:[#allocation5 + $0x28] sm:$0xff] }
 0x343   : > { %v11126_v31 = vpop.f32.mrb[174].mxu1 }
 0x344   : > { %v13883_v47 = vpop.f32.mrb[206].mxu0  ;;  %5443 = vst.msk [vmem:[#allocation5 + $0xe8] sm:$0xff] %vm327_vm2, %v11126_v31  ;;  %v5395_v21 = vpop.f32.mrb[175].mxu1  ;;  %11442 = vmatmul.mubr.msk.f32.gmra.mrb[24].mxu1 %vm807_vm4, %v14756_v60 }
 0x345   : > { %v13886_v33 = vpop.f32.mrb[207].mxu0  ;;  %5442 = vst.msk [vmem:[#allocation5 + $0xe0] sm:$0xff] %vm327_vm2, %v5395_v21  ;;  %11444 = vmatprep.mubr.msk.f32.mxu1 %vm807_vm4, %v14757_v63  ;;  %v5805_v63 = vld [vmem:[#allocation5 + $0x20] sm:$0xff] }
 0x347   : > { %v11129_v55 = vpop.f32.mrb[176].mxu1 }
 0x348   : > { %v13893_v7 = vpop.f32.mrb[208].mxu0  ;;  %5445 = vst.msk [vmem:[#allocation5 + $0xf8] sm:$0xff] %vm327_vm2, %v11129_v55  ;;  %v5405_v61 = vpop.f32.mrb[177].mxu1  ;;  %11445 = vmatmul.mubr.msk.f32.gmra.mrb[26].mxu1 %vm807_vm4, %v14758_v57 }
 0x349   : > { %v13896_v41 = vpop.f32.mrb[209].mxu0  ;;  %5444 = vst.msk [vmem:[#allocation5 + $0xf0] sm:$0xff] %vm327_vm2, %v5405_v61  ;;  %11447 = vmatprep.mubr.msk.f32.mxu1 %vm807_vm4, %v14759_v54  ;;  %v14764_v61 = vld [vmem:[#allocation25_spill] sm:$0xff]  ;;  %v14765_v54 = vld [vmem:[#allocation26_spill] sm:$0xff] }
 0x34b   : > { %v11134_v19 = vpop.f32.mrb[178].mxu1 }
 0x34c   : > { %v13903_v20 = vpop.f32.mrb[210].mxu0  ;;  %v5834_v30 = vadd.f32 %v11134_v19, %v5802_v43  ;;  %v5642_v15 = vpop.f32.mrb[179].mxu1  ;;  %11448 = vmatmul.mubr.msk.f32.gmra.mrb[28].mxu1 %vm807_vm4, %v14760_v2 }
 0x34d   : > { %v13905_v37 = vpop.f32.mrb[211].mxu0  ;;  %v5833_v39 = vadd.f32 %v5801_v8, %v5642_v15  ;;  %11450 = vmatprep.mubr.msk.f32.mxu1 %vm807_vm4, %v14761_v35  ;;  %v5808_v8 = vld [vmem:[#allocation5 + $0x38] sm:$0xff] }
 0x34e   : > { %5866 = vst.msk [vmem:[#allocation5 + $0x8] sm:$0xff] %vm327_vm2, %v5834_v30 }
 0x34f   : > { %5865 = vst.msk [vmem:[#allocation5] sm:$0xff] %vm327_vm2, %v5833_v39  ;;  %v11137_v16 = vpop.f32.mrb[180].mxu1 }
 0x350   : > { %v13913_v12 = vpop.f32.mrb[212].mxu0  ;;  %v5836_v58 = vadd.f32 %v11137_v16, %v5804_v44  ;;  %v5652_v18 = vpop.f32.mrb[181].mxu1  ;;  %11451 = vmatmul.mubr.msk.f32.gmra.mrb[30].mxu1 %vm807_vm4, %v14762_v59  ;;  %v5807_v44 = vld [vmem:[#allocation5 + $0x30] sm:$0xff] }
 0x351   : > { %v13915_v36 = vpop.f32.mrb[213].mxu0  ;;  %v5835_v0 = vadd.f32 %v5803_v28, %v5652_v18  ;;  %11453 = vmatprep.mubr.msk.f32.mxu1 %vm807_vm4, %v14763_v17  ;;  %v14766_v18 = vld [vmem:[#allocation27_spill] sm:$0xff]  ;;  %v14767_v28 = vld [vmem:[#allocation28_spill] sm:$0xff] }
 0x352   : > { %5868 = vst.msk [vmem:[#allocation5 + $0x18] sm:$0xff] %vm327_vm2, %v5836_v58 }
 0x353   : > { %5867 = vst.msk [vmem:[#allocation5 + $0x10] sm:$0xff] %vm327_vm2, %v5835_v0  ;;  %v11140_v24 = vpop.f32.mrb[182].mxu1 }
 0x354   : > { %v13923_v31 = vpop.f32.mrb[214].mxu0  ;;  %v5838_v21 = vadd.f32 %v11140_v24, %v5806_v50  ;;  %v5662_v60 = vpop.f32.mrb[183].mxu1  ;;  %11454 = vmatmul.mubr.msk.f32.gmra.mrb[32].mxu1 %vm807_vm4, %v14764_v61  ;;  %v5810_v24 = vld [vmem:[#allocation5 + $0x48] sm:$0xff]  ;;  %v5809_v61 = vld [vmem:[#allocation5 + $0x40] sm:$0xff] }
 0x355   : > { %v13925_v55 = vpop.f32.mrb[215].mxu0  ;;  %v5837_v57 = vadd.f32 %v5805_v63, %v5662_v60  ;;  %11456 = vmatprep.mubr.msk.f32.mxu1 %vm807_vm4, %v14765_v54  ;;  %v6253_v19 = vld [vmem:[#allocation5 + $0x8] sm:$0xff]  ;;  %v14768_v54 = vld [vmem:[#allocation29_spill] sm:$0xff] }
 0x356   : > { %5870 = vst.msk [vmem:[#allocation5 + $0x28] sm:$0xff] %vm327_vm2, %v5838_v21  ;;  %v6285_v43 = vadd.f32 %v13708_v53, %v6253_v19  ;;  %v6252_v30 = vld [vmem:[#allocation5] sm:$0xff] }
 0x357   : > { %5869 = vst.msk [vmem:[#allocation5 + $0x20] sm:$0xff] %vm327_vm2, %v5837_v57  ;;  %v11143_v15 = vpop.f32.mrb[184].mxu1  ;;  %v6284_v39 = vadd.f32 %v6252_v30, %v13714_v11  ;;  %v14769_v19 = vld [vmem:[#allocation30_spill] sm:$0xff] }
 0x358   : > { %v13934_v2 = vpop.f32.mrb[216].mxu0  ;;  %v5840_v35 = vadd.f32 %v11143_v15, %v5808_v8  ;;  %v5672_v16 = vpop.f32.mrb[185].mxu1  ;;  %11457 = vmatmul.mubr.msk.f32.gmra.mrb[34].mxu1 %vm807_vm4, %v14766_v18  ;;  %6317 = vst.msk [vmem:[#allocation5 + $0x8] sm:$0xff] %vm327_vm2, %v6285_v43  ;;  %v5812_v8 = vld [vmem:[#allocation5 + $0x58] sm:$0xff]  ;;  %v5811_v18 = vld [vmem:[#allocation5 + $0x50] sm:$0xff] }
 0x359   : > { %v13937_v58 = vpop.f32.mrb[217].mxu0  ;;  %v5839_v53 = vadd.f32 %v5807_v44, %v5672_v16  ;;  %11459 = vmatprep.mubr.msk.f32.mxu1 %vm807_vm4, %v14767_v28  ;;  %6316 = vst.msk [vmem:[#allocation5] sm:$0xff] %vm327_vm2, %v6284_v39  ;;  %v6255_v59 = vld [vmem:[#allocation5 + $0x18] sm:$0xff]  ;;  %v14770_v28 = vld [vmem:[#allocation31_spill] sm:$0xff] }
 0x35a   : > { %5872 = vst.msk [vmem:[#allocation5 + $0x38] sm:$0xff] %vm327_vm2, %v5840_v35  ;;  %v6287_v11 = vadd.f32 %v13721_v32, %v6255_v59  ;;  %v6254_v0 = vld [vmem:[#allocation5 + $0x10] sm:$0xff]  ;;  %v14771_v59 = vld [vmem:[#allocation6_spill] sm:$0xff] }
 0x35b   : > { %5871 = vst.msk [vmem:[#allocation5 + $0x30] sm:$0xff] %vm327_vm2, %v5839_v53  ;;  %v11146_v17 = vpop.f32.mrb[186].mxu1  ;;  %v6286_v21 = vadd.f32 %v6254_v0, %v13724_v25 }
 0x35c   : > { %v13948_v50 = vpop.f32.mrb[218].mxu0  ;;  %v5842_v60 = vadd.f32 %v11146_v17, %v5810_v24  ;;  %v5682_v63 = vpop.f32.mrb[187].mxu1  ;;  %11460 = vmatmul.mubr.msk.f32.gmra.mrb[36].mxu1 %vm807_vm4, %v14768_v54  ;;  %6319 = vst.msk [vmem:[#allocation5 + $0x18] sm:$0xff] %vm327_vm2, %v6287_v11  ;;  %v5814_v24 = vld [vmem:[#allocation5 + $0x68] sm:$0xff]  ;;  %v5813_v54 = vld [vmem:[#allocation5 + $0x60] sm:$0xff] }
 0x35d   : > { %v13951_v57 = vpop.f32.mrb[219].mxu0  ;;  %v5841_v32 = vadd.f32 %v5809_v61, %v5682_v63  ;;  %11462 = vmatprep.mubr.msk.f32.mxu1 %vm807_vm4, %v14769_v19  ;;  %6318 = vst.msk [vmem:[#allocation5 + $0x10] sm:$0xff] %vm327_vm2, %v6286_v21  ;;  %v6257_v43 = vld [vmem:[#allocation5 + $0x28] sm:$0xff] }
 0x35e   : > { %5874 = vst.msk [vmem:[#allocation5 + $0x48] sm:$0xff] %vm327_vm2, %v5842_v60  ;;  %v6289_v25 = vadd.f32 %v13735_v62, %v6257_v43  ;;  %v6256_v30 = vld [vmem:[#allocation5 + $0x20] sm:$0xff]  ;;  %v14772_v19 = vld [vmem:[#allocation7_spill] sm:$0xff] }
 0x35f   : > { %5873 = vst.msk [vmem:[#allocation5 + $0x40] sm:$0xff] %vm327_vm2, %v5841_v32  ;;  %v11149_v15 = vpop.f32.mrb[188].mxu1  ;;  %v6288_v35 = vadd.f32 %v6256_v30, %v13738_v49 }
 0x360   : > { %v13962_v39 = vpop.f32.mrb[220].mxu0  ;;  %v5844_v16 = vadd.f32 %v11149_v15, %v5812_v8  ;;  %v5692_v44 = vpop.f32.mrb[189].mxu1  ;;  %11463 = vmatmul.mubr.msk.f32.gmra.mrb[38].mxu1 %vm807_vm4, %v14770_v28  ;;  %6321 = vst.msk [vmem:[#allocation5 + $0x28] sm:$0xff] %vm327_vm2, %v6289_v25  ;;  %v5816_v15 = vld [vmem:[#allocation5 + $0x78] sm:$0xff] }
 0x361   : > { %v13965_v53 = vpop.f32.mrb[221].mxu0  ;;  %v5843_v62 = vadd.f32 %v5811_v18, %v5692_v44  ;;  %11465 = vmatprep.mubr.msk.f32.mxu1 %vm807_vm4, %v14771_v59  ;;  %6320 = vst.msk [vmem:[#allocation5 + $0x20] sm:$0xff] %vm327_vm2, %v6288_v35  ;;  %v6259_v11 = vld [vmem:[#allocation5 + $0x38] sm:$0xff]  ;;  %v8179_v35 = vld [vmem:[#allocation3 + $0x159] sm:$0xff] }
 0x362   : > { %5876 = vst.msk [vmem:[#allocation5 + $0x58] sm:$0xff] %vm327_vm2, %v5844_v16  ;;  %v6291_v49 = vadd.f32 %v13749_v40, %v6259_v11  ;;  %v6258_v0 = vld [vmem:[#allocation5 + $0x30] sm:$0xff] }
 0x363   : > { %5875 = vst.msk [vmem:[#allocation5 + $0x50] sm:$0xff] %vm327_vm2, %v5843_v62  ;;  %v11152_v17 = vpop.f32.mrb[190].mxu1  ;;  %v6290_v60 = vadd.f32 %v6258_v0, %v13752_v34 }
 0x364   : > { %v13976_v21 = vpop.f32.mrb[222].mxu0  ;;  %v5846_v63 = vadd.f32 %v11152_v17, %v5814_v24  ;;  %v5702_v61 = vpop.f32.mrb[191].mxu1  ;;  %11466 = vmatmul.mubr.msk.f32.gmra.mrb[40].mxu1 %vm807_vm4, %v14772_v19  ;;  %6323 = vst.msk [vmem:[#allocation5 + $0x38] sm:$0xff] %vm327_vm2, %v6291_v49  ;;  %v5818_v49 = vld [vmem:[#allocation5 + $0x88] sm:$0xff] }
 0x365   : > { %v13979_v32 = vpop.f32.mrb[223].mxu0  ;;  %v5845_v40 = vadd.f32 %v5813_v54, %v5702_v61  ;;  %11468 = vmatprep.mubr.msk.f32.mxu1 %vm807_vm4, %v13530_v52  ;;  %6322 = vst.msk [vmem:[#allocation5 + $0x30] sm:$0xff] %vm327_vm2, %v6290_v60  ;;  %v6261_v43 = vld [vmem:[#allocation5 + $0x48] sm:$0xff]  ;;  %v5815_v52 = vld [vmem:[#allocation5 + $0x70] sm:$0xff] }
 0x366   : > { %5878 = vst.msk [vmem:[#allocation5 + $0x68] sm:$0xff] %vm327_vm2, %v5846_v63  ;;  %v6293_v34 = vadd.f32 %v13763_v9, %v6261_v43  ;;  %v6260_v25 = vld [vmem:[#allocation5 + $0x40] sm:$0xff]  ;;  %v8182_v54 = vld [vmem:[#allocation3 + $0x181] sm:$0xff] }
 0x367   : > { %5877 = vst.msk [vmem:[#allocation5 + $0x60] sm:$0xff] %vm327_vm2, %v5845_v40  ;;  %v11155_v30 = vpop.f32.mrb[192].mxu1  ;;  %v6292_v16 = vadd.f32 %v6260_v25, %v13766_v4  ;;  %v8181_v17 = vld [vmem:[#allocation3 + $0x171] sm:$0xff]  ;;  %v8184_v40 = vld [vmem:[#allocation3 + $0x199] sm:$0xff]  ;;  %v5820_v25 = vld [vmem:[#allocation5 + $0x98] sm:$0xff] }
 0x368   : > { %v13990_v8 = vpop.f32.mrb[224].mxu0  ;;  %v5848_v44 = vadd.f32 %v11155_v30, %v5816_v15  ;;  %v5712_v18 = vpop.f32.mrb[193].mxu1  ;;  %11469 = vmatmul.mubr.msk.f32.gmra.mrb[42].mxu1 %vm807_vm4, %v8179_v35  ;;  %6325 = vst.msk [vmem:[#allocation5 + $0x48] sm:$0xff] %vm327_vm2, %v6293_v34  ;;  %v8183_v15 = vld [vmem:[#allocation3 + $0x189] sm:$0xff] }
 0x369   : > { %v13993_v28 = vpop.f32.mrb[225].mxu0  ;;  %v5847_v9 = vadd.f32 %v5815_v52, %v5712_v18  ;;  %11471 = vmatprep.mubr.msk.f32.mxu1 %vm807_vm4, %v13539_v56  ;;  %6324 = vst.msk [vmem:[#allocation5 + $0x40] sm:$0xff] %vm327_vm2, %v6292_v16  ;;  %v6263_v62 = vld [vmem:[#allocation5 + $0x58] sm:$0xff]  ;;  %v5817_v56 = vld [vmem:[#allocation5 + $0x80] sm:$0xff]  ;;  %v5819_v18 = vld [vmem:[#allocation5 + $0x90] sm:$0xff] }
 0x36a   : > { %5880 = vst.msk [vmem:[#allocation5 + $0x78] sm:$0xff] %vm327_vm2, %v5848_v44  ;;  %v6295_v4 = vadd.f32 %v13777_v13, %v6263_v62  ;;  %v6262_v59 = vld [vmem:[#allocation5 + $0x50] sm:$0xff] }
 0x36b   : > { %5879 = vst.msk [vmem:[#allocation5 + $0x70] sm:$0xff] %vm327_vm2, %v5847_v9  ;;  %v11158_v11 = vpop.f32.mrb[194].mxu1  ;;  %v6294_v24 = vadd.f32 %v6262_v59, %v13780_v45  ;;  %v8185_v9 = vld [vmem:[#allocation3 + $0x1a1] sm:$0xff] }
 0x36c   : > { %v14003_v0 = vpop.f32.mrb[226].mxu0  ;;  %v5850_v60 = vadd.f32 %v11158_v11, %v5818_v49  ;;  %v5722_v63 = vpop.f32.mrb[195].mxu1  ;;  %11472 = vmatmul.mubr.msk.f32.gmra.mrb[44].mxu1 %vm807_vm4, %v8181_v17  ;;  %6327 = vst.msk [vmem:[#allocation5 + $0x58] sm:$0xff] %vm327_vm2, %v6295_v4  ;;  %v5822_v11 = vld [vmem:[#allocation5 + $0xa8] sm:$0xff] }
 0x36d   : > { %v14006_v61 = vpop.f32.mrb[227].mxu0  ;;  %v5849_v13 = vadd.f32 %v5817_v56, %v5722_v63  ;;  %11474 = vmatprep.mubr.msk.f32.mxu1 %vm807_vm4, %v8182_v54  ;;  %6326 = vst.msk [vmem:[#allocation5 + $0x50] sm:$0xff] %vm327_vm2, %v6294_v24  ;;  %v6265_v19 = vld [vmem:[#allocation5 + $0x68] sm:$0xff]  ;;  %v5821_v63 = vld [vmem:[#allocation5 + $0xa0] sm:$0xff] }
 0x36e   : > { %5882 = vst.msk [vmem:[#allocation5 + $0x88] sm:$0xff] %vm327_vm2, %v5850_v60  ;;  %v6297_v45 = vadd.f32 %v13791_v42, %v6265_v19  ;;  %v6264_v43 = vld [vmem:[#allocation5 + $0x60] sm:$0xff] }
 0x36f   : > { %5881 = vst.msk [vmem:[#allocation5 + $0x80] sm:$0xff] %vm327_vm2, %v5849_v13  ;;  %v11161_v34 = vpop.f32.mrb[196].mxu1  ;;  %v6296_v35 = vadd.f32 %v6264_v43, %v13794_v23 }
 0x370   : > { %v14015_v30 = vpop.f32.mrb[228].mxu0  ;;  %v5852_v16 = vadd.f32 %v11161_v34, %v5820_v25  ;;  %v5732_v44 = vpop.f32.mrb[197].mxu1  ;;  %11475 = vmatmul.mubr.msk.f32.gmra.mrb[46].mxu1 %vm807_vm4, %v8183_v15  ;;  %6329 = vst.msk [vmem:[#allocation5 + $0x68] sm:$0xff] %vm327_vm2, %v6297_v45  ;;  %v5823_v15 = vld [vmem:[#allocation5 + $0xb0] sm:$0xff] }
 0x371   : > { %v14018_v52 = vpop.f32.mrb[229].mxu0  ;;  %v5851_v42 = vadd.f32 %v5819_v18, %v5732_v44  ;;  %11477 = vmatprep.mubr.msk.f32.mxu1 %vm807_vm4, %v8184_v40  ;;  %6328 = vst.msk [vmem:[#allocation5 + $0x60] sm:$0xff] %vm327_vm2, %v6296_v35  ;;  %v6267_v62 = vld [vmem:[#allocation5 + $0x78] sm:$0xff] }
 0x372   : > { %5884 = vst.msk [vmem:[#allocation5 + $0x98] sm:$0xff] %vm327_vm2, %v5852_v16  ;;  %v6299_v23 = vadd.f32 %v13805_v1, %v6267_v62  ;;  %v6266_v4 = vld [vmem:[#allocation5 + $0x70] sm:$0xff]  ;;  %v5824_v40 = vld [vmem:[#allocation5 + $0xb8] sm:$0xff] }
 0x373   : > { %5883 = vst.msk [vmem:[#allocation5 + $0x90] sm:$0xff] %vm327_vm2, %v5851_v42  ;;  %v11164_v59 = vpop.f32.mrb[198].mxu1  ;;  %v6298_v17 = vadd.f32 %v6266_v4, %v13808_v5 }
 0x374   : > { %v14027_v49 = vpop.f32.mrb[230].mxu0  ;;  %v5854_v24 = vadd.f32 %v11164_v59, %v5822_v11  ;;  %v5742_v60 = vpop.f32.mrb[199].mxu1  ;;  %11478 = vmatmul.mubr.msk.f32.gmra.mrb[48].mxu1 %vm807_vm4, %v8185_v9  ;;  %6331 = vst.msk [vmem:[#allocation5 + $0x78] sm:$0xff] %vm327_vm2, %v6299_v23  ;;  %v5825_v59 = vld [vmem:[#allocation5 + $0xc0] sm:$0xff] }
 0x375   : > { %v14030_v56 = vpop.f32.mrb[231].mxu0  ;;  %v5853_v54 = vadd.f32 %v5821_v63, %v5742_v60  ;;  %6330 = vst.msk [vmem:[#allocation5 + $0x70] sm:$0xff] %vm327_vm2, %v6298_v17  ;;  %v6269_v1 = vld [vmem:[#allocation5 + $0x88] sm:$0xff] }
 0x376   : > { %5886 = vst.msk [vmem:[#allocation5 + $0xa8] sm:$0xff] %vm327_vm2, %v5854_v24  ;;  %v6301_v13 = vadd.f32 %v13819_v29, %v6269_v1  ;;  %v6268_v19 = vld [vmem:[#allocation5 + $0x80] sm:$0xff] }
 0x377   : > { %5885 = vst.msk [vmem:[#allocation5 + $0xa0] sm:$0xff] %vm327_vm2, %v5853_v54  ;;  %v11167_v5 = vpop.f32.mrb[200].mxu1  ;;  %v6300_v43 = vadd.f32 %v6268_v19, %v13822_v26  ;;  %v5826_v26 = vld [vmem:[#allocation5 + $0xc8] sm:$0xff] }
 0x378   : > { %v14038_v45 = vpop.f32.mrb[232].mxu0  ;;  %v5856_v34 = vadd.f32 %v11167_v5, %v5824_v40  ;;  %v5752_v25 = vpop.f32.mrb[201].mxu1  ;;  %6333 = vst.msk [vmem:[#allocation5 + $0x88] sm:$0xff] %vm327_vm2, %v6301_v13  ;;  %v5827_v5 = vld [vmem:[#allocation5 + $0xd0] sm:$0xff] }
 0x379   : > { %v14041_v35 = vpop.f32.mrb[233].mxu0  ;;  %v5855_v16 = vadd.f32 %v5823_v15, %v5752_v25  ;;  %6332 = vst.msk [vmem:[#allocation5 + $0x80] sm:$0xff] %vm327_vm2, %v6300_v43  ;;  %v6271_v29 = vld [vmem:[#allocation5 + $0x98] sm:$0xff] }
 0x37a   : > { %5888 = vst.msk [vmem:[#allocation5 + $0xb8] sm:$0xff] %vm327_vm2, %v5856_v34  ;;  %v6303_v44 = vadd.f32 %v13832_v51, %v6271_v29  ;;  %v6270_v18 = vld [vmem:[#allocation5 + $0x90] sm:$0xff] }
 0x37b   : > { %5887 = vst.msk [vmem:[#allocation5 + $0xb0] sm:$0xff] %vm327_vm2, %v5855_v16  ;;  %v11170_v42 = vpop.f32.mrb[202].mxu1  ;;  %v6302_v62 = vadd.f32 %v6270_v18, %v13835_v14  ;;  %v5828_v14 = vld [vmem:[#allocation5 + $0xd8] sm:$0xff] }
 0x37c   : > { %v14048_v9 = vpop.f32.mrb[234].mxu0  ;;  %v5858_v23 = vadd.f32 %v11170_v42, %v5826_v26  ;;  %v5762_v4 = vpop.f32.mrb[203].mxu1  ;;  %6335 = vst.msk [vmem:[#allocation5 + $0x98] sm:$0xff] %vm327_vm2, %v6303_v44  ;;  %v5829_v42 = vld [vmem:[#allocation5 + $0xe0] sm:$0xff] }
 0x37d   : > { %v14051_v11 = vpop.f32.mrb[235].mxu0  ;;  %v5857_v17 = vadd.f32 %v5825_v59, %v5762_v4  ;;  %6334 = vst.msk [vmem:[#allocation5 + $0x90] sm:$0xff] %vm327_vm2, %v6302_v62  ;;  %v6273_v51 = vld [vmem:[#allocation5 + $0xa8] sm:$0xff] }
 0x37e   : > { %5890 = vst.msk [vmem:[#allocation5 + $0xc8] sm:$0xff] %vm327_vm2, %v5858_v23  ;;  %v6305_v24 = vadd.f32 %v13843_v10, %v6273_v51  ;;  %v6272_v60 = vld [vmem:[#allocation5 + $0xa0] sm:$0xff] }
 0x37f   : > { %5889 = vst.msk [vmem:[#allocation5 + $0xc0] sm:$0xff] %vm327_vm2, %v5857_v17  ;;  %v11173_v63 = vpop.f32.mrb[204].mxu1  ;;  %v6304_v1 = vadd.f32 %v6272_v60, %v13846_v22  ;;  %v5830_v22 = vld [vmem:[#allocation5 + $0xe8] sm:$0xff] }
 0x380   : > { %v14058_v54 = vpop.f32.mrb[236].mxu0  ;;  %v5860_v13 = vadd.f32 %v11173_v63, %v5828_v14  ;;  %v5772_v19 = vpop.f32.mrb[205].mxu1  ;;  %6337 = vst.msk [vmem:[#allocation5 + $0xa8] sm:$0xff] %vm327_vm2, %v6305_v24  ;;  %v5831_v63 = vld [vmem:[#allocation5 + $0xf0] sm:$0xff] }
 0x381   : > { %v14061_v40 = vpop.f32.mrb[237].mxu0  ;;  %v5859_v43 = vadd.f32 %v5827_v5, %v5772_v19  ;;  %6336 = vst.msk [vmem:[#allocation5 + $0xa0] sm:$0xff] %vm327_vm2, %v6304_v1  ;;  %v6275_v10 = vld [vmem:[#allocation5 + $0xb8] sm:$0xff] }
 0x382   : > { %5892 = vst.msk [vmem:[#allocation5 + $0xd8] sm:$0xff] %vm327_vm2, %v5860_v13  ;;  %v6307_v34 = vadd.f32 %v13853_v48, %v6275_v10  ;;  %v6274_v25 = vld [vmem:[#allocation5 + $0xb0] sm:$0xff] }
 0x383   : > { %5891 = vst.msk [vmem:[#allocation5 + $0xd0] sm:$0xff] %vm327_vm2, %v5859_v43  ;;  %v11176_v15 = vpop.f32.mrb[206].mxu1  ;;  %v6306_v29 = vadd.f32 %v6274_v25, %v13856_v46  ;;  %v5832_v46 = vld [vmem:[#allocation5 + $0xf8] sm:$0xff] }
 0x384   : > { %v14068_v16 = vpop.f32.mrb[238].mxu0  ;;  %v5862_v44 = vadd.f32 %v11176_v15, %v5830_v22  ;;  %v5782_v18 = vpop.f32.mrb[207].mxu1  ;;  %6339 = vst.msk [vmem:[#allocation5 + $0xb8] sm:$0xff] %vm327_vm2, %v6307_v34  ;;  %v6704_v15 = vld [vmem:[#allocation5] sm:$0xff] }
 0x385   : > { %v14071_v26 = vpop.f32.mrb[239].mxu0  ;;  %v5861_v62 = vadd.f32 %v5829_v42, %v5782_v18  ;;  %6338 = vst.msk [vmem:[#allocation5 + $0xb0] sm:$0xff] %vm327_vm2, %v6306_v29  ;;  %v6277_v48 = vld [vmem:[#allocation5 + $0xc8] sm:$0xff] }
 0x386   : > { %5894 = vst.msk [vmem:[#allocation5 + $0xe8] sm:$0xff] %vm327_vm2, %v5862_v44  ;;  %v6309_v23 = vadd.f32 %v13863_v3, %v6277_v48  ;;  %v6276_v4 = vld [vmem:[#allocation5 + $0xc0] sm:$0xff] }
 0x387   : > { %5893 = vst.msk [vmem:[#allocation5 + $0xe0] sm:$0xff] %vm327_vm2, %v5861_v62  ;;  %v11179_v59 = vpop.f32.mrb[208].mxu1  ;;  %v6308_v51 = vadd.f32 %v6276_v4, %v13866_v27  ;;  %v6705_v27 = vld [vmem:[#allocation5 + $0x8] sm:$0xff] }
 0x388   : > { %v14078_v17 = vpop.f32.mrb[240].mxu0  ;;  %v5864_v24 = vadd.f32 %v11179_v59, %v5832_v46  ;;  %v5792_v60 = vpop.f32.mrb[209].mxu1  ;;  %6341 = vst.msk [vmem:[#allocation5 + $0xc8] sm:$0xff] %vm327_vm2, %v6309_v23  ;;  %v6706_v59 = vld [vmem:[#allocation5 + $0x10] sm:$0xff] }
 0x389   : > { %v14081_v14 = vpop.f32.mrb[241].mxu0  ;;  %v5863_v1 = vadd.f32 %v5831_v63, %v5792_v60  ;;  %6340 = vst.msk [vmem:[#allocation5 + $0xc0] sm:$0xff] %vm327_vm2, %v6308_v51  ;;  %v6279_v3 = vld [vmem:[#allocation5 + $0xd8] sm:$0xff] }
 0x38a   : > { %5896 = vst.msk [vmem:[#allocation5 + $0xf8] sm:$0xff] %vm327_vm2, %v5864_v24  ;;  %v6311_v13 = vadd.f32 %v13873_v38, %v6279_v3  ;;  %v6278_v19 = vld [vmem:[#allocation5 + $0xd0] sm:$0xff] }
 0x38b   : > { %5895 = vst.msk [vmem:[#allocation5 + $0xf0] sm:$0xff] %vm327_vm2, %v5863_v1  ;;  %v11234_v5 = vpop.f32.mrb[210].mxu1  ;;  %v6310_v10 = vadd.f32 %v6278_v19, %v13876_v6  ;;  %v6707_v6 = vld [vmem:[#allocation5 + $0x18] sm:$0xff] }
 0x38c   : > { %v14088_v43 = vpop.f32.mrb[242].mxu0  ;;  %v6737_v34 = vadd.f32 %v11234_v5, %v6705_v27  ;;  %v6545_v25 = vpop.f32.mrb[211].mxu1  ;;  %6343 = vst.msk [vmem:[#allocation5 + $0xd8] sm:$0xff] %vm327_vm2, %v6311_v13  ;;  %v6708_v5 = vld [vmem:[#allocation5 + $0x20] sm:$0xff] }
 0x38d   : > { %v14091_v22 = vpop.f32.mrb[243].mxu0  ;;  %v6736_v29 = vadd.f32 %v6704_v15, %v6545_v25  ;;  %6342 = vst.msk [vmem:[#allocation5 + $0xd0] sm:$0xff] %vm327_vm2, %v6310_v10  ;;  %v6281_v38 = vld [vmem:[#allocation5 + $0xe8] sm:$0xff] }
 0x38e   : > { %6769 = vst.msk [vmem:[#allocation5 + $0x8] sm:$0xff] %vm327_vm2, %v6737_v34  ;;  %v6313_v44 = vadd.f32 %v13883_v47, %v6281_v38  ;;  %v6280_v18 = vld [vmem:[#allocation5 + $0xe0] sm:$0xff] }
 0x38f   : > { %6768 = vst.msk [vmem:[#allocation5] sm:$0xff] %vm327_vm2, %v6736_v29  ;;  %v11237_v42 = vpop.f32.mrb[212].mxu1  ;;  %v6312_v48 = vadd.f32 %v6280_v18, %v13886_v33  ;;  %v6709_v33 = vld [vmem:[#allocation5 + $0x28] sm:$0xff] }
 0x390   : > { %v14098_v62 = vpop.f32.mrb[244].mxu0  ;;  %v6739_v23 = vadd.f32 %v11237_v42, %v6707_v6  ;;  %v6555_v4 = vpop.f32.mrb[213].mxu1  ;;  %6345 = vst.msk [vmem:[#allocation5 + $0xe8] sm:$0xff] %vm327_vm2, %v6313_v44  ;;  %v6710_v42 = vld [vmem:[#allocation5 + $0x30] sm:$0xff] }
 0x391   : > { %v14101_v46 = vpop.f32.mrb[245].mxu0  ;;  %v6738_v51 = vadd.f32 %v6706_v59, %v6555_v4  ;;  %6344 = vst.msk [vmem:[#allocation5 + $0xe0] sm:$0xff] %vm327_vm2, %v6312_v48  ;;  %v6283_v47 = vld [vmem:[#allocation5 + $0xf8] sm:$0xff] }
 0x392   : > { %6771 = vst.msk [vmem:[#allocation5 + $0x18] sm:$0xff] %vm327_vm2, %v6739_v23  ;;  %v6315_v24 = vadd.f32 %v13893_v7, %v6283_v47  ;;  %v6282_v60 = vld [vmem:[#allocation5 + $0xf0] sm:$0xff] }
 0x393   : > { %6770 = vst.msk [vmem:[#allocation5 + $0x10] sm:$0xff] %vm327_vm2, %v6738_v51  ;;  %v11240_v63 = vpop.f32.mrb[214].mxu1  ;;  %v6314_v3 = vadd.f32 %v6282_v60, %v13896_v41  ;;  %v6711_v41 = vld [vmem:[#allocation5 + $0x38] sm:$0xff] }
 0x394   : > { %v14108_v1 = vpop.f32.mrb[246].mxu0  ;;  %v6741_v13 = vadd.f32 %v11240_v63, %v6709_v33  ;;  %v6565_v19 = vpop.f32.mrb[215].mxu1  ;;  %6347 = vst.msk [vmem:[#allocation5 + $0xf8] sm:$0xff] %vm327_vm2, %v6315_v24  ;;  %v6712_v63 = vld [vmem:[#allocation5 + $0x40] sm:$0xff] }
 0x395   : > { %v14111_v27 = vpop.f32.mrb[247].mxu0  ;;  %v6740_v10 = vadd.f32 %v6708_v5, %v6565_v19  ;;  %6346 = vst.msk [vmem:[#allocation5 + $0xf0] sm:$0xff] %vm327_vm2, %v6314_v3  ;;  %v7156_v7 = vld [vmem:[#allocation5 + $0x8] sm:$0xff] }
 0x396   : > { %6773 = vst.msk [vmem:[#allocation5 + $0x28] sm:$0xff] %vm327_vm2, %v6741_v13  ;;  %v7188_v34 = vadd.f32 %v13903_v20, %v7156_v7  ;;  %v7155_v25 = vld [vmem:[#allocation5] sm:$0xff] }
 0x397   : > { %6772 = vst.msk [vmem:[#allocation5 + $0x20] sm:$0xff] %vm327_vm2, %v6740_v10  ;;  %v11243_v15 = vpop.f32.mrb[216].mxu1  ;;  %v7187_v38 = vadd.f32 %v7155_v25, %v13905_v37  ;;  %v6713_v37 = vld [vmem:[#allocation5 + $0x48] sm:$0xff] }
 0x398   : > { %v14118_v29 = vpop.f32.mrb[248].mxu0  ;;  %v6743_v44 = vadd.f32 %v11243_v15, %v6711_v41  ;;  %v6575_v18 = vpop.f32.mrb[217].mxu1  ;;  %7220 = vst.msk [vmem:[#allocation5 + $0x8] sm:$0xff] %vm327_vm2, %v7188_v34  ;;  %v6714_v15 = vld [vmem:[#allocation5 + $0x50] sm:$0xff] }
 0x399   : > { %v14121_v6 = vpop.f32.mrb[249].mxu0  ;;  %v6742_v48 = vadd.f32 %v6710_v42, %v6575_v18  ;;  %7219 = vst.msk [vmem:[#allocation5] sm:$0xff] %vm327_vm2, %v7187_v38  ;;  %v7158_v20 = vld [vmem:[#allocation5 + $0x18] sm:$0xff] }
 0x39a   : > { %6775 = vst.msk [vmem:[#allocation5 + $0x38] sm:$0xff] %vm327_vm2, %v6743_v44  ;;  %v7190_v23 = vadd.f32 %v13913_v12, %v7158_v20  ;;  %v7157_v4 = vld [vmem:[#allocation5 + $0x10] sm:$0xff] }
 0x39b   : > { %6774 = vst.msk [vmem:[#allocation5 + $0x30] sm:$0xff] %vm327_vm2, %v6742_v48  ;;  %v11246_v59 = vpop.f32.mrb[218].mxu1  ;;  %v7189_v47 = vadd.f32 %v7157_v4, %v13915_v36  ;;  %v6715_v36 = vld [vmem:[#allocation5 + $0x58] sm:$0xff] }
 0x39c   : > { %v14128_v51 = vpop.f32.mrb[250].mxu0  ;;  %v6745_v24 = vadd.f32 %v11246_v59, %v6713_v37  ;;  %v6585_v60 = vpop.f32.mrb[219].mxu1  ;;  %7222 = vst.msk [vmem:[#allocation5 + $0x18] sm:$0xff] %vm327_vm2, %v7190_v23  ;;  %v6716_v59 = vld [vmem:[#allocation5 + $0x60] sm:$0xff] }
 0x39d   : > { %v14131_v33 = vpop.f32.mrb[251].mxu0  ;;  %v6744_v3 = vadd.f32 %v6712_v63, %v6585_v60  ;;  %7221 = vst.msk [vmem:[#allocation5 + $0x10] sm:$0xff] %vm327_vm2, %v7189_v47  ;;  %v7160_v12 = vld [vmem:[#allocation5 + $0x28] sm:$0xff] }
 0x39e   : > { %6777 = vst.msk [vmem:[#allocation5 + $0x48] sm:$0xff] %vm327_vm2, %v6745_v24  ;;  %v7192_v13 = vadd.f32 %v13923_v31, %v7160_v12  ;;  %v7159_v19 = vld [vmem:[#allocation5 + $0x20] sm:$0xff] }
 0x39f   : > { %6776 = vst.msk [vmem:[#allocation5 + $0x40] sm:$0xff] %vm327_vm2, %v6744_v3  ;;  %v11249_v5 = vpop.f32.mrb[220].mxu1  ;;  %v7191_v7 = vadd.f32 %v7159_v19, %v13925_v55  ;;  %v6717_v55 = vld [vmem:[#allocation5 + $0x68] sm:$0xff] }
 0x3a0   : > { %v14138_v10 = vpop.f32.mrb[252].mxu0  ;;  %v6747_v34 = vadd.f32 %v11249_v5, %v6715_v36  ;;  %v6595_v25 = vpop.f32.mrb[221].mxu1  ;;  %7224 = vst.msk [vmem:[#allocation5 + $0x28] sm:$0xff] %vm327_vm2, %v7192_v13  ;;  %v6718_v5 = vld [vmem:[#allocation5 + $0x70] sm:$0xff] }
 0x3a1   : > { %v14141_v41 = vpop.f32.mrb[253].mxu0  ;;  %v6746_v38 = vadd.f32 %v6714_v15, %v6595_v25  ;;  %7223 = vst.msk [vmem:[#allocation5 + $0x20] sm:$0xff] %vm327_vm2, %v7191_v7  ;;  %v7162_v31 = vld [vmem:[#allocation5 + $0x38] sm:$0xff] }
 0x3a2   : > { %6779 = vst.msk [vmem:[#allocation5 + $0x58] sm:$0xff] %vm327_vm2, %v6747_v34  ;;  %v7194_v44 = vadd.f32 %v13934_v2, %v7162_v31  ;;  %v7161_v18 = vld [vmem:[#allocation5 + $0x30] sm:$0xff] }
 0x3a3   : > { %6778 = vst.msk [vmem:[#allocation5 + $0x50] sm:$0xff] %vm327_vm2, %v6746_v38  ;;  %v11252_v42 = vpop.f32.mrb[222].mxu1  ;;  %v7193_v20 = vadd.f32 %v7161_v18, %v13937_v58  ;;  %v6719_v58 = vld [vmem:[#allocation5 + $0x78] sm:$0xff] }
 0x3a4   : > { %v14148_v48 = vpop.f32.mrb[254].mxu0  ;;  %v6749_v23 = vadd.f32 %v11252_v42, %v6717_v55  ;;  %v6605_v4 = vpop.f32.mrb[223].mxu1  ;;  %7226 = vst.msk [vmem:[#allocation5 + $0x38] sm:$0xff] %vm327_vm2, %v7194_v44  ;;  %v6720_v42 = vld [vmem:[#allocation5 + $0x80] sm:$0xff] }
 0x3a5   : > { %v14151_v37 = vpop.f32.mrb[255].mxu0  ;;  %v6748_v47 = vadd.f32 %v6716_v59, %v6605_v4  ;;  %7225 = vst.msk [vmem:[#allocation5 + $0x30] sm:$0xff] %vm327_vm2, %v7193_v20  ;;  %v7164_v2 = vld [vmem:[#allocation5 + $0x48] sm:$0xff] }
 0x3a6   : > { %6781 = vst.msk [vmem:[#allocation5 + $0x68] sm:$0xff] %vm327_vm2, %v6749_v23  ;;  %v7196_v24 = vadd.f32 %v13948_v50, %v7164_v2  ;;  %v7163_v60 = vld [vmem:[#allocation5 + $0x40] sm:$0xff] }
 0x3a7   : > { %6780 = vst.msk [vmem:[#allocation5 + $0x60] sm:$0xff] %vm327_vm2, %v6748_v47  ;;  %v11255_v63 = vpop.f32.mrb[224].mxu1  ;;  %v7195_v12 = vadd.f32 %v7163_v60, %v13951_v57  ;;  %v6721_v57 = vld [vmem:[#allocation5 + $0x88] sm:$0xff] }
 0x3a8   : > { %v14158_v3 = vpop.f32.mrb[0].mxu0  ;;  %v6751_v13 = vadd.f32 %v11255_v63, %v6719_v58  ;;  %v6615_v19 = vpop.f32.mrb[225].mxu1  ;;  %7228 = vst.msk [vmem:[#allocation5 + $0x48] sm:$0xff] %vm327_vm2, %v7196_v24  ;;  %v6722_v63 = vld [vmem:[#allocation5 + $0x90] sm:$0xff] }
 0x3a9   : > { %v14161_v36 = vpop.f32.mrb[1].mxu0  ;;  %v6750_v7 = vadd.f32 %v6718_v5, %v6615_v19  ;;  %7227 = vst.msk [vmem:[#allocation5 + $0x40] sm:$0xff] %vm327_vm2, %v7195_v12  ;;  %v7166_v50 = vld [vmem:[#allocation5 + $0x58] sm:$0xff] }
 0x3aa   : > { %6783 = vst.msk [vmem:[#allocation5 + $0x78] sm:$0xff] %vm327_vm2, %v6751_v13  ;;  %v7198_v34 = vadd.f32 %v13962_v39, %v7166_v50  ;;  %v7165_v25 = vld [vmem:[#allocation5 + $0x50] sm:$0xff] }
 0x3ab   : > { %6782 = vst.msk [vmem:[#allocation5 + $0x70] sm:$0xff] %vm327_vm2, %v6750_v7  ;;  %v11258_v15 = vpop.f32.mrb[226].mxu1  ;;  %v7197_v31 = vadd.f32 %v7165_v25, %v13965_v53  ;;  %v6723_v53 = vld [vmem:[#allocation5 + $0x98] sm:$0xff] }
 0x3ac   : > { %v14168_v38 = vpop.f32.mrb[2].mxu0  ;;  %v6753_v44 = vadd.f32 %v11258_v15, %v6721_v57  ;;  %v6625_v18 = vpop.f32.mrb[227].mxu1  ;;  %7230 = vst.msk [vmem:[#allocation5 + $0x58] sm:$0xff] %vm327_vm2, %v7198_v34  ;;  %v6724_v15 = vld [vmem:[#allocation5 + $0xa0] sm:$0xff] }
 0x3ad   : > { %v14171_v55 = vpop.f32.mrb[3].mxu0  ;;  %v6752_v20 = vadd.f32 %v6720_v42, %v6625_v18  ;;  %7229 = vst.msk [vmem:[#allocation5 + $0x50] sm:$0xff] %vm327_vm2, %v7197_v31  ;;  %v7168_v39 = vld [vmem:[#allocation5 + $0x68] sm:$0xff] }
 0x3ae   : > { %6785 = vst.msk [vmem:[#allocation5 + $0x88] sm:$0xff] %vm327_vm2, %v6753_v44  ;;  %v7200_v23 = vadd.f32 %v13976_v21, %v7168_v39  ;;  %v7167_v4 = vld [vmem:[#allocation5 + $0x60] sm:$0xff] }
 0x3af   : > { %6784 = vst.msk [vmem:[#allocation5 + $0x80] sm:$0xff] %vm327_vm2, %v6752_v20  ;;  %v11261_v59 = vpop.f32.mrb[228].mxu1  ;;  %v7199_v2 = vadd.f32 %v7167_v4, %v13979_v32  ;;  %v6725_v32 = vld [vmem:[#allocation5 + $0xa8] sm:$0xff] }
 0x3b0   : > { %v14178_v47 = vpop.f32.mrb[4].mxu0  ;;  %v6755_v24 = vadd.f32 %v11261_v59, %v6723_v53  ;;  %v6635_v60 = vpop.f32.mrb[229].mxu1  ;;  %7232 = vst.msk [vmem:[#allocation5 + $0x68] sm:$0xff] %vm327_vm2, %v7200_v23  ;;  %v6726_v59 = vld [vmem:[#allocation5 + $0xb0] sm:$0xff] }
 0x3b1   : > { %v14181_v58 = vpop.f32.mrb[5].mxu0  ;;  %v6754_v12 = vadd.f32 %v6722_v63, %v6635_v60  ;;  %7231 = vst.msk [vmem:[#allocation5 + $0x60] sm:$0xff] %vm327_vm2, %v7199_v2  ;;  %v7170_v21 = vld [vmem:[#allocation5 + $0x78] sm:$0xff] }
 0x3b2   : > { %6787 = vst.msk [vmem:[#allocation5 + $0x98] sm:$0xff] %vm327_vm2, %v6755_v24  ;;  %v7202_v13 = vadd.f32 %v13990_v8, %v7170_v21  ;;  %v7169_v19 = vld [vmem:[#allocation5 + $0x70] sm:$0xff] }
 0x3b3   : > { %6786 = vst.msk [vmem:[#allocation5 + $0x90] sm:$0xff] %vm327_vm2, %v6754_v12  ;;  %v11264_v5 = vpop.f32.mrb[230].mxu1  ;;  %v7201_v50 = vadd.f32 %v7169_v19, %v13993_v28  ;;  %v6727_v28 = vld [vmem:[#allocation5 + $0xb8] sm:$0xff] }
 0x3b4   : > { %v14188_v7 = vpop.f32.mrb[6].mxu0  ;;  %v6757_v34 = vadd.f32 %v11264_v5, %v6725_v32  ;;  %v6645_v25 = vpop.f32.mrb[231].mxu1  ;;  %7234 = vst.msk [vmem:[#allocation5 + $0x78] sm:$0xff] %vm327_vm2, %v7202_v13  ;;  %v6728_v5 = vld [vmem:[#allocation5 + $0xc0] sm:$0xff] }
 0x3b5   : > { %v14191_v57 = vpop.f32.mrb[7].mxu0  ;;  %v6756_v31 = vadd.f32 %v6724_v15, %v6645_v25  ;;  %7233 = vst.msk [vmem:[#allocation5 + $0x70] sm:$0xff] %vm327_vm2, %v7201_v50  ;;  %v7172_v8 = vld [vmem:[#allocation5 + $0x88] sm:$0xff] }
 0x3b6   : > { %6789 = vst.msk [vmem:[#allocation5 + $0xa8] sm:$0xff] %vm327_vm2, %v6757_v34  ;;  %v7204_v44 = vadd.f32 %v14003_v0, %v7172_v8  ;;  %v7171_v18 = vld [vmem:[#allocation5 + $0x80] sm:$0xff] }
 0x3b7   : > { %6788 = vst.msk [vmem:[#allocation5 + $0xa0] sm:$0xff] %vm327_vm2, %v6756_v31  ;;  %v11267_v42 = vpop.f32.mrb[232].mxu1  ;;  %v7203_v39 = vadd.f32 %v7171_v18, %v14006_v61  ;;  %v6729_v61 = vld [vmem:[#allocation5 + $0xc8] sm:$0xff] }
 0x3b8   : > { %v14198_v20 = vpop.f32.mrb[8].mxu0  ;;  %v6759_v23 = vadd.f32 %v11267_v42, %v6727_v28  ;;  %v6655_v4 = vpop.f32.mrb[233].mxu1  ;;  %7236 = vst.msk [vmem:[#allocation5 + $0x88] sm:$0xff] %vm327_vm2, %v7204_v44  ;;  %v6730_v42 = vld [vmem:[#allocation5 + $0xd0] sm:$0xff] }
 0x3b9   : > { %v14201_v53 = vpop.f32.mrb[9].mxu0  ;;  %v6758_v2 = vadd.f32 %v6726_v59, %v6655_v4  ;;  %7235 = vst.msk [vmem:[#allocation5 + $0x80] sm:$0xff] %vm327_vm2, %v7203_v39  ;;  %v7174_v0 = vld [vmem:[#allocation5 + $0x98] sm:$0xff] }
 0x3ba   : > { %6791 = vst.msk [vmem:[#allocation5 + $0xb8] sm:$0xff] %vm327_vm2, %v6759_v23  ;;  %v7206_v24 = vadd.f32 %v14015_v30, %v7174_v0  ;;  %v7173_v60 = vld [vmem:[#allocation5 + $0x90] sm:$0xff] }
 0x3bb   : > { %6790 = vst.msk [vmem:[#allocation5 + $0xb0] sm:$0xff] %vm327_vm2, %v6758_v2  ;;  %v11270_v63 = vpop.f32.mrb[234].mxu1  ;;  %v7205_v21 = vadd.f32 %v7173_v60, %v14018_v52  ;;  %v6731_v52 = vld [vmem:[#allocation5 + $0xd8] sm:$0xff] }
 0x3bc   : > { %v14208_v12 = vpop.f32.mrb[10].mxu0  ;;  %v6761_v13 = vadd.f32 %v11270_v63, %v6729_v61  ;;  %v6665_v19 = vpop.f32.mrb[235].mxu1  ;;  %7238 = vst.msk [vmem:[#allocation5 + $0x98] sm:$0xff] %vm327_vm2, %v7206_v24  ;;  %v6732_v63 = vld [vmem:[#allocation5 + $0xe0] sm:$0xff] }
 0x3bd   : > { %v14211_v32 = vpop.f32.mrb[11].mxu0  ;;  %v6760_v50 = vadd.f32 %v6728_v5, %v6665_v19  ;;  %7237 = vst.msk [vmem:[#allocation5 + $0x90] sm:$0xff] %vm327_vm2, %v7205_v21  ;;  %v7176_v30 = vld [vmem:[#allocation5 + $0xa8] sm:$0xff] }
 0x3be   : > { %6793 = vst.msk [vmem:[#allocation5 + $0xc8] sm:$0xff] %vm327_vm2, %v6761_v13  ;;  %v7208_v34 = vadd.f32 %v14027_v49, %v7176_v30  ;;  %v7175_v25 = vld [vmem:[#allocation5 + $0xa0] sm:$0xff] }
 0x3bf   : > { %6792 = vst.msk [vmem:[#allocation5 + $0xc0] sm:$0xff] %vm327_vm2, %v6760_v50  ;;  %v11273_v15 = vpop.f32.mrb[236].mxu1  ;;  %v7207_v8 = vadd.f32 %v7175_v25, %v14030_v56  ;;  %v6733_v56 = vld [vmem:[#allocation5 + $0xe8] sm:$0xff] }
 0x3c0   : > { %v14218_v31 = vpop.f32.mrb[12].mxu0  ;;  %v6763_v44 = vadd.f32 %v11273_v15, %v6731_v52  ;;  %v6675_v18 = vpop.f32.mrb[237].mxu1  ;;  %7240 = vst.msk [vmem:[#allocation5 + $0xa8] sm:$0xff] %vm327_vm2, %v7208_v34  ;;  %v6734_v15 = vld [vmem:[#allocation5 + $0xf0] sm:$0xff] }
 0x3c1   : > { %v14221_v28 = vpop.f32.mrb[13].mxu0  ;;  %v6762_v39 = vadd.f32 %v6730_v42, %v6675_v18  ;;  %7239 = vst.msk [vmem:[#allocation5 + $0xa0] sm:$0xff] %vm327_vm2, %v7207_v8  ;;  %v7178_v49 = vld [vmem:[#allocation5 + $0xb8] sm:$0xff] }
 0x3c2   : > { %6795 = vst.msk [vmem:[#allocation5 + $0xd8] sm:$0xff] %vm327_vm2, %v6763_v44  ;;  %v7210_v23 = vadd.f32 %v14038_v45, %v7178_v49  ;;  %v7177_v4 = vld [vmem:[#allocation5 + $0xb0] sm:$0xff] }
 0x3c3   : > { %6794 = vst.msk [vmem:[#allocation5 + $0xd0] sm:$0xff] %vm327_vm2, %v6762_v39  ;;  %v11276_v59 = vpop.f32.mrb[238].mxu1  ;;  %v7209_v0 = vadd.f32 %v7177_v4, %v14041_v35  ;;  %v6735_v35 = vld [vmem:[#allocation5 + $0xf8] sm:$0xff] }
 0x3c4   : > { %v14228_v2 = vpop.f32.mrb[14].mxu0  ;;  %v6765_v24 = vadd.f32 %v11276_v59, %v6733_v56  ;;  %v6685_v60 = vpop.f32.mrb[239].mxu1  ;;  %7242 = vst.msk [vmem:[#allocation5 + $0xb8] sm:$0xff] %vm327_vm2, %v7210_v23  ;;  %v7606_v59 = vld [vmem:[#allocation5] sm:$0xff] }
 0x3c5   : > { %v14231_v61 = vpop.f32.mrb[15].mxu0  ;;  %v6764_v21 = vadd.f32 %v6732_v63, %v6685_v60  ;;  %7241 = vst.msk [vmem:[#allocation5 + $0xb0] sm:$0xff] %vm327_vm2, %v7209_v0  ;;  %v7180_v45 = vld [vmem:[#allocation5 + $0xc8] sm:$0xff] }
 0x3c6   : > { %6797 = vst.msk [vmem:[#allocation5 + $0xe8] sm:$0xff] %vm327_vm2, %v6765_v24  ;;  %v7212_v13 = vadd.f32 %v14048_v9, %v7180_v45  ;;  %v7179_v19 = vld [vmem:[#allocation5 + $0xc0] sm:$0xff] }
 0x3c7   : > { %6796 = vst.msk [vmem:[#allocation5 + $0xe0] sm:$0xff] %vm327_vm2, %v6764_v21  ;;  %v11279_v5 = vpop.f32.mrb[240].mxu1  ;;  %v7211_v30 = vadd.f32 %v7179_v19, %v14051_v11  ;;  %v7607_v11 = vld [vmem:[#allocation5 + $0x8] sm:$0xff] }
 0x3c8   : > { %v14238_v50 = vpop.f32.mrb[16].mxu0  ;;  %v6767_v34 = vadd.f32 %v11279_v5, %v6735_v35  ;;  %v6695_v25 = vpop.f32.mrb[241].mxu1  ;;  %7244 = vst.msk [vmem:[#allocation5 + $0xc8] sm:$0xff] %vm327_vm2, %v7212_v13  ;;  %v7608_v5 = vld [vmem:[#allocation5 + $0x10] sm:$0xff] }
 0x3c9   : > { %v14241_v52 = vpop.f32.mrb[17].mxu0  ;;  %v6766_v8 = vadd.f32 %v6734_v15, %v6695_v25  ;;  %7243 = vst.msk [vmem:[#allocation5 + $0xc0] sm:$0xff] %vm327_vm2, %v7211_v30  ;;  %v7182_v9 = vld [vmem:[#allocation5 + $0xd8] sm:$0xff] }
 0x3ca   : > { %6799 = vst.msk [vmem:[#allocation5 + $0xf8] sm:$0xff] %vm327_vm2, %v6767_v34  ;;  %v7214_v44 = vadd.f32 %v14058_v54, %v7182_v9  ;;  %v7181_v18 = vld [vmem:[#allocation5 + $0xd0] sm:$0xff] }
 0x3cb   : > { %6798 = vst.msk [vmem:[#allocation5 + $0xf0] sm:$0xff] %vm327_vm2, %v6766_v8  ;;  %v11334_v42 = vpop.f32.mrb[242].mxu1  ;;  %v7213_v49 = vadd.f32 %v7181_v18, %v14061_v40  ;;  %v7609_v40 = vld [vmem:[#allocation5 + $0x18] sm:$0xff] }
 0x3cc   : > { %v14248_v39 = vpop.f32.mrb[18].mxu0  ;;  %v7639_v23 = vadd.f32 %v11334_v42, %v7607_v11  ;;  %v7447_v4 = vpop.f32.mrb[243].mxu1  ;;  %7246 = vst.msk [vmem:[#allocation5 + $0xd8] sm:$0xff] %vm327_vm2, %v7214_v44  ;;  %v7610_v42 = vld [vmem:[#allocation5 + $0x20] sm:$0xff] }
 0x3cd   : > { %v14251_v56 = vpop.f32.mrb[19].mxu0  ;;  %v7638_v0 = vadd.f32 %v7606_v59, %v7447_v4  ;;  %7245 = vst.msk [vmem:[#allocation5 + $0xd0] sm:$0xff] %vm327_vm2, %v7213_v49  ;;  %v7184_v54 = vld [vmem:[#allocation5 + $0xe8] sm:$0xff] }
 0x3ce   : > { %7671 = vst.msk [vmem:[#allocation5 + $0x8] sm:$0xff] %vm327_vm2, %v7639_v23  ;;  %v7216_v24 = vadd.f32 %v14068_v16, %v7184_v54  ;;  %v7183_v60 = vld [vmem:[#allocation5 + $0xe0] sm:$0xff] }
 0x3cf   : > { %7670 = vst.msk [vmem:[#allocation5] sm:$0xff] %vm327_vm2, %v7638_v0  ;;  %v11337_v63 = vpop.f32.mrb[244].mxu1  ;;  %v7215_v45 = vadd.f32 %v7183_v60, %v14071_v26  ;;  %v7611_v26 = vld [vmem:[#allocation5 + $0x28] sm:$0xff] }
 0x3d0   : > { %v14258_v21 = vpop.f32.mrb[20].mxu0  ;;  %v7641_v13 = vadd.f32 %v11337_v63, %v7609_v40  ;;  %v7457_v19 = vpop.f32.mrb[245].mxu1  ;;  %7248 = vst.msk [vmem:[#allocation5 + $0xe8] sm:$0xff] %vm327_vm2, %v7216_v24  ;;  %v7612_v63 = vld [vmem:[#allocation5 + $0x30] sm:$0xff] }
 0x3d1   : > { %v14261_v35 = vpop.f32.mrb[21].mxu0  ;;  %v7640_v30 = vadd.f32 %v7608_v5, %v7457_v19  ;;  %7247 = vst.msk [vmem:[#allocation5 + $0xe0] sm:$0xff] %vm327_vm2, %v7215_v45  ;;  %v7186_v16 = vld [vmem:[#allocation5 + $0xf8] sm:$0xff] }
 0x3d2   : > { %7673 = vst.msk [vmem:[#allocation5 + $0x18] sm:$0xff] %vm327_vm2, %v7641_v13  ;;  %v7218_v34 = vadd.f32 %v14078_v17, %v7186_v16  ;;  %v7185_v25 = vld [vmem:[#allocation5 + $0xf0] sm:$0xff] }
 0x3d3   : > { %7672 = vst.msk [vmem:[#allocation5 + $0x10] sm:$0xff] %vm327_vm2, %v7640_v30  ;;  %v11340_v15 = vpop.f32.mrb[246].mxu1  ;;  %v7217_v9 = vadd.f32 %v7185_v25, %v14081_v14  ;;  %v7613_v14 = vld [vmem:[#allocation5 + $0x38] sm:$0xff] }
 0x3d4   : > { %v14268_v8 = vpop.f32.mrb[22].mxu0  ;;  %v7643_v44 = vadd.f32 %v11340_v15, %v7611_v26  ;;  %v7467_v18 = vpop.f32.mrb[247].mxu1  ;;  %7250 = vst.msk [vmem:[#allocation5 + $0xf8] sm:$0xff] %vm327_vm2, %v7218_v34  ;;  %v7614_v15 = vld [vmem:[#allocation5 + $0x40] sm:$0xff] }
 0x3d5   : > { %v14271_v11 = vpop.f32.mrb[23].mxu0  ;;  %v7642_v49 = vadd.f32 %v7610_v42, %v7467_v18  ;;  %7249 = vst.msk [vmem:[#allocation5 + $0xf0] sm:$0xff] %vm327_vm2, %v7217_v9  ;;  %v8059_v17 = vld [vmem:[#allocation5 + $0x8] sm:$0xff] }
 0x3d6   : > { %7675 = vst.msk [vmem:[#allocation5 + $0x28] sm:$0xff] %vm327_vm2, %v7643_v44  ;;  %v8091_v23 = vadd.f32 %v14088_v43, %v8059_v17  ;;  %v8058_v4 = vld [vmem:[#allocation5] sm:$0xff] }
 0x3d7   : > { %7674 = vst.msk [vmem:[#allocation5 + $0x20] sm:$0xff] %vm327_vm2, %v7642_v49  ;;  %v11343_v59 = vpop.f32.mrb[248].mxu1  ;;  %v8090_v54 = vadd.f32 %v8058_v4, %v14091_v22  ;;  %v7615_v22 = vld [vmem:[#allocation5 + $0x48] sm:$0xff] }
 0x3d8   : > { %v14278_v0 = vpop.f32.mrb[24].mxu0  ;;  %v7645_v24 = vadd.f32 %v11343_v59, %v7613_v14  ;;  %v7477_v60 = vpop.f32.mrb[249].mxu1  ;;  %8123 = vst.msk [vmem:[#allocation5 + $0x8] sm:$0xff] %vm327_vm2, %v8091_v23  ;;  %v7616_v59 = vld [vmem:[#allocation5 + $0x50] sm:$0xff] }
 0x3d9   : > { %v14281_v40 = vpop.f32.mrb[25].mxu0  ;;  %v7644_v45 = vadd.f32 %v7612_v63, %v7477_v60  ;;  %8122 = vst.msk [vmem:[#allocation5] sm:$0xff] %vm327_vm2, %v8090_v54  ;;  %v8061_v43 = vld [vmem:[#allocation5 + $0x18] sm:$0xff] }
 0x3da   : > { %7677 = vst.msk [vmem:[#allocation5 + $0x38] sm:$0xff] %vm327_vm2, %v7645_v24  ;;  %v8093_v13 = vadd.f32 %v14098_v62, %v8061_v43  ;;  %v8060_v19 = vld [vmem:[#allocation5 + $0x10] sm:$0xff] }
 0x3db   : > { %7676 = vst.msk [vmem:[#allocation5 + $0x30] sm:$0xff] %vm327_vm2, %v7644_v45  ;;  %v11346_v5 = vpop.f32.mrb[250].mxu1  ;;  %v8092_v16 = vadd.f32 %v8060_v19, %v14101_v46  ;;  %v7617_v46 = vld [vmem:[#allocation5 + $0x58] sm:$0xff] }
 0x3dc   : > { %v14288_v30 = vpop.f32.mrb[26].mxu0  ;;  %v7647_v34 = vadd.f32 %v11346_v5, %v7615_v22  ;;  %v7487_v25 = vpop.f32.mrb[251].mxu1  ;;  %8125 = vst.msk [vmem:[#allocation5 + $0x18] sm:$0xff] %vm327_vm2, %v8093_v13  ;;  %v7618_v5 = vld [vmem:[#allocation5 + $0x60] sm:$0xff] }
 0x3dd   : > { %v14291_v26 = vpop.f32.mrb[27].mxu0  ;;  %v7646_v9 = vadd.f32 %v7614_v15, %v7487_v25  ;;  %8124 = vst.msk [vmem:[#allocation5 + $0x10] sm:$0xff] %vm327_vm2, %v8092_v16  ;;  %v8063_v62 = vld [vmem:[#allocation5 + $0x28] sm:$0xff] }
 0x3de   : > { %7679 = vst.msk [vmem:[#allocation5 + $0x48] sm:$0xff] %vm327_vm2, %v7647_v34  ;;  %v8095_v44 = vadd.f32 %v14108_v1, %v8063_v62  ;;  %v8062_v18 = vld [vmem:[#allocation5 + $0x20] sm:$0xff] }
 0x3df   : > { %7678 = vst.msk [vmem:[#allocation5 + $0x40] sm:$0xff] %vm327_vm2, %v7646_v9  ;;  %v11349_v42 = vpop.f32.mrb[252].mxu1  ;;  %v8094_v17 = vadd.f32 %v8062_v18, %v14111_v27  ;;  %v7619_v27 = vld [vmem:[#allocation5 + $0x68] sm:$0xff] }
 0x3e0   : > { %v14298_v49 = vpop.f32.mrb[28].mxu0  ;;  %v7649_v23 = vadd.f32 %v11349_v42, %v7617_v46  ;;  %v7497_v4 = vpop.f32.mrb[253].mxu1  ;;  %8127 = vst.msk [vmem:[#allocation5 + $0x28] sm:$0xff] %vm327_vm2, %v8095_v44  ;;  %v7620_v42 = vld [vmem:[#allocation5 + $0x70] sm:$0xff] }
 0x3e1   : > { %v14301_v14 = vpop.f32.mrb[29].mxu0  ;;  %v7648_v54 = vadd.f32 %v7616_v59, %v7497_v4  ;;  %8126 = vst.msk [vmem:[#allocation5 + $0x20] sm:$0xff] %vm327_vm2, %v8094_v17  ;;  %v8065_v1 = vld [vmem:[#allocation5 + $0x38] sm:$0xff] }
 0x3e2   : > { %7681 = vst.msk [vmem:[#allocation5 + $0x58] sm:$0xff] %vm327_vm2, %v7649_v23  ;;  %v8097_v24 = vadd.f32 %v14118_v29, %v8065_v1  ;;  %v8064_v60 = vld [vmem:[#allocation5 + $0x30] sm:$0xff] }
 0x3e3   : > { %7680 = vst.msk [vmem:[#allocation5 + $0x50] sm:$0xff] %vm327_vm2, %v7648_v54  ;;  %v11352_v63 = vpop.f32.mrb[254].mxu1  ;;  %v8096_v43 = vadd.f32 %v8064_v60, %v14121_v6  ;;  %v7621_v6 = vld [vmem:[#allocation5 + $0x78] sm:$0xff] }
 0x3e4   : > { %v14308_v45 = vpop.f32.mrb[30].mxu0  ;;  %v7651_v13 = vadd.f32 %v11352_v63, %v7619_v27  ;;  %v7507_v19 = vpop.f32.mrb[255].mxu1  ;;  %8129 = vst.msk [vmem:[#allocation5 + $0x38] sm:$0xff] %vm327_vm2, %v8097_v24  ;;  %v7622_v63 = vld [vmem:[#allocation5 + $0x80] sm:$0xff] }
 0x3e5   : > { %v14311_v22 = vpop.f32.mrb[31].mxu0  ;;  %v7650_v16 = vadd.f32 %v7618_v5, %v7507_v19  ;;  %8128 = vst.msk [vmem:[#allocation5 + $0x30] sm:$0xff] %vm327_vm2, %v8096_v43  ;;  %v8067_v29 = vld [vmem:[#allocation5 + $0x48] sm:$0xff] }
 0x3e6   : > { %7683 = vst.msk [vmem:[#allocation5 + $0x68] sm:$0xff] %vm327_vm2, %v7651_v13  ;;  %v8099_v34 = vadd.f32 %v14128_v51, %v8067_v29  ;;  %v8066_v25 = vld [vmem:[#allocation5 + $0x40] sm:$0xff] }
 0x3e7   : > { %7682 = vst.msk [vmem:[#allocation5 + $0x60] sm:$0xff] %vm327_vm2, %v7650_v16  ;;  %v11355_v15 = vpop.f32.mrb[0].mxu1  ;;  %v8098_v62 = vadd.f32 %v8066_v25, %v14131_v33  ;;  %v7623_v33 = vld [vmem:[#allocation5 + $0x88] sm:$0xff] }
 0x3e8   : > { %v14318_v9 = vpop.f32.mrb[32].mxu0  ;;  %v7653_v44 = vadd.f32 %v11355_v15, %v7621_v6  ;;  %v7517_v18 = vpop.f32.mrb[1].mxu1  ;;  %8131 = vst.msk [vmem:[#allocation5 + $0x48] sm:$0xff] %vm327_vm2, %v8099_v34  ;;  %v7624_v15 = vld [vmem:[#allocation5 + $0x90] sm:$0xff] }
 0x3e9   : > { %v14321_v46 = vpop.f32.mrb[33].mxu0  ;;  %v7652_v17 = vadd.f32 %v7620_v42, %v7517_v18  ;;  %8130 = vst.msk [vmem:[#allocation5 + $0x40] sm:$0xff] %vm327_vm2, %v8098_v62  ;;  %v8069_v51 = vld [vmem:[#allocation5 + $0x58] sm:$0xff] }
 0x3ea   : > { %7685 = vst.msk [vmem:[#allocation5 + $0x78] sm:$0xff] %vm327_vm2, %v7653_v44  ;;  %v8101_v23 = vadd.f32 %v14138_v10, %v8069_v51  ;;  %v8068_v4 = vld [vmem:[#allocation5 + $0x50] sm:$0xff] }
 0x3eb   : > { %7684 = vst.msk [vmem:[#allocation5 + $0x70] sm:$0xff] %vm327_vm2, %v7652_v17  ;;  %v11358_v59 = vpop.f32.mrb[2].mxu1  ;;  %v8100_v1 = vadd.f32 %v8068_v4, %v14141_v41  ;;  %v7625_v41 = vld [vmem:[#allocation5 + $0x98] sm:$0xff] }
 0x3ec   : > { %v14328_v54 = vpop.f32.mrb[34].mxu0  ;;  %v7655_v24 = vadd.f32 %v11358_v59, %v7623_v33  ;;  %v7527_v60 = vpop.f32.mrb[3].mxu1  ;;  %8133 = vst.msk [vmem:[#allocation5 + $0x58] sm:$0xff] %vm327_vm2, %v8101_v23  ;;  %v7626_v59 = vld [vmem:[#allocation5 + $0xa0] sm:$0xff] }
 0x3ed   : > { %v14331_v27 = vpop.f32.mrb[35].mxu0  ;;  %v7654_v43 = vadd.f32 %v7622_v63, %v7527_v60  ;;  %8132 = vst.msk [vmem:[#allocation5 + $0x50] sm:$0xff] %vm327_vm2, %v8100_v1  ;;  %v8071_v10 = vld [vmem:[#allocation5 + $0x68] sm:$0xff] }
 0x3ee   : > { %7687 = vst.msk [vmem:[#allocation5 + $0x88] sm:$0xff] %vm327_vm2, %v7655_v24  ;;  %v8103_v13 = vadd.f32 %v14148_v48, %v8071_v10  ;;  %v8070_v19 = vld [vmem:[#allocation5 + $0x60] sm:$0xff] }
 0x3ef   : > { %7686 = vst.msk [vmem:[#allocation5 + $0x80] sm:$0xff] %vm327_vm2, %v7654_v43  ;;  %v11361_v5 = vpop.f32.mrb[4].mxu1  ;;  %v8102_v29 = vadd.f32 %v8070_v19, %v14151_v37  ;;  %v7627_v37 = vld [vmem:[#allocation5 + $0xa8] sm:$0xff] }
 0x3f0   : > { %v14338_v16 = vpop.f32.mrb[36].mxu0  ;;  %v7657_v34 = vadd.f32 %v11361_v5, %v7625_v41  ;;  %v7537_v25 = vpop.f32.mrb[5].mxu1  ;;  %8135 = vst.msk [vmem:[#allocation5 + $0x68] sm:$0xff] %vm327_vm2, %v8103_v13  ;;  %v7628_v5 = vld [vmem:[#allocation5 + $0xb0] sm:$0xff] }
 0x3f1   : > { %v14341_v6 = vpop.f32.mrb[37].mxu0  ;;  %v7656_v62 = vadd.f32 %v7624_v15, %v7537_v25  ;;  %8134 = vst.msk [vmem:[#allocation5 + $0x60] sm:$0xff] %vm327_vm2, %v8102_v29  ;;  %v8073_v48 = vld [vmem:[#allocation5 + $0x78] sm:$0xff] }
 0x3f2   : > { %7689 = vst.msk [vmem:[#allocation5 + $0x98] sm:$0xff] %vm327_vm2, %v7657_v34  ;;  %v8105_v44 = vadd.f32 %v14158_v3, %v8073_v48  ;;  %v8072_v18 = vld [vmem:[#allocation5 + $0x70] sm:$0xff] }
 0x3f3   : > { %7688 = vst.msk [vmem:[#allocation5 + $0x90] sm:$0xff] %vm327_vm2, %v7656_v62  ;;  %v11364_v42 = vpop.f32.mrb[6].mxu1  ;;  %v8104_v51 = vadd.f32 %v8072_v18, %v14161_v36  ;;  %v7629_v36 = vld [vmem:[#allocation5 + $0xb8] sm:$0xff] }
 0x3f4   : > { %v14348_v17 = vpop.f32.mrb[38].mxu0  ;;  %v7659_v23 = vadd.f32 %v11364_v42, %v7627_v37  ;;  %v7547_v4 = vpop.f32.mrb[7].mxu1  ;;  %8137 = vst.msk [vmem:[#allocation5 + $0x78] sm:$0xff] %vm327_vm2, %v8105_v44  ;;  %v7630_v42 = vld [vmem:[#allocation5 + $0xc0] sm:$0xff] }
 0x3f5   : > { %v14351_v33 = vpop.f32.mrb[39].mxu0  ;;  %v7658_v1 = vadd.f32 %v7626_v59, %v7547_v4  ;;  %8136 = vst.msk [vmem:[#allocation5 + $0x70] sm:$0xff] %vm327_vm2, %v8104_v51  ;;  %v8075_v3 = vld [vmem:[#allocation5 + $0x88] sm:$0xff] }
 0x3f6   : > { %7691 = vst.msk [vmem:[#allocation5 + $0xa8] sm:$0xff] %vm327_vm2, %v7659_v23  ;;  %v8107_v24 = vadd.f32 %v14168_v38, %v8075_v3  ;;  %v8074_v60 = vld [vmem:[#allocation5 + $0x80] sm:$0xff] }
 0x3f7   : > { %7690 = vst.msk [vmem:[#allocation5 + $0xa0] sm:$0xff] %vm327_vm2, %v7658_v1  ;;  %v11367_v63 = vpop.f32.mrb[8].mxu1  ;;  %v8106_v10 = vadd.f32 %v8074_v60, %v14171_v55  ;;  %v7631_v55 = vld [vmem:[#allocation5 + $0xc8] sm:$0xff] }
 0x3f8   : > { %v14358_v43 = vpop.f32.mrb[40].mxu0  ;;  %v7661_v13 = vadd.f32 %v11367_v63, %v7629_v36  ;;  %v7557_v19 = vpop.f32.mrb[9].mxu1  ;;  %8139 = vst.msk [vmem:[#allocation5 + $0x88] sm:$0xff] %vm327_vm2, %v8107_v24  ;;  %v7632_v63 = vld [vmem:[#allocation5 + $0xd0] sm:$0xff] }
 0x3f9   : > { %v14361_v41 = vpop.f32.mrb[41].mxu0  ;;  %v7660_v29 = vadd.f32 %v7628_v5, %v7557_v19  ;;  %8138 = vst.msk [vmem:[#allocation5 + $0x80] sm:$0xff] %vm327_vm2, %v8106_v10  ;;  %v8077_v38 = vld [vmem:[#allocation5 + $0x98] sm:$0xff] }
 0x3fa   : > { %7693 = vst.msk [vmem:[#allocation5 + $0xb8] sm:$0xff] %vm327_vm2, %v7661_v13  ;;  %v8109_v34 = vadd.f32 %v14178_v47, %v8077_v38  ;;  %v8076_v25 = vld [vmem:[#allocation5 + $0x90] sm:$0xff] }
 0x3fb   : > { %7692 = vst.msk [vmem:[#allocation5 + $0xb0] sm:$0xff] %vm327_vm2, %v7660_v29  ;;  %v11370_v15 = vpop.f32.mrb[10].mxu1  ;;  %v8108_v48 = vadd.f32 %v8076_v25, %v14181_v58  ;;  %v7633_v58 = vld [vmem:[#allocation5 + $0xd8] sm:$0xff] }
 0x3fc   : > { %v14368_v62 = vpop.f32.mrb[42].mxu0  ;;  %v7663_v44 = vadd.f32 %v11370_v15, %v7631_v55  ;;  %v7567_v18 = vpop.f32.mrb[11].mxu1  ;;  %8141 = vst.msk [vmem:[#allocation5 + $0x98] sm:$0xff] %vm327_vm2, %v8109_v34  ;;  %v7634_v15 = vld [vmem:[#allocation5 + $0xe0] sm:$0xff] }
 0x3fd   : > { %v14371_v37 = vpop.f32.mrb[43].mxu0  ;;  %v7662_v51 = vadd.f32 %v7630_v42, %v7567_v18  ;;  %8140 = vst.msk [vmem:[#allocation5 + $0x90] sm:$0xff] %vm327_vm2, %v8108_v48  ;;  %v8079_v47 = vld [vmem:[#allocation5 + $0xa8] sm:$0xff] }
 0x3fe   : > { %7695 = vst.msk [vmem:[#allocation5 + $0xc8] sm:$0xff] %vm327_vm2, %v7663_v44  ;;  %v8111_v23 = vadd.f32 %v14188_v7, %v8079_v47  ;;  %v8078_v4 = vld [vmem:[#allocation5 + $0xa0] sm:$0xff] }
 0x3ff   : > { %7694 = vst.msk [vmem:[#allocation5 + $0xc0] sm:$0xff] %vm327_vm2, %v7662_v51  ;;  %v11373_v59 = vpop.f32.mrb[12].mxu1  ;;  %v8110_v3 = vadd.f32 %v8078_v4, %v14191_v57  ;;  %v7635_v57 = vld [vmem:[#allocation5 + $0xe8] sm:$0xff] }
 0x400   : > { %v14378_v1 = vpop.f32.mrb[44].mxu0  ;;  %v7665_v24 = vadd.f32 %v11373_v59, %v7633_v58  ;;  %v7577_v60 = vpop.f32.mrb[13].mxu1  ;;  %8143 = vst.msk [vmem:[#allocation5 + $0xa8] sm:$0xff] %vm327_vm2, %v8111_v23  ;;  %v7636_v59 = vld [vmem:[#allocation5 + $0xf0] sm:$0xff] }
 0x401   : > { %v14381_v36 = vpop.f32.mrb[45].mxu0  ;;  %v7664_v10 = vadd.f32 %v7632_v63, %v7577_v60  ;;  %8142 = vst.msk [vmem:[#allocation5 + $0xa0] sm:$0xff] %vm327_vm2, %v8110_v3  ;;  %v8081_v7 = vld [vmem:[#allocation5 + $0xb8] sm:$0xff]  ;;  %v8510_v63 = vld [vmem:[#allocation5 + $0x8] sm:$0xff] }
 0x402   : > { %7697 = vst.msk [vmem:[#allocation5 + $0xd8] sm:$0xff] %vm327_vm2, %v7665_v24  ;;  %v8113_v13 = vadd.f32 %v14198_v20, %v8081_v7  ;;  %v8080_v19 = vld [vmem:[#allocation5 + $0xb0] sm:$0xff] }
 0x403   : > { %7696 = vst.msk [vmem:[#allocation5 + $0xd0] sm:$0xff] %vm327_vm2, %v7664_v10  ;;  %v11376_v5 = vpop.f32.mrb[14].mxu1  ;;  %v8112_v38 = vadd.f32 %v8080_v19, %v14201_v53  ;;  %v7637_v53 = vld [vmem:[#allocation5 + $0xf8] sm:$0xff]  ;;  %v8509_v19 = vld [vmem:[#allocation5] sm:$0xff] }
 0x404   : > { %v14388_v29 = vpop.f32.mrb[46].mxu0  ;;  %v7667_v34 = vadd.f32 %v11376_v5, %v7635_v57  ;;  %v7587_v25 = vpop.f32.mrb[15].mxu1  ;;  %8145 = vst.msk [vmem:[#allocation5 + $0xb8] sm:$0xff] %vm327_vm2, %v8113_v13 }
 0x405   : > { %v14391_v55 = vpop.f32.mrb[47].mxu0  ;;  %v7666_v48 = vadd.f32 %v7634_v15, %v7587_v25  ;;  %8144 = vst.msk [vmem:[#allocation5 + $0xb0] sm:$0xff] %vm327_vm2, %v8112_v38  ;;  %v8083_v20 = vld [vmem:[#allocation5 + $0xc8] sm:$0xff]  ;;  %v8512_v25 = vld [vmem:[#allocation5 + $0x18] sm:$0xff] }
 0x406   : > { %7699 = vst.msk [vmem:[#allocation5 + $0xe8] sm:$0xff] %vm327_vm2, %v7667_v34  ;;  %v8115_v44 = vadd.f32 %v14208_v12, %v8083_v20  ;;  %v8082_v18 = vld [vmem:[#allocation5 + $0xc0] sm:$0xff]  ;;  %v8511_v20 = vld [vmem:[#allocation5 + $0x10] sm:$0xff] }
 0x407   : > { %7698 = vst.msk [vmem:[#allocation5 + $0xe0] sm:$0xff] %vm327_vm2, %v7666_v48  ;;  %v11379_v42 = vpop.f32.mrb[16].mxu1  ;;  %v8114_v51 = vadd.f32 %v8082_v18, %v14211_v32 }
 0x408   : > { %v14399_v47 = vpop.f32.mrb[48].mxu0  ;;  %v7669_v23 = vadd.f32 %v11379_v42, %v7637_v53  ;;  %v7597_v4 = vpop.f32.mrb[17].mxu1  ;;  %8147 = vst.msk [vmem:[#allocation5 + $0xc8] sm:$0xff] %vm327_vm2, %v8115_v44 }
 0x409   : > { %v14402_v58 = vpop.f32.mrb[49].mxu0  ;;  %v7668_v3 = vadd.f32 %v7636_v59, %v7597_v4  ;;  %8146 = vst.msk [vmem:[#allocation5 + $0xc0] sm:$0xff] %vm327_vm2, %v8114_v51  ;;  %v8085_v12 = vld [vmem:[#allocation5 + $0xd8] sm:$0xff]  ;;  %v8514_v51 = vld [vmem:[#allocation5 + $0x28] sm:$0xff]  ;;  %v8513_v59 = vld [vmem:[#allocation5 + $0x20] sm:$0xff] }
 0x40a   : > { %7701 = vst.msk [vmem:[#allocation5 + $0xf8] sm:$0xff] %vm327_vm2, %v7669_v23  ;;  %v8117_v24 = vadd.f32 %v14218_v31, %v8085_v12  ;;  %v8084_v60 = vld [vmem:[#allocation5 + $0xd0] sm:$0xff] }
 0x40b   : > { %7700 = vst.msk [vmem:[#allocation5 + $0xf0] sm:$0xff] %vm327_vm2, %v7668_v3  ;;  %v11434_v32 = vpop.f32.mrb[18].mxu1  ;;  %v8116_v10 = vadd.f32 %v8084_v60, %v14221_v28 }
 0x40c   : > { %v8542_v7 = vadd.f32 %v11434_v32, %v8510_v63  ;;  %v8350_v13 = vpop.f32.mrb[19].mxu1  ;;  %8149 = vst.msk [vmem:[#allocation5 + $0xd8] sm:$0xff] %vm327_vm2, %v8117_v24 }
 0x40d   : > { %v8541_v5 = vadd.f32 %v8509_v19, %v8350_v13  ;;  %8148 = vst.msk [vmem:[#allocation5 + $0xd0] sm:$0xff] %vm327_vm2, %v8116_v10  ;;  %v8087_v57 = vld [vmem:[#allocation5 + $0xe8] sm:$0xff] }
 0x40e   : > { %8574 = vst.msk [vmem:[#allocation5 + $0x8] sm:$0xff] %vm327_vm2, %v8542_v7  ;;  %v8119_v31 = vadd.f32 %v14228_v2, %v8087_v57  ;;  %v8086_v38 = vld [vmem:[#allocation5 + $0xe0] sm:$0xff]  ;;  %v8515_v7 = vld [vmem:[#allocation5 + $0x30] sm:$0xff] }
 0x40f   : > { %8573 = vst.msk [vmem:[#allocation5] sm:$0xff] %vm327_vm2, %v8541_v5  ;;  %v11437_v34 = vpop.f32.mrb[20].mxu1  ;;  %v8118_v28 = vadd.f32 %v8086_v38, %v14231_v61 }
 0x410   : > { %v8544_v15 = vadd.f32 %v11437_v34, %v8512_v25  ;;  %v8360_v48 = vpop.f32.mrb[21].mxu1  ;;  %8151 = vst.msk [vmem:[#allocation5 + $0xe8] sm:$0xff] %vm327_vm2, %v8119_v31  ;;  %v8518_v31 = vld [vmem:[#allocation5 + $0x48] sm:$0xff]  ;;  %v8517_v25 = vld [vmem:[#allocation5 + $0x40] sm:$0xff] }
 0x411   : > { %v8543_v44 = vadd.f32 %v8511_v20, %v8360_v48  ;;  %8150 = vst.msk [vmem:[#allocation5 + $0xe0] sm:$0xff] %vm327_vm2, %v8118_v28  ;;  %v8089_v18 = vld [vmem:[#allocation5 + $0xf8] sm:$0xff]  ;;  %v14437_v28 = vld [vmem:[%s14636_s4] ss:$0 sm:$0xff] }
 0x412   : > { %8576 = vst.msk [vmem:[#allocation5 + $0x18] sm:$0xff] %vm327_vm2, %v8544_v15  ;;  %v8121_v2 = vadd.f32 %v14238_v50, %v8089_v18  ;;  %v8088_v42 = vld [vmem:[#allocation5 + $0xf0] sm:$0xff] }
 0x413   : > { %8575 = vst.msk [vmem:[#allocation5 + $0x10] sm:$0xff] %vm327_vm2, %v8543_v44  ;;  %v11440_v53 = vpop.f32.mrb[22].mxu1  ;;  %v8120_v61 = vadd.f32 %v8088_v42, %v14241_v52  ;;  %v8516_v52 = vld [vmem:[#allocation5 + $0x38] sm:$0xff] }
 0x414   : > { %v8546_v23 = vadd.f32 %v11440_v53, %v8514_v51  ;;  %v8370_v4 = vpop.f32.mrb[23].mxu1  ;;  %8153 = vst.msk [vmem:[#allocation5 + $0xf8] sm:$0xff] %vm327_vm2, %v8121_v2  ;;  %v8520_v2 = vld [vmem:[#allocation5 + $0x58] sm:$0xff] }
 0x415   : > { %v8961_v3 = vld [vmem:[#allocation5 + $0x8] sm:$0xff]  ;;  %v8545_v12 = vadd.f32 %v8513_v59, %v8370_v4  ;;  %8152 = vst.msk [vmem:[#allocation5 + $0xf0] sm:$0xff] %vm327_vm2, %v8120_v61 }
 0x416   : > { %v8993_v24 = vadd.f32 %v14248_v39, %v8961_v3  ;;  %v8960_v60 = vld [vmem:[#allocation5] sm:$0xff]  ;;  %8578 = vst.msk [vmem:[#allocation5 + $0x28] sm:$0xff] %vm327_vm2, %v8546_v23  ;;  %v8519_v23 = vld [vmem:[#allocation5 + $0x50] sm:$0xff] }
 0x417   : > { %v8992_v50 = vadd.f32 %v8960_v60, %v14251_v56  ;;  %8577 = vst.msk [vmem:[#allocation5 + $0x20] sm:$0xff] %vm327_vm2, %v8545_v12  ;;  %v11443_v32 = vpop.f32.mrb[24].mxu1 }
 0x418   : > { %9025 = vst.msk [vmem:[#allocation5 + $0x8] sm:$0xff] %vm327_vm2, %v8993_v24  ;;  %v8548_v63 = vadd.f32 %v11443_v32, %v8516_v52  ;;  %v8380_v10 = vpop.f32.mrb[25].mxu1  ;;  %v8522_v52 = vld [vmem:[#allocation5 + $0x68] sm:$0xff] }
 0x419   : > { %9024 = vst.msk [vmem:[#allocation5] sm:$0xff] %vm327_vm2, %v8992_v50  ;;  %v8963_v13 = vld [vmem:[#allocation5 + $0x18] sm:$0xff]  ;;  %v8547_v19 = vadd.f32 %v8515_v7, %v8380_v10 }
 0x41a   : > { %v8995_v39 = vadd.f32 %v14258_v21, %v8963_v13  ;;  %v8962_v5 = vld [vmem:[#allocation5 + $0x10] sm:$0xff]  ;;  %8580 = vst.msk [vmem:[#allocation5 + $0x38] sm:$0xff] %vm327_vm2, %v8548_v63  ;;  %v8521_v13 = vld [vmem:[#allocation5 + $0x60] sm:$0xff] }
 0x41b   : > { %v8994_v56 = vadd.f32 %v8962_v5, %v14261_v35  ;;  %8579 = vst.msk [vmem:[#allocation5 + $0x30] sm:$0xff] %vm327_vm2, %v8547_v19  ;;  %v11446_v57 = vpop.f32.mrb[26].mxu1 }
 0x41c   : > { %9027 = vst.msk [vmem:[#allocation5 + $0x18] sm:$0xff] %vm327_vm2, %v8995_v39  ;;  %v8550_v38 = vadd.f32 %v11446_v57, %v8518_v31  ;;  %v8390_v34 = vpop.f32.mrb[27].mxu1 }
 0x41d   : > { %9026 = vst.msk [vmem:[#allocation5 + $0x10] sm:$0xff] %vm327_vm2, %v8994_v56  ;;  %v8965_v21 = vld [vmem:[#allocation5 + $0x28] sm:$0xff]  ;;  %v8549_v15 = vadd.f32 %v8517_v25, %v8390_v34 }
 0x41e   : > { %v8997_v35 = vadd.f32 %v14268_v8, %v8965_v21  ;;  %v8964_v48 = vld [vmem:[#allocation5 + $0x20] sm:$0xff]  ;;  %8582 = vst.msk [vmem:[#allocation5 + $0x48] sm:$0xff] %vm327_vm2, %v8550_v38  ;;  %v8524_v21 = vld [vmem:[#allocation5 + $0x78] sm:$0xff] }
 0x41f   : > { %v9057_v20 = vld [vmem:[#allocation5 + $0x8] sm:$0xff]  ;;  %v8996_v44 = vadd.f32 %v8964_v48, %v14271_v11  ;;  %8581 = vst.msk [vmem:[#allocation5 + $0x40] sm:$0xff] %vm327_vm2, %v8549_v15  ;;  %v11449_v18 = vpop.f32.mrb[28].mxu1 }
 0x420   : > { %v9096_v42 = vadd.f32 %v14437_v28, %v9057_v20  ;;  %v9056_v53 = vld [vmem:[#allocation5] sm:$0xff]  ;;  %9029 = vst.msk [vmem:[#allocation5 + $0x28] sm:$0xff] %vm327_vm2, %v8997_v35  ;;  %v8552_v51 = vadd.f32 %v11449_v18, %v8520_v2  ;;  %v8400_v61 = vpop.f32.mrb[29].mxu1  ;;  %v8523_v20 = vld [vmem:[#allocation5 + $0x70] sm:$0xff] }
 0x421   : > { %v9095_v8 = vadd.f32 %v14437_v28, %v9056_v53  ;;  %9028 = vst.msk [vmem:[#allocation5 + $0x20] sm:$0xff] %vm327_vm2, %v8996_v44  ;;  %v8967_v11 = vld [vmem:[#allocation5 + $0x38] sm:$0xff]  ;;  %v8551_v4 = vadd.f32 %v8519_v23, %v8400_v61 }
 0x422   : > { %v9128_v59 = vmax.f32 %v9096_v42, 0.0  ;;  %v8999_v3 = vadd.f32 %v14278_v0, %v8967_v11  ;;  %v8966_v12 = vld [vmem:[#allocation5 + $0x30] sm:$0xff]  ;;  %8584 = vst.msk [vmem:[#allocation5 + $0x58] sm:$0xff] %vm327_vm2, %v8552_v51  ;;  %v8526_v11 = vld [vmem:[#allocation5 + $0x88] sm:$0xff] }
 0x423   : > { %v9127_v24 = vmax.f32 %v9095_v8, 0.0  ;;  %v9059_v60 = vld [vmem:[#allocation5 + $0x18] sm:$0xff]  ;;  %v8998_v50 = vadd.f32 %v8966_v12, %v14281_v40  ;;  %8583 = vst.msk [vmem:[#allocation5 + $0x50] sm:$0xff] %vm327_vm2, %v8551_v4  ;;  %v11452_v32 = vpop.f32.mrb[30].mxu1  ;;  %v8525_v12 = vld [vmem:[#allocation5 + $0x80] sm:$0xff] }
 0x424   : > { %9160 = vst.msk [vmem:[%s14451_s27 + $0x8] sm:$0xff] %vm327_vm2, %v9128_v59  ;;  %v9098_v63 = vadd.f32 %v14437_v28, %v9059_v60  ;;  %v9058_v10 = vld [vmem:[#allocation5 + $0x10] sm:$0xff]  ;;  %9031 = vst.msk [vmem:[#allocation5 + $0x38] sm:$0xff] %vm327_vm2, %v8999_v3  ;;  %v8554_v0 = vadd.f32 %v11452_v32, %v8522_v52  ;;  %v8410_v7 = vpop.f32.mrb[31].mxu1 }
 0x425   : > { %9159 = vst.msk [vmem:[%s14451_s27] sm:$0xff] %vm327_vm2, %v9127_v24  ;;  %v9097_v19 = vadd.f32 %v14437_v28, %v9058_v10  ;;  %9030 = vst.msk [vmem:[#allocation5 + $0x30] sm:$0xff] %vm327_vm2, %v8998_v50  ;;  %v8969_v40 = vld [vmem:[#allocation5 + $0x48] sm:$0xff]  ;;  %v8553_v39 = vadd.f32 %v8521_v13, %v8410_v7  ;;  %v8528_v13 = vld [vmem:[#allocation5 + $0x98] sm:$0xff] }
 0x426   : > { %v9130_v5 = vmax.f32 %v9098_v63, 0.0  ;;  %v9001_v56 = vadd.f32 %v14288_v30, %v8969_v40  ;;  %v8968_v57 = vld [vmem:[#allocation5 + $0x40] sm:$0xff]  ;;  %8586 = vst.msk [vmem:[#allocation5 + $0x68] sm:$0xff] %vm327_vm2, %v8554_v0 }
 0x427   : > { %v9129_v31 = vmax.f32 %v9097_v19, 0.0  ;;  %v9061_v38 = vld [vmem:[#allocation5 + $0x28] sm:$0xff]  ;;  %v9000_v34 = vadd.f32 %v8968_v57, %v14291_v26  ;;  %8585 = vst.msk [vmem:[#allocation5 + $0x60] sm:$0xff] %vm327_vm2, %v8553_v39  ;;  %v11455_v25 = vpop.f32.mrb[32].mxu1 }
 0x428   : > { %9162 = vst.msk [vmem:[%s14451_s27 + $0x18] sm:$0xff] %vm327_vm2, %v9130_v5  ;;  %v9100_v15 = vadd.f32 %v14437_v28, %v9061_v38  ;;  %v9060_v35 = vld [vmem:[#allocation5 + $0x20] sm:$0xff]  ;;  %9033 = vst.msk [vmem:[#allocation5 + $0x48] sm:$0xff] %vm327_vm2, %v9001_v56  ;;  %v8556_v30 = vadd.f32 %v11455_v25, %v8524_v21  ;;  %v8420_v48 = vpop.f32.mrb[33].mxu1  ;;  %v8527_v5 = vld [vmem:[#allocation5 + $0x90] sm:$0xff] }
 0x429   : > { %9161 = vst.msk [vmem:[%s14451_s27 + $0x10] sm:$0xff] %vm327_vm2, %v9129_v31  ;;  %v9099_v44 = vadd.f32 %v14437_v28, %v9060_v35  ;;  %9032 = vst.msk [vmem:[#allocation5 + $0x40] sm:$0xff] %vm327_vm2, %v9000_v34  ;;  %v8971_v26 = vld [vmem:[#allocation5 + $0x58] sm:$0xff]  ;;  %v8555_v18 = vadd.f32 %v8523_v20, %v8420_v48 }
 0x42a   : > { %v9132_v2 = vmax.f32 %v9100_v15, 0.0  ;;  %v9003_v42 = vadd.f32 %v14298_v49, %v8971_v26  ;;  %v8970_v53 = vld [vmem:[#allocation5 + $0x50] sm:$0xff]  ;;  %8588 = vst.msk [vmem:[#allocation5 + $0x78] sm:$0xff] %vm327_vm2, %v8556_v30  ;;  %v8530_v30 = vld [vmem:[#allocation5 + $0xa8] sm:$0xff]  ;;  %v8529_v26 = vld [vmem:[#allocation5 + $0xa0] sm:$0xff] }
 0x42b   : > { %v9131_v51 = vmax.f32 %v9099_v44, 0.0  ;;  %v9063_v61 = vld [vmem:[#allocation5 + $0x38] sm:$0xff]  ;;  %v9002_v23 = vadd.f32 %v8970_v53, %v14301_v14  ;;  %8587 = vst.msk [vmem:[#allocation5 + $0x70] sm:$0xff] %vm327_vm2, %v8555_v18  ;;  %v11458_v8 = vpop.f32.mrb[34].mxu1 }
 0x42c   : > { %9164 = vst.msk [vmem:[%s14451_s27 + $0x28] sm:$0xff] %vm327_vm2, %v9132_v2  ;;  %v9102_v4 = vadd.f32 %v14437_v28, %v9063_v61  ;;  %v9062_v59 = vld [vmem:[#allocation5 + $0x30] sm:$0xff]  ;;  %9035 = vst.msk [vmem:[#allocation5 + $0x58] sm:$0xff] %vm327_vm2, %v9003_v42  ;;  %v8558_v49 = vadd.f32 %v11458_v8, %v8526_v11  ;;  %v8430_v3 = vpop.f32.mrb[35].mxu1 }
 0x42d   : > { %9163 = vst.msk [vmem:[%s14451_s27 + $0x20] sm:$0xff] %vm327_vm2, %v9131_v51  ;;  %v9101_v24 = vadd.f32 %v14437_v28, %v9062_v59  ;;  %9034 = vst.msk [vmem:[#allocation5 + $0x50] sm:$0xff] %vm327_vm2, %v9002_v23  ;;  %v8973_v14 = vld [vmem:[#allocation5 + $0x68] sm:$0xff]  ;;  %v8557_v60 = vadd.f32 %v8525_v12, %v8430_v3  ;;  %v8531_v12 = vld [vmem:[#allocation5 + $0xb0] sm:$0xff] }
 0x42e   : > { %v9134_v50 = vmax.f32 %v9102_v4, 0.0  ;;  %v9005_v32 = vadd.f32 %v14308_v45, %v8973_v14  ;;  %v8972_v52 = vld [vmem:[#allocation5 + $0x60] sm:$0xff]  ;;  %8590 = vst.msk [vmem:[#allocation5 + $0x88] sm:$0xff] %vm327_vm2, %v8558_v49  ;;  %v8532_v4 = vld [vmem:[#allocation5 + $0xb8] sm:$0xff] }
 0x42f   : > { %v9133_v63 = vmax.f32 %v9101_v24, 0.0  ;;  %v9065_v10 = vld [vmem:[#allocation5 + $0x48] sm:$0xff]  ;;  %v9004_v0 = vadd.f32 %v8972_v52, %v14311_v22  ;;  %8589 = vst.msk [vmem:[#allocation5 + $0x80] sm:$0xff] %vm327_vm2, %v8557_v60  ;;  %v11461_v7 = vpop.f32.mrb[36].mxu1 }
 0x430   : > { %9166 = vst.msk [vmem:[%s14451_s27 + $0x38] sm:$0xff] %vm327_vm2, %v9134_v50  ;;  %v9104_v19 = vadd.f32 %v14437_v28, %v9065_v10  ;;  %v9064_v40 = vld [vmem:[#allocation5 + $0x40] sm:$0xff]  ;;  %9037 = vst.msk [vmem:[#allocation5 + $0x68] sm:$0xff] %vm327_vm2, %v9005_v32  ;;  %v8560_v45 = vadd.f32 %v11461_v7, %v8528_v13  ;;  %v8440_v39 = vpop.f32.mrb[37].mxu1  ;;  %v8534_v7 = vld [vmem:[#allocation5 + $0xc8] sm:$0xff] }
 0x431   : > { %9165 = vst.msk [vmem:[%s14451_s27 + $0x30] sm:$0xff] %vm327_vm2, %v9133_v63  ;;  %v9103_v56 = vadd.f32 %v14437_v28, %v9064_v40  ;;  %9036 = vst.msk [vmem:[#allocation5 + $0x60] sm:$0xff] %vm327_vm2, %v9004_v0  ;;  %v8975_v22 = vld [vmem:[#allocation5 + $0x78] sm:$0xff]  ;;  %v8559_v57 = vadd.f32 %v8527_v5, %v8440_v39 }
 0x432   : > { %v9136_v31 = vmax.f32 %v9104_v19, 0.0  ;;  %v9007_v38 = vadd.f32 %v14318_v9, %v8975_v22  ;;  %v8974_v34 = vld [vmem:[#allocation5 + $0x70] sm:$0xff]  ;;  %8592 = vst.msk [vmem:[#allocation5 + $0x98] sm:$0xff] %vm327_vm2, %v8560_v45  ;;  %v8533_v45 = vld [vmem:[#allocation5 + $0xc0] sm:$0xff] }
 0x433   : > { %v9135_v25 = vmax.f32 %v9103_v56, 0.0  ;;  %v9067_v21 = vld [vmem:[#allocation5 + $0x58] sm:$0xff]  ;;  %v9006_v15 = vadd.f32 %v8974_v34, %v14321_v46  ;;  %8591 = vst.msk [vmem:[#allocation5 + $0x90] sm:$0xff] %vm327_vm2, %v8559_v57  ;;  %v11464_v35 = vpop.f32.mrb[38].mxu1 }
 0x434   : > { %9168 = vst.msk [vmem:[%s14451_s27 + $0x48] sm:$0xff] %vm327_vm2, %v9136_v31  ;;  %v9106_v48 = vadd.f32 %v14437_v28, %v9067_v21  ;;  %v9066_v20 = vld [vmem:[#allocation5 + $0x50] sm:$0xff]  ;;  %9039 = vst.msk [vmem:[#allocation5 + $0x78] sm:$0xff] %vm327_vm2, %v9007_v38  ;;  %v8562_v9 = vadd.f32 %v11464_v35, %v8530_v30  ;;  %v8450_v44 = vpop.f32.mrb[39].mxu1  ;;  %v8536_v21 = vld [vmem:[#allocation5 + $0xd8] sm:$0xff] }
 0x435   : > { %9167 = vst.msk [vmem:[%s14451_s27 + $0x40] sm:$0xff] %vm327_vm2, %v9135_v25  ;;  %v9105_v18 = vadd.f32 %v14437_v28, %v9066_v20  ;;  %9038 = vst.msk [vmem:[#allocation5 + $0x70] sm:$0xff] %vm327_vm2, %v9006_v15  ;;  %v8977_v46 = vld [vmem:[#allocation5 + $0x88] sm:$0xff]  ;;  %v8561_v2 = vadd.f32 %v8529_v26, %v8450_v44 }
 0x436   : > { %v9138_v42 = vmax.f32 %v9106_v48, 0.0  ;;  %v9009_v53 = vadd.f32 %v14328_v54, %v8977_v46  ;;  %v8976_v51 = vld [vmem:[#allocation5 + $0x80] sm:$0xff]  ;;  %8594 = vst.msk [vmem:[#allocation5 + $0xa8] sm:$0xff] %vm327_vm2, %v8562_v9  ;;  %v8535_v48 = vld [vmem:[#allocation5 + $0xd0] sm:$0xff] }
 0x437   : > { %v9137_v61 = vmax.f32 %v9105_v18, 0.0  ;;  %v9069_v23 = vld [vmem:[#allocation5 + $0x68] sm:$0xff]  ;;  %v9008_v8 = vadd.f32 %v8976_v51, %v14331_v27  ;;  %8593 = vst.msk [vmem:[#allocation5 + $0xa0] sm:$0xff] %vm327_vm2, %v8561_v2  ;;  %v11467_v11 = vpop.f32.mrb[40].mxu1 }
 0x438   : > { %9170 = vst.msk [vmem:[%s14451_s27 + $0x58] sm:$0xff] %vm327_vm2, %v9138_v42  ;;  %v9108_v59 = vadd.f32 %v14437_v28, %v9069_v23  ;;  %v9068_v49 = vld [vmem:[#allocation5 + $0x60] sm:$0xff]  ;;  %9041 = vst.msk [vmem:[#allocation5 + $0x88] sm:$0xff] %vm327_vm2, %v9009_v53  ;;  %v8564_v54 = vadd.f32 %v11467_v11, %v8532_v4  ;;  %v8460_v3 = vpop.f32.mrb[41].mxu1  ;;  %v8538_v51 = vld [vmem:[#allocation5 + $0xe8] sm:$0xff] }
 0x439   : > { %9169 = vst.msk [vmem:[%s14451_s27 + $0x50] sm:$0xff] %vm327_vm2, %v9137_v61  ;;  %v9107_v24 = vadd.f32 %v14437_v28, %v9068_v49  ;;  %9040 = vst.msk [vmem:[#allocation5 + $0x80] sm:$0xff] %vm327_vm2, %v9008_v8  ;;  %v8979_v27 = vld [vmem:[#allocation5 + $0x98] sm:$0xff]  ;;  %v8563_v14 = vadd.f32 %v8531_v12, %v8460_v3  ;;  %v8537_v11 = vld [vmem:[#allocation5 + $0xe0] sm:$0xff] }
 0x43a   : > { %v9140_v60 = vmax.f32 %v9108_v59, 0.0  ;;  %v9011_v50 = vadd.f32 %v14338_v16, %v8979_v27  ;;  %v8978_v32 = vld [vmem:[#allocation5 + $0x90] sm:$0xff]  ;;  %8596 = vst.msk [vmem:[#allocation5 + $0xb8] sm:$0xff] %vm327_vm2, %v8564_v54 }
 0x43b   : > { %v9139_v52 = vmax.f32 %v9107_v24, 0.0  ;;  %v9071_v63 = vld [vmem:[#allocation5 + $0x78] sm:$0xff]  ;;  %v9010_v10 = vadd.f32 %v8978_v32, %v14341_v6  ;;  %8595 = vst.msk [vmem:[#allocation5 + $0xb0] sm:$0xff] %vm327_vm2, %v8563_v14  ;;  %v11470_v0 = vpop.f32.mrb[42].mxu1 }
 0x43c   : > { %9172 = vst.msk [vmem:[%s14451_s27 + $0x68] sm:$0xff] %vm327_vm2, %v9140_v60  ;;  %v9110_v13 = vadd.f32 %v14437_v28, %v9071_v63  ;;  %v9070_v19 = vld [vmem:[#allocation5 + $0x70] sm:$0xff]  ;;  %9043 = vst.msk [vmem:[#allocation5 + $0x98] sm:$0xff] %vm327_vm2, %v9011_v50  ;;  %v8566_v16 = vadd.f32 %v11470_v0, %v8534_v7  ;;  %v8470_v40 = vpop.f32.mrb[43].mxu1  ;;  %v8540_v60 = vld [vmem:[#allocation5 + $0xf8] sm:$0xff] }
 0x43d   : > { %9171 = vst.msk [vmem:[%s14451_s27 + $0x60] sm:$0xff] %vm327_vm2, %v9139_v52  ;;  %v9109_v39 = vadd.f32 %v14437_v28, %v9070_v19  ;;  %9042 = vst.msk [vmem:[#allocation5 + $0x90] sm:$0xff] %vm327_vm2, %v9010_v10  ;;  %v8981_v6 = vld [vmem:[#allocation5 + $0xa8] sm:$0xff]  ;;  %v8565_v5 = vadd.f32 %v8533_v45, %v8470_v40  ;;  %v8539_v63 = vld [vmem:[#allocation5 + $0xf0] sm:$0xff] }
 0x43e   : > { %v9142_v56 = vmax.f32 %v9110_v13, 0.0  ;;  %v9013_v22 = vadd.f32 %v14348_v17, %v8981_v6  ;;  %v8980_v57 = vld [vmem:[#allocation5 + $0xa0] sm:$0xff]  ;;  %8598 = vst.msk [vmem:[#allocation5 + $0xc8] sm:$0xff] %vm327_vm2, %v8566_v16 }
 0x43f   : > { %v9141_v31 = vmax.f32 %v9109_v39, 0.0  ;;  %v9073_v38 = vld [vmem:[#allocation5 + $0x88] sm:$0xff]  ;;  %v9012_v34 = vadd.f32 %v8980_v57, %v14351_v33  ;;  %8597 = vst.msk [vmem:[#allocation5 + $0xc0] sm:$0xff] %vm327_vm2, %v8565_v5  ;;  %v11473_v25 = vpop.f32.mrb[44].mxu1 }
 0x440   : > { %9174 = vst.msk [vmem:[%s14451_s27 + $0x78] sm:$0xff] %vm327_vm2, %v9142_v56  ;;  %v9112_v15 = vadd.f32 %v14437_v28, %v9073_v38  ;;  %v9072_v35 = vld [vmem:[#allocation5 + $0x80] sm:$0xff]  ;;  %9045 = vst.msk [vmem:[#allocation5 + $0xa8] sm:$0xff] %vm327_vm2, %v9013_v22  ;;  %v8568_v17 = vadd.f32 %v11473_v25, %v8536_v21  ;;  %v8480_v30 = vpop.f32.mrb[45].mxu1 }
 0x441   : > { %9173 = vst.msk [vmem:[%s14451_s27 + $0x70] sm:$0xff] %vm327_vm2, %v9141_v31  ;;  %v9111_v20 = vadd.f32 %v14437_v28, %v9072_v35  ;;  %9044 = vst.msk [vmem:[#allocation5 + $0xa0] sm:$0xff] %vm327_vm2, %v9012_v34  ;;  %v8983_v33 = vld [vmem:[#allocation5 + $0xb8] sm:$0xff]  ;;  %v8567_v9 = vadd.f32 %v8535_v48, %v8480_v30 }
 0x442   : > { %v9144_v44 = vmax.f32 %v9112_v15, 0.0  ;;  %v9015_v26 = vadd.f32 %v14358_v43, %v8983_v33  ;;  %v8982_v18 = vld [vmem:[#allocation5 + $0xb0] sm:$0xff]  ;;  %8600 = vst.msk [vmem:[#allocation5 + $0xd8] sm:$0xff] %vm327_vm2, %v8568_v17 }
 0x443   : > { %v9143_v46 = vmax.f32 %v9111_v20, 0.0  ;;  %v9075_v2 = vld [vmem:[#allocation5 + $0x98] sm:$0xff]  ;;  %v9014_v42 = vadd.f32 %v8982_v18, %v14361_v41  ;;  %8599 = vst.msk [vmem:[#allocation5 + $0xd0] sm:$0xff] %vm327_vm2, %v8567_v9  ;;  %v11476_v53 = vpop.f32.mrb[46].mxu1 }
 0x444   : > { %9176 = vst.msk [vmem:[%s14451_s27 + $0x88] sm:$0xff] %vm327_vm2, %v9144_v44  ;;  %v9114_v61 = vadd.f32 %v14437_v28, %v9075_v2  ;;  %v9074_v23 = vld [vmem:[#allocation5 + $0x90] sm:$0xff]  ;;  %9047 = vst.msk [vmem:[#allocation5 + $0xb8] sm:$0xff] %vm327_vm2, %v9015_v26  ;;  %v8570_v43 = vadd.f32 %v11476_v53, %v8538_v51  ;;  %v8490_v8 = vpop.f32.mrb[47].mxu1 }
 0x445   : > { %9175 = vst.msk [vmem:[%s14451_s27 + $0x80] sm:$0xff] %vm327_vm2, %v9143_v46  ;;  %v9113_v4 = vadd.f32 %v14437_v28, %v9074_v23  ;;  %9046 = vst.msk [vmem:[#allocation5 + $0xb0] sm:$0xff] %vm327_vm2, %v9014_v42  ;;  %v8985_v41 = vld [vmem:[#allocation5 + $0xc8] sm:$0xff]  ;;  %v8569_v59 = vadd.f32 %v8537_v11, %v8490_v8 }
 0x446   : > { %v9146_v49 = vmax.f32 %v9114_v61, 0.0  ;;  %v9017_v54 = vadd.f32 %v14368_v62, %v8985_v41  ;;  %v8984_v3 = vld [vmem:[#allocation5 + $0xc0] sm:$0xff]  ;;  %8602 = vst.msk [vmem:[#allocation5 + $0xe8] sm:$0xff] %vm327_vm2, %v8570_v43 }
 0x447   : > { %v9145_v12 = vmax.f32 %v9113_v4, 0.0  ;;  %v9077_v24 = vld [vmem:[#allocation5 + $0xa8] sm:$0xff]  ;;  %v9016_v27 = vadd.f32 %v8984_v3, %v14371_v37  ;;  %8601 = vst.msk [vmem:[#allocation5 + $0xe0] sm:$0xff] %vm327_vm2, %v8569_v59  ;;  %v11479_v14 = vpop.f32.mrb[48].mxu1 }
 0x448   : > { %9178 = vst.msk [vmem:[%s14451_s27 + $0x98] sm:$0xff] %vm327_vm2, %v9146_v49  ;;  %v9116_v50 = vadd.f32 %v14437_v28, %v9077_v24  ;;  %v9076_v32 = vld [vmem:[#allocation5 + $0xa0] sm:$0xff]  ;;  %9049 = vst.msk [vmem:[#allocation5 + $0xc8] sm:$0xff] %vm327_vm2, %v9017_v54  ;;  %v8572_v62 = vadd.f32 %v11479_v14, %v8540_v60  ;;  %v8500_v52 = vpop.f32.mrb[49].mxu1 }
 0x449   : > { %9177 = vst.msk [vmem:[%s14451_s27 + $0x90] sm:$0xff] %vm327_vm2, %v9145_v12  ;;  %v9115_v10 = vadd.f32 %v14437_v28, %v9076_v32  ;;  %9048 = vst.msk [vmem:[#allocation5 + $0xc0] sm:$0xff] %vm327_vm2, %v9016_v27  ;;  %v8987_v37 = vld [vmem:[#allocation5 + $0xd8] sm:$0xff]  ;;  %v8571_v0 = vadd.f32 %v8539_v63, %v8500_v52 }
 0x44a   : > { %v9148_v7 = vmax.f32 %v9116_v50, 0.0  ;;  %v9019_v13 = vadd.f32 %v14378_v1, %v8987_v37  ;;  %v8986_v19 = vld [vmem:[#allocation5 + $0xd0] sm:$0xff]  ;;  %8604 = vst.msk [vmem:[#allocation5 + $0xf8] sm:$0xff] %vm327_vm2, %v8572_v62 }
 0x44b   : > { %v9147_v16 = vmax.f32 %v9115_v10, 0.0  ;;  %v9079_v40 = vld [vmem:[#allocation5 + $0xb8] sm:$0xff]  ;;  %v9018_v45 = vadd.f32 %v8986_v19, %v14381_v36  ;;  %8603 = vst.msk [vmem:[#allocation5 + $0xf0] sm:$0xff] %vm327_vm2, %v8571_v0 }
 0x44c   : > { %9180 = vst.msk [vmem:[%s14451_s27 + $0xa8] sm:$0xff] %vm327_vm2, %v9148_v7  ;;  %v9118_v39 = vadd.f32 %v14437_v28, %v9079_v40  ;;  %v9078_v6 = vld [vmem:[#allocation5 + $0xb0] sm:$0xff]  ;;  %9051 = vst.msk [vmem:[#allocation5 + $0xd8] sm:$0xff] %vm327_vm2, %v9019_v13 }
 0x44d   : > { %9179 = vst.msk [vmem:[%s14451_s27 + $0xa0] sm:$0xff] %vm327_vm2, %v9147_v16  ;;  %v9117_v1 = vadd.f32 %v14437_v28, %v9078_v6  ;;  %9050 = vst.msk [vmem:[#allocation5 + $0xd0] sm:$0xff] %vm327_vm2, %v9018_v45  ;;  %v8989_v5 = vld [vmem:[#allocation5 + $0xe8] sm:$0xff] }
 0x44e   : > { %v9150_v56 = vmax.f32 %v9118_v39, 0.0  ;;  %v9021_v36 = vadd.f32 %v14388_v29, %v8989_v5  ;;  %v8988_v22 = vld [vmem:[#allocation5 + $0xe0] sm:$0xff] }
 0x44f   : > { %v9149_v57 = vmax.f32 %v9117_v1, 0.0  ;;  %v9081_v31 = vld [vmem:[#allocation5 + $0xc8] sm:$0xff]  ;;  %v9020_v38 = vadd.f32 %v8988_v22, %v14391_v55 }
 0x450   : > { %9182 = vst.msk [vmem:[%s14451_s27 + $0xb8] sm:$0xff] %vm327_vm2, %v9150_v56  ;;  %v9120_v34 = vadd.f32 %v14437_v28, %v9081_v31  ;;  %v9080_v25 = vld [vmem:[#allocation5 + $0xc0] sm:$0xff]  ;;  %9053 = vst.msk [vmem:[#allocation5 + $0xe8] sm:$0xff] %vm327_vm2, %v9021_v36 }
 0x451   : > { %9181 = vst.msk [vmem:[%s14451_s27 + $0xb0] sm:$0xff] %vm327_vm2, %v9149_v57  ;;  %v9119_v21 = vadd.f32 %v14437_v28, %v9080_v25  ;;  %9052 = vst.msk [vmem:[#allocation5 + $0xe0] sm:$0xff] %vm327_vm2, %v9020_v38  ;;  %v8991_v29 = vld [vmem:[#allocation5 + $0xf8] sm:$0xff] }
 0x452   : > { %v9152_v15 = vmax.f32 %v9120_v34, 0.0  ;;  %v9023_v35 = vadd.f32 %v14399_v47, %v8991_v29  ;;  %v8990_v55 = vld [vmem:[#allocation5 + $0xf0] sm:$0xff] }
 0x453   : > { %v9151_v17 = vmax.f32 %v9119_v21, 0.0  ;;  %v9083_v30 = vld [vmem:[#allocation5 + $0xd8] sm:$0xff]  ;;  %v9022_v48 = vadd.f32 %v8990_v55, %v14402_v58 }
 0x454   : > { %9184 = vst.msk [vmem:[%s14451_s27 + $0xc8] sm:$0xff] %vm327_vm2, %v9152_v15  ;;  %v9122_v20 = vadd.f32 %v14437_v28, %v9083_v30  ;;  %v9082_v33 = vld [vmem:[#allocation5 + $0xd0] sm:$0xff]  ;;  %9055 = vst.msk [vmem:[#allocation5 + $0xf8] sm:$0xff] %vm327_vm2, %v9023_v35 }
 0x455   : > { %9183 = vst.msk [vmem:[%s14451_s27 + $0xc0] sm:$0xff] %vm327_vm2, %v9151_v17  ;;  %v9121_v9 = vadd.f32 %v14437_v28, %v9082_v33  ;;  %9054 = vst.msk [vmem:[#allocation5 + $0xf0] sm:$0xff] %vm327_vm2, %v9022_v48 }
 0x456   : > { %v9154_v47 = vmax.f32 %v9122_v20, 0.0 }
 0x457   : > { %v9153_v44 = vmax.f32 %v9121_v9, 0.0  ;;  %v9085_v26 = vld [vmem:[#allocation5 + $0xe8] sm:$0xff] }
 0x458   : > { %9186 = vst.msk [vmem:[%s14451_s27 + $0xd8] sm:$0xff] %vm327_vm2, %v9154_v47  ;;  %v9124_v58 = vadd.f32 %v14437_v28, %v9085_v26  ;;  %v9084_v18 = vld [vmem:[#allocation5 + $0xe0] sm:$0xff] }
 0x459   : > { %9185 = vst.msk [vmem:[%s14451_s27 + $0xd0] sm:$0xff] %vm327_vm2, %v9153_v44  ;;  %v9123_v46 = vadd.f32 %v14437_v28, %v9084_v18 }
 0x45a   : > { %v9156_v2 = vmax.f32 %v9124_v58, 0.0 }
 0x45b   : > { %v9155_v42 = vmax.f32 %v9123_v46, 0.0  ;;  %v9087_v53 = vld [vmem:[#allocation5 + $0xf8] sm:$0xff] }
 0x45c   : > { %9188 = vst.msk [vmem:[%s14451_s27 + $0xe8] sm:$0xff] %vm327_vm2, %v9156_v2  ;;  %v9126_v51 = vadd.f32 %v14437_v28, %v9087_v53  ;;  %v9086_v61 = vld [vmem:[#allocation5 + $0xf0] sm:$0xff] }
 0x45d   : > { %9187 = vst.msk [vmem:[%s14451_s27 + $0xe0] sm:$0xff] %vm327_vm2, %v9155_v42  ;;  %v9125_v23 = vadd.f32 %v14437_v28, %v9086_v61 }
 0x45e   : > { %v9158_v43 = vmax.f32 %v9126_v51, 0.0 }
 0x45f   : > { %v9157_v8 = vmax.f32 %v9125_v23, 0.0 }
 0x460   : > { %9190 = vst.msk [vmem:[%s14451_s27 + $0xf8] sm:$0xff] %vm327_vm2, %v9158_v43 }
 0x461   : > { %9189 = vst.msk [vmem:[%s14451_s27 + $0xf0] sm:$0xff] %vm327_vm2, %v9157_v8 }
 0x462 PF: > { %s15_s20 = sadd.s32 1, %s11579_s20   ;;  %s14773_s18 = smov %s11575_s19 }
 0x463   : > { %p12_p5 = scmp.ge.s32.totalorder %s15_s20, 4   ;;  %s14774_s19 = smov %s14776_s21 }
 0x465   :  { %14 = sbr.rel (!%p12_p5) target bundleno = 2 (0x2), region = 116 }

</bundles_post_ra>
